<compile_context>
chip_gen: v6e
topology: v6e:2x2x1
jax: 0.10.0
libtpu: 0.0.40
codegen_flags: <defaults>
</compile_context>

<pallas_src>
import jax
import jax.numpy as jnp
from jax.experimental import pallas as pl
from jax.experimental.pallas import tpu as pltpu


# ------------------------------ fused kernel --------------------------------

def _seq2seq_kernel(tf_ref,                                   # SMEM: int32 [T-1]
                    enc_emb_ref, tgt_emb_ref,                 # [S,B,E], [T-1,B,E]
                    enc_wx_ref, enc_wh_ref, enc_b_ref,        # [E,4H], [H,4H], [1,4H]
                    dec_wx_ref, dec_wh_ref, dec_b_ref,        # [E,4H], [H,4H], [1,4H]
                    dec_emb_ref, fc_w_ref, fc_b_ref,          # [V,E], [H,V], [1,V]
                    out_ref,                                  # [T,B,V]
                    h_scr, c_scr, guess_scr, x_emb_scr):      # [B,H],[B,H],[B,V],[B,E]
    B, H = h_scr.shape
    V = guess_scr.shape[1]
    S = enc_emb_ref.shape[0]
    T1 = tgt_emb_ref.shape[0]

    # outputs[0] stays zero, as in the PyTorch reference (written once, in-kernel).
    out_ref[0] = jnp.zeros((B, V), jnp.float32)

    # state init
    h_scr[...] = jnp.zeros_like(h_scr)
    c_scr[...] = jnp.zeros_like(c_scr)
    guess_scr[...] = jnp.zeros_like(guess_scr)   # only read if tf_sel[0]==0 (never, see wrapper)

    def _cell(x, wx, wh, b, h, c):
        """Split-dot LSTM cell: no lane-axis concatenate; PyTorch gate order i,f,g,o."""
        gates = (jnp.dot(x, wx, preferred_element_type=jnp.float32)
                 + jnp.dot(h, wh, preferred_element_type=jnp.float32) + b)
        i = jax.nn.sigmoid(gates[:, 0 * H:1 * H])
        f = jax.nn.sigmoid(gates[:, 1 * H:2 * H])
        g = jnp.tanh(gates[:, 2 * H:3 * H])
        o = jax.nn.sigmoid(gates[:, 3 * H:4 * H])
        c_new = f * c + i * g
        h_new = o * jnp.tanh(c_new)
        return h_new, c_new

    # ---------------- encoder: unrolled recurrence over source time ----------------
    enc_wx = enc_wx_ref[...]
    enc_wh = enc_wh_ref[...]
    enc_b = enc_b_ref[...]

    def enc_body(t, carry):
        h_new, c_new = _cell(enc_emb_ref[t], enc_wx, enc_wh, enc_b,
                             h_scr[...], c_scr[...])
        h_scr[...] = h_new
        c_scr[...] = c_new
        return carry

    jax.lax.fori_loop(0, S, enc_body, None, unroll=True)

    # ---------------- decoder: unrolled recurrence over target time ----------------
    dec_wx = dec_wx_ref[...]
    dec_wh = dec_wh_ref[...]
    dec_b = dec_b_ref[...]
    fc_w = fc_w_ref[...]
    fc_b = fc_b_ref[...]

    # Hoisted once (JAX does not CSE broadcast_in_dim / iota across steps).
    lane = jax.lax.broadcasted_iota(jnp.int32, (B, V), 1).astype(jnp.float32)

    def dec_body(t, carry):
        tf = tf_ref[t]                                         # int32 scalar from SMEM

        # Teacher-forced step: use pre-embedded target token (no matmul).
        @pl.when(tf > 0)
        def _():
            x_emb_scr[...] = tgt_emb_ref[t]

        # Free-running step: embed the previous argmax via one-hot @ table.
        @pl.when(tf == 0)
        def _():
            x_emb_scr[...] = jnp.dot(guess_scr[...], dec_emb_ref[...],
                                     preferred_element_type=jnp.float32)

        h_new, c_new = _cell(x_emb_scr[...], dec_wx, dec_wh, dec_b,
                             h_scr[...], c_scr[...])

        logits = jnp.dot(h_new, fc_w, preferred_element_type=jnp.float32) + fc_b
        out_ref[t + 1] = logits

        # one-hot(argmax(logits)) for the next step (first max index on ties).
        mx = jnp.max(logits, axis=1, keepdims=True)
        idx = jnp.min(jnp.where(logits == mx, lane, float(V)), axis=1, keepdims=True)
        guess_scr[...] = jnp.where(lane == idx, 1.0, 0.0)

        h_scr[...] = h_new
        c_scr[...] = c_new
        return carry

    jax.lax.fori_loop(0, T1, dec_body, None, unroll=True)


def seq2seq_fused(tf_sel, enc_emb_seq, tgt_emb_seq,
                  enc_wx, enc_wh, enc_b,
                  dec_wx, dec_wh, dec_b,
                  dec_emb, fc_w, fc_b):
    """Single fused kernel for the whole forward. Returns logits [T, B, V]."""
    S, B, E = enc_emb_seq.shape
    T1 = tgt_emb_seq.shape[0]
    T = T1 + 1
    H = enc_wh.shape[0]
    V = fc_w.shape[1]

    grid_spec = pltpu.PrefetchScalarGridSpec(
        num_scalar_prefetch=1,                                  # tf_sel -> SMEM
        grid=(1,),
        in_specs=[
            pl.BlockSpec((S, B, E), lambda i, tf: (0, 0, 0)),   # encoder embeddings (resident)
            pl.BlockSpec((T1, B, E), lambda i, tf: (0, 0, 0)),  # pre-embedded targets (resident)
            pl.BlockSpec((E, 4 * H), lambda i, tf: (0, 0)),     # enc W_x
            pl.BlockSpec((H, 4 * H), lambda i, tf: (0, 0)),     # enc W_h
            pl.BlockSpec((1, 4 * H), lambda i, tf: (0, 0)),     # enc bias
            pl.BlockSpec((E, 4 * H), lambda i, tf: (0, 0)),     # dec W_x
            pl.BlockSpec((H, 4 * H), lambda i, tf: (0, 0)),     # dec W_h
            pl.BlockSpec((1, 4 * H), lambda i, tf: (0, 0)),     # dec bias
            pl.BlockSpec((V, E), lambda i, tf: (0, 0)),         # dec embedding table
            pl.BlockSpec((H, V), lambda i, tf: (0, 0)),         # fc W
            pl.BlockSpec((1, V), lambda i, tf: (0, 0)),         # fc b
        ],
        out_specs=pl.BlockSpec((T, B, V), lambda i, tf: (0, 0, 0)),
        scratch_shapes=[pltpu.VMEM((B, H), jnp.float32),        # h
                        pltpu.VMEM((B, H), jnp.float32),        # c
                        pltpu.VMEM((B, V), jnp.float32),        # prev argmax one-hot
                        pltpu.VMEM((B, E), jnp.float32)],       # current step embedding
    )
    return pl.pallas_call(
        _seq2seq_kernel,
        out_shape=jax.ShapeDtypeStruct((T, B, V), jnp.float32),
        grid_spec=grid_spec,
        compiler_params=pltpu.CompilerParams(dimension_semantics=("arbitrary",)),
    )(tf_sel, enc_emb_seq, tgt_emb_seq,
      enc_wx, enc_wh, enc_b, dec_wx, dec_wh, dec_b,
      dec_emb, fc_w, fc_b)


# ------------------------------ model (glue) --------------------------------

def init_params(key, src_vocab, tgt_vocab, emb, hidden):
    ks = jax.random.split(key, 10)
    s = 0.1
    return {
        # encoder: split input / recurrent weights ([E,4H], [H,4H]); gate order i,f,g,o
        "enc_emb": jax.random.normal(ks[0], (src_vocab, emb), jnp.float32) * s,
        "enc_wx":  jax.random.normal(ks[1], (emb, 4 * hidden), jnp.float32) * s,
        "enc_wh":  jax.random.normal(ks[2], (hidden, 4 * hidden), jnp.float32) * s,
        "enc_b":   jax.random.normal(ks[3], (1, 4 * hidden), jnp.float32) * s,
        # decoder
        "dec_emb": jax.random.normal(ks[4], (tgt_vocab, emb), jnp.float32) * s,
        "dec_wx":  jax.random.normal(ks[5], (emb, 4 * hidden), jnp.float32) * s,
        "dec_wh":  jax.random.normal(ks[6], (hidden, 4 * hidden), jnp.float32) * s,
        "dec_b":   jax.random.normal(ks[7], (1, 4 * hidden), jnp.float32) * s,
        "fc_w":    jax.random.normal(ks[8], (hidden, tgt_vocab), jnp.float32) * s,
        "fc_b":    jax.random.normal(ks[9], (1, tgt_vocab), jnp.float32) * s,
    }


@jax.jit
def seq2seq_forward(params, source, target, tf_key, teacher_force_ratio=0.5):
    """Mirrors seq2seq.forward: returns outputs [target_len, B, tgt_vocab]."""
    T, B = target.shape

    # Embedding gathers done once outside the kernel (single XLA gather each).
    enc_emb_seq = jnp.take(params["enc_emb"], source, axis=0)        # [S, B, E]
    tgt_emb_seq = jnp.take(params["dec_emb"], target[:-1], axis=0)   # [T-1, B, E]

    # Teacher-forcing decisions precomputed (runtime-random under jit).
    tf_rand = jax.random.uniform(tf_key, (T - 1,))
    tf_sel = (tf_rand < teacher_force_ratio).astype(jnp.int32)
    tf_sel = tf_sel.at[0].set(1)          # step 0 always uses target[0], as in the reference

    return seq2seq_fused(tf_sel, enc_emb_seq, tgt_emb_seq,
                         params["enc_wx"], params["enc_wh"], params["enc_b"],
                         params["dec_wx"], params["dec_wh"], params["dec_b"],
                         params["dec_emb"], params["fc_w"], params["fc_b"])


# ---------------------- pure-JAX reference (for checking) -------------------

def _reference_forward(params, source, target, tf_sel):
    S, B = source.shape
    T, _ = target.shape
    H = params["fc_w"].shape[0]
    V = params["fc_w"].shape[1]

    def lstm(x, h, c, wx, wh, b):
        gates = x @ wx + h @ wh + b
        i, f, g, o = jnp.split(gates, 4, axis=-1)
        c = jax.nn.sigmoid(f) * c + jax.nn.sigmoid(i) * jnp.tanh(g)
        h = jax.nn.sigmoid(o) * jnp.tanh(c)
        return h, c

    h = jnp.zeros((B, H), jnp.float32)
    c = jnp.zeros((B, H), jnp.float32)
    emb = jnp.take(params["enc_emb"], source, axis=0)
    for t in range(S):
        h, c = lstm(emb[t], h, c, params["enc_wx"], params["enc_wh"], params["enc_b"])

    outputs = [jnp.zeros((B, V), jnp.float32)]
    x = target[0]
    for t in range(1, T):
        x_emb = jnp.take(params["dec_emb"], x, axis=0)
        h, c = lstm(x_emb, h, c, params["dec_wx"], params["dec_wh"], params["dec_b"])
        logits = h @ params["fc_w"] + params["fc_b"]
        outputs.append(logits)
        if t < T - 1:
            best = jnp.argmax(logits, axis=1).astype(jnp.int32)
            x = jnp.where(tf_sel[t] > 0, target[t], best)
    return jnp.stack(outputs, axis=0)


# --------------------------------- driver -----------------------------------

if __name__ == "__main__":
    # Small, lane-dense sizes (last dims multiples of 128, batch multiple of 8).
    SRC_VOCAB = 128
    TGT_VOCAB = 128
    EMB = 128
    HIDDEN = 128
    SRC_LEN = 8
    TGT_LEN = 8
    BATCH = 8

    key = jax.random.PRNGKey(0)
    kp, ks, kt, kf = jax.random.split(key, 4)

    params = init_params(kp, SRC_VOCAB, TGT_VOCAB, EMB, HIDDEN)
    source = jax.random.randint(ks, (SRC_LEN, BATCH), 0, SRC_VOCAB, dtype=jnp.int32)
    target = jax.random.randint(kt, (TGT_LEN, BATCH), 0, TGT_VOCAB, dtype=jnp.int32)

    # Correctness check with teacher_force_ratio=1.0 (fully teacher-forced path,
    # deterministic regardless of the RNG key) against a pure-JAX reference.
    out_tf1 = jax.block_until_ready(seq2seq_forward(params, source, target, kf, 1.0))
    ref_tf1 = _reference_forward(params, source, target,
                                 jnp.ones((TGT_LEN - 1,), jnp.int32))
    assert out_tf1.shape == (TGT_LEN, BATCH, TGT_VOCAB)
    assert jnp.allclose(out_tf1, ref_tf1, atol=1e-4, rtol=1e-4), \
        float(jnp.max(jnp.abs(out_tf1 - ref_tf1)))

    # Standard run with teacher_force_ratio=0.5 (exercises in-kernel argmax feedback
    # and the pl.when-guarded one-hot @ embedding matmul path).
    outputs = jax.block_until_ready(seq2seq_forward(params, source, target, kf, 0.5))
    assert outputs.shape == (TGT_LEN, BATCH, TGT_VOCAB)
    assert outputs.dtype == jnp.float32
    assert bool(jnp.all(outputs[0] == 0.0))

    print("KERNEL_OK")
</pallas_src>

<mosaic_0001>
module attributes {stable_mosaic.version = 11 : i64} {
  func.func @_seq2seq_kernel(%arg0: i32, %arg1: memref<7xi32, #tpu.memory_space<smem>>, %arg2: memref<8x8x128xf32, #tpu.memory_space<vmem>>, %arg3: memref<7x8x128xf32, #tpu.memory_space<vmem>>, %arg4: memref<128x512xf32, #tpu.memory_space<vmem>>, %arg5: memref<128x512xf32, #tpu.memory_space<vmem>>, %arg6: memref<1x512xf32, #tpu.memory_space<vmem>>, %arg7: memref<128x512xf32, #tpu.memory_space<vmem>>, %arg8: memref<128x512xf32, #tpu.memory_space<vmem>>, %arg9: memref<1x512xf32, #tpu.memory_space<vmem>>, %arg10: memref<128x128xf32, #tpu.memory_space<vmem>>, %arg11: memref<128x128xf32, #tpu.memory_space<vmem>>, %arg12: memref<1x128xf32, #tpu.memory_space<vmem>>, %arg13: memref<8x8x128xf32, #tpu.memory_space<vmem>>, %arg14: memref<8x128xf32, #tpu.memory_space<vmem>>, %arg15: memref<8x128xf32, #tpu.memory_space<vmem>>, %arg16: memref<8x128xf32, #tpu.memory_space<vmem>>, %arg17: memref<8x128xf32, #tpu.memory_space<vmem>>) attributes {dimension_semantics = [#tpu.dimension_semantics<arbitrary>], iteration_bounds = array<i64: 1>, scalar_prefetch = 1 : i64, scratch_operands = 4 : i64, tpu.core_type = #tpu.core_type<tc>, window_params = [{pipeline_mode = #tpu.pipeline_mode<synchronous>, transform_indices = @transform_0, window_bounds = array<i64: 8, 8, 128>}, {pipeline_mode = #tpu.pipeline_mode<synchronous>, transform_indices = @transform_1, window_bounds = array<i64: 7, 8, 128>}, {pipeline_mode = #tpu.pipeline_mode<synchronous>, transform_indices = @transform_2, window_bounds = array<i64: 128, 512>}, {pipeline_mode = #tpu.pipeline_mode<synchronous>, transform_indices = @transform_3, window_bounds = array<i64: 128, 512>}, {pipeline_mode = #tpu.pipeline_mode<synchronous>, transform_indices = @transform_4, window_bounds = array<i64: 1, 512>}, {pipeline_mode = #tpu.pipeline_mode<synchronous>, transform_indices = @transform_5, window_bounds = array<i64: 128, 512>}, {pipeline_mode = #tpu.pipeline_mode<synchronous>, transform_indices = @transform_6, window_bounds = array<i64: 128, 512>}, {pipeline_mode = #tpu.pipeline_mode<synchronous>, transform_indices = @transform_7, window_bounds = array<i64: 1, 512>}, {pipeline_mode = #tpu.pipeline_mode<synchronous>, transform_indices = @transform_8, window_bounds = array<i64: 128, 128>}, {pipeline_mode = #tpu.pipeline_mode<synchronous>, transform_indices = @transform_9, window_bounds = array<i64: 128, 128>}, {pipeline_mode = #tpu.pipeline_mode<synchronous>, transform_indices = @transform_10, window_bounds = array<i64: 1, 128>}, {pipeline_mode = #tpu.pipeline_mode<synchronous>, transform_indices = @transform_11, window_bounds = array<i64: 8, 8, 128>}]} {
    %cst = arith.constant 0.000000e+00 : f32
    %0 = vector.broadcast %cst : f32 to vector<8x128xf32>
    %c0 = arith.constant 0 : index
    %c0_0 = arith.constant 0 : index
    %c0_1 = arith.constant 0 : index
    %1 = vector.load %arg13[%c0, %c0_0, %c0_1] : memref<8x8x128xf32, #tpu.memory_space<vmem>>, vector<1x8x128xf32>
    %2 = vector.shape_cast %1 : vector<1x8x128xf32> to vector<8x128xf32>
    %3 = vector.shape_cast %0 : vector<8x128xf32> to vector<1x8x128xf32>
    tpu.vector_store %arg13[%c0, %c0_0, %c0_1], %3 {strides = array<i32>} : memref<8x8x128xf32, #tpu.memory_space<vmem>>, vector<1x8x128xf32>,
    %cst_2 = arith.constant 0.000000e+00 : f32
    %4 = vector.broadcast %cst_2 : f32 to vector<8x128xf32>
    %c0_3 = arith.constant 0 : index
    %c0_4 = arith.constant 0 : index
    %5 = vector.load %arg14[%c0_3, %c0_4] : memref<8x128xf32, #tpu.memory_space<vmem>>, vector<8x128xf32>
    tpu.vector_store %arg14[%c0_3, %c0_4], %4 {strides = array<i32>} : memref<8x128xf32, #tpu.memory_space<vmem>>, vector<8x128xf32>,
    %cst_5 = arith.constant 0.000000e+00 : f32
    %6 = vector.broadcast %cst_5 : f32 to vector<8x128xf32>
    %c0_6 = arith.constant 0 : index
    %c0_7 = arith.constant 0 : index
    %7 = vector.load %arg15[%c0_6, %c0_7] : memref<8x128xf32, #tpu.memory_space<vmem>>, vector<8x128xf32>
    tpu.vector_store %arg15[%c0_6, %c0_7], %6 {strides = array<i32>} : memref<8x128xf32, #tpu.memory_space<vmem>>, vector<8x128xf32>,
    %cst_8 = arith.constant 0.000000e+00 : f32
    %8 = vector.broadcast %cst_8 : f32 to vector<8x128xf32>
    %c0_9 = arith.constant 0 : index
    %c0_10 = arith.constant 0 : index
    %9 = vector.load %arg16[%c0_9, %c0_10] : memref<8x128xf32, #tpu.memory_space<vmem>>, vector<8x128xf32>
    tpu.vector_store %arg16[%c0_9, %c0_10], %8 {strides = array<i32>} : memref<8x128xf32, #tpu.memory_space<vmem>>, vector<8x128xf32>,
    %c0_11 = arith.constant 0 : index
    %c0_12 = arith.constant 0 : index
    %10 = vector.load %arg4[%c0_11, %c0_12] : memref<128x512xf32, #tpu.memory_space<vmem>>, vector<128x512xf32>
    %c0_13 = arith.constant 0 : index
    %c0_14 = arith.constant 0 : index
    %11 = vector.load %arg5[%c0_13, %c0_14] : memref<128x512xf32, #tpu.memory_space<vmem>>, vector<128x512xf32>
    %c0_15 = arith.constant 0 : index
    %c0_16 = arith.constant 0 : index
    %12 = vector.load %arg6[%c0_15, %c0_16] : memref<1x512xf32, #tpu.memory_space<vmem>>, vector<1x512xf32>
    %c0_i32 = arith.constant 0 : i32
    %13 = arith.index_cast %c0_i32 : i32 to index
    %c0_17 = arith.constant 0 : index
    %c0_18 = arith.constant 0 : index
    %14 = vector.load %arg2[%13, %c0_17, %c0_18] : memref<8x8x128xf32, #tpu.memory_space<vmem>>, vector<1x8x128xf32>
    %15 = vector.shape_cast %14 : vector<1x8x128xf32> to vector<8x128xf32>
    %c0_19 = arith.constant 0 : index
    %c0_20 = arith.constant 0 : index
    %16 = vector.load %arg14[%c0_19, %c0_20] : memref<8x128xf32, #tpu.memory_space<vmem>>, vector<8x128xf32>
    %c0_21 = arith.constant 0 : index
    %c0_22 = arith.constant 0 : index
    %17 = vector.load %arg15[%c0_21, %c0_22] : memref<8x128xf32, #tpu.memory_space<vmem>>, vector<8x128xf32>
    %cst_23 = arith.constant dense<0.000000e+00> : vector<8x512xf32>
    %18 = tpu.matmul %15, %10, %cst_23 {dimension_numbers = #tpu.dot_dimension_numbers<[1], [0], [0], [1], [0, 0, 1, 1], [], []>} : vector<8x128xf32>, vector<128x512xf32>, vector<8x512xf32> -> vector<8x512xf32>
    %cst_24 = arith.constant dense<0.000000e+00> : vector<8x512xf32>
    %19 = tpu.matmul %16, %11, %cst_24 {dimension_numbers = #tpu.dot_dimension_numbers<[1], [0], [0], [1], [0, 0, 1, 1], [], []>} : vector<8x128xf32>, vector<128x512xf32>, vector<8x512xf32> -> vector<8x512xf32>
    %20 = arith.addf %18, %19 : vector<8x512xf32>
    %21 = vector.broadcast %12 : vector<1x512xf32> to vector<8x512xf32>
    %22 = arith.addf %20, %21 : vector<8x512xf32>
    %23 = vector.extract_strided_slice %22 {offsets = [0, 0], sizes = [8, 128], strides = [1, 1]} : vector<8x512xf32> to vector<8x128xf32>
    %24 = arith.negf %23 : vector<8x128xf32>
    %25 = math.exp %24 : vector<8x128xf32>
    %cst_25 = arith.constant 1.000000e+00 : f32
    %26 = vector.broadcast %cst_25 : f32 to vector<8x128xf32>
    %27 = arith.addf %26, %25 : vector<8x128xf32>
    %28 = arith.divf %26, %27 : vector<8x128xf32>
    %29 = vector.extract_strided_slice %22 {offsets = [0, 128], sizes = [8, 128], strides = [1, 1]} : vector<8x512xf32> to vector<8x128xf32>
    %30 = arith.negf %29 : vector<8x128xf32>
    %31 = math.exp %30 : vector<8x128xf32>
    %cst_26 = arith.constant 1.000000e+00 : f32
    %32 = vector.broadcast %cst_26 : f32 to vector<8x128xf32>
    %33 = arith.addf %32, %31 : vector<8x128xf32>
    %34 = arith.divf %32, %33 : vector<8x128xf32>
    %35 = vector.extract_strided_slice %22 {offsets = [0, 256], sizes = [8, 128], strides = [1, 1]} : vector<8x512xf32> to vector<8x128xf32>
    %36 = math.tanh %35 : vector<8x128xf32>
    %37 = vector.extract_strided_slice %22 {offsets = [0, 384], sizes = [8, 128], strides = [1, 1]} : vector<8x512xf32> to vector<8x128xf32>
    %38 = arith.negf %37 : vector<8x128xf32>
    %39 = math.exp %38 : vector<8x128xf32>
    %cst_27 = arith.constant 1.000000e+00 : f32
    %40 = vector.broadcast %cst_27 : f32 to vector<8x128xf32>
    %41 = arith.addf %40, %39 : vector<8x128xf32>
    %42 = arith.divf %40, %41 : vector<8x128xf32>
    %43 = arith.mulf %34, %17 : vector<8x128xf32>
    %44 = arith.mulf %28, %36 : vector<8x128xf32>
    %45 = arith.addf %43, %44 : vector<8x128xf32>
    %46 = math.tanh %45 : vector<8x128xf32>
    %47 = arith.mulf %42, %46 : vector<8x128xf32>
    %c0_28 = arith.constant 0 : index
    %c0_29 = arith.constant 0 : index
    %48 = vector.load %arg14[%c0_28, %c0_29] : memref<8x128xf32, #tpu.memory_space<vmem>>, vector<8x128xf32>
    tpu.vector_store %arg14[%c0_28, %c0_29], %47 {strides = array<i32>} : memref<8x128xf32, #tpu.memory_space<vmem>>, vector<8x128xf32>,
    %c0_30 = arith.constant 0 : index
    %c0_31 = arith.constant 0 : index
    %49 = vector.load %arg15[%c0_30, %c0_31] : memref<8x128xf32, #tpu.memory_space<vmem>>, vector<8x128xf32>
    tpu.vector_store %arg15[%c0_30, %c0_31], %45 {strides = array<i32>} : memref<8x128xf32, #tpu.memory_space<vmem>>, vector<8x128xf32>,
    %c1_i32 = arith.constant 1 : i32
    %50 = arith.index_cast %c1_i32 : i32 to index
    %c0_32 = arith.constant 0 : index
    %c0_33 = arith.constant 0 : index
    %51 = vector.load %arg2[%50, %c0_32, %c0_33] : memref<8x8x128xf32, #tpu.memory_space<vmem>>, vector<1x8x128xf32>
    %52 = vector.shape_cast %51 : vector<1x8x128xf32> to vector<8x128xf32>
    %c0_34 = arith.constant 0 : index
    %c0_35 = arith.constant 0 : index
    %53 = vector.load %arg14[%c0_34, %c0_35] : memref<8x128xf32, #tpu.memory_space<vmem>>, vector<8x128xf32>
    %c0_36 = arith.constant 0 : index
    %c0_37 = arith.constant 0 : index
    %54 = vector.load %arg15[%c0_36, %c0_37] : memref<8x128xf32, #tpu.memory_space<vmem>>, vector<8x128xf32>
    %cst_38 = arith.constant dense<0.000000e+00> : vector<8x512xf32>
    %55 = tpu.matmul %52, %10, %cst_38 {dimension_numbers = #tpu.dot_dimension_numbers<[1], [0], [0], [1], [0, 0, 1, 1], [], []>} : vector<8x128xf32>, vector<128x512xf32>, vector<8x512xf32> -> vector<8x512xf32>
    %cst_39 = arith.constant dense<0.000000e+00> : vector<8x512xf32>
    %56 = tpu.matmul %53, %11, %cst_39 {dimension_numbers = #tpu.dot_dimension_numbers<[1], [0], [0], [1], [0, 0, 1, 1], [], []>} : vector<8x128xf32>, vector<128x512xf32>, vector<8x512xf32> -> vector<8x512xf32>
    %57 = arith.addf %55, %56 : vector<8x512xf32>
    %58 = vector.broadcast %12 : vector<1x512xf32> to vector<8x512xf32>
    %59 = arith.addf %57, %58 : vector<8x512xf32>
    %60 = vector.extract_strided_slice %59 {offsets = [0, 0], sizes = [8, 128], strides = [1, 1]} : vector<8x512xf32> to vector<8x128xf32>
    %61 = arith.negf %60 : vector<8x128xf32>
    %62 = math.exp %61 : vector<8x128xf32>
    %cst_40 = arith.constant 1.000000e+00 : f32
    %63 = vector.broadcast %cst_40 : f32 to vector<8x128xf32>
    %64 = arith.addf %63, %62 : vector<8x128xf32>
    %65 = arith.divf %63, %64 : vector<8x128xf32>
    %66 = vector.extract_strided_slice %59 {offsets = [0, 128], sizes = [8, 128], strides = [1, 1]} : vector<8x512xf32> to vector<8x128xf32>
    %67 = arith.negf %66 : vector<8x128xf32>
    %68 = math.exp %67 : vector<8x128xf32>
    %cst_41 = arith.constant 1.000000e+00 : f32
    %69 = vector.broadcast %cst_41 : f32 to vector<8x128xf32>
    %70 = arith.addf %69, %68 : vector<8x128xf32>
    %71 = arith.divf %69, %70 : vector<8x128xf32>
    %72 = vector.extract_strided_slice %59 {offsets = [0, 256], sizes = [8, 128], strides = [1, 1]} : vector<8x512xf32> to vector<8x128xf32>
    %73 = math.tanh %72 : vector<8x128xf32>
    %74 = vector.extract_strided_slice %59 {offsets = [0, 384], sizes = [8, 128], strides = [1, 1]} : vector<8x512xf32> to vector<8x128xf32>
    %75 = arith.negf %74 : vector<8x128xf32>
    %76 = math.exp %75 : vector<8x128xf32>
    %cst_42 = arith.constant 1.000000e+00 : f32
    %77 = vector.broadcast %cst_42 : f32 to vector<8x128xf32>
    %78 = arith.addf %77, %76 : vector<8x128xf32>
    %79 = arith.divf %77, %78 : vector<8x128xf32>
    %80 = arith.mulf %71, %54 : vector<8x128xf32>
    %81 = arith.mulf %65, %73 : vector<8x128xf32>
    %82 = arith.addf %80, %81 : vector<8x128xf32>
    %83 = math.tanh %82 : vector<8x128xf32>
    %84 = arith.mulf %79, %83 : vector<8x128xf32>
    %c0_43 = arith.constant 0 : index
    %c0_44 = arith.constant 0 : index
    %85 = vector.load %arg14[%c0_43, %c0_44] : memref<8x128xf32, #tpu.memory_space<vmem>>, vector<8x128xf32>
    tpu.vector_store %arg14[%c0_43, %c0_44], %84 {strides = array<i32>} : memref<8x128xf32, #tpu.memory_space<vmem>>, vector<8x128xf32>,
    %c0_45 = arith.constant 0 : index
    %c0_46 = arith.constant 0 : index
    %86 = vector.load %arg15[%c0_45, %c0_46] : memref<8x128xf32, #tpu.memory_space<vmem>>, vector<8x128xf32>
    tpu.vector_store %arg15[%c0_45, %c0_46], %82 {strides = array<i32>} : memref<8x128xf32, #tpu.memory_space<vmem>>, vector<8x128xf32>,
    %c2_i32 = arith.constant 2 : i32
    %87 = arith.index_cast %c2_i32 : i32 to index
    %c0_47 = arith.constant 0 : index
    %c0_48 = arith.constant 0 : index
    %88 = vector.load %arg2[%87, %c0_47, %c0_48] : memref<8x8x128xf32, #tpu.memory_space<vmem>>, vector<1x8x128xf32>
    %89 = vector.shape_cast %88 : vector<1x8x128xf32> to vector<8x128xf32>
    %c0_49 = arith.constant 0 : index
    %c0_50 = arith.constant 0 : index
    %90 = vector.load %arg14[%c0_49, %c0_50] : memref<8x128xf32, #tpu.memory_space<vmem>>, vector<8x128xf32>
    %c0_51 = arith.constant 0 : index
    %c0_52 = arith.constant 0 : index
    %91 = vector.load %arg15[%c0_51, %c0_52] : memref<8x128xf32, #tpu.memory_space<vmem>>, vector<8x128xf32>
    %cst_53 = arith.constant dense<0.000000e+00> : vector<8x512xf32>
    %92 = tpu.matmul %89, %10, %cst_53 {dimension_numbers = #tpu.dot_dimension_numbers<[1], [0], [0], [1], [0, 0, 1, 1], [], []>} : vector<8x128xf32>, vector<128x512xf32>, vector<8x512xf32> -> vector<8x512xf32>
    %cst_54 = arith.constant dense<0.000000e+00> : vector<8x512xf32>
    %93 = tpu.matmul %90, %11, %cst_54 {dimension_numbers = #tpu.dot_dimension_numbers<[1], [0], [0], [1], [0, 0, 1, 1], [], []>} : vector<8x128xf32>, vector<128x512xf32>, vector<8x512xf32> -> vector<8x512xf32>
    %94 = arith.addf %92, %93 : vector<8x512xf32>
    %95 = vector.broadcast %12 : vector<1x512xf32> to vector<8x512xf32>
    %96 = arith.addf %94, %95 : vector<8x512xf32>
    %97 = vector.extract_strided_slice %96 {offsets = [0, 0], sizes = [8, 128], strides = [1, 1]} : vector<8x512xf32> to vector<8x128xf32>
    %98 = arith.negf %97 : vector<8x128xf32>
    %99 = math.exp %98 : vector<8x128xf32>
    %cst_55 = arith.constant 1.000000e+00 : f32
    %100 = vector.broadcast %cst_55 : f32 to vector<8x128xf32>
    %101 = arith.addf %100, %99 : vector<8x128xf32>
    %102 = arith.divf %100, %101 : vector<8x128xf32>
    %103 = vector.extract_strided_slice %96 {offsets = [0, 128], sizes = [8, 128], strides = [1, 1]} : vector<8x512xf32> to vector<8x128xf32>
    %104 = arith.negf %103 : vector<8x128xf32>
    %105 = math.exp %104 : vector<8x128xf32>
    %cst_56 = arith.constant 1.000000e+00 : f32
    %106 = vector.broadcast %cst_56 : f32 to vector<8x128xf32>
    %107 = arith.addf %106, %105 : vector<8x128xf32>
    %108 = arith.divf %106, %107 : vector<8x128xf32>
    %109 = vector.extract_strided_slice %96 {offsets = [0, 256], sizes = [8, 128], strides = [1, 1]} : vector<8x512xf32> to vector<8x128xf32>
    %110 = math.tanh %109 : vector<8x128xf32>
    %111 = vector.extract_strided_slice %96 {offsets = [0, 384], sizes = [8, 128], strides = [1, 1]} : vector<8x512xf32> to vector<8x128xf32>
    %112 = arith.negf %111 : vector<8x128xf32>
    %113 = math.exp %112 : vector<8x128xf32>
    %cst_57 = arith.constant 1.000000e+00 : f32
    %114 = vector.broadcast %cst_57 : f32 to vector<8x128xf32>
    %115 = arith.addf %114, %113 : vector<8x128xf32>
    %116 = arith.divf %114, %115 : vector<8x128xf32>
    %117 = arith.mulf %108, %91 : vector<8x128xf32>
    %118 = arith.mulf %102, %110 : vector<8x128xf32>
    %119 = arith.addf %117, %118 : vector<8x128xf32>
    %120 = math.tanh %119 : vector<8x128xf32>
    %121 = arith.mulf %116, %120 : vector<8x128xf32>
    %c0_58 = arith.constant 0 : index
    %c0_59 = arith.constant 0 : index
    %122 = vector.load %arg14[%c0_58, %c0_59] : memref<8x128xf32, #tpu.memory_space<vmem>>, vector<8x128xf32>
    tpu.vector_store %arg14[%c0_58, %c0_59], %121 {strides = array<i32>} : memref<8x128xf32, #tpu.memory_space<vmem>>, vector<8x128xf32>,
    %c0_60 = arith.constant 0 : index
    %c0_61 = arith.constant 0 : index
    %123 = vector.load %arg15[%c0_60, %c0_61] : memref<8x128xf32, #tpu.memory_space<vmem>>, vector<8x128xf32>
    tpu.vector_store %arg15[%c0_60, %c0_61], %119 {strides = array<i32>} : memref<8x128xf32, #tpu.memory_space<vmem>>, vector<8x128xf32>,
    %c3_i32 = arith.constant 3 : i32
    %124 = arith.index_cast %c3_i32 : i32 to index
    %c0_62 = arith.constant 0 : index
    %c0_63 = arith.constant 0 : index
    %125 = vector.load %arg2[%124, %c0_62, %c0_63] : memref<8x8x128xf32, #tpu.memory_space<vmem>>, vector<1x8x128xf32>
    %126 = vector.shape_cast %125 : vector<1x8x128xf32> to vector<8x128xf32>
    %c0_64 = arith.constant 0 : index
    %c0_65 = arith.constant 0 : index
    %127 = vector.load %arg14[%c0_64, %c0_65] : memref<8x128xf32, #tpu.memory_space<vmem>>, vector<8x128xf32>
    %c0_66 = arith.constant 0 : index
    %c0_67 = arith.constant 0 : index
    %128 = vector.load %arg15[%c0_66, %c0_67] : memref<8x128xf32, #tpu.memory_space<vmem>>, vector<8x128xf32>
    %cst_68 = arith.constant dense<0.000000e+00> : vector<8x512xf32>
    %129 = tpu.matmul %126, %10, %cst_68 {dimension_numbers = #tpu.dot_dimension_numbers<[1], [0], [0], [1], [0, 0, 1, 1], [], []>} : vector<8x128xf32>, vector<128x512xf32>, vector<8x512xf32> -> vector<8x512xf32>
    %cst_69 = arith.constant dense<0.000000e+00> : vector<8x512xf32>
    %130 = tpu.matmul %127, %11, %cst_69 {dimension_numbers = #tpu.dot_dimension_numbers<[1], [0], [0], [1], [0, 0, 1, 1], [], []>} : vector<8x128xf32>, vector<128x512xf32>, vector<8x512xf32> -> vector<8x512xf32>
    %131 = arith.addf %129, %130 : vector<8x512xf32>
    %132 = vector.broadcast %12 : vector<1x512xf32> to vector<8x512xf32>
    %133 = arith.addf %131, %132 : vector<8x512xf32>
    %134 = vector.extract_strided_slice %133 {offsets = [0, 0], sizes = [8, 128], strides = [1, 1]} : vector<8x512xf32> to vector<8x128xf32>
    %135 = arith.negf %134 : vector<8x128xf32>
    %136 = math.exp %135 : vector<8x128xf32>
    %cst_70 = arith.constant 1.000000e+00 : f32
    %137 = vector.broadcast %cst_70 : f32 to vector<8x128xf32>
    %138 = arith.addf %137, %136 : vector<8x128xf32>
    %139 = arith.divf %137, %138 : vector<8x128xf32>
    %140 = vector.extract_strided_slice %133 {offsets = [0, 128], sizes = [8, 128], strides = [1, 1]} : vector<8x512xf32> to vector<8x128xf32>
    %141 = arith.negf %140 : vector<8x128xf32>
    %142 = math.exp %141 : vector<8x128xf32>
    %cst_71 = arith.constant 1.000000e+00 : f32
    %143 = vector.broadcast %cst_71 : f32 to vector<8x128xf32>
    %144 = arith.addf %143, %142 : vector<8x128xf32>
    %145 = arith.divf %143, %144 : vector<8x128xf32>
    %146 = vector.extract_strided_slice %133 {offsets = [0, 256], sizes = [8, 128], strides = [1, 1]} : vector<8x512xf32> to vector<8x128xf32>
    %147 = math.tanh %146 : vector<8x128xf32>
    %148 = vector.extract_strided_slice %133 {offsets = [0, 384], sizes = [8, 128], strides = [1, 1]} : vector<8x512xf32> to vector<8x128xf32>
    %149 = arith.negf %148 : vector<8x128xf32>
    %150 = math.exp %149 : vector<8x128xf32>
    %cst_72 = arith.constant 1.000000e+00 : f32
    %151 = vector.broadcast %cst_72 : f32 to vector<8x128xf32>
    %152 = arith.addf %151, %150 : vector<8x128xf32>
    %153 = arith.divf %151, %152 : vector<8x128xf32>
    %154 = arith.mulf %145, %128 : vector<8x128xf32>
    %155 = arith.mulf %139, %147 : vector<8x128xf32>
    %156 = arith.addf %154, %155 : vector<8x128xf32>
    %157 = math.tanh %156 : vector<8x128xf32>
    %158 = arith.mulf %153, %157 : vector<8x128xf32>
    %c0_73 = arith.constant 0 : index
    %c0_74 = arith.constant 0 : index
    %159 = vector.load %arg14[%c0_73, %c0_74] : memref<8x128xf32, #tpu.memory_space<vmem>>, vector<8x128xf32>
    tpu.vector_store %arg14[%c0_73, %c0_74], %158 {strides = array<i32>} : memref<8x128xf32, #tpu.memory_space<vmem>>, vector<8x128xf32>,
    %c0_75 = arith.constant 0 : index
    %c0_76 = arith.constant 0 : index
    %160 = vector.load %arg15[%c0_75, %c0_76] : memref<8x128xf32, #tpu.memory_space<vmem>>, vector<8x128xf32>
    tpu.vector_store %arg15[%c0_75, %c0_76], %156 {strides = array<i32>} : memref<8x128xf32, #tpu.memory_space<vmem>>, vector<8x128xf32>,
    %c4_i32 = arith.constant 4 : i32
    %161 = arith.index_cast %c4_i32 : i32 to index
    %c0_77 = arith.constant 0 : index
    %c0_78 = arith.constant 0 : index
    %162 = vector.load %arg2[%161, %c0_77, %c0_78] : memref<8x8x128xf32, #tpu.memory_space<vmem>>, vector<1x8x128xf32>
    %163 = vector.shape_cast %162 : vector<1x8x128xf32> to vector<8x128xf32>
    %c0_79 = arith.constant 0 : index
    %c0_80 = arith.constant 0 : index
    %164 = vector.load %arg14[%c0_79, %c0_80] : memref<8x128xf32, #tpu.memory_space<vmem>>, vector<8x128xf32>
    %c0_81 = arith.constant 0 : index
    %c0_82 = arith.constant 0 : index
    %165 = vector.load %arg15[%c0_81, %c0_82] : memref<8x128xf32, #tpu.memory_space<vmem>>, vector<8x128xf32>
    %cst_83 = arith.constant dense<0.000000e+00> : vector<8x512xf32>
    %166 = tpu.matmul %163, %10, %cst_83 {dimension_numbers = #tpu.dot_dimension_numbers<[1], [0], [0], [1], [0, 0, 1, 1], [], []>} : vector<8x128xf32>, vector<128x512xf32>, vector<8x512xf32> -> vector<8x512xf32>
    %cst_84 = arith.constant dense<0.000000e+00> : vector<8x512xf32>
    %167 = tpu.matmul %164, %11, %cst_84 {dimension_numbers = #tpu.dot_dimension_numbers<[1], [0], [0], [1], [0, 0, 1, 1], [], []>} : vector<8x128xf32>, vector<128x512xf32>, vector<8x512xf32> -> vector<8x512xf32>
    %168 = arith.addf %166, %167 : vector<8x512xf32>
    %169 = vector.broadcast %12 : vector<1x512xf32> to vector<8x512xf32>
    %170 = arith.addf %168, %169 : vector<8x512xf32>
    %171 = vector.extract_strided_slice %170 {offsets = [0, 0], sizes = [8, 128], strides = [1, 1]} : vector<8x512xf32> to vector<8x128xf32>
    %172 = arith.negf %171 : vector<8x128xf32>
    %173 = math.exp %172 : vector<8x128xf32>
    %cst_85 = arith.constant 1.000000e+00 : f32
    %174 = vector.broadcast %cst_85 : f32 to vector<8x128xf32>
    %175 = arith.addf %174, %173 : vector<8x128xf32>
    %176 = arith.divf %174, %175 : vector<8x128xf32>
    %177 = vector.extract_strided_slice %170 {offsets = [0, 128], sizes = [8, 128], strides = [1, 1]} : vector<8x512xf32> to vector<8x128xf32>
    %178 = arith.negf %177 : vector<8x128xf32>
    %179 = math.exp %178 : vector<8x128xf32>
    %cst_86 = arith.constant 1.000000e+00 : f32
    %180 = vector.broadcast %cst_86 : f32 to vector<8x128xf32>
    %181 = arith.addf %180, %179 : vector<8x128xf32>
    %182 = arith.divf %180, %181 : vector<8x128xf32>
    %183 = vector.extract_strided_slice %170 {offsets = [0, 256], sizes = [8, 128], strides = [1, 1]} : vector<8x512xf32> to vector<8x128xf32>
    %184 = math.tanh %183 : vector<8x128xf32>
    %185 = vector.extract_strided_slice %170 {offsets = [0, 384], sizes = [8, 128], strides = [1, 1]} : vector<8x512xf32> to vector<8x128xf32>
    %186 = arith.negf %185 : vector<8x128xf32>
    %187 = math.exp %186 : vector<8x128xf32>
    %cst_87 = arith.constant 1.000000e+00 : f32
    %188 = vector.broadcast %cst_87 : f32 to vector<8x128xf32>
    %189 = arith.addf %188, %187 : vector<8x128xf32>
    %190 = arith.divf %188, %189 : vector<8x128xf32>
    %191 = arith.mulf %182, %165 : vector<8x128xf32>
    %192 = arith.mulf %176, %184 : vector<8x128xf32>
    %193 = arith.addf %191, %192 : vector<8x128xf32>
    %194 = math.tanh %193 : vector<8x128xf32>
    %195 = arith.mulf %190, %194 : vector<8x128xf32>
    %c0_88 = arith.constant 0 : index
    %c0_89 = arith.constant 0 : index
    %196 = vector.load %arg14[%c0_88, %c0_89] : memref<8x128xf32, #tpu.memory_space<vmem>>, vector<8x128xf32>
    tpu.vector_store %arg14[%c0_88, %c0_89], %195 {strides = array<i32>} : memref<8x128xf32, #tpu.memory_space<vmem>>, vector<8x128xf32>,
    %c0_90 = arith.constant 0 : index
    %c0_91 = arith.constant 0 : index
    %197 = vector.load %arg15[%c0_90, %c0_91] : memref<8x128xf32, #tpu.memory_space<vmem>>, vector<8x128xf32>
    tpu.vector_store %arg15[%c0_90, %c0_91], %193 {strides = array<i32>} : memref<8x128xf32, #tpu.memory_space<vmem>>, vector<8x128xf32>,
    %c5_i32 = arith.constant 5 : i32
    %198 = arith.index_cast %c5_i32 : i32 to index
    %c0_92 = arith.constant 0 : index
    %c0_93 = arith.constant 0 : index
    %199 = vector.load %arg2[%198, %c0_92, %c0_93] : memref<8x8x128xf32, #tpu.memory_space<vmem>>, vector<1x8x128xf32>
    %200 = vector.shape_cast %199 : vector<1x8x128xf32> to vector<8x128xf32>
    %c0_94 = arith.constant 0 : index
    %c0_95 = arith.constant 0 : index
    %201 = vector.load %arg14[%c0_94, %c0_95] : memref<8x128xf32, #tpu.memory_space<vmem>>, vector<8x128xf32>
    %c0_96 = arith.constant 0 : index
    %c0_97 = arith.constant 0 : index
    %202 = vector.load %arg15[%c0_96, %c0_97] : memref<8x128xf32, #tpu.memory_space<vmem>>, vector<8x128xf32>
    %cst_98 = arith.constant dense<0.000000e+00> : vector<8x512xf32>
    %203 = tpu.matmul %200, %10, %cst_98 {dimension_numbers = #tpu.dot_dimension_numbers<[1], [0], [0], [1], [0, 0, 1, 1], [], []>} : vector<8x128xf32>, vector<128x512xf32>, vector<8x512xf32> -> vector<8x512xf32>
    %cst_99 = arith.constant dense<0.000000e+00> : vector<8x512xf32>
    %204 = tpu.matmul %201, %11, %cst_99 {dimension_numbers = #tpu.dot_dimension_numbers<[1], [0], [0], [1], [0, 0, 1, 1], [], []>} : vector<8x128xf32>, vector<128x512xf32>, vector<8x512xf32> -> vector<8x512xf32>
    %205 = arith.addf %203, %204 : vector<8x512xf32>
    %206 = vector.broadcast %12 : vector<1x512xf32> to vector<8x512xf32>
    %207 = arith.addf %205, %206 : vector<8x512xf32>
    %208 = vector.extract_strided_slice %207 {offsets = [0, 0], sizes = [8, 128], strides = [1, 1]} : vector<8x512xf32> to vector<8x128xf32>
    %209 = arith.negf %208 : vector<8x128xf32>
    %210 = math.exp %209 : vector<8x128xf32>
    %cst_100 = arith.constant 1.000000e+00 : f32
    %211 = vector.broadcast %cst_100 : f32 to vector<8x128xf32>
    %212 = arith.addf %211, %210 : vector<8x128xf32>
    %213 = arith.divf %211, %212 : vector<8x128xf32>
    %214 = vector.extract_strided_slice %207 {offsets = [0, 128], sizes = [8, 128], strides = [1, 1]} : vector<8x512xf32> to vector<8x128xf32>
    %215 = arith.negf %214 : vector<8x128xf32>
    %216 = math.exp %215 : vector<8x128xf32>
    %cst_101 = arith.constant 1.000000e+00 : f32
    %217 = vector.broadcast %cst_101 : f32 to vector<8x128xf32>
    %218 = arith.addf %217, %216 : vector<8x128xf32>
    %219 = arith.divf %217, %218 : vector<8x128xf32>
    %220 = vector.extract_strided_slice %207 {offsets = [0, 256], sizes = [8, 128], strides = [1, 1]} : vector<8x512xf32> to vector<8x128xf32>
    %221 = math.tanh %220 : vector<8x128xf32>
    %222 = vector.extract_strided_slice %207 {offsets = [0, 384], sizes = [8, 128], strides = [1, 1]} : vector<8x512xf32> to vector<8x128xf32>
    %223 = arith.negf %222 : vector<8x128xf32>
    %224 = math.exp %223 : vector<8x128xf32>
    %cst_102 = arith.constant 1.000000e+00 : f32
    %225 = vector.broadcast %cst_102 : f32 to vector<8x128xf32>
    %226 = arith.addf %225, %224 : vector<8x128xf32>
    %227 = arith.divf %225, %226 : vector<8x128xf32>
    %228 = arith.mulf %219, %202 : vector<8x128xf32>
    %229 = arith.mulf %213, %221 : vector<8x128xf32>
    %230 = arith.addf %228, %229 : vector<8x128xf32>
    %231 = math.tanh %230 : vector<8x128xf32>
    %232 = arith.mulf %227, %231 : vector<8x128xf32>
    %c0_103 = arith.constant 0 : index
    %c0_104 = arith.constant 0 : index
    %233 = vector.load %arg14[%c0_103, %c0_104] : memref<8x128xf32, #tpu.memory_space<vmem>>, vector<8x128xf32>
    tpu.vector_store %arg14[%c0_103, %c0_104], %232 {strides = array<i32>} : memref<8x128xf32, #tpu.memory_space<vmem>>, vector<8x128xf32>,
    %c0_105 = arith.constant 0 : index
    %c0_106 = arith.constant 0 : index
    %234 = vector.load %arg15[%c0_105, %c0_106] : memref<8x128xf32, #tpu.memory_space<vmem>>, vector<8x128xf32>
    tpu.vector_store %arg15[%c0_105, %c0_106], %230 {strides = array<i32>} : memref<8x128xf32, #tpu.memory_space<vmem>>, vector<8x128xf32>,
    %c6_i32 = arith.constant 6 : i32
    %235 = arith.index_cast %c6_i32 : i32 to index
    %c0_107 = arith.constant 0 : index
    %c0_108 = arith.constant 0 : index
    %236 = vector.load %arg2[%235, %c0_107, %c0_108] : memref<8x8x128xf32, #tpu.memory_space<vmem>>, vector<1x8x128xf32>
    %237 = vector.shape_cast %236 : vector<1x8x128xf32> to vector<8x128xf32>
    %c0_109 = arith.constant 0 : index
    %c0_110 = arith.constant 0 : index
    %238 = vector.load %arg14[%c0_109, %c0_110] : memref<8x128xf32, #tpu.memory_space<vmem>>, vector<8x128xf32>
    %c0_111 = arith.constant 0 : index
    %c0_112 = arith.constant 0 : index
    %239 = vector.load %arg15[%c0_111, %c0_112] : memref<8x128xf32, #tpu.memory_space<vmem>>, vector<8x128xf32>
    %cst_113 = arith.constant dense<0.000000e+00> : vector<8x512xf32>
    %240 = tpu.matmul %237, %10, %cst_113 {dimension_numbers = #tpu.dot_dimension_numbers<[1], [0], [0], [1], [0, 0, 1, 1], [], []>} : vector<8x128xf32>, vector<128x512xf32>, vector<8x512xf32> -> vector<8x512xf32>
    %cst_114 = arith.constant dense<0.000000e+00> : vector<8x512xf32>
    %241 = tpu.matmul %238, %11, %cst_114 {dimension_numbers = #tpu.dot_dimension_numbers<[1], [0], [0], [1], [0, 0, 1, 1], [], []>} : vector<8x128xf32>, vector<128x512xf32>, vector<8x512xf32> -> vector<8x512xf32>
    %242 = arith.addf %240, %241 : vector<8x512xf32>
    %243 = vector.broadcast %12 : vector<1x512xf32> to vector<8x512xf32>
    %244 = arith.addf %242, %243 : vector<8x512xf32>
    %245 = vector.extract_strided_slice %244 {offsets = [0, 0], sizes = [8, 128], strides = [1, 1]} : vector<8x512xf32> to vector<8x128xf32>
    %246 = arith.negf %245 : vector<8x128xf32>
    %247 = math.exp %246 : vector<8x128xf32>
    %cst_115 = arith.constant 1.000000e+00 : f32
    %248 = vector.broadcast %cst_115 : f32 to vector<8x128xf32>
    %249 = arith.addf %248, %247 : vector<8x128xf32>
    %250 = arith.divf %248, %249 : vector<8x128xf32>
    %251 = vector.extract_strided_slice %244 {offsets = [0, 128], sizes = [8, 128], strides = [1, 1]} : vector<8x512xf32> to vector<8x128xf32>
    %252 = arith.negf %251 : vector<8x128xf32>
    %253 = math.exp %252 : vector<8x128xf32>
    %cst_116 = arith.constant 1.000000e+00 : f32
    %254 = vector.broadcast %cst_116 : f32 to vector<8x128xf32>
    %255 = arith.addf %254, %253 : vector<8x128xf32>
    %256 = arith.divf %254, %255 : vector<8x128xf32>
    %257 = vector.extract_strided_slice %244 {offsets = [0, 256], sizes = [8, 128], strides = [1, 1]} : vector<8x512xf32> to vector<8x128xf32>
    %258 = math.tanh %257 : vector<8x128xf32>
    %259 = vector.extract_strided_slice %244 {offsets = [0, 384], sizes = [8, 128], strides = [1, 1]} : vector<8x512xf32> to vector<8x128xf32>
    %260 = arith.negf %259 : vector<8x128xf32>
    %261 = math.exp %260 : vector<8x128xf32>
    %cst_117 = arith.constant 1.000000e+00 : f32
    %262 = vector.broadcast %cst_117 : f32 to vector<8x128xf32>
    %263 = arith.addf %262, %261 : vector<8x128xf32>
    %264 = arith.divf %262, %263 : vector<8x128xf32>
    %265 = arith.mulf %256, %239 : vector<8x128xf32>
    %266 = arith.mulf %250, %258 : vector<8x128xf32>
    %267 = arith.addf %265, %266 : vector<8x128xf32>
    %268 = math.tanh %267 : vector<8x128xf32>
    %269 = arith.mulf %264, %268 : vector<8x128xf32>
    %c0_118 = arith.constant 0 : index
    %c0_119 = arith.constant 0 : index
    %270 = vector.load %arg14[%c0_118, %c0_119] : memref<8x128xf32, #tpu.memory_space<vmem>>, vector<8x128xf32>
    tpu.vector_store %arg14[%c0_118, %c0_119], %269 {strides = array<i32>} : memref<8x128xf32, #tpu.memory_space<vmem>>, vector<8x128xf32>,
    %c0_120 = arith.constant 0 : index
    %c0_121 = arith.constant 0 : index
    %271 = vector.load %arg15[%c0_120, %c0_121] : memref<8x128xf32, #tpu.memory_space<vmem>>, vector<8x128xf32>
    tpu.vector_store %arg15[%c0_120, %c0_121], %267 {strides = array<i32>} : memref<8x128xf32, #tpu.memory_space<vmem>>, vector<8x128xf32>,
    %c7_i32 = arith.constant 7 : i32
    %272 = arith.index_cast %c7_i32 : i32 to index
    %c0_122 = arith.constant 0 : index
    %c0_123 = arith.constant 0 : index
    %273 = vector.load %arg2[%272, %c0_122, %c0_123] : memref<8x8x128xf32, #tpu.memory_space<vmem>>, vector<1x8x128xf32>
    %274 = vector.shape_cast %273 : vector<1x8x128xf32> to vector<8x128xf32>
    %c0_124 = arith.constant 0 : index
    %c0_125 = arith.constant 0 : index
    %275 = vector.load %arg14[%c0_124, %c0_125] : memref<8x128xf32, #tpu.memory_space<vmem>>, vector<8x128xf32>
    %c0_126 = arith.constant 0 : index
    %c0_127 = arith.constant 0 : index
    %276 = vector.load %arg15[%c0_126, %c0_127] : memref<8x128xf32, #tpu.memory_space<vmem>>, vector<8x128xf32>
    %cst_128 = arith.constant dense<0.000000e+00> : vector<8x512xf32>
    %277 = tpu.matmul %274, %10, %cst_128 {dimension_numbers = #tpu.dot_dimension_numbers<[1], [0], [0], [1], [0, 0, 1, 1], [], []>} : vector<8x128xf32>, vector<128x512xf32>, vector<8x512xf32> -> vector<8x512xf32>
    %cst_129 = arith.constant dense<0.000000e+00> : vector<8x512xf32>
    %278 = tpu.matmul %275, %11, %cst_129 {dimension_numbers = #tpu.dot_dimension_numbers<[1], [0], [0], [1], [0, 0, 1, 1], [], []>} : vector<8x128xf32>, vector<128x512xf32>, vector<8x512xf32> -> vector<8x512xf32>
    %279 = arith.addf %277, %278 : vector<8x512xf32>
    %280 = vector.broadcast %12 : vector<1x512xf32> to vector<8x512xf32>
    %281 = arith.addf %279, %280 : vector<8x512xf32>
    %282 = vector.extract_strided_slice %281 {offsets = [0, 0], sizes = [8, 128], strides = [1, 1]} : vector<8x512xf32> to vector<8x128xf32>
    %283 = arith.negf %282 : vector<8x128xf32>
    %284 = math.exp %283 : vector<8x128xf32>
    %cst_130 = arith.constant 1.000000e+00 : f32
    %285 = vector.broadcast %cst_130 : f32 to vector<8x128xf32>
    %286 = arith.addf %285, %284 : vector<8x128xf32>
    %287 = arith.divf %285, %286 : vector<8x128xf32>
    %288 = vector.extract_strided_slice %281 {offsets = [0, 128], sizes = [8, 128], strides = [1, 1]} : vector<8x512xf32> to vector<8x128xf32>
    %289 = arith.negf %288 : vector<8x128xf32>
    %290 = math.exp %289 : vector<8x128xf32>
    %cst_131 = arith.constant 1.000000e+00 : f32
    %291 = vector.broadcast %cst_131 : f32 to vector<8x128xf32>
    %292 = arith.addf %291, %290 : vector<8x128xf32>
    %293 = arith.divf %291, %292 : vector<8x128xf32>
    %294 = vector.extract_strided_slice %281 {offsets = [0, 256], sizes = [8, 128], strides = [1, 1]} : vector<8x512xf32> to vector<8x128xf32>
    %295 = math.tanh %294 : vector<8x128xf32>
    %296 = vector.extract_strided_slice %281 {offsets = [0, 384], sizes = [8, 128], strides = [1, 1]} : vector<8x512xf32> to vector<8x128xf32>
    %297 = arith.negf %296 : vector<8x128xf32>
    %298 = math.exp %297 : vector<8x128xf32>
    %cst_132 = arith.constant 1.000000e+00 : f32
    %299 = vector.broadcast %cst_132 : f32 to vector<8x128xf32>
    %300 = arith.addf %299, %298 : vector<8x128xf32>
    %301 = arith.divf %299, %300 : vector<8x128xf32>
    %302 = arith.mulf %293, %276 : vector<8x128xf32>
    %303 = arith.mulf %287, %295 : vector<8x128xf32>
    %304 = arith.addf %302, %303 : vector<8x128xf32>
    %305 = math.tanh %304 : vector<8x128xf32>
    %306 = arith.mulf %301, %305 : vector<8x128xf32>
    %c0_133 = arith.constant 0 : index
    %c0_134 = arith.constant 0 : index
    %307 = vector.load %arg14[%c0_133, %c0_134] : memref<8x128xf32, #tpu.memory_space<vmem>>, vector<8x128xf32>
    tpu.vector_store %arg14[%c0_133, %c0_134], %306 {strides = array<i32>} : memref<8x128xf32, #tpu.memory_space<vmem>>, vector<8x128xf32>,
    %c0_135 = arith.constant 0 : index
    %c0_136 = arith.constant 0 : index
    %308 = vector.load %arg15[%c0_135, %c0_136] : memref<8x128xf32, #tpu.memory_space<vmem>>, vector<8x128xf32>
    tpu.vector_store %arg15[%c0_135, %c0_136], %304 {strides = array<i32>} : memref<8x128xf32, #tpu.memory_space<vmem>>, vector<8x128xf32>,
    %c8_i32 = arith.constant 8 : i32
    %c0_137 = arith.constant 0 : index
    %c0_138 = arith.constant 0 : index
    %309 = vector.load %arg7[%c0_137, %c0_138] : memref<128x512xf32, #tpu.memory_space<vmem>>, vector<128x512xf32>
    %c0_139 = arith.constant 0 : index
    %c0_140 = arith.constant 0 : index
    %310 = vector.load %arg8[%c0_139, %c0_140] : memref<128x512xf32, #tpu.memory_space<vmem>>, vector<128x512xf32>
    %c0_141 = arith.constant 0 : index
    %c0_142 = arith.constant 0 : index
    %311 = vector.load %arg9[%c0_141, %c0_142] : memref<1x512xf32, #tpu.memory_space<vmem>>, vector<1x512xf32>
    %c0_143 = arith.constant 0 : index
    %c0_144 = arith.constant 0 : index
    %312 = vector.load %arg11[%c0_143, %c0_144] : memref<128x128xf32, #tpu.memory_space<vmem>>, vector<128x128xf32>
    %c0_145 = arith.constant 0 : index
    %c0_146 = arith.constant 0 : index
    %313 = vector.load %arg12[%c0_145, %c0_146] : memref<1x128xf32, #tpu.memory_space<vmem>>, vector<1x128xf32>
    %314 = tpu.iota {dimensions = array<i32: 1>} : vector<8x128xi32>
    %315 = arith.sitofp %314 : vector<8x128xi32> to vector<8x128xf32>
    %c0_i32_147 = arith.constant 0 : i32
    %316 = arith.index_cast %c0_i32_147 : i32 to index
    %317 = memref.load %arg1[%316] : memref<7xi32, #tpu.memory_space<smem>>
    %c0_i32_148 = arith.constant 0 : i32
    %318 = arith.cmpi sgt, %317, %c0_i32_148 : i32
    %319 = arith.extui %318 : i1 to i32
    %c0_i32_149 = arith.constant 0 : i32
    %320 = arith.cmpi ne, %319, %c0_i32_149 : i32
    scf.if %320 {
      %771 = arith.index_cast %c0_i32_147 : i32 to index
      %c0_365 = arith.constant 0 : index
      %c0_366 = arith.constant 0 : index
      %772 = vector.load %arg3[%771, %c0_365, %c0_366] : memref<7x8x128xf32, #tpu.memory_space<vmem>>, vector<1x8x128xf32>
      %773 = vector.shape_cast %772 : vector<1x8x128xf32> to vector<8x128xf32>
      %c0_367 = arith.constant 0 : index
      %c0_368 = arith.constant 0 : index
      %774 = vector.load %arg17[%c0_367, %c0_368] : memref<8x128xf32, #tpu.memory_space<vmem>>, vector<8x128xf32>
      tpu.vector_store %arg17[%c0_367, %c0_368], %773 {strides = array<i32>} : memref<8x128xf32, #tpu.memory_space<vmem>>, vector<8x128xf32>,
    } else {
    }
    %c0_i32_150 = arith.constant 0 : i32
    %321 = arith.cmpi eq, %317, %c0_i32_150 : i32
    %322 = arith.extui %321 : i1 to i32
    %c0_i32_151 = arith.constant 0 : i32
    %323 = arith.cmpi ne, %322, %c0_i32_151 : i32
    scf.if %323 {
      %c0_365 = arith.constant 0 : index
      %c0_366 = arith.constant 0 : index
      %771 = vector.load %arg16[%c0_365, %c0_366] : memref<8x128xf32, #tpu.memory_space<vmem>>, vector<8x128xf32>
      %c0_367 = arith.constant 0 : index
      %c0_368 = arith.constant 0 : index
      %772 = vector.load %arg10[%c0_367, %c0_368] : memref<128x128xf32, #tpu.memory_space<vmem>>, vector<128x128xf32>
      %cst_369 = arith.constant dense<0.000000e+00> : vector<8x128xf32>
      %773 = tpu.matmul %771, %772, %cst_369 {dimension_numbers = #tpu.dot_dimension_numbers<[1], [0], [0], [1], [0, 0, 1, 1], [], []>} : vector<8x128xf32>, vector<128x128xf32>, vector<8x128xf32> -> vector<8x128xf32>
      %c0_370 = arith.constant 0 : index
      %c0_371 = arith.constant 0 : index
      %774 = vector.load %arg17[%c0_370, %c0_371] : memref<8x128xf32, #tpu.memory_space<vmem>>, vector<8x128xf32>
      tpu.vector_store %arg17[%c0_370, %c0_371], %773 {strides = array<i32>} : memref<8x128xf32, #tpu.memory_space<vmem>>, vector<8x128xf32>,
    } else {
    }
    %c0_152 = arith.constant 0 : index
    %c0_153 = arith.constant 0 : index
    %324 = vector.load %arg17[%c0_152, %c0_153] : memref<8x128xf32, #tpu.memory_space<vmem>>, vector<8x128xf32>
    %c0_154 = arith.constant 0 : index
    %c0_155 = arith.constant 0 : index
    %325 = vector.load %arg14[%c0_154, %c0_155] : memref<8x128xf32, #tpu.memory_space<vmem>>, vector<8x128xf32>
    %c0_156 = arith.constant 0 : index
    %c0_157 = arith.constant 0 : index
    %326 = vector.load %arg15[%c0_156, %c0_157] : memref<8x128xf32, #tpu.memory_space<vmem>>, vector<8x128xf32>
    %cst_158 = arith.constant dense<0.000000e+00> : vector<8x512xf32>
    %327 = tpu.matmul %324, %309, %cst_158 {dimension_numbers = #tpu.dot_dimension_numbers<[1], [0], [0], [1], [0, 0, 1, 1], [], []>} : vector<8x128xf32>, vector<128x512xf32>, vector<8x512xf32> -> vector<8x512xf32>
    %cst_159 = arith.constant dense<0.000000e+00> : vector<8x512xf32>
    %328 = tpu.matmul %325, %310, %cst_159 {dimension_numbers = #tpu.dot_dimension_numbers<[1], [0], [0], [1], [0, 0, 1, 1], [], []>} : vector<8x128xf32>, vector<128x512xf32>, vector<8x512xf32> -> vector<8x512xf32>
    %329 = arith.addf %327, %328 : vector<8x512xf32>
    %330 = vector.broadcast %311 : vector<1x512xf32> to vector<8x512xf32>
    %331 = arith.addf %329, %330 : vector<8x512xf32>
    %332 = vector.extract_strided_slice %331 {offsets = [0, 0], sizes = [8, 128], strides = [1, 1]} : vector<8x512xf32> to vector<8x128xf32>
    %333 = arith.negf %332 : vector<8x128xf32>
    %334 = math.exp %333 : vector<8x128xf32>
    %cst_160 = arith.constant 1.000000e+00 : f32
    %335 = vector.broadcast %cst_160 : f32 to vector<8x128xf32>
    %336 = arith.addf %335, %334 : vector<8x128xf32>
    %337 = arith.divf %335, %336 : vector<8x128xf32>
    %338 = vector.extract_strided_slice %331 {offsets = [0, 128], sizes = [8, 128], strides = [1, 1]} : vector<8x512xf32> to vector<8x128xf32>
    %339 = arith.negf %338 : vector<8x128xf32>
    %340 = math.exp %339 : vector<8x128xf32>
    %cst_161 = arith.constant 1.000000e+00 : f32
    %341 = vector.broadcast %cst_161 : f32 to vector<8x128xf32>
    %342 = arith.addf %341, %340 : vector<8x128xf32>
    %343 = arith.divf %341, %342 : vector<8x128xf32>
    %344 = vector.extract_strided_slice %331 {offsets = [0, 256], sizes = [8, 128], strides = [1, 1]} : vector<8x512xf32> to vector<8x128xf32>
    %345 = math.tanh %344 : vector<8x128xf32>
    %346 = vector.extract_strided_slice %331 {offsets = [0, 384], sizes = [8, 128], strides = [1, 1]} : vector<8x512xf32> to vector<8x128xf32>
    %347 = arith.negf %346 : vector<8x128xf32>
    %348 = math.exp %347 : vector<8x128xf32>
    %cst_162 = arith.constant 1.000000e+00 : f32
    %349 = vector.broadcast %cst_162 : f32 to vector<8x128xf32>
    %350 = arith.addf %349, %348 : vector<8x128xf32>
    %351 = arith.divf %349, %350 : vector<8x128xf32>
    %352 = arith.mulf %343, %326 : vector<8x128xf32>
    %353 = arith.mulf %337, %345 : vector<8x128xf32>
    %354 = arith.addf %352, %353 : vector<8x128xf32>
    %355 = math.tanh %354 : vector<8x128xf32>
    %356 = arith.mulf %351, %355 : vector<8x128xf32>
    %cst_163 = arith.constant dense<0.000000e+00> : vector<8x128xf32>
    %357 = tpu.matmul %356, %312, %cst_163 {dimension_numbers = #tpu.dot_dimension_numbers<[1], [0], [0], [1], [0, 0, 1, 1], [], []>} : vector<8x128xf32>, vector<128x128xf32>, vector<8x128xf32> -> vector<8x128xf32>
    %358 = vector.broadcast %313 : vector<1x128xf32> to vector<8x128xf32>
    %359 = arith.addf %357, %358 : vector<8x128xf32>
    %c1_i32_164 = arith.constant 1 : i32
    %360 = arith.addi %c0_i32_147, %c1_i32_164 : i32
    %361 = arith.index_cast %360 : i32 to index
    %c0_165 = arith.constant 0 : index
    %c0_166 = arith.constant 0 : index
    %362 = vector.load %arg13[%361, %c0_165, %c0_166] : memref<8x8x128xf32, #tpu.memory_space<vmem>>, vector<1x8x128xf32>
    %363 = vector.shape_cast %362 : vector<1x8x128xf32> to vector<8x128xf32>
    %364 = vector.shape_cast %359 : vector<8x128xf32> to vector<1x8x128xf32>
    tpu.vector_store %arg13[%361, %c0_165, %c0_166], %364 {strides = array<i32>} : memref<8x8x128xf32, #tpu.memory_space<vmem>>, vector<1x8x128xf32>,
    %cst_167 = arith.constant dense<0xFF800000> : vector<8xf32>
    %365 = vector.multi_reduction <maximumf>, %359, %cst_167 [1] : vector<8x128xf32> to vector<8xf32>
    %366 = vector.shape_cast %365 : vector<8xf32> to vector<8x1xf32>
    %367 = vector.broadcast %366 : vector<8x1xf32> to vector<8x128xf32>
    %368 = arith.cmpf oeq, %359, %367 : vector<8x128xf32>
    %cst_168 = arith.constant 1.280000e+02 : f32
    %369 = vector.broadcast %cst_168 : f32 to vector<8x128xf32>
    %370 = arith.select %368, %315, %369 : vector<8x128xi1>, vector<8x128xf32>
    %cst_169 = arith.constant dense<0x7F800000> : vector<8xf32>
    %371 = vector.multi_reduction <minimumf>, %370, %cst_169 [1] : vector<8x128xf32> to vector<8xf32>
    %372 = vector.shape_cast %371 : vector<8xf32> to vector<8x1xf32>
    %373 = vector.broadcast %372 : vector<8x1xf32> to vector<8x128xf32>
    %374 = arith.cmpf oeq, %315, %373 : vector<8x128xf32>
    %cst_170 = arith.constant 1.000000e+00 : f32
    %cst_171 = arith.constant 0.000000e+00 : f32
    %375 = vector.broadcast %cst_170 : f32 to vector<8x128xf32>
    %376 = vector.broadcast %cst_171 : f32 to vector<8x128xf32>
    %377 = arith.select %374, %375, %376 : vector<8x128xi1>, vector<8x128xf32>
    %c0_172 = arith.constant 0 : index
    %c0_173 = arith.constant 0 : index
    %378 = vector.load %arg16[%c0_172, %c0_173] : memref<8x128xf32, #tpu.memory_space<vmem>>, vector<8x128xf32>
    tpu.vector_store %arg16[%c0_172, %c0_173], %377 {strides = array<i32>} : memref<8x128xf32, #tpu.memory_space<vmem>>, vector<8x128xf32>,
    %c0_174 = arith.constant 0 : index
    %c0_175 = arith.constant 0 : index
    %379 = vector.load %arg14[%c0_174, %c0_175] : memref<8x128xf32, #tpu.memory_space<vmem>>, vector<8x128xf32>
    tpu.vector_store %arg14[%c0_174, %c0_175], %356 {strides = array<i32>} : memref<8x128xf32, #tpu.memory_space<vmem>>, vector<8x128xf32>,
    %c0_176 = arith.constant 0 : index
    %c0_177 = arith.constant 0 : index
    %380 = vector.load %arg15[%c0_176, %c0_177] : memref<8x128xf32, #tpu.memory_space<vmem>>, vector<8x128xf32>
    tpu.vector_store %arg15[%c0_176, %c0_177], %354 {strides = array<i32>} : memref<8x128xf32, #tpu.memory_space<vmem>>, vector<8x128xf32>,
    %c1_i32_178 = arith.constant 1 : i32
    %381 = arith.index_cast %c1_i32_178 : i32 to index
    %382 = memref.load %arg1[%381] : memref<7xi32, #tpu.memory_space<smem>>
    %c0_i32_179 = arith.constant 0 : i32
    %383 = arith.cmpi sgt, %382, %c0_i32_179 : i32
    %384 = arith.extui %383 : i1 to i32
    %c0_i32_180 = arith.constant 0 : i32
    %385 = arith.cmpi ne, %384, %c0_i32_180 : i32
    scf.if %385 {
      %771 = arith.index_cast %c1_i32_178 : i32 to index
      %c0_365 = arith.constant 0 : index
      %c0_366 = arith.constant 0 : index
      %772 = vector.load %arg3[%771, %c0_365, %c0_366] : memref<7x8x128xf32, #tpu.memory_space<vmem>>, vector<1x8x128xf32>
      %773 = vector.shape_cast %772 : vector<1x8x128xf32> to vector<8x128xf32>
      %c0_367 = arith.constant 0 : index
      %c0_368 = arith.constant 0 : index
      %774 = vector.load %arg17[%c0_367, %c0_368] : memref<8x128xf32, #tpu.memory_space<vmem>>, vector<8x128xf32>
      tpu.vector_store %arg17[%c0_367, %c0_368], %773 {strides = array<i32>} : memref<8x128xf32, #tpu.memory_space<vmem>>, vector<8x128xf32>,
    } else {
    }
    %c0_i32_181 = arith.constant 0 : i32
    %386 = arith.cmpi eq, %382, %c0_i32_181 : i32
    %387 = arith.extui %386 : i1 to i32
    %c0_i32_182 = arith.constant 0 : i32
    %388 = arith.cmpi ne, %387, %c0_i32_182 : i32
    scf.if %388 {
      %c0_365 = arith.constant 0 : index
      %c0_366 = arith.constant 0 : index
      %771 = vector.load %arg16[%c0_365, %c0_366] : memref<8x128xf32, #tpu.memory_space<vmem>>, vector<8x128xf32>
      %c0_367 = arith.constant 0 : index
      %c0_368 = arith.constant 0 : index
      %772 = vector.load %arg10[%c0_367, %c0_368] : memref<128x128xf32, #tpu.memory_space<vmem>>, vector<128x128xf32>
      %cst_369 = arith.constant dense<0.000000e+00> : vector<8x128xf32>
      %773 = tpu.matmul %771, %772, %cst_369 {dimension_numbers = #tpu.dot_dimension_numbers<[1], [0], [0], [1], [0, 0, 1, 1], [], []>} : vector<8x128xf32>, vector<128x128xf32>, vector<8x128xf32> -> vector<8x128xf32>
      %c0_370 = arith.constant 0 : index
      %c0_371 = arith.constant 0 : index
      %774 = vector.load %arg17[%c0_370, %c0_371] : memref<8x128xf32, #tpu.memory_space<vmem>>, vector<8x128xf32>
      tpu.vector_store %arg17[%c0_370, %c0_371], %773 {strides = array<i32>} : memref<8x128xf32, #tpu.memory_space<vmem>>, vector<8x128xf32>,
    } else {
    }
    %c0_183 = arith.constant 0 : index
    %c0_184 = arith.constant 0 : index
    %389 = vector.load %arg17[%c0_183, %c0_184] : memref<8x128xf32, #tpu.memory_space<vmem>>, vector<8x128xf32>
    %c0_185 = arith.constant 0 : index
    %c0_186 = arith.constant 0 : index
    %390 = vector.load %arg14[%c0_185, %c0_186] : memref<8x128xf32, #tpu.memory_space<vmem>>, vector<8x128xf32>
    %c0_187 = arith.constant 0 : index
    %c0_188 = arith.constant 0 : index
    %391 = vector.load %arg15[%c0_187, %c0_188] : memref<8x128xf32, #tpu.memory_space<vmem>>, vector<8x128xf32>
    %cst_189 = arith.constant dense<0.000000e+00> : vector<8x512xf32>
    %392 = tpu.matmul %389, %309, %cst_189 {dimension_numbers = #tpu.dot_dimension_numbers<[1], [0], [0], [1], [0, 0, 1, 1], [], []>} : vector<8x128xf32>, vector<128x512xf32>, vector<8x512xf32> -> vector<8x512xf32>
    %cst_190 = arith.constant dense<0.000000e+00> : vector<8x512xf32>
    %393 = tpu.matmul %390, %310, %cst_190 {dimension_numbers = #tpu.dot_dimension_numbers<[1], [0], [0], [1], [0, 0, 1, 1], [], []>} : vector<8x128xf32>, vector<128x512xf32>, vector<8x512xf32> -> vector<8x512xf32>
    %394 = arith.addf %392, %393 : vector<8x512xf32>
    %395 = vector.broadcast %311 : vector<1x512xf32> to vector<8x512xf32>
    %396 = arith.addf %394, %395 : vector<8x512xf32>
    %397 = vector.extract_strided_slice %396 {offsets = [0, 0], sizes = [8, 128], strides = [1, 1]} : vector<8x512xf32> to vector<8x128xf32>
    %398 = arith.negf %397 : vector<8x128xf32>
    %399 = math.exp %398 : vector<8x128xf32>
    %cst_191 = arith.constant 1.000000e+00 : f32
    %400 = vector.broadcast %cst_191 : f32 to vector<8x128xf32>
    %401 = arith.addf %400, %399 : vector<8x128xf32>
    %402 = arith.divf %400, %401 : vector<8x128xf32>
    %403 = vector.extract_strided_slice %396 {offsets = [0, 128], sizes = [8, 128], strides = [1, 1]} : vector<8x512xf32> to vector<8x128xf32>
    %404 = arith.negf %403 : vector<8x128xf32>
    %405 = math.exp %404 : vector<8x128xf32>
    %cst_192 = arith.constant 1.000000e+00 : f32
    %406 = vector.broadcast %cst_192 : f32 to vector<8x128xf32>
    %407 = arith.addf %406, %405 : vector<8x128xf32>
    %408 = arith.divf %406, %407 : vector<8x128xf32>
    %409 = vector.extract_strided_slice %396 {offsets = [0, 256], sizes = [8, 128], strides = [1, 1]} : vector<8x512xf32> to vector<8x128xf32>
    %410 = math.tanh %409 : vector<8x128xf32>
    %411 = vector.extract_strided_slice %396 {offsets = [0, 384], sizes = [8, 128], strides = [1, 1]} : vector<8x512xf32> to vector<8x128xf32>
    %412 = arith.negf %411 : vector<8x128xf32>
    %413 = math.exp %412 : vector<8x128xf32>
    %cst_193 = arith.constant 1.000000e+00 : f32
    %414 = vector.broadcast %cst_193 : f32 to vector<8x128xf32>
    %415 = arith.addf %414, %413 : vector<8x128xf32>
    %416 = arith.divf %414, %415 : vector<8x128xf32>
    %417 = arith.mulf %408, %391 : vector<8x128xf32>
    %418 = arith.mulf %402, %410 : vector<8x128xf32>
    %419 = arith.addf %417, %418 : vector<8x128xf32>
    %420 = math.tanh %419 : vector<8x128xf32>
    %421 = arith.mulf %416, %420 : vector<8x128xf32>
    %cst_194 = arith.constant dense<0.000000e+00> : vector<8x128xf32>
    %422 = tpu.matmul %421, %312, %cst_194 {dimension_numbers = #tpu.dot_dimension_numbers<[1], [0], [0], [1], [0, 0, 1, 1], [], []>} : vector<8x128xf32>, vector<128x128xf32>, vector<8x128xf32> -> vector<8x128xf32>
    %423 = vector.broadcast %313 : vector<1x128xf32> to vector<8x128xf32>
    %424 = arith.addf %422, %423 : vector<8x128xf32>
    %c1_i32_195 = arith.constant 1 : i32
    %425 = arith.addi %c1_i32_178, %c1_i32_195 : i32
    %426 = arith.index_cast %425 : i32 to index
    %c0_196 = arith.constant 0 : index
    %c0_197 = arith.constant 0 : index
    %427 = vector.load %arg13[%426, %c0_196, %c0_197] : memref<8x8x128xf32, #tpu.memory_space<vmem>>, vector<1x8x128xf32>
    %428 = vector.shape_cast %427 : vector<1x8x128xf32> to vector<8x128xf32>
    %429 = vector.shape_cast %424 : vector<8x128xf32> to vector<1x8x128xf32>
    tpu.vector_store %arg13[%426, %c0_196, %c0_197], %429 {strides = array<i32>} : memref<8x8x128xf32, #tpu.memory_space<vmem>>, vector<1x8x128xf32>,
    %cst_198 = arith.constant dense<0xFF800000> : vector<8xf32>
    %430 = vector.multi_reduction <maximumf>, %424, %cst_198 [1] : vector<8x128xf32> to vector<8xf32>
    %431 = vector.shape_cast %430 : vector<8xf32> to vector<8x1xf32>
    %432 = vector.broadcast %431 : vector<8x1xf32> to vector<8x128xf32>
    %433 = arith.cmpf oeq, %424, %432 : vector<8x128xf32>
    %cst_199 = arith.constant 1.280000e+02 : f32
    %434 = vector.broadcast %cst_199 : f32 to vector<8x128xf32>
    %435 = arith.select %433, %315, %434 : vector<8x128xi1>, vector<8x128xf32>
    %cst_200 = arith.constant dense<0x7F800000> : vector<8xf32>
    %436 = vector.multi_reduction <minimumf>, %435, %cst_200 [1] : vector<8x128xf32> to vector<8xf32>
    %437 = vector.shape_cast %436 : vector<8xf32> to vector<8x1xf32>
    %438 = vector.broadcast %437 : vector<8x1xf32> to vector<8x128xf32>
    %439 = arith.cmpf oeq, %315, %438 : vector<8x128xf32>
    %cst_201 = arith.constant 1.000000e+00 : f32
    %cst_202 = arith.constant 0.000000e+00 : f32
    %440 = vector.broadcast %cst_201 : f32 to vector<8x128xf32>
    %441 = vector.broadcast %cst_202 : f32 to vector<8x128xf32>
    %442 = arith.select %439, %440, %441 : vector<8x128xi1>, vector<8x128xf32>
    %c0_203 = arith.constant 0 : index
    %c0_204 = arith.constant 0 : index
    %443 = vector.load %arg16[%c0_203, %c0_204] : memref<8x128xf32, #tpu.memory_space<vmem>>, vector<8x128xf32>
    tpu.vector_store %arg16[%c0_203, %c0_204], %442 {strides = array<i32>} : memref<8x128xf32, #tpu.memory_space<vmem>>, vector<8x128xf32>,
    %c0_205 = arith.constant 0 : index
    %c0_206 = arith.constant 0 : index
    %444 = vector.load %arg14[%c0_205, %c0_206] : memref<8x128xf32, #tpu.memory_space<vmem>>, vector<8x128xf32>
    tpu.vector_store %arg14[%c0_205, %c0_206], %421 {strides = array<i32>} : memref<8x128xf32, #tpu.memory_space<vmem>>, vector<8x128xf32>,
    %c0_207 = arith.constant 0 : index
    %c0_208 = arith.constant 0 : index
    %445 = vector.load %arg15[%c0_207, %c0_208] : memref<8x128xf32, #tpu.memory_space<vmem>>, vector<8x128xf32>
    tpu.vector_store %arg15[%c0_207, %c0_208], %419 {strides = array<i32>} : memref<8x128xf32, #tpu.memory_space<vmem>>, vector<8x128xf32>,
    %c2_i32_209 = arith.constant 2 : i32
    %446 = arith.index_cast %c2_i32_209 : i32 to index
    %447 = memref.load %arg1[%446] : memref<7xi32, #tpu.memory_space<smem>>
    %c0_i32_210 = arith.constant 0 : i32
    %448 = arith.cmpi sgt, %447, %c0_i32_210 : i32
    %449 = arith.extui %448 : i1 to i32
    %c0_i32_211 = arith.constant 0 : i32
    %450 = arith.cmpi ne, %449, %c0_i32_211 : i32
    scf.if %450 {
      %771 = arith.index_cast %c2_i32_209 : i32 to index
      %c0_365 = arith.constant 0 : index
      %c0_366 = arith.constant 0 : index
      %772 = vector.load %arg3[%771, %c0_365, %c0_366] : memref<7x8x128xf32, #tpu.memory_space<vmem>>, vector<1x8x128xf32>
      %773 = vector.shape_cast %772 : vector<1x8x128xf32> to vector<8x128xf32>
      %c0_367 = arith.constant 0 : index
      %c0_368 = arith.constant 0 : index
      %774 = vector.load %arg17[%c0_367, %c0_368] : memref<8x128xf32, #tpu.memory_space<vmem>>, vector<8x128xf32>
      tpu.vector_store %arg17[%c0_367, %c0_368], %773 {strides = array<i32>} : memref<8x128xf32, #tpu.memory_space<vmem>>, vector<8x128xf32>,
    } else {
    }
    %c0_i32_212 = arith.constant 0 : i32
    %451 = arith.cmpi eq, %447, %c0_i32_212 : i32
    %452 = arith.extui %451 : i1 to i32
    %c0_i32_213 = arith.constant 0 : i32
    %453 = arith.cmpi ne, %452, %c0_i32_213 : i32
    scf.if %453 {
      %c0_365 = arith.constant 0 : index
      %c0_366 = arith.constant 0 : index
      %771 = vector.load %arg16[%c0_365, %c0_366] : memref<8x128xf32, #tpu.memory_space<vmem>>, vector<8x128xf32>
      %c0_367 = arith.constant 0 : index
      %c0_368 = arith.constant 0 : index
      %772 = vector.load %arg10[%c0_367, %c0_368] : memref<128x128xf32, #tpu.memory_space<vmem>>, vector<128x128xf32>
      %cst_369 = arith.constant dense<0.000000e+00> : vector<8x128xf32>
      %773 = tpu.matmul %771, %772, %cst_369 {dimension_numbers = #tpu.dot_dimension_numbers<[1], [0], [0], [1], [0, 0, 1, 1], [], []>} : vector<8x128xf32>, vector<128x128xf32>, vector<8x128xf32> -> vector<8x128xf32>
      %c0_370 = arith.constant 0 : index
      %c0_371 = arith.constant 0 : index
      %774 = vector.load %arg17[%c0_370, %c0_371] : memref<8x128xf32, #tpu.memory_space<vmem>>, vector<8x128xf32>
      tpu.vector_store %arg17[%c0_370, %c0_371], %773 {strides = array<i32>} : memref<8x128xf32, #tpu.memory_space<vmem>>, vector<8x128xf32>,
    } else {
    }
    %c0_214 = arith.constant 0 : index
    %c0_215 = arith.constant 0 : index
    %454 = vector.load %arg17[%c0_214, %c0_215] : memref<8x128xf32, #tpu.memory_space<vmem>>, vector<8x128xf32>
    %c0_216 = arith.constant 0 : index
    %c0_217 = arith.constant 0 : index
    %455 = vector.load %arg14[%c0_216, %c0_217] : memref<8x128xf32, #tpu.memory_space<vmem>>, vector<8x128xf32>
    %c0_218 = arith.constant 0 : index
    %c0_219 = arith.constant 0 : index
    %456 = vector.load %arg15[%c0_218, %c0_219] : memref<8x128xf32, #tpu.memory_space<vmem>>, vector<8x128xf32>
    %cst_220 = arith.constant dense<0.000000e+00> : vector<8x512xf32>
    %457 = tpu.matmul %454, %309, %cst_220 {dimension_numbers = #tpu.dot_dimension_numbers<[1], [0], [0], [1], [0, 0, 1, 1], [], []>} : vector<8x128xf32>, vector<128x512xf32>, vector<8x512xf32> -> vector<8x512xf32>
    %cst_221 = arith.constant dense<0.000000e+00> : vector<8x512xf32>
    %458 = tpu.matmul %455, %310, %cst_221 {dimension_numbers = #tpu.dot_dimension_numbers<[1], [0], [0], [1], [0, 0, 1, 1], [], []>} : vector<8x128xf32>, vector<128x512xf32>, vector<8x512xf32> -> vector<8x512xf32>
    %459 = arith.addf %457, %458 : vector<8x512xf32>
    %460 = vector.broadcast %311 : vector<1x512xf32> to vector<8x512xf32>
    %461 = arith.addf %459, %460 : vector<8x512xf32>
    %462 = vector.extract_strided_slice %461 {offsets = [0, 0], sizes = [8, 128], strides = [1, 1]} : vector<8x512xf32> to vector<8x128xf32>
    %463 = arith.negf %462 : vector<8x128xf32>
    %464 = math.exp %463 : vector<8x128xf32>
    %cst_222 = arith.constant 1.000000e+00 : f32
    %465 = vector.broadcast %cst_222 : f32 to vector<8x128xf32>
    %466 = arith.addf %465, %464 : vector<8x128xf32>
    %467 = arith.divf %465, %466 : vector<8x128xf32>
    %468 = vector.extract_strided_slice %461 {offsets = [0, 128], sizes = [8, 128], strides = [1, 1]} : vector<8x512xf32> to vector<8x128xf32>
    %469 = arith.negf %468 : vector<8x128xf32>
    %470 = math.exp %469 : vector<8x128xf32>
    %cst_223 = arith.constant 1.000000e+00 : f32
    %471 = vector.broadcast %cst_223 : f32 to vector<8x128xf32>
    %472 = arith.addf %471, %470 : vector<8x128xf32>
    %473 = arith.divf %471, %472 : vector<8x128xf32>
    %474 = vector.extract_strided_slice %461 {offsets = [0, 256], sizes = [8, 128], strides = [1, 1]} : vector<8x512xf32> to vector<8x128xf32>
    %475 = math.tanh %474 : vector<8x128xf32>
    %476 = vector.extract_strided_slice %461 {offsets = [0, 384], sizes = [8, 128], strides = [1, 1]} : vector<8x512xf32> to vector<8x128xf32>
    %477 = arith.negf %476 : vector<8x128xf32>
    %478 = math.exp %477 : vector<8x128xf32>
    %cst_224 = arith.constant 1.000000e+00 : f32
    %479 = vector.broadcast %cst_224 : f32 to vector<8x128xf32>
    %480 = arith.addf %479, %478 : vector<8x128xf32>
    %481 = arith.divf %479, %480 : vector<8x128xf32>
    %482 = arith.mulf %473, %456 : vector<8x128xf32>
    %483 = arith.mulf %467, %475 : vector<8x128xf32>
    %484 = arith.addf %482, %483 : vector<8x128xf32>
    %485 = math.tanh %484 : vector<8x128xf32>
    %486 = arith.mulf %481, %485 : vector<8x128xf32>
    %cst_225 = arith.constant dense<0.000000e+00> : vector<8x128xf32>
    %487 = tpu.matmul %486, %312, %cst_225 {dimension_numbers = #tpu.dot_dimension_numbers<[1], [0], [0], [1], [0, 0, 1, 1], [], []>} : vector<8x128xf32>, vector<128x128xf32>, vector<8x128xf32> -> vector<8x128xf32>
    %488 = vector.broadcast %313 : vector<1x128xf32> to vector<8x128xf32>
    %489 = arith.addf %487, %488 : vector<8x128xf32>
    %c1_i32_226 = arith.constant 1 : i32
    %490 = arith.addi %c2_i32_209, %c1_i32_226 : i32
    %491 = arith.index_cast %490 : i32 to index
    %c0_227 = arith.constant 0 : index
    %c0_228 = arith.constant 0 : index
    %492 = vector.load %arg13[%491, %c0_227, %c0_228] : memref<8x8x128xf32, #tpu.memory_space<vmem>>, vector<1x8x128xf32>
    %493 = vector.shape_cast %492 : vector<1x8x128xf32> to vector<8x128xf32>
    %494 = vector.shape_cast %489 : vector<8x128xf32> to vector<1x8x128xf32>
    tpu.vector_store %arg13[%491, %c0_227, %c0_228], %494 {strides = array<i32>} : memref<8x8x128xf32, #tpu.memory_space<vmem>>, vector<1x8x128xf32>,
    %cst_229 = arith.constant dense<0xFF800000> : vector<8xf32>
    %495 = vector.multi_reduction <maximumf>, %489, %cst_229 [1] : vector<8x128xf32> to vector<8xf32>
    %496 = vector.shape_cast %495 : vector<8xf32> to vector<8x1xf32>
    %497 = vector.broadcast %496 : vector<8x1xf32> to vector<8x128xf32>
    %498 = arith.cmpf oeq, %489, %497 : vector<8x128xf32>
    %cst_230 = arith.constant 1.280000e+02 : f32
    %499 = vector.broadcast %cst_230 : f32 to vector<8x128xf32>
    %500 = arith.select %498, %315, %499 : vector<8x128xi1>, vector<8x128xf32>
    %cst_231 = arith.constant dense<0x7F800000> : vector<8xf32>
    %501 = vector.multi_reduction <minimumf>, %500, %cst_231 [1] : vector<8x128xf32> to vector<8xf32>
    %502 = vector.shape_cast %501 : vector<8xf32> to vector<8x1xf32>
    %503 = vector.broadcast %502 : vector<8x1xf32> to vector<8x128xf32>
    %504 = arith.cmpf oeq, %315, %503 : vector<8x128xf32>
    %cst_232 = arith.constant 1.000000e+00 : f32
    %cst_233 = arith.constant 0.000000e+00 : f32
    %505 = vector.broadcast %cst_232 : f32 to vector<8x128xf32>
    %506 = vector.broadcast %cst_233 : f32 to vector<8x128xf32>
    %507 = arith.select %504, %505, %506 : vector<8x128xi1>, vector<8x128xf32>
    %c0_234 = arith.constant 0 : index
    %c0_235 = arith.constant 0 : index
    %508 = vector.load %arg16[%c0_234, %c0_235] : memref<8x128xf32, #tpu.memory_space<vmem>>, vector<8x128xf32>
    tpu.vector_store %arg16[%c0_234, %c0_235], %507 {strides = array<i32>} : memref<8x128xf32, #tpu.memory_space<vmem>>, vector<8x128xf32>,
    %c0_236 = arith.constant 0 : index
    %c0_237 = arith.constant 0 : index
    %509 = vector.load %arg14[%c0_236, %c0_237] : memref<8x128xf32, #tpu.memory_space<vmem>>, vector<8x128xf32>
    tpu.vector_store %arg14[%c0_236, %c0_237], %486 {strides = array<i32>} : memref<8x128xf32, #tpu.memory_space<vmem>>, vector<8x128xf32>,
    %c0_238 = arith.constant 0 : index
    %c0_239 = arith.constant 0 : index
    %510 = vector.load %arg15[%c0_238, %c0_239] : memref<8x128xf32, #tpu.memory_space<vmem>>, vector<8x128xf32>
    tpu.vector_store %arg15[%c0_238, %c0_239], %484 {strides = array<i32>} : memref<8x128xf32, #tpu.memory_space<vmem>>, vector<8x128xf32>,
    %c3_i32_240 = arith.constant 3 : i32
    %511 = arith.index_cast %c3_i32_240 : i32 to index
    %512 = memref.load %arg1[%511] : memref<7xi32, #tpu.memory_space<smem>>
    %c0_i32_241 = arith.constant 0 : i32
    %513 = arith.cmpi sgt, %512, %c0_i32_241 : i32
    %514 = arith.extui %513 : i1 to i32
    %c0_i32_242 = arith.constant 0 : i32
    %515 = arith.cmpi ne, %514, %c0_i32_242 : i32
    scf.if %515 {
      %771 = arith.index_cast %c3_i32_240 : i32 to index
      %c0_365 = arith.constant 0 : index
      %c0_366 = arith.constant 0 : index
      %772 = vector.load %arg3[%771, %c0_365, %c0_366] : memref<7x8x128xf32, #tpu.memory_space<vmem>>, vector<1x8x128xf32>
      %773 = vector.shape_cast %772 : vector<1x8x128xf32> to vector<8x128xf32>
      %c0_367 = arith.constant 0 : index
      %c0_368 = arith.constant 0 : index
      %774 = vector.load %arg17[%c0_367, %c0_368] : memref<8x128xf32, #tpu.memory_space<vmem>>, vector<8x128xf32>
      tpu.vector_store %arg17[%c0_367, %c0_368], %773 {strides = array<i32>} : memref<8x128xf32, #tpu.memory_space<vmem>>, vector<8x128xf32>,
    } else {
    }
    %c0_i32_243 = arith.constant 0 : i32
    %516 = arith.cmpi eq, %512, %c0_i32_243 : i32
    %517 = arith.extui %516 : i1 to i32
    %c0_i32_244 = arith.constant 0 : i32
    %518 = arith.cmpi ne, %517, %c0_i32_244 : i32
    scf.if %518 {
      %c0_365 = arith.constant 0 : index
      %c0_366 = arith.constant 0 : index
      %771 = vector.load %arg16[%c0_365, %c0_366] : memref<8x128xf32, #tpu.memory_space<vmem>>, vector<8x128xf32>
      %c0_367 = arith.constant 0 : index
      %c0_368 = arith.constant 0 : index
      %772 = vector.load %arg10[%c0_367, %c0_368] : memref<128x128xf32, #tpu.memory_space<vmem>>, vector<128x128xf32>
      %cst_369 = arith.constant dense<0.000000e+00> : vector<8x128xf32>
      %773 = tpu.matmul %771, %772, %cst_369 {dimension_numbers = #tpu.dot_dimension_numbers<[1], [0], [0], [1], [0, 0, 1, 1], [], []>} : vector<8x128xf32>, vector<128x128xf32>, vector<8x128xf32> -> vector<8x128xf32>
      %c0_370 = arith.constant 0 : index
      %c0_371 = arith.constant 0 : index
      %774 = vector.load %arg17[%c0_370, %c0_371] : memref<8x128xf32, #tpu.memory_space<vmem>>, vector<8x128xf32>
      tpu.vector_store %arg17[%c0_370, %c0_371], %773 {strides = array<i32>} : memref<8x128xf32, #tpu.memory_space<vmem>>, vector<8x128xf32>,
    } else {
    }
    %c0_245 = arith.constant 0 : index
    %c0_246 = arith.constant 0 : index
    %519 = vector.load %arg17[%c0_245, %c0_246] : memref<8x128xf32, #tpu.memory_space<vmem>>, vector<8x128xf32>
    %c0_247 = arith.constant 0 : index
    %c0_248 = arith.constant 0 : index
    %520 = vector.load %arg14[%c0_247, %c0_248] : memref<8x128xf32, #tpu.memory_space<vmem>>, vector<8x128xf32>
    %c0_249 = arith.constant 0 : index
    %c0_250 = arith.constant 0 : index
    %521 = vector.load %arg15[%c0_249, %c0_250] : memref<8x128xf32, #tpu.memory_space<vmem>>, vector<8x128xf32>
    %cst_251 = arith.constant dense<0.000000e+00> : vector<8x512xf32>
    %522 = tpu.matmul %519, %309, %cst_251 {dimension_numbers = #tpu.dot_dimension_numbers<[1], [0], [0], [1], [0, 0, 1, 1], [], []>} : vector<8x128xf32>, vector<128x512xf32>, vector<8x512xf32> -> vector<8x512xf32>
    %cst_252 = arith.constant dense<0.000000e+00> : vector<8x512xf32>
    %523 = tpu.matmul %520, %310, %cst_252 {dimension_numbers = #tpu.dot_dimension_numbers<[1], [0], [0], [1], [0, 0, 1, 1], [], []>} : vector<8x128xf32>, vector<128x512xf32>, vector<8x512xf32> -> vector<8x512xf32>
    %524 = arith.addf %522, %523 : vector<8x512xf32>
    %525 = vector.broadcast %311 : vector<1x512xf32> to vector<8x512xf32>
    %526 = arith.addf %524, %525 : vector<8x512xf32>
    %527 = vector.extract_strided_slice %526 {offsets = [0, 0], sizes = [8, 128], strides = [1, 1]} : vector<8x512xf32> to vector<8x128xf32>
    %528 = arith.negf %527 : vector<8x128xf32>
    %529 = math.exp %528 : vector<8x128xf32>
    %cst_253 = arith.constant 1.000000e+00 : f32
    %530 = vector.broadcast %cst_253 : f32 to vector<8x128xf32>
    %531 = arith.addf %530, %529 : vector<8x128xf32>
    %532 = arith.divf %530, %531 : vector<8x128xf32>
    %533 = vector.extract_strided_slice %526 {offsets = [0, 128], sizes = [8, 128], strides = [1, 1]} : vector<8x512xf32> to vector<8x128xf32>
    %534 = arith.negf %533 : vector<8x128xf32>
    %535 = math.exp %534 : vector<8x128xf32>
    %cst_254 = arith.constant 1.000000e+00 : f32
    %536 = vector.broadcast %cst_254 : f32 to vector<8x128xf32>
    %537 = arith.addf %536, %535 : vector<8x128xf32>
    %538 = arith.divf %536, %537 : vector<8x128xf32>
    %539 = vector.extract_strided_slice %526 {offsets = [0, 256], sizes = [8, 128], strides = [1, 1]} : vector<8x512xf32> to vector<8x128xf32>
    %540 = math.tanh %539 : vector<8x128xf32>
    %541 = vector.extract_strided_slice %526 {offsets = [0, 384], sizes = [8, 128], strides = [1, 1]} : vector<8x512xf32> to vector<8x128xf32>
    %542 = arith.negf %541 : vector<8x128xf32>
    %543 = math.exp %542 : vector<8x128xf32>
    %cst_255 = arith.constant 1.000000e+00 : f32
    %544 = vector.broadcast %cst_255 : f32 to vector<8x128xf32>
    %545 = arith.addf %544, %543 : vector<8x128xf32>
    %546 = arith.divf %544, %545 : vector<8x128xf32>
    %547 = arith.mulf %538, %521 : vector<8x128xf32>
    %548 = arith.mulf %532, %540 : vector<8x128xf32>
    %549 = arith.addf %547, %548 : vector<8x128xf32>
    %550 = math.tanh %549 : vector<8x128xf32>
    %551 = arith.mulf %546, %550 : vector<8x128xf32>
    %cst_256 = arith.constant dense<0.000000e+00> : vector<8x128xf32>
    %552 = tpu.matmul %551, %312, %cst_256 {dimension_numbers = #tpu.dot_dimension_numbers<[1], [0], [0], [1], [0, 0, 1, 1], [], []>} : vector<8x128xf32>, vector<128x128xf32>, vector<8x128xf32> -> vector<8x128xf32>
    %553 = vector.broadcast %313 : vector<1x128xf32> to vector<8x128xf32>
    %554 = arith.addf %552, %553 : vector<8x128xf32>
    %c1_i32_257 = arith.constant 1 : i32
    %555 = arith.addi %c3_i32_240, %c1_i32_257 : i32
    %556 = arith.index_cast %555 : i32 to index
    %c0_258 = arith.constant 0 : index
    %c0_259 = arith.constant 0 : index
    %557 = vector.load %arg13[%556, %c0_258, %c0_259] : memref<8x8x128xf32, #tpu.memory_space<vmem>>, vector<1x8x128xf32>
    %558 = vector.shape_cast %557 : vector<1x8x128xf32> to vector<8x128xf32>
    %559 = vector.shape_cast %554 : vector<8x128xf32> to vector<1x8x128xf32>
    tpu.vector_store %arg13[%556, %c0_258, %c0_259], %559 {strides = array<i32>} : memref<8x8x128xf32, #tpu.memory_space<vmem>>, vector<1x8x128xf32>,
    %cst_260 = arith.constant dense<0xFF800000> : vector<8xf32>
    %560 = vector.multi_reduction <maximumf>, %554, %cst_260 [1] : vector<8x128xf32> to vector<8xf32>
    %561 = vector.shape_cast %560 : vector<8xf32> to vector<8x1xf32>
    %562 = vector.broadcast %561 : vector<8x1xf32> to vector<8x128xf32>
    %563 = arith.cmpf oeq, %554, %562 : vector<8x128xf32>
    %cst_261 = arith.constant 1.280000e+02 : f32
    %564 = vector.broadcast %cst_261 : f32 to vector<8x128xf32>
    %565 = arith.select %563, %315, %564 : vector<8x128xi1>, vector<8x128xf32>
    %cst_262 = arith.constant dense<0x7F800000> : vector<8xf32>
    %566 = vector.multi_reduction <minimumf>, %565, %cst_262 [1] : vector<8x128xf32> to vector<8xf32>
    %567 = vector.shape_cast %566 : vector<8xf32> to vector<8x1xf32>
    %568 = vector.broadcast %567 : vector<8x1xf32> to vector<8x128xf32>
    %569 = arith.cmpf oeq, %315, %568 : vector<8x128xf32>
    %cst_263 = arith.constant 1.000000e+00 : f32
    %cst_264 = arith.constant 0.000000e+00 : f32
    %570 = vector.broadcast %cst_263 : f32 to vector<8x128xf32>
    %571 = vector.broadcast %cst_264 : f32 to vector<8x128xf32>
    %572 = arith.select %569, %570, %571 : vector<8x128xi1>, vector<8x128xf32>
    %c0_265 = arith.constant 0 : index
    %c0_266 = arith.constant 0 : index
    %573 = vector.load %arg16[%c0_265, %c0_266] : memref<8x128xf32, #tpu.memory_space<vmem>>, vector<8x128xf32>
    tpu.vector_store %arg16[%c0_265, %c0_266], %572 {strides = array<i32>} : memref<8x128xf32, #tpu.memory_space<vmem>>, vector<8x128xf32>,
    %c0_267 = arith.constant 0 : index
    %c0_268 = arith.constant 0 : index
    %574 = vector.load %arg14[%c0_267, %c0_268] : memref<8x128xf32, #tpu.memory_space<vmem>>, vector<8x128xf32>
    tpu.vector_store %arg14[%c0_267, %c0_268], %551 {strides = array<i32>} : memref<8x128xf32, #tpu.memory_space<vmem>>, vector<8x128xf32>,
    %c0_269 = arith.constant 0 : index
    %c0_270 = arith.constant 0 : index
    %575 = vector.load %arg15[%c0_269, %c0_270] : memref<8x128xf32, #tpu.memory_space<vmem>>, vector<8x128xf32>
    tpu.vector_store %arg15[%c0_269, %c0_270], %549 {strides = array<i32>} : memref<8x128xf32, #tpu.memory_space<vmem>>, vector<8x128xf32>,
    %c4_i32_271 = arith.constant 4 : i32
    %576 = arith.index_cast %c4_i32_271 : i32 to index
    %577 = memref.load %arg1[%576] : memref<7xi32, #tpu.memory_space<smem>>
    %c0_i32_272 = arith.constant 0 : i32
    %578 = arith.cmpi sgt, %577, %c0_i32_272 : i32
    %579 = arith.extui %578 : i1 to i32
    %c0_i32_273 = arith.constant 0 : i32
    %580 = arith.cmpi ne, %579, %c0_i32_273 : i32
    scf.if %580 {
      %771 = arith.index_cast %c4_i32_271 : i32 to index
      %c0_365 = arith.constant 0 : index
      %c0_366 = arith.constant 0 : index
      %772 = vector.load %arg3[%771, %c0_365, %c0_366] : memref<7x8x128xf32, #tpu.memory_space<vmem>>, vector<1x8x128xf32>
      %773 = vector.shape_cast %772 : vector<1x8x128xf32> to vector<8x128xf32>
      %c0_367 = arith.constant 0 : index
      %c0_368 = arith.constant 0 : index
      %774 = vector.load %arg17[%c0_367, %c0_368] : memref<8x128xf32, #tpu.memory_space<vmem>>, vector<8x128xf32>
      tpu.vector_store %arg17[%c0_367, %c0_368], %773 {strides = array<i32>} : memref<8x128xf32, #tpu.memory_space<vmem>>, vector<8x128xf32>,
    } else {
    }
    %c0_i32_274 = arith.constant 0 : i32
    %581 = arith.cmpi eq, %577, %c0_i32_274 : i32
    %582 = arith.extui %581 : i1 to i32
    %c0_i32_275 = arith.constant 0 : i32
    %583 = arith.cmpi ne, %582, %c0_i32_275 : i32
    scf.if %583 {
      %c0_365 = arith.constant 0 : index
      %c0_366 = arith.constant 0 : index
      %771 = vector.load %arg16[%c0_365, %c0_366] : memref<8x128xf32, #tpu.memory_space<vmem>>, vector<8x128xf32>
      %c0_367 = arith.constant 0 : index
      %c0_368 = arith.constant 0 : index
      %772 = vector.load %arg10[%c0_367, %c0_368] : memref<128x128xf32, #tpu.memory_space<vmem>>, vector<128x128xf32>
      %cst_369 = arith.constant dense<0.000000e+00> : vector<8x128xf32>
      %773 = tpu.matmul %771, %772, %cst_369 {dimension_numbers = #tpu.dot_dimension_numbers<[1], [0], [0], [1], [0, 0, 1, 1], [], []>} : vector<8x128xf32>, vector<128x128xf32>, vector<8x128xf32> -> vector<8x128xf32>
      %c0_370 = arith.constant 0 : index
      %c0_371 = arith.constant 0 : index
      %774 = vector.load %arg17[%c0_370, %c0_371] : memref<8x128xf32, #tpu.memory_space<vmem>>, vector<8x128xf32>
      tpu.vector_store %arg17[%c0_370, %c0_371], %773 {strides = array<i32>} : memref<8x128xf32, #tpu.memory_space<vmem>>, vector<8x128xf32>,
    } else {
    }
    %c0_276 = arith.constant 0 : index
    %c0_277 = arith.constant 0 : index
    %584 = vector.load %arg17[%c0_276, %c0_277] : memref<8x128xf32, #tpu.memory_space<vmem>>, vector<8x128xf32>
    %c0_278 = arith.constant 0 : index
    %c0_279 = arith.constant 0 : index
    %585 = vector.load %arg14[%c0_278, %c0_279] : memref<8x128xf32, #tpu.memory_space<vmem>>, vector<8x128xf32>
    %c0_280 = arith.constant 0 : index
    %c0_281 = arith.constant 0 : index
    %586 = vector.load %arg15[%c0_280, %c0_281] : memref<8x128xf32, #tpu.memory_space<vmem>>, vector<8x128xf32>
    %cst_282 = arith.constant dense<0.000000e+00> : vector<8x512xf32>
    %587 = tpu.matmul %584, %309, %cst_282 {dimension_numbers = #tpu.dot_dimension_numbers<[1], [0], [0], [1], [0, 0, 1, 1], [], []>} : vector<8x128xf32>, vector<128x512xf32>, vector<8x512xf32> -> vector<8x512xf32>
    %cst_283 = arith.constant dense<0.000000e+00> : vector<8x512xf32>
    %588 = tpu.matmul %585, %310, %cst_283 {dimension_numbers = #tpu.dot_dimension_numbers<[1], [0], [0], [1], [0, 0, 1, 1], [], []>} : vector<8x128xf32>, vector<128x512xf32>, vector<8x512xf32> -> vector<8x512xf32>
    %589 = arith.addf %587, %588 : vector<8x512xf32>
    %590 = vector.broadcast %311 : vector<1x512xf32> to vector<8x512xf32>
    %591 = arith.addf %589, %590 : vector<8x512xf32>
    %592 = vector.extract_strided_slice %591 {offsets = [0, 0], sizes = [8, 128], strides = [1, 1]} : vector<8x512xf32> to vector<8x128xf32>
    %593 = arith.negf %592 : vector<8x128xf32>
    %594 = math.exp %593 : vector<8x128xf32>
    %cst_284 = arith.constant 1.000000e+00 : f32
    %595 = vector.broadcast %cst_284 : f32 to vector<8x128xf32>
    %596 = arith.addf %595, %594 : vector<8x128xf32>
    %597 = arith.divf %595, %596 : vector<8x128xf32>
    %598 = vector.extract_strided_slice %591 {offsets = [0, 128], sizes = [8, 128], strides = [1, 1]} : vector<8x512xf32> to vector<8x128xf32>
    %599 = arith.negf %598 : vector<8x128xf32>
    %600 = math.exp %599 : vector<8x128xf32>
    %cst_285 = arith.constant 1.000000e+00 : f32
    %601 = vector.broadcast %cst_285 : f32 to vector<8x128xf32>
    %602 = arith.addf %601, %600 : vector<8x128xf32>
    %603 = arith.divf %601, %602 : vector<8x128xf32>
    %604 = vector.extract_strided_slice %591 {offsets = [0, 256], sizes = [8, 128], strides = [1, 1]} : vector<8x512xf32> to vector<8x128xf32>
    %605 = math.tanh %604 : vector<8x128xf32>
    %606 = vector.extract_strided_slice %591 {offsets = [0, 384], sizes = [8, 128], strides = [1, 1]} : vector<8x512xf32> to vector<8x128xf32>
    %607 = arith.negf %606 : vector<8x128xf32>
    %608 = math.exp %607 : vector<8x128xf32>
    %cst_286 = arith.constant 1.000000e+00 : f32
    %609 = vector.broadcast %cst_286 : f32 to vector<8x128xf32>
    %610 = arith.addf %609, %608 : vector<8x128xf32>
    %611 = arith.divf %609, %610 : vector<8x128xf32>
    %612 = arith.mulf %603, %586 : vector<8x128xf32>
    %613 = arith.mulf %597, %605 : vector<8x128xf32>
    %614 = arith.addf %612, %613 : vector<8x128xf32>
    %615 = math.tanh %614 : vector<8x128xf32>
    %616 = arith.mulf %611, %615 : vector<8x128xf32>
    %cst_287 = arith.constant dense<0.000000e+00> : vector<8x128xf32>
    %617 = tpu.matmul %616, %312, %cst_287 {dimension_numbers = #tpu.dot_dimension_numbers<[1], [0], [0], [1], [0, 0, 1, 1], [], []>} : vector<8x128xf32>, vector<128x128xf32>, vector<8x128xf32> -> vector<8x128xf32>
    %618 = vector.broadcast %313 : vector<1x128xf32> to vector<8x128xf32>
    %619 = arith.addf %617, %618 : vector<8x128xf32>
    %c1_i32_288 = arith.constant 1 : i32
    %620 = arith.addi %c4_i32_271, %c1_i32_288 : i32
    %621 = arith.index_cast %620 : i32 to index
    %c0_289 = arith.constant 0 : index
    %c0_290 = arith.constant 0 : index
    %622 = vector.load %arg13[%621, %c0_289, %c0_290] : memref<8x8x128xf32, #tpu.memory_space<vmem>>, vector<1x8x128xf32>
    %623 = vector.shape_cast %622 : vector<1x8x128xf32> to vector<8x128xf32>
    %624 = vector.shape_cast %619 : vector<8x128xf32> to vector<1x8x128xf32>
    tpu.vector_store %arg13[%621, %c0_289, %c0_290], %624 {strides = array<i32>} : memref<8x8x128xf32, #tpu.memory_space<vmem>>, vector<1x8x128xf32>,
    %cst_291 = arith.constant dense<0xFF800000> : vector<8xf32>
    %625 = vector.multi_reduction <maximumf>, %619, %cst_291 [1] : vector<8x128xf32> to vector<8xf32>
    %626 = vector.shape_cast %625 : vector<8xf32> to vector<8x1xf32>
    %627 = vector.broadcast %626 : vector<8x1xf32> to vector<8x128xf32>
    %628 = arith.cmpf oeq, %619, %627 : vector<8x128xf32>
    %cst_292 = arith.constant 1.280000e+02 : f32
    %629 = vector.broadcast %cst_292 : f32 to vector<8x128xf32>
    %630 = arith.select %628, %315, %629 : vector<8x128xi1>, vector<8x128xf32>
    %cst_293 = arith.constant dense<0x7F800000> : vector<8xf32>
    %631 = vector.multi_reduction <minimumf>, %630, %cst_293 [1] : vector<8x128xf32> to vector<8xf32>
    %632 = vector.shape_cast %631 : vector<8xf32> to vector<8x1xf32>
    %633 = vector.broadcast %632 : vector<8x1xf32> to vector<8x128xf32>
    %634 = arith.cmpf oeq, %315, %633 : vector<8x128xf32>
    %cst_294 = arith.constant 1.000000e+00 : f32
    %cst_295 = arith.constant 0.000000e+00 : f32
    %635 = vector.broadcast %cst_294 : f32 to vector<8x128xf32>
    %636 = vector.broadcast %cst_295 : f32 to vector<8x128xf32>
    %637 = arith.select %634, %635, %636 : vector<8x128xi1>, vector<8x128xf32>
    %c0_296 = arith.constant 0 : index
    %c0_297 = arith.constant 0 : index
    %638 = vector.load %arg16[%c0_296, %c0_297] : memref<8x128xf32, #tpu.memory_space<vmem>>, vector<8x128xf32>
    tpu.vector_store %arg16[%c0_296, %c0_297], %637 {strides = array<i32>} : memref<8x128xf32, #tpu.memory_space<vmem>>, vector<8x128xf32>,
    %c0_298 = arith.constant 0 : index
    %c0_299 = arith.constant 0 : index
    %639 = vector.load %arg14[%c0_298, %c0_299] : memref<8x128xf32, #tpu.memory_space<vmem>>, vector<8x128xf32>
    tpu.vector_store %arg14[%c0_298, %c0_299], %616 {strides = array<i32>} : memref<8x128xf32, #tpu.memory_space<vmem>>, vector<8x128xf32>,
    %c0_300 = arith.constant 0 : index
    %c0_301 = arith.constant 0 : index
    %640 = vector.load %arg15[%c0_300, %c0_301] : memref<8x128xf32, #tpu.memory_space<vmem>>, vector<8x128xf32>
    tpu.vector_store %arg15[%c0_300, %c0_301], %614 {strides = array<i32>} : memref<8x128xf32, #tpu.memory_space<vmem>>, vector<8x128xf32>,
    %c5_i32_302 = arith.constant 5 : i32
    %641 = arith.index_cast %c5_i32_302 : i32 to index
    %642 = memref.load %arg1[%641] : memref<7xi32, #tpu.memory_space<smem>>
    %c0_i32_303 = arith.constant 0 : i32
    %643 = arith.cmpi sgt, %642, %c0_i32_303 : i32
    %644 = arith.extui %643 : i1 to i32
    %c0_i32_304 = arith.constant 0 : i32
    %645 = arith.cmpi ne, %644, %c0_i32_304 : i32
    scf.if %645 {
      %771 = arith.index_cast %c5_i32_302 : i32 to index
      %c0_365 = arith.constant 0 : index
      %c0_366 = arith.constant 0 : index
      %772 = vector.load %arg3[%771, %c0_365, %c0_366] : memref<7x8x128xf32, #tpu.memory_space<vmem>>, vector<1x8x128xf32>
      %773 = vector.shape_cast %772 : vector<1x8x128xf32> to vector<8x128xf32>
      %c0_367 = arith.constant 0 : index
      %c0_368 = arith.constant 0 : index
      %774 = vector.load %arg17[%c0_367, %c0_368] : memref<8x128xf32, #tpu.memory_space<vmem>>, vector<8x128xf32>
      tpu.vector_store %arg17[%c0_367, %c0_368], %773 {strides = array<i32>} : memref<8x128xf32, #tpu.memory_space<vmem>>, vector<8x128xf32>,
    } else {
    }
    %c0_i32_305 = arith.constant 0 : i32
    %646 = arith.cmpi eq, %642, %c0_i32_305 : i32
    %647 = arith.extui %646 : i1 to i32
    %c0_i32_306 = arith.constant 0 : i32
    %648 = arith.cmpi ne, %647, %c0_i32_306 : i32
    scf.if %648 {
      %c0_365 = arith.constant 0 : index
      %c0_366 = arith.constant 0 : index
      %771 = vector.load %arg16[%c0_365, %c0_366] : memref<8x128xf32, #tpu.memory_space<vmem>>, vector<8x128xf32>
      %c0_367 = arith.constant 0 : index
      %c0_368 = arith.constant 0 : index
      %772 = vector.load %arg10[%c0_367, %c0_368] : memref<128x128xf32, #tpu.memory_space<vmem>>, vector<128x128xf32>
      %cst_369 = arith.constant dense<0.000000e+00> : vector<8x128xf32>
      %773 = tpu.matmul %771, %772, %cst_369 {dimension_numbers = #tpu.dot_dimension_numbers<[1], [0], [0], [1], [0, 0, 1, 1], [], []>} : vector<8x128xf32>, vector<128x128xf32>, vector<8x128xf32> -> vector<8x128xf32>
      %c0_370 = arith.constant 0 : index
      %c0_371 = arith.constant 0 : index
      %774 = vector.load %arg17[%c0_370, %c0_371] : memref<8x128xf32, #tpu.memory_space<vmem>>, vector<8x128xf32>
      tpu.vector_store %arg17[%c0_370, %c0_371], %773 {strides = array<i32>} : memref<8x128xf32, #tpu.memory_space<vmem>>, vector<8x128xf32>,
    } else {
    }
    %c0_307 = arith.constant 0 : index
    %c0_308 = arith.constant 0 : index
    %649 = vector.load %arg17[%c0_307, %c0_308] : memref<8x128xf32, #tpu.memory_space<vmem>>, vector<8x128xf32>
    %c0_309 = arith.constant 0 : index
    %c0_310 = arith.constant 0 : index
    %650 = vector.load %arg14[%c0_309, %c0_310] : memref<8x128xf32, #tpu.memory_space<vmem>>, vector<8x128xf32>
    %c0_311 = arith.constant 0 : index
    %c0_312 = arith.constant 0 : index
    %651 = vector.load %arg15[%c0_311, %c0_312] : memref<8x128xf32, #tpu.memory_space<vmem>>, vector<8x128xf32>
    %cst_313 = arith.constant dense<0.000000e+00> : vector<8x512xf32>
    %652 = tpu.matmul %649, %309, %cst_313 {dimension_numbers = #tpu.dot_dimension_numbers<[1], [0], [0], [1], [0, 0, 1, 1], [], []>} : vector<8x128xf32>, vector<128x512xf32>, vector<8x512xf32> -> vector<8x512xf32>
    %cst_314 = arith.constant dense<0.000000e+00> : vector<8x512xf32>
    %653 = tpu.matmul %650, %310, %cst_314 {dimension_numbers = #tpu.dot_dimension_numbers<[1], [0], [0], [1], [0, 0, 1, 1], [], []>} : vector<8x128xf32>, vector<128x512xf32>, vector<8x512xf32> -> vector<8x512xf32>
    %654 = arith.addf %652, %653 : vector<8x512xf32>
    %655 = vector.broadcast %311 : vector<1x512xf32> to vector<8x512xf32>
    %656 = arith.addf %654, %655 : vector<8x512xf32>
    %657 = vector.extract_strided_slice %656 {offsets = [0, 0], sizes = [8, 128], strides = [1, 1]} : vector<8x512xf32> to vector<8x128xf32>
    %658 = arith.negf %657 : vector<8x128xf32>
    %659 = math.exp %658 : vector<8x128xf32>
    %cst_315 = arith.constant 1.000000e+00 : f32
    %660 = vector.broadcast %cst_315 : f32 to vector<8x128xf32>
    %661 = arith.addf %660, %659 : vector<8x128xf32>
    %662 = arith.divf %660, %661 : vector<8x128xf32>
    %663 = vector.extract_strided_slice %656 {offsets = [0, 128], sizes = [8, 128], strides = [1, 1]} : vector<8x512xf32> to vector<8x128xf32>
    %664 = arith.negf %663 : vector<8x128xf32>
    %665 = math.exp %664 : vector<8x128xf32>
    %cst_316 = arith.constant 1.000000e+00 : f32
    %666 = vector.broadcast %cst_316 : f32 to vector<8x128xf32>
    %667 = arith.addf %666, %665 : vector<8x128xf32>
    %668 = arith.divf %666, %667 : vector<8x128xf32>
    %669 = vector.extract_strided_slice %656 {offsets = [0, 256], sizes = [8, 128], strides = [1, 1]} : vector<8x512xf32> to vector<8x128xf32>
    %670 = math.tanh %669 : vector<8x128xf32>
    %671 = vector.extract_strided_slice %656 {offsets = [0, 384], sizes = [8, 128], strides = [1, 1]} : vector<8x512xf32> to vector<8x128xf32>
    %672 = arith.negf %671 : vector<8x128xf32>
    %673 = math.exp %672 : vector<8x128xf32>
    %cst_317 = arith.constant 1.000000e+00 : f32
    %674 = vector.broadcast %cst_317 : f32 to vector<8x128xf32>
    %675 = arith.addf %674, %673 : vector<8x128xf32>
    %676 = arith.divf %674, %675 : vector<8x128xf32>
    %677 = arith.mulf %668, %651 : vector<8x128xf32>
    %678 = arith.mulf %662, %670 : vector<8x128xf32>
    %679 = arith.addf %677, %678 : vector<8x128xf32>
    %680 = math.tanh %679 : vector<8x128xf32>
    %681 = arith.mulf %676, %680 : vector<8x128xf32>
    %cst_318 = arith.constant dense<0.000000e+00> : vector<8x128xf32>
    %682 = tpu.matmul %681, %312, %cst_318 {dimension_numbers = #tpu.dot_dimension_numbers<[1], [0], [0], [1], [0, 0, 1, 1], [], []>} : vector<8x128xf32>, vector<128x128xf32>, vector<8x128xf32> -> vector<8x128xf32>
    %683 = vector.broadcast %313 : vector<1x128xf32> to vector<8x128xf32>
    %684 = arith.addf %682, %683 : vector<8x128xf32>
    %c1_i32_319 = arith.constant 1 : i32
    %685 = arith.addi %c5_i32_302, %c1_i32_319 : i32
    %686 = arith.index_cast %685 : i32 to index
    %c0_320 = arith.constant 0 : index
    %c0_321 = arith.constant 0 : index
    %687 = vector.load %arg13[%686, %c0_320, %c0_321] : memref<8x8x128xf32, #tpu.memory_space<vmem>>, vector<1x8x128xf32>
    %688 = vector.shape_cast %687 : vector<1x8x128xf32> to vector<8x128xf32>
    %689 = vector.shape_cast %684 : vector<8x128xf32> to vector<1x8x128xf32>
    tpu.vector_store %arg13[%686, %c0_320, %c0_321], %689 {strides = array<i32>} : memref<8x8x128xf32, #tpu.memory_space<vmem>>, vector<1x8x128xf32>,
    %cst_322 = arith.constant dense<0xFF800000> : vector<8xf32>
    %690 = vector.multi_reduction <maximumf>, %684, %cst_322 [1] : vector<8x128xf32> to vector<8xf32>
    %691 = vector.shape_cast %690 : vector<8xf32> to vector<8x1xf32>
    %692 = vector.broadcast %691 : vector<8x1xf32> to vector<8x128xf32>
    %693 = arith.cmpf oeq, %684, %692 : vector<8x128xf32>
    %cst_323 = arith.constant 1.280000e+02 : f32
    %694 = vector.broadcast %cst_323 : f32 to vector<8x128xf32>
    %695 = arith.select %693, %315, %694 : vector<8x128xi1>, vector<8x128xf32>
    %cst_324 = arith.constant dense<0x7F800000> : vector<8xf32>
    %696 = vector.multi_reduction <minimumf>, %695, %cst_324 [1] : vector<8x128xf32> to vector<8xf32>
    %697 = vector.shape_cast %696 : vector<8xf32> to vector<8x1xf32>
    %698 = vector.broadcast %697 : vector<8x1xf32> to vector<8x128xf32>
    %699 = arith.cmpf oeq, %315, %698 : vector<8x128xf32>
    %cst_325 = arith.constant 1.000000e+00 : f32
    %cst_326 = arith.constant 0.000000e+00 : f32
    %700 = vector.broadcast %cst_325 : f32 to vector<8x128xf32>
    %701 = vector.broadcast %cst_326 : f32 to vector<8x128xf32>
    %702 = arith.select %699, %700, %701 : vector<8x128xi1>, vector<8x128xf32>
    %c0_327 = arith.constant 0 : index
    %c0_328 = arith.constant 0 : index
    %703 = vector.load %arg16[%c0_327, %c0_328] : memref<8x128xf32, #tpu.memory_space<vmem>>, vector<8x128xf32>
    tpu.vector_store %arg16[%c0_327, %c0_328], %702 {strides = array<i32>} : memref<8x128xf32, #tpu.memory_space<vmem>>, vector<8x128xf32>,
    %c0_329 = arith.constant 0 : index
    %c0_330 = arith.constant 0 : index
    %704 = vector.load %arg14[%c0_329, %c0_330] : memref<8x128xf32, #tpu.memory_space<vmem>>, vector<8x128xf32>
    tpu.vector_store %arg14[%c0_329, %c0_330], %681 {strides = array<i32>} : memref<8x128xf32, #tpu.memory_space<vmem>>, vector<8x128xf32>,
    %c0_331 = arith.constant 0 : index
    %c0_332 = arith.constant 0 : index
    %705 = vector.load %arg15[%c0_331, %c0_332] : memref<8x128xf32, #tpu.memory_space<vmem>>, vector<8x128xf32>
    tpu.vector_store %arg15[%c0_331, %c0_332], %679 {strides = array<i32>} : memref<8x128xf32, #tpu.memory_space<vmem>>, vector<8x128xf32>,
    %c6_i32_333 = arith.constant 6 : i32
    %706 = arith.index_cast %c6_i32_333 : i32 to index
    %707 = memref.load %arg1[%706] : memref<7xi32, #tpu.memory_space<smem>>
    %c0_i32_334 = arith.constant 0 : i32
    %708 = arith.cmpi sgt, %707, %c0_i32_334 : i32
    %709 = arith.extui %708 : i1 to i32
    %c0_i32_335 = arith.constant 0 : i32
    %710 = arith.cmpi ne, %709, %c0_i32_335 : i32
    scf.if %710 {
      %771 = arith.index_cast %c6_i32_333 : i32 to index
      %c0_365 = arith.constant 0 : index
      %c0_366 = arith.constant 0 : index
      %772 = vector.load %arg3[%771, %c0_365, %c0_366] : memref<7x8x128xf32, #tpu.memory_space<vmem>>, vector<1x8x128xf32>
      %773 = vector.shape_cast %772 : vector<1x8x128xf32> to vector<8x128xf32>
      %c0_367 = arith.constant 0 : index
      %c0_368 = arith.constant 0 : index
      %774 = vector.load %arg17[%c0_367, %c0_368] : memref<8x128xf32, #tpu.memory_space<vmem>>, vector<8x128xf32>
      tpu.vector_store %arg17[%c0_367, %c0_368], %773 {strides = array<i32>} : memref<8x128xf32, #tpu.memory_space<vmem>>, vector<8x128xf32>,
    } else {
    }
    %c0_i32_336 = arith.constant 0 : i32
    %711 = arith.cmpi eq, %707, %c0_i32_336 : i32
    %712 = arith.extui %711 : i1 to i32
    %c0_i32_337 = arith.constant 0 : i32
    %713 = arith.cmpi ne, %712, %c0_i32_337 : i32
    scf.if %713 {
      %c0_365 = arith.constant 0 : index
      %c0_366 = arith.constant 0 : index
      %771 = vector.load %arg16[%c0_365, %c0_366] : memref<8x128xf32, #tpu.memory_space<vmem>>, vector<8x128xf32>
      %c0_367 = arith.constant 0 : index
      %c0_368 = arith.constant 0 : index
      %772 = vector.load %arg10[%c0_367, %c0_368] : memref<128x128xf32, #tpu.memory_space<vmem>>, vector<128x128xf32>
      %cst_369 = arith.constant dense<0.000000e+00> : vector<8x128xf32>
      %773 = tpu.matmul %771, %772, %cst_369 {dimension_numbers = #tpu.dot_dimension_numbers<[1], [0], [0], [1], [0, 0, 1, 1], [], []>} : vector<8x128xf32>, vector<128x128xf32>, vector<8x128xf32> -> vector<8x128xf32>
      %c0_370 = arith.constant 0 : index
      %c0_371 = arith.constant 0 : index
      %774 = vector.load %arg17[%c0_370, %c0_371] : memref<8x128xf32, #tpu.memory_space<vmem>>, vector<8x128xf32>
      tpu.vector_store %arg17[%c0_370, %c0_371], %773 {strides = array<i32>} : memref<8x128xf32, #tpu.memory_space<vmem>>, vector<8x128xf32>,
    } else {
    }
    %c0_338 = arith.constant 0 : index
    %c0_339 = arith.constant 0 : index
    %714 = vector.load %arg17[%c0_338, %c0_339] : memref<8x128xf32, #tpu.memory_space<vmem>>, vector<8x128xf32>
    %c0_340 = arith.constant 0 : index
    %c0_341 = arith.constant 0 : index
    %715 = vector.load %arg14[%c0_340, %c0_341] : memref<8x128xf32, #tpu.memory_space<vmem>>, vector<8x128xf32>
    %c0_342 = arith.constant 0 : index
    %c0_343 = arith.constant 0 : index
    %716 = vector.load %arg15[%c0_342, %c0_343] : memref<8x128xf32, #tpu.memory_space<vmem>>, vector<8x128xf32>
    %cst_344 = arith.constant dense<0.000000e+00> : vector<8x512xf32>
    %717 = tpu.matmul %714, %309, %cst_344 {dimension_numbers = #tpu.dot_dimension_numbers<[1], [0], [0], [1], [0, 0, 1, 1], [], []>} : vector<8x128xf32>, vector<128x512xf32>, vector<8x512xf32> -> vector<8x512xf32>
    %cst_345 = arith.constant dense<0.000000e+00> : vector<8x512xf32>
    %718 = tpu.matmul %715, %310, %cst_345 {dimension_numbers = #tpu.dot_dimension_numbers<[1], [0], [0], [1], [0, 0, 1, 1], [], []>} : vector<8x128xf32>, vector<128x512xf32>, vector<8x512xf32> -> vector<8x512xf32>
    %719 = arith.addf %717, %718 : vector<8x512xf32>
    %720 = vector.broadcast %311 : vector<1x512xf32> to vector<8x512xf32>
    %721 = arith.addf %719, %720 : vector<8x512xf32>
    %722 = vector.extract_strided_slice %721 {offsets = [0, 0], sizes = [8, 128], strides = [1, 1]} : vector<8x512xf32> to vector<8x128xf32>
    %723 = arith.negf %722 : vector<8x128xf32>
    %724 = math.exp %723 : vector<8x128xf32>
    %cst_346 = arith.constant 1.000000e+00 : f32
    %725 = vector.broadcast %cst_346 : f32 to vector<8x128xf32>
    %726 = arith.addf %725, %724 : vector<8x128xf32>
    %727 = arith.divf %725, %726 : vector<8x128xf32>
    %728 = vector.extract_strided_slice %721 {offsets = [0, 128], sizes = [8, 128], strides = [1, 1]} : vector<8x512xf32> to vector<8x128xf32>
    %729 = arith.negf %728 : vector<8x128xf32>
    %730 = math.exp %729 : vector<8x128xf32>
    %cst_347 = arith.constant 1.000000e+00 : f32
    %731 = vector.broadcast %cst_347 : f32 to vector<8x128xf32>
    %732 = arith.addf %731, %730 : vector<8x128xf32>
    %733 = arith.divf %731, %732 : vector<8x128xf32>
    %734 = vector.extract_strided_slice %721 {offsets = [0, 256], sizes = [8, 128], strides = [1, 1]} : vector<8x512xf32> to vector<8x128xf32>
    %735 = math.tanh %734 : vector<8x128xf32>
    %736 = vector.extract_strided_slice %721 {offsets = [0, 384], sizes = [8, 128], strides = [1, 1]} : vector<8x512xf32> to vector<8x128xf32>
    %737 = arith.negf %736 : vector<8x128xf32>
    %738 = math.exp %737 : vector<8x128xf32>
    %cst_348 = arith.constant 1.000000e+00 : f32
    %739 = vector.broadcast %cst_348 : f32 to vector<8x128xf32>
    %740 = arith.addf %739, %738 : vector<8x128xf32>
    %741 = arith.divf %739, %740 : vector<8x128xf32>
    %742 = arith.mulf %733, %716 : vector<8x128xf32>
    %743 = arith.mulf %727, %735 : vector<8x128xf32>
    %744 = arith.addf %742, %743 : vector<8x128xf32>
    %745 = math.tanh %744 : vector<8x128xf32>
    %746 = arith.mulf %741, %745 : vector<8x128xf32>
    %cst_349 = arith.constant dense<0.000000e+00> : vector<8x128xf32>
    %747 = tpu.matmul %746, %312, %cst_349 {dimension_numbers = #tpu.dot_dimension_numbers<[1], [0], [0], [1], [0, 0, 1, 1], [], []>} : vector<8x128xf32>, vector<128x128xf32>, vector<8x128xf32> -> vector<8x128xf32>
    %748 = vector.broadcast %313 : vector<1x128xf32> to vector<8x128xf32>
    %749 = arith.addf %747, %748 : vector<8x128xf32>
    %c1_i32_350 = arith.constant 1 : i32
    %750 = arith.addi %c6_i32_333, %c1_i32_350 : i32
    %751 = arith.index_cast %750 : i32 to index
    %c0_351 = arith.constant 0 : index
    %c0_352 = arith.constant 0 : index
    %752 = vector.load %arg13[%751, %c0_351, %c0_352] : memref<8x8x128xf32, #tpu.memory_space<vmem>>, vector<1x8x128xf32>
    %753 = vector.shape_cast %752 : vector<1x8x128xf32> to vector<8x128xf32>
    %754 = vector.shape_cast %749 : vector<8x128xf32> to vector<1x8x128xf32>
    tpu.vector_store %arg13[%751, %c0_351, %c0_352], %754 {strides = array<i32>} : memref<8x8x128xf32, #tpu.memory_space<vmem>>, vector<1x8x128xf32>,
    %cst_353 = arith.constant dense<0xFF800000> : vector<8xf32>
    %755 = vector.multi_reduction <maximumf>, %749, %cst_353 [1] : vector<8x128xf32> to vector<8xf32>
    %756 = vector.shape_cast %755 : vector<8xf32> to vector<8x1xf32>
    %757 = vector.broadcast %756 : vector<8x1xf32> to vector<8x128xf32>
    %758 = arith.cmpf oeq, %749, %757 : vector<8x128xf32>
    %cst_354 = arith.constant 1.280000e+02 : f32
    %759 = vector.broadcast %cst_354 : f32 to vector<8x128xf32>
    %760 = arith.select %758, %315, %759 : vector<8x128xi1>, vector<8x128xf32>
    %cst_355 = arith.constant dense<0x7F800000> : vector<8xf32>
    %761 = vector.multi_reduction <minimumf>, %760, %cst_355 [1] : vector<8x128xf32> to vector<8xf32>
    %762 = vector.shape_cast %761 : vector<8xf32> to vector<8x1xf32>
    %763 = vector.broadcast %762 : vector<8x1xf32> to vector<8x128xf32>
    %764 = arith.cmpf oeq, %315, %763 : vector<8x128xf32>
    %cst_356 = arith.constant 1.000000e+00 : f32
    %cst_357 = arith.constant 0.000000e+00 : f32
    %765 = vector.broadcast %cst_356 : f32 to vector<8x128xf32>
    %766 = vector.broadcast %cst_357 : f32 to vector<8x128xf32>
    %767 = arith.select %764, %765, %766 : vector<8x128xi1>, vector<8x128xf32>
    %c0_358 = arith.constant 0 : index
    %c0_359 = arith.constant 0 : index
    %768 = vector.load %arg16[%c0_358, %c0_359] : memref<8x128xf32, #tpu.memory_space<vmem>>, vector<8x128xf32>
    tpu.vector_store %arg16[%c0_358, %c0_359], %767 {strides = array<i32>} : memref<8x128xf32, #tpu.memory_space<vmem>>, vector<8x128xf32>,
    %c0_360 = arith.constant 0 : index
    %c0_361 = arith.constant 0 : index
    %769 = vector.load %arg14[%c0_360, %c0_361] : memref<8x128xf32, #tpu.memory_space<vmem>>, vector<8x128xf32>
    tpu.vector_store %arg14[%c0_360, %c0_361], %746 {strides = array<i32>} : memref<8x128xf32, #tpu.memory_space<vmem>>, vector<8x128xf32>,
    %c0_362 = arith.constant 0 : index
    %c0_363 = arith.constant 0 : index
    %770 = vector.load %arg15[%c0_362, %c0_363] : memref<8x128xf32, #tpu.memory_space<vmem>>, vector<8x128xf32>
    tpu.vector_store %arg15[%c0_362, %c0_363], %744 {strides = array<i32>} : memref<8x128xf32, #tpu.memory_space<vmem>>, vector<8x128xf32>,
    %c7_i32_364 = arith.constant 7 : i32
    return
  }
  func.func @transform_0(%arg0: i32, %arg1: memref<7xi32, #tpu.memory_space<smem>>) -> (i32, i32, i32) {
    %c0_i32 = arith.constant 0 : i32
    %c0_i32_0 = arith.constant 0 : i32
    %c0_i32_1 = arith.constant 0 : i32
    %c0_i32_2 = arith.constant 0 : i32
    return %c0_i32, %c0_i32_0, %c0_i32_1 : i32, i32, i32
  }
  func.func @transform_1(%arg0: i32, %arg1: memref<7xi32, #tpu.memory_space<smem>>) -> (i32, i32, i32) {
    %c0_i32 = arith.constant 0 : i32
    %c0_i32_0 = arith.constant 0 : i32
    %c0_i32_1 = arith.constant 0 : i32
    %c0_i32_2 = arith.constant 0 : i32
    return %c0_i32, %c0_i32_0, %c0_i32_1 : i32, i32, i32
  }
  func.func @transform_2(%arg0: i32, %arg1: memref<7xi32, #tpu.memory_space<smem>>) -> (i32, i32) {
    %c0_i32 = arith.constant 0 : i32
    %c0_i32_0 = arith.constant 0 : i32
    %c0_i32_1 = arith.constant 0 : i32
    return %c0_i32, %c0_i32_0 : i32, i32
  }
  func.func @transform_3(%arg0: i32, %arg1: memref<7xi32, #tpu.memory_space<smem>>) -> (i32, i32) {
    %c0_i32 = arith.constant 0 : i32
    %c0_i32_0 = arith.constant 0 : i32
    %c0_i32_1 = arith.constant 0 : i32
    return %c0_i32, %c0_i32_0 : i32, i32
  }
  func.func @transform_4(%arg0: i32, %arg1: memref<7xi32, #tpu.memory_space<smem>>) -> (i32, i32) {
    %c0_i32 = arith.constant 0 : i32
    %c0_i32_0 = arith.constant 0 : i32
    %c0_i32_1 = arith.constant 0 : i32
    return %c0_i32, %c0_i32_0 : i32, i32
  }
  func.func @transform_5(%arg0: i32, %arg1: memref<7xi32, #tpu.memory_space<smem>>) -> (i32, i32) {
    %c0_i32 = arith.constant 0 : i32
    %c0_i32_0 = arith.constant 0 : i32
    %c0_i32_1 = arith.constant 0 : i32
    return %c0_i32, %c0_i32_0 : i32, i32
  }
  func.func @transform_6(%arg0: i32, %arg1: memref<7xi32, #tpu.memory_space<smem>>) -> (i32, i32) {
    %c0_i32 = arith.constant 0 : i32
    %c0_i32_0 = arith.constant 0 : i32
    %c0_i32_1 = arith.constant 0 : i32
    return %c0_i32, %c0_i32_0 : i32, i32
  }
  func.func @transform_7(%arg0: i32, %arg1: memref<7xi32, #tpu.memory_space<smem>>) -> (i32, i32) {
    %c0_i32 = arith.constant 0 : i32
    %c0_i32_0 = arith.constant 0 : i32
    %c0_i32_1 = arith.constant 0 : i32
    return %c0_i32, %c0_i32_0 : i32, i32
  }
  func.func @transform_8(%arg0: i32, %arg1: memref<7xi32, #tpu.memory_space<smem>>) -> (i32, i32) {
    %c0_i32 = arith.constant 0 : i32
    %c0_i32_0 = arith.constant 0 : i32
    %c0_i32_1 = arith.constant 0 : i32
    return %c0_i32, %c0_i32_0 : i32, i32
  }
  func.func @transform_9(%arg0: i32, %arg1: memref<7xi32, #tpu.memory_space<smem>>) -> (i32, i32) {
    %c0_i32 = arith.constant 0 : i32
    %c0_i32_0 = arith.constant 0 : i32
    %c0_i32_1 = arith.constant 0 : i32
    return %c0_i32, %c0_i32_0 : i32, i32
  }
  func.func @transform_10(%arg0: i32, %arg1: memref<7xi32, #tpu.memory_space<smem>>) -> (i32, i32) {
    %c0_i32 = arith.constant 0 : i32
    %c0_i32_0 = arith.constant 0 : i32
    %c0_i32_1 = arith.constant 0 : i32
    return %c0_i32, %c0_i32_0 : i32, i32
  }
  func.func @transform_11(%arg0: i32, %arg1: memref<7xi32, #tpu.memory_space<smem>>) -> (i32, i32, i32) {
    %c0_i32 = arith.constant 0 : i32
    %c0_i32_0 = arith.constant 0 : i32
    %c0_i32_1 = arith.constant 0 : i32
    %c0_i32_2 = arith.constant 0 : i32
    return %c0_i32, %c0_i32_0, %c0_i32_1 : i32, i32, i32
  }
}

</mosaic_0001>

<bundles_post_ra>
// kernel: seq2seq_forward.1
= control target key start
LH: loop header
LB: loop body
LE: loop exit
PB: predicated region body
PF: predicated region fallthrough
CT: control target
= control target key end

     0   :  { %s13000_s0 = inlined_call_operand.vmem [shape: s32[7], index: 0, kind: input, shape index: {}]   ;;  %s13001_s1 = inlined_call_operand.vmem [shape: f32[8,8,128], index: 1, kind: input, shape index: {}]   ;;  %s13002_s2 = inlined_call_operand.vmem [shape: f32[7,8,128], index: 2, kind: input, shape index: {}]   ;;  %s13003_s3 = inlined_call_operand.vmem [shape: f32[128,512], index: 3, kind: input, shape index: {}]   ;;  %s13004_s4 = inlined_call_operand.vmem [shape: f32[128,512], index: 4, kind: input, shape index: {}]   ;;  %s13005_s5 = inlined_call_operand.vmem [shape: f32[1,512], index: 5, kind: input, shape index: {}]   ;;  %s13006_s6 = inlined_call_operand.hbm [shape: f32[128,512], index: 6, kind: input, shape index: {}]   ;;  %s13007_s7 = inlined_call_operand.hbm [shape: f32[128,512], index: 7, kind: input, shape index: {}]   ;;  %s13008_s8 = inlined_call_operand.vmem [shape: f32[1,512], index: 8, kind: input, shape index: {}]   ;;  %s13009_s9 = inlined_call_operand.vmem [shape: f32[128,128], index: 9, kind: input, shape index: {}]   ;;  %s13010_s10 = inlined_call_operand.vmem [shape: f32[128,128], index: 10, kind: input, shape index: {}]   ;;  %s13011_s11 = inlined_call_operand.vmem [shape: f32[1,128], index: 11, kind: input, shape index: {}]   ;;  %s13012_s12 = inlined_call_operand.hbm [shape: f32[8,8,128], index: 12, kind: output, shape index: {}]  }
   0x1   :  { %s17_s23 = sshll.u32 %s13000_s0, 4  ;;  %s18_s23 = int_to_ptr.vmem [resolvable:$true] %s17_s23 }
   0x2   :  { %s7780_s24 = scalar_lea.vmem %s18_s23, 16  ;;  %p7785_p1 = scmp.lt.s32.totalorder %s18_s23, %s18_s23 }
   0x3   :  { %p7781_p0 = scmp.ne.s32.totalorder %s18_s23, %s7780_s24  ;;  %p7786_p2 = scmp.lt.s32.totalorder %s7780_s24, %s7780_s24 }
   0x5   :  { %p7787_p3 = por %p7786_p2, %p7785_p1 }
   0x7   :  { %p7788_p4 = pnand %p7787_p3, %p7781_p0 }
   0x9   :  { %7791 = shalt.err (!%p7788_p4)  }
   0xa   :  { %s7860_s25 = smov [#allocation7]  }
   0xb   :  { %20 = dma.vmem_to_smem %s18_s23, 16, %s7860_s25, [#allocation6] }
   0xc   :  { %7852 = dma.done.wait [#allocation6], 16 }
   0xd   :  { %7853 = vsyncadd [#allocation6], 4294967280 }
   0xe   :  { %22 = sfence }
   0xf   :  { %23 = vsyncpa [#allocation9], 0 }
  0x10   :  { %24 = vsyncpa [#allocation12], 0 }
  0x11   :  { %25 = vsyncpa [#allocation10], 0  ;;  %s7861_s26 = smov [#allocation8]  }
  0x12   :  { %s41_s27 = sshll.u32 %s7861_s26, 4  ;;  %s42_s27 = int_to_ptr.vmem [resolvable:$true] %s41_s27 }
  0x13   :  { %s7800_s0 = scalar_lea.vmem %s42_s27, 8192  ;;  %p7805_p6 = scmp.lt.s32.totalorder %s42_s27, %s42_s27 }
  0x14   :  { %p7801_p5 = scmp.ne.s32.totalorder %s42_s27, %s7800_s0  ;;  %p7806_p7 = scmp.lt.s32.totalorder %s7800_s0, %s7800_s0 }
  0x16   :  { %p7807_p8 = por %p7806_p7, %p7805_p6 }
  0x18   :  { %p7808_p9 = pnand %p7807_p8, %p7801_p5 }
  0x1a   :  { %7811 = shalt.err (!%p7808_p9)
}
  0x1b   :  { %s7862_s28 = smov 512   ;;  %s7863_s29 = smov 32  }
  0x1c   :  { %47 = dma.hbm_to_vmem [thread:$0]  %s13006_s6, 8192, %s42_s27, [#allocation9], %s7862_s28, %s7862_s28, %s7863_s29  }
  0x1d   :  { %s7864_s14 = smov [#allocation11]  }
  0x1e   :  { %s53_s15 = sshll.u32 %s7864_s14, 4  ;;  %s54_s15 = int_to_ptr.vmem [resolvable:$true] %s53_s15 }
  0x1f   :  { %s7820_s16 = scalar_lea.vmem %s54_s15, 8192  ;;  %p7825_p11 = scmp.lt.s32.totalorder %s54_s15, %s54_s15 }
  0x20   :  { %p7821_p10 = scmp.ne.s32.totalorder %s54_s15, %s7820_s16  ;;  %p7826_p12 = scmp.lt.s32.totalorder %s7820_s16, %s7820_s16 }
  0x22   :  { %p7827_p13 = por %p7826_p12, %p7825_p11 }
  0x24   :  { %p7828_p0 = pnand %p7827_p13, %p7821_p10 }
  0x26   :  { %7831 = shalt.err (!%p7828_p0)
}
  0x27   :  { %59 = dma.hbm_to_vmem [thread:$0]  %s13007_s7, 8192, %s54_s15, [#allocation12], %s7862_s28, %s7862_s28, %s7863_s29  }
  0x28   :  { %7854 = dma.done.wait [#allocation9], 8192  }
  0x29   :  { %7855 = vsyncadd [#allocation9], 4294959104 }
  0x2a   :  { %7856 = dma.done.wait [#allocation12], 8192  }
  0x2b   :  { %7857 = vsyncadd [#allocation12], 4294959104  ;;  %v13013_v0 = vmov 0.0   ;;  %s7960_s6 = sld [smem:[#allocation7]]  ;;  %v7964_v1 = vld [vmem:[#allocation8] sm:$0xff]  ;;  %v7966_v2 = vld [vmem:[#allocation8 + $0x8] sm:$0xff] }
  0x2c   :  { %74 = vst [vmem:[#allocation13] sm:$0xff] %v13013_v0  ;;  %77 = vst [vmem:[#allocation4] sm:$0xff] %v13013_v0  ;;  %274 = vmatprep.mubr.f32.mxu0 %v13013_v0  ;;  %345 = vmatprep.mubr.f32.mxu1 %v13013_v0  ;;  %v7968_v3 = vld [vmem:[#allocation8 + $0x10] sm:$0xff]  ;;  %v7970_v4 = vld [vmem:[#allocation8 + $0x18] sm:$0xff] }
  0x2d   :  { %13418 = vst [vmem:[#allocation18_spill] sm:$0xff] %v7964_v1  ;;  %13419 = vst [vmem:[#allocation19_spill] sm:$0xff] %v7966_v2  ;;  %v7972_v5 = vld [vmem:[#allocation8 + $0x20] sm:$0xff]  ;;  %v7974_v6 = vld [vmem:[#allocation8 + $0x28] sm:$0xff] }
  0x2e   :  { %13420 = vst [vmem:[#allocation20_spill] sm:$0xff] %v7968_v3  ;;  %13421 = vst [vmem:[#allocation21_spill] sm:$0xff] %v7970_v4  ;;  %v7976_v7 = vld [vmem:[#allocation8 + $0x30] sm:$0xff]  ;;  %v7978_v8 = vld [vmem:[#allocation8 + $0x38] sm:$0xff] }
  0x2f   :  { %13422 = vst [vmem:[#allocation22_spill] sm:$0xff] %v7972_v5  ;;  %13423 = vst [vmem:[#allocation23_spill] sm:$0xff] %v7974_v6  ;;  %v7980_v9 = vld [vmem:[#allocation8 + $0x40] sm:$0xff]  ;;  %v7982_v10 = vld [vmem:[#allocation8 + $0x48] sm:$0xff] }
  0x30   :  { %13424 = vst [vmem:[#allocation24_spill] sm:$0xff] %v7976_v7  ;;  %13425 = vst [vmem:[#allocation25_spill] sm:$0xff] %v7978_v8  ;;  %v7984_v11 = vld [vmem:[#allocation8 + $0x50] sm:$0xff]  ;;  %v7986_v12 = vld [vmem:[#allocation8 + $0x58] sm:$0xff] }
  0x31   :  { %13426 = vst [vmem:[#allocation26_spill] sm:$0xff] %v7980_v9  ;;  %13427 = vst [vmem:[#allocation27_spill] sm:$0xff] %v7982_v10  ;;  %v7988_v13 = vld [vmem:[#allocation8 + $0x60] sm:$0xff]  ;;  %v7990_v14 = vld [vmem:[#allocation8 + $0x68] sm:$0xff]  ;;  %p6481_p1 = scmp.le.s32.totalorder %s7960_s6, 0 }
  0x32   :  { %13428 = vst [vmem:[#allocation28_spill] sm:$0xff] %v7984_v11  ;;  %13429 = vst [vmem:[#allocation29_spill] sm:$0xff] %v7986_v12  ;;  %v7992_v15 = vld [vmem:[#allocation8 + $0x70] sm:$0xff]  ;;  %v7994_v16 = vld [vmem:[#allocation8 + $0x78] sm:$0xff] }
  0x33   :  { %13430 = vst [vmem:[#allocation30_spill] sm:$0xff] %v7988_v13  ;;  %13431 = vst [vmem:[#allocation31_spill] sm:$0xff] %v7990_v14  ;;  %v7996_v17 = vld [vmem:[#allocation8 + $0x80] sm:$0xff]  ;;  %v7998_v18 = vld [vmem:[#allocation8 + $0x88] sm:$0xff] }
  0x34   :  { %13432 = vst [vmem:[#allocation32_spill] sm:$0xff] %v7992_v15  ;;  %13433 = vst [vmem:[#allocation33_spill] sm:$0xff] %v7994_v16  ;;  %v8000_v19 = vld [vmem:[#allocation8 + $0x90] sm:$0xff]  ;;  %v8002_v20 = vld [vmem:[#allocation8 + $0x98] sm:$0xff] }
  0x35   :  { %13434 = vst [vmem:[#allocation34_spill] sm:$0xff] %v7996_v17  ;;  %13435 = vst [vmem:[#allocation35_spill] sm:$0xff] %v7998_v18  ;;  %v8004_v21 = vld [vmem:[#allocation8 + $0xa0] sm:$0xff]  ;;  %v8006_v22 = vld [vmem:[#allocation8 + $0xa8] sm:$0xff] }
  0x36   :  { %13436 = vst [vmem:[#allocation36_spill] sm:$0xff] %v8000_v19  ;;  %13437 = vst [vmem:[#allocation37_spill] sm:$0xff] %v8002_v20  ;;  %v8008_v23 = vld [vmem:[#allocation8 + $0xb0] sm:$0xff]  ;;  %v8010_v24 = vld [vmem:[#allocation8 + $0xb8] sm:$0xff] }
  0x37   :  { %13438 = vst [vmem:[#allocation38_spill] sm:$0xff] %v8004_v21  ;;  %13439 = vst [vmem:[#allocation39_spill] sm:$0xff] %v8006_v22  ;;  %v8012_v25 = vld [vmem:[#allocation8 + $0xc0] sm:$0xff]  ;;  %v8014_v26 = vld [vmem:[#allocation8 + $0xc8] sm:$0xff] }
  0x38   :  { %13440 = vst [vmem:[#allocation40_spill] sm:$0xff] %v8008_v23  ;;  %13441 = vst [vmem:[#allocation41_spill] sm:$0xff] %v8010_v24  ;;  %v8016_v27 = vld [vmem:[#allocation8 + $0xd0] sm:$0xff]  ;;  %v8018_v28 = vld [vmem:[#allocation8 + $0xd8] sm:$0xff] }
  0x39   :  { %13442 = vst [vmem:[#allocation42_spill] sm:$0xff] %v8012_v25  ;;  %13443 = vst [vmem:[#allocation43_spill] sm:$0xff] %v8014_v26  ;;  %v8020_v29 = vld [vmem:[#allocation8 + $0xe0] sm:$0xff]  ;;  %v8022_v30 = vld [vmem:[#allocation8 + $0xe8] sm:$0xff] }
  0x3a   :  { %13444 = vst [vmem:[#allocation44_spill] sm:$0xff] %v8016_v27  ;;  %13445 = vst [vmem:[#allocation45_spill] sm:$0xff] %v8018_v28  ;;  %v8024_v31 = vld [vmem:[#allocation8 + $0xf0] sm:$0xff]  ;;  %v8026_v32 = vld [vmem:[#allocation8 + $0xf8] sm:$0xff] }
  0x3b   :  { %13446 = vst [vmem:[#allocation46_spill] sm:$0xff] %v8020_v29  ;;  %13447 = vst [vmem:[#allocation47_spill] sm:$0xff] %v8022_v30  ;;  %v8028_v33 = vld [vmem:[#allocation8 + $0x100] sm:$0xff]  ;;  %v8030_v34 = vld [vmem:[#allocation8 + $0x108] sm:$0xff] }
  0x3c   :  { %13448 = vst [vmem:[#allocation48_spill] sm:$0xff] %v8024_v31  ;;  %13449 = vst [vmem:[#allocation49_spill] sm:$0xff] %v8026_v32  ;;  %v8032_v35 = vld [vmem:[#allocation8 + $0x110] sm:$0xff]  ;;  %v8034_v36 = vld [vmem:[#allocation8 + $0x118] sm:$0xff] }
  0x3d   :  { %13450 = vst [vmem:[#allocation50_spill] sm:$0xff] %v8028_v33  ;;  %13451 = vst [vmem:[#allocation51_spill] sm:$0xff] %v8030_v34  ;;  %v8036_v37 = vld [vmem:[#allocation8 + $0x120] sm:$0xff]  ;;  %v8038_v38 = vld [vmem:[#allocation8 + $0x128] sm:$0xff] }
  0x3e   :  { %13452 = vst [vmem:[#allocation52_spill] sm:$0xff] %v8032_v35  ;;  %13453 = vst [vmem:[#allocation53_spill] sm:$0xff] %v8034_v36  ;;  %v8040_v39 = vld [vmem:[#allocation8 + $0x130] sm:$0xff]  ;;  %v8042_v40 = vld [vmem:[#allocation8 + $0x138] sm:$0xff] }
  0x3f   :  { %13454 = vst [vmem:[#allocation54_spill] sm:$0xff] %v8036_v37  ;;  %13455 = vst [vmem:[#allocation55_spill] sm:$0xff] %v8038_v38  ;;  %v8044_v41 = vld [vmem:[#allocation8 + $0x140] sm:$0xff]  ;;  %v8046_v42 = vld [vmem:[#allocation8 + $0x148] sm:$0xff] }
  0x40   :  { %13456 = vst [vmem:[#allocation56_spill] sm:$0xff] %v8040_v39  ;;  %13457 = vst [vmem:[#allocation57_spill] sm:$0xff] %v8042_v40  ;;  %v8048_v43 = vld [vmem:[#allocation8 + $0x150] sm:$0xff]  ;;  %v8050_v44 = vld [vmem:[#allocation8 + $0x158] sm:$0xff] }
  0x41   :  { %13458 = vst [vmem:[#allocation58_spill] sm:$0xff] %v8044_v41  ;;  %13459 = vst [vmem:[#allocation59_spill] sm:$0xff] %v8046_v42  ;;  %v8052_v45 = vld [vmem:[#allocation8 + $0x160] sm:$0xff]  ;;  %v8054_v46 = vld [vmem:[#allocation8 + $0x168] sm:$0xff] }
  0x42   :  { %13460 = vst [vmem:[#allocation60_spill] sm:$0xff] %v8048_v43  ;;  %13461 = vst [vmem:[#allocation61_spill] sm:$0xff] %v8050_v44  ;;  %v8056_v47 = vld [vmem:[#allocation8 + $0x170] sm:$0xff]  ;;  %v8058_v48 = vld [vmem:[#allocation8 + $0x178] sm:$0xff] }
  0x43   :  { %13462 = vst [vmem:[#allocation62_spill] sm:$0xff] %v8052_v45  ;;  %13463 = vst [vmem:[#allocation63_spill] sm:$0xff] %v8054_v46  ;;  %v8060_v49 = vld [vmem:[#allocation8 + $0x180] sm:$0xff]  ;;  %v8062_v50 = vld [vmem:[#allocation8 + $0x188] sm:$0xff] }
  0x44   :  { %13464 = vst [vmem:[#allocation64_spill] sm:$0xff] %v8056_v47  ;;  %13465 = vst [vmem:[#allocation65_spill] sm:$0xff] %v8058_v48  ;;  %v8064_v51 = vld [vmem:[#allocation8 + $0x190] sm:$0xff]  ;;  %v8066_v52 = vld [vmem:[#allocation8 + $0x198] sm:$0xff] }
  0x45   :  { %13466 = vst [vmem:[#allocation66_spill] sm:$0xff] %v8060_v49  ;;  %13467 = vst [vmem:[#allocation67_spill] sm:$0xff] %v8062_v50  ;;  %v8068_v53 = vld [vmem:[#allocation8 + $0x1a0] sm:$0xff]  ;;  %v8070_v54 = vld [vmem:[#allocation8 + $0x1a8] sm:$0xff] }
  0x46   :  { %13468 = vst [vmem:[#allocation68_spill] sm:$0xff] %v8064_v51  ;;  %13469 = vst [vmem:[#allocation69_spill] sm:$0xff] %v8066_v52  ;;  %v8072_v55 = vld [vmem:[#allocation8 + $0x1b0] sm:$0xff]  ;;  %v8074_v56 = vld [vmem:[#allocation8 + $0x1b8] sm:$0xff] }
  0x47   :  { %13470 = vst [vmem:[#allocation70_spill] sm:$0xff] %v8068_v53  ;;  %13471 = vst [vmem:[#allocation71_spill] sm:$0xff] %v8070_v54  ;;  %v8076_v57 = vld [vmem:[#allocation8 + $0x1c0] sm:$0xff]  ;;  %v8078_v58 = vld [vmem:[#allocation8 + $0x1c8] sm:$0xff] }
  0x48   :  { %13472 = vst [vmem:[#allocation72_spill] sm:$0xff] %v8072_v55  ;;  %13473 = vst [vmem:[#allocation73_spill] sm:$0xff] %v8074_v56  ;;  %v8080_v59 = vld [vmem:[#allocation8 + $0x1d0] sm:$0xff]  ;;  %v8082_v60 = vld [vmem:[#allocation8 + $0x1d8] sm:$0xff] }
  0x49   :  { %13474 = vst [vmem:[#allocation74_spill] sm:$0xff] %v8076_v57  ;;  %13475 = vst [vmem:[#allocation75_spill] sm:$0xff] %v8078_v58  ;;  %v8084_v61 = vld [vmem:[#allocation8 + $0x1e0] sm:$0xff]  ;;  %v8086_v62 = vld [vmem:[#allocation8 + $0x1e8] sm:$0xff] }
  0x4a   :  { %13476 = vst [vmem:[#allocation76_spill] sm:$0xff] %v8080_v59  ;;  %13477 = vst [vmem:[#allocation77_spill] sm:$0xff] %v8082_v60  ;;  %v8088_v63 = vld [vmem:[#allocation8 + $0x1f0] sm:$0xff]  ;;  %v8090_v0 = vld [vmem:[#allocation8 + $0x1f8] sm:$0xff] }
  0x4b   :  { %13478 = vst [vmem:[#allocation78_spill] sm:$0xff] %v8084_v61  ;;  %13479 = vst [vmem:[#allocation79_spill] sm:$0xff] %v8086_v62  ;;  %v8092_v3 = vld [vmem:[#allocation11] sm:$0xff]  ;;  %v8094_v1 = vld [vmem:[#allocation11 + $0x8] sm:$0xff] }
  0x4c   :  { %13480 = vst [vmem:[#allocation80_spill] sm:$0xff] %v8088_v63  ;;  %13481 = vst [vmem:[#allocation81_spill] sm:$0xff] %v8090_v0  ;;  %v8096_v4 = vld [vmem:[#allocation11 + $0x10] sm:$0xff]  ;;  %v8098_v2 = vld [vmem:[#allocation11 + $0x18] sm:$0xff] }
  0x4d   :  { %13482 = vst [vmem:[#allocation82_spill] sm:$0xff] %v8092_v3  ;;  %13483 = vst [vmem:[#allocation83_spill] sm:$0xff] %v8094_v1  ;;  %v8100_v7 = vld [vmem:[#allocation11 + $0x20] sm:$0xff]  ;;  %v8102_v5 = vld [vmem:[#allocation11 + $0x28] sm:$0xff] }
  0x4e   :  { %13484 = vst [vmem:[#allocation84_spill] sm:$0xff] %v8096_v4  ;;  %13485 = vst [vmem:[#allocation85_spill] sm:$0xff] %v8098_v2  ;;  %v8104_v8 = vld [vmem:[#allocation11 + $0x30] sm:$0xff]  ;;  %v8106_v6 = vld [vmem:[#allocation11 + $0x38] sm:$0xff] }
  0x4f   :  { %13486 = vst [vmem:[#allocation86_spill] sm:$0xff] %v8100_v7  ;;  %13487 = vst [vmem:[#allocation87_spill] sm:$0xff] %v8102_v5  ;;  %v8108_v11 = vld [vmem:[#allocation11 + $0x40] sm:$0xff]  ;;  %v8110_v9 = vld [vmem:[#allocation11 + $0x48] sm:$0xff] }
  0x50   :  { %13488 = vst [vmem:[#allocation88_spill] sm:$0xff] %v8104_v8  ;;  %13489 = vst [vmem:[#allocation89_spill] sm:$0xff] %v8106_v6  ;;  %v8112_v12 = vld [vmem:[#allocation11 + $0x50] sm:$0xff]  ;;  %v8114_v10 = vld [vmem:[#allocation11 + $0x58] sm:$0xff] }
  0x51   :  { %13490 = vst [vmem:[#allocation90_spill] sm:$0xff] %v8108_v11  ;;  %13491 = vst [vmem:[#allocation91_spill] sm:$0xff] %v8110_v9  ;;  %v8116_v15 = vld [vmem:[#allocation11 + $0x60] sm:$0xff]  ;;  %v8118_v13 = vld [vmem:[#allocation11 + $0x68] sm:$0xff] }
  0x52   :  { %13492 = vst [vmem:[#allocation92_spill] sm:$0xff] %v8112_v12  ;;  %13493 = vst [vmem:[#allocation93_spill] sm:$0xff] %v8114_v10  ;;  %v8120_v16 = vld [vmem:[#allocation11 + $0x70] sm:$0xff]  ;;  %v8122_v14 = vld [vmem:[#allocation11 + $0x78] sm:$0xff] }
  0x53   :  { %13494 = vst [vmem:[#allocation94_spill] sm:$0xff] %v8116_v15  ;;  %13495 = vst [vmem:[#allocation95_spill] sm:$0xff] %v8118_v13  ;;  %v8124_v19 = vld [vmem:[#allocation11 + $0x80] sm:$0xff]  ;;  %v8126_v17 = vld [vmem:[#allocation11 + $0x88] sm:$0xff] }
  0x54   :  { %13496 = vst [vmem:[#allocation96_spill] sm:$0xff] %v8120_v16  ;;  %13497 = vst [vmem:[#allocation97_spill] sm:$0xff] %v8122_v14  ;;  %v8128_v20 = vld [vmem:[#allocation11 + $0x90] sm:$0xff]  ;;  %v8130_v18 = vld [vmem:[#allocation11 + $0x98] sm:$0xff] }
  0x55   :  { %13498 = vst [vmem:[#allocation98_spill] sm:$0xff] %v8124_v19  ;;  %13499 = vst [vmem:[#allocation99_spill] sm:$0xff] %v8126_v17  ;;  %v8132_v23 = vld [vmem:[#allocation11 + $0xa0] sm:$0xff]  ;;  %v8134_v21 = vld [vmem:[#allocation11 + $0xa8] sm:$0xff] }
  0x56   :  { %13500 = vst [vmem:[#allocation100_spill] sm:$0xff] %v8128_v20  ;;  %13501 = vst [vmem:[#allocation101_spill] sm:$0xff] %v8130_v18  ;;  %v8136_v24 = vld [vmem:[#allocation11 + $0xb0] sm:$0xff]  ;;  %v8138_v22 = vld [vmem:[#allocation11 + $0xb8] sm:$0xff] }
  0x57   :  { %13502 = vst [vmem:[#allocation102_spill] sm:$0xff] %v8132_v23  ;;  %13503 = vst [vmem:[#allocation103_spill] sm:$0xff] %v8134_v21  ;;  %v8140_v27 = vld [vmem:[#allocation11 + $0xc0] sm:$0xff]  ;;  %v8142_v25 = vld [vmem:[#allocation11 + $0xc8] sm:$0xff] }
  0x58   :  { %13504 = vst [vmem:[#allocation104_spill] sm:$0xff] %v8136_v24  ;;  %13505 = vst [vmem:[#allocation105_spill] sm:$0xff] %v8138_v22  ;;  %v8144_v28 = vld [vmem:[#allocation11 + $0xd0] sm:$0xff]  ;;  %v8146_v26 = vld [vmem:[#allocation11 + $0xd8] sm:$0xff] }
  0x59   :  { %13506 = vst [vmem:[#allocation106_spill] sm:$0xff] %v8140_v27  ;;  %13507 = vst [vmem:[#allocation107_spill] sm:$0xff] %v8142_v25  ;;  %v8148_v31 = vld [vmem:[#allocation11 + $0xe0] sm:$0xff]  ;;  %v8150_v29 = vld [vmem:[#allocation11 + $0xe8] sm:$0xff] }
  0x5a   :  { %13508 = vst [vmem:[#allocation108_spill] sm:$0xff] %v8144_v28  ;;  %13509 = vst [vmem:[#allocation109_spill] sm:$0xff] %v8146_v26  ;;  %v8152_v32 = vld [vmem:[#allocation11 + $0xf0] sm:$0xff]  ;;  %v8154_v30 = vld [vmem:[#allocation11 + $0xf8] sm:$0xff] }
  0x5b   :  { %13510 = vst [vmem:[#allocation110_spill] sm:$0xff] %v8148_v31  ;;  %13511 = vst [vmem:[#allocation111_spill] sm:$0xff] %v8150_v29  ;;  %v8156_v35 = vld [vmem:[#allocation11 + $0x100] sm:$0xff]  ;;  %v8158_v33 = vld [vmem:[#allocation11 + $0x108] sm:$0xff] }
  0x5c   :  { %13512 = vst [vmem:[#allocation112_spill] sm:$0xff] %v8152_v32  ;;  %13513 = vst [vmem:[#allocation113_spill] sm:$0xff] %v8154_v30  ;;  %v8160_v36 = vld [vmem:[#allocation11 + $0x110] sm:$0xff]  ;;  %v8162_v34 = vld [vmem:[#allocation11 + $0x118] sm:$0xff] }
  0x5d   :  { %13514 = vst [vmem:[#allocation114_spill] sm:$0xff] %v8156_v35  ;;  %13515 = vst [vmem:[#allocation115_spill] sm:$0xff] %v8158_v33  ;;  %v8164_v39 = vld [vmem:[#allocation11 + $0x120] sm:$0xff]  ;;  %v8166_v37 = vld [vmem:[#allocation11 + $0x128] sm:$0xff] }
  0x5e   :  { %13516 = vst [vmem:[#allocation116_spill] sm:$0xff] %v8160_v36  ;;  %13517 = vst [vmem:[#allocation117_spill] sm:$0xff] %v8162_v34  ;;  %v8168_v40 = vld [vmem:[#allocation11 + $0x130] sm:$0xff]  ;;  %v8170_v38 = vld [vmem:[#allocation11 + $0x138] sm:$0xff] }
  0x5f   :  { %13518 = vst [vmem:[#allocation118_spill] sm:$0xff] %v8164_v39  ;;  %13519 = vst [vmem:[#allocation119_spill] sm:$0xff] %v8166_v37  ;;  %v8172_v43 = vld [vmem:[#allocation11 + $0x140] sm:$0xff]  ;;  %v8174_v41 = vld [vmem:[#allocation11 + $0x148] sm:$0xff] }
  0x60   :  { %13520 = vst [vmem:[#allocation120_spill] sm:$0xff] %v8168_v40  ;;  %13521 = vst [vmem:[#allocation121_spill] sm:$0xff] %v8170_v38  ;;  %v8176_v44 = vld [vmem:[#allocation11 + $0x150] sm:$0xff]  ;;  %v8178_v42 = vld [vmem:[#allocation11 + $0x158] sm:$0xff] }
  0x61   :  { %13522 = vst [vmem:[#allocation122_spill] sm:$0xff] %v8172_v43  ;;  %13523 = vst [vmem:[#allocation123_spill] sm:$0xff] %v8174_v41  ;;  %v8180_v47 = vld [vmem:[#allocation11 + $0x160] sm:$0xff]  ;;  %v8182_v45 = vld [vmem:[#allocation11 + $0x168] sm:$0xff] }
  0x62   :  { %13524 = vst [vmem:[#allocation124_spill] sm:$0xff] %v8176_v44  ;;  %13525 = vst [vmem:[#allocation125_spill] sm:$0xff] %v8178_v42  ;;  %v8184_v48 = vld [vmem:[#allocation11 + $0x170] sm:$0xff]  ;;  %v8186_v46 = vld [vmem:[#allocation11 + $0x178] sm:$0xff] }
  0x63   :  { %13526 = vst [vmem:[#allocation126_spill] sm:$0xff] %v8180_v47  ;;  %13527 = vst [vmem:[#allocation127_spill] sm:$0xff] %v8182_v45  ;;  %v8188_v51 = vld [vmem:[#allocation11 + $0x180] sm:$0xff]  ;;  %v8190_v49 = vld [vmem:[#allocation11 + $0x188] sm:$0xff] }
  0x64   :  { %13528 = vst [vmem:[#allocation128_spill] sm:$0xff] %v8184_v48  ;;  %13529 = vst [vmem:[#allocation129_spill] sm:$0xff] %v8186_v46  ;;  %v8192_v52 = vld [vmem:[#allocation11 + $0x190] sm:$0xff]  ;;  %v8194_v50 = vld [vmem:[#allocation11 + $0x198] sm:$0xff] }
  0x65   :  { %13530 = vst [vmem:[#allocation130_spill] sm:$0xff] %v8188_v51  ;;  %13531 = vst [vmem:[#allocation131_spill] sm:$0xff] %v8190_v49  ;;  %v8196_v55 = vld [vmem:[#allocation11 + $0x1a0] sm:$0xff]  ;;  %v8198_v53 = vld [vmem:[#allocation11 + $0x1a8] sm:$0xff] }
  0x66   :  { %13532 = vst [vmem:[#allocation132_spill] sm:$0xff] %v8192_v52  ;;  %13533 = vst [vmem:[#allocation133_spill] sm:$0xff] %v8194_v50  ;;  %v8200_v56 = vld [vmem:[#allocation11 + $0x1b0] sm:$0xff]  ;;  %v8202_v54 = vld [vmem:[#allocation11 + $0x1b8] sm:$0xff] }
  0x67   :  { %13534 = vst [vmem:[#allocation134_spill] sm:$0xff] %v8196_v55  ;;  %13535 = vst [vmem:[#allocation135_spill] sm:$0xff] %v8198_v53  ;;  %v8204_v59 = vld [vmem:[#allocation11 + $0x1c0] sm:$0xff]  ;;  %v8206_v57 = vld [vmem:[#allocation11 + $0x1c8] sm:$0xff] }
  0x68   :  { %13536 = vst [vmem:[#allocation136_spill] sm:$0xff] %v8200_v56  ;;  %13537 = vst [vmem:[#allocation137_spill] sm:$0xff] %v8202_v54  ;;  %v8208_v60 = vld [vmem:[#allocation11 + $0x1d0] sm:$0xff]  ;;  %v8210_v58 = vld [vmem:[#allocation11 + $0x1d8] sm:$0xff] }
  0x69   :  { %13538 = vst [vmem:[#allocation138_spill] sm:$0xff] %v8204_v59  ;;  %13539 = vst [vmem:[#allocation139_spill] sm:$0xff] %v8206_v57  ;;  %v8212_v63 = vld [vmem:[#allocation11 + $0x1e0] sm:$0xff]  ;;  %v8214_v61 = vld [vmem:[#allocation11 + $0x1e8] sm:$0xff] }
  0x6a   :  { %13540 = vst [vmem:[#allocation140_spill] sm:$0xff] %v8208_v60  ;;  %13541 = vst [vmem:[#allocation141_spill] sm:$0xff] %v8210_v58  ;;  %v8216_v0 = vld [vmem:[#allocation11 + $0x1f0] sm:$0xff]  ;;  %v8218_v62 = vld [vmem:[#allocation11 + $0x1f8] sm:$0xff] }
  0x6b   :  { %13542 = vst [vmem:[#allocation142_spill] sm:$0xff] %v8212_v63  ;;  %13543 = vst [vmem:[#allocation143_spill] sm:$0xff] %v8214_v61  ;;  %v8223_v4 = vld [vmem:[%s13008_s8] sm:$0xf]  ;;  %v8233_v2 = vld [vmem:[%s13010_s10 + $0x8] sm:$0xff] }
  0x6c   :  { %13544 = vst [vmem:[#allocation144_spill] sm:$0xff] %v8216_v0  ;;  %13545 = vst [vmem:[#allocation145_spill] sm:$0xff] %v8218_v62  ;;  %v8228_v3 = vld [vmem:[%s13010_s10] sm:$0xff]  ;;  %v8238_v1 = vld [vmem:[%s13010_s10 + $0x10] sm:$0xff] }
  0x6d   :  { %13546 = vst [vmem:[#allocation146_spill] sm:$0xff] %v8223_v4  ;;  %13547 = vst [vmem:[#allocation147_spill] sm:$0xff] %v8228_v3  ;;  %v8243_v8 = vld [vmem:[%s13010_s10 + $0x18] sm:$0xff]  ;;  %v8248_v4 = vld [vmem:[%s13010_s10 + $0x20] sm:$0xff] }
  0x6e   :  { %13548 = vst [vmem:[#allocation148_spill] sm:$0xff] %v8233_v2  ;;  %13549 = vst [vmem:[#allocation149_spill] sm:$0xff] %v8238_v1  ;;  %v8253_v3 = vld [vmem:[%s13010_s10 + $0x28] sm:$0xff]  ;;  %v8258_v2 = vld [vmem:[%s13010_s10 + $0x30] sm:$0xff] }
  0x6f   :  { %13550 = vst [vmem:[#allocation150_spill] sm:$0xff] %v8243_v8  ;;  %13551 = vst [vmem:[#allocation151_spill] sm:$0xff] %v8248_v4  ;;  %v8263_v1 = vld [vmem:[%s13010_s10 + $0x38] sm:$0xff]  ;;  %v8268_v8 = vld [vmem:[%s13010_s10 + $0x40] sm:$0xff] }
  0x70   :  { %13552 = vst [vmem:[#allocation152_spill] sm:$0xff] %v8253_v3  ;;  %13553 = vst [vmem:[#allocation153_spill] sm:$0xff] %v8258_v2  ;;  %v8273_v4 = vld [vmem:[%s13010_s10 + $0x48] sm:$0xff]  ;;  %v8278_v3 = vld [vmem:[%s13010_s10 + $0x50] sm:$0xff] }
  0x71   :  { %13554 = vst [vmem:[#allocation154_spill] sm:$0xff] %v8263_v1  ;;  %13555 = vst [vmem:[#allocation155_spill] sm:$0xff] %v8268_v8  ;;  %v8283_v2 = vld [vmem:[%s13010_s10 + $0x58] sm:$0xff]  ;;  %v8288_v1 = vld [vmem:[%s13010_s10 + $0x60] sm:$0xff] }
  0x72   :  { %13556 = vst [vmem:[#allocation156_spill] sm:$0xff] %v8273_v4  ;;  %13557 = vst [vmem:[#allocation157_spill] sm:$0xff] %v8278_v3  ;;  %v8293_v8 = vld [vmem:[%s13010_s10 + $0x68] sm:$0xff]  ;;  %v8298_v4 = vld [vmem:[%s13010_s10 + $0x70] sm:$0xff] }
  0x73   :  { %13558 = vst [vmem:[#allocation158_spill] sm:$0xff] %v8283_v2  ;;  %13559 = vst [vmem:[#allocation159_spill] sm:$0xff] %v8288_v1  ;;  %v8303_v3 = vld [vmem:[%s13010_s10 + $0x78] sm:$0xff]  ;;  %v8308_v2 = vld [vmem:[%s13011_s11] ss:$0 sm:$0xff] }
  0x74   :  { %13560 = vst [vmem:[#allocation160_spill] sm:$0xff] %v8293_v8  ;;  %13561 = vst [vmem:[#allocation161_spill] sm:$0xff] %v8298_v4  ;;  %v8313_v1 = vld [vmem:[%s13004_s4 + $0x1e8] sm:$0xff]  ;;  %v8319_v8 = vld [vmem:[%s13004_s4 + $0x1f8] sm:$0xff] }
  0x75   :  { %13562 = vst [vmem:[#allocation162_spill] sm:$0xff] %v8303_v3  ;;  %13563 = vst [vmem:[#allocation163_spill] sm:$0xff] %v8308_v2  ;;  %210 = vmatprep.subr.mxu0 %v8313_v1  ;;  %v8324_v4 = vld [vmem:[%s13004_s4 + $0x1e0] sm:$0xff]  ;;  %v8329_v2 = vld [vmem:[%s13004_s4 + $0x1f0] sm:$0xff]  ;;  %281 = vmatprep.subr.mxu1 %v8319_v8 }
  0x76   :  { %211 = vmatpush1.msra.mxu0 %v8324_v4  ;;  %v8336_v3 = vld [vmem:[%s13004_s4 + $0x1c8] sm:$0xff]  ;;  %v8341_v7 = vld [vmem:[%s13004_s4 + $0x1d8] sm:$0xff]  ;;  %v8346_v6 = vld [vmem:[%s13004_s4 + $0x1c0] sm:$0xff]  ;;  %282 = vmatpush1.msra.mxu1 %v8329_v2 }
  0x77   :  { %212 = vmatprep.subr.mxu0 %v8336_v3  ;;  %v8353_v5 = vld [vmem:[%s13004_s4 + $0x1d0] sm:$0xff]  ;;  %v8358_v12 = vld [vmem:[%s13004_s4 + $0x1a8] sm:$0xff]  ;;  %v8363_v11 = vld [vmem:[%s13004_s4 + $0x1b8] sm:$0xff]  ;;  %283 = vmatprep.subr.mxu1 %v8341_v7 }
  0x78   :  { %213 = vmatpush1.msra.mxu0 %v8346_v6  ;;  %v8370_v10 = vld [vmem:[%s13004_s4 + $0x1a0] sm:$0xff]  ;;  %v8375_v9 = vld [vmem:[%s13004_s4 + $0x1b0] sm:$0xff]  ;;  %v8380_v16 = vld [vmem:[%s13004_s4 + $0x188] sm:$0xff]  ;;  %284 = vmatpush1.msra.mxu1 %v8353_v5 }
  0x79   :  { %214 = vmatprep.subr.mxu0 %v8358_v12  ;;  %v8387_v15 = vld [vmem:[%s13004_s4 + $0x198] sm:$0xff]  ;;  %v8392_v14 = vld [vmem:[%s13004_s4 + $0x180] sm:$0xff]  ;;  %285 = vmatprep.subr.mxu1 %v8363_v11  ;;  %v8399_v13 = vld [vmem:[%s13004_s4 + $0x190] sm:$0xff] }
  0x7a   :  { %215 = vmatpush1.msra.mxu0 %v8370_v10  ;;  %v8404_v20 = vld [vmem:[%s13004_s4 + $0x168] sm:$0xff]  ;;  %286 = vmatpush1.msra.mxu1 %v8375_v9  ;;  %v8411_v19 = vld [vmem:[%s13004_s4 + $0x178] sm:$0xff]  ;;  %v8416_v18 = vld [vmem:[%s13004_s4 + $0x160] sm:$0xff] }
  0x7b   :  { %216 = vmatprep.subr.mxu0 %v8380_v16  ;;  %287 = vmatprep.subr.mxu1 %v8387_v15  ;;  %v8423_v17 = vld [vmem:[%s13004_s4 + $0x170] sm:$0xff]  ;;  %v8428_v24 = vld [vmem:[%s13004_s4 + $0x148] sm:$0xff]  ;;  %v8435_v23 = vld [vmem:[%s13004_s4 + $0x158] sm:$0xff] }
  0x7c   :  { %217 = vmatpush1.msra.mxu0 %v8392_v14  ;;  %288 = vmatpush1.msra.mxu1 %v8399_v13  ;;  %v8440_v22 = vld [vmem:[%s13004_s4 + $0x140] sm:$0xff]  ;;  %v8447_v21 = vld [vmem:[%s13004_s4 + $0x150] sm:$0xff]  ;;  %v8452_v28 = vld [vmem:[%s13004_s4 + $0x128] sm:$0xff] }
  0x7d   :  { %218 = vmatprep.subr.mxu0 %v8404_v20  ;;  %289 = vmatprep.subr.mxu1 %v8411_v19  ;;  %v8459_v27 = vld [vmem:[%s13004_s4 + $0x138] sm:$0xff]  ;;  %v8464_v26 = vld [vmem:[%s13004_s4 + $0x120] sm:$0xff]  ;;  %v8471_v25 = vld [vmem:[%s13004_s4 + $0x130] sm:$0xff] }
  0x7e   :  { %219 = vmatpush1.msra.mxu0 %v8416_v18  ;;  %290 = vmatpush1.msra.mxu1 %v8423_v17  ;;  %v8476_v32 = vld [vmem:[%s13004_s4 + $0x108] sm:$0xff]  ;;  %v8483_v31 = vld [vmem:[%s13004_s4 + $0x118] sm:$0xff]  ;;  %v8488_v30 = vld [vmem:[%s13004_s4 + $0x100] sm:$0xff] }
  0x7f   :  { %220 = vmatprep.subr.mxu0 %v8428_v24  ;;  %291 = vmatprep.subr.mxu1 %v8435_v23  ;;  %v8495_v29 = vld [vmem:[%s13004_s4 + $0x110] sm:$0xff]  ;;  %v8500_v36 = vld [vmem:[%s13004_s4 + $0xe8] sm:$0xff]  ;;  %v8507_v35 = vld [vmem:[%s13004_s4 + $0xf8] sm:$0xff] }
  0x80   :  { %221 = vmatpush1.msra.mxu0 %v8440_v22  ;;  %292 = vmatpush1.msra.mxu1 %v8447_v21  ;;  %v8512_v34 = vld [vmem:[%s13004_s4 + $0xe0] sm:$0xff]  ;;  %v8519_v33 = vld [vmem:[%s13004_s4 + $0xf0] sm:$0xff]  ;;  %v8524_v40 = vld [vmem:[%s13004_s4 + $0xc8] sm:$0xff] }
  0x81   :  { %222 = vmatprep.subr.mxu0 %v8452_v28  ;;  %293 = vmatprep.subr.mxu1 %v8459_v27  ;;  %13564 = vst [vmem:[#allocation164_spill] sm:$0xff] %v8524_v40  ;;  %v8531_v39 = vld [vmem:[%s13004_s4 + $0xd8] sm:$0xff]  ;;  %v8536_v38 = vld [vmem:[%s13004_s4 + $0xc0] sm:$0xff]  ;;  %v8543_v37 = vld [vmem:[%s13004_s4 + $0xd0] sm:$0xff] }
  0x82   :  { %223 = vmatpush1.msra.mxu0 %v8464_v26  ;;  %294 = vmatpush1.msra.mxu1 %v8471_v25  ;;  %13565 = vst [vmem:[#allocation165_spill] sm:$0xff] %v8531_v39  ;;  %13566 = vst [vmem:[#allocation166_spill] sm:$0xff] %v8536_v38  ;;  %v8548_v44 = vld [vmem:[%s13004_s4 + $0xa8] sm:$0xff]  ;;  %v8555_v43 = vld [vmem:[%s13004_s4 + $0xb8] sm:$0xff] }
  0x83   :  { %224 = vmatprep.subr.mxu0 %v8476_v32  ;;  %295 = vmatprep.subr.mxu1 %v8483_v31  ;;  %13567 = vst [vmem:[#allocation167_spill] sm:$0xff] %v8543_v37  ;;  %13568 = vst [vmem:[#allocation168_spill] sm:$0xff] %v8548_v44  ;;  %v8560_v42 = vld [vmem:[%s13004_s4 + $0xa0] sm:$0xff]  ;;  %v8567_v41 = vld [vmem:[%s13004_s4 + $0xb0] sm:$0xff] }
  0x84   :  { %225 = vmatpush1.msra.mxu0 %v8488_v30  ;;  %296 = vmatpush1.msra.mxu1 %v8495_v29  ;;  %13569 = vst [vmem:[#allocation169_spill] sm:$0xff] %v8555_v43  ;;  %13570 = vst [vmem:[#allocation170_spill] sm:$0xff] %v8560_v42  ;;  %v8572_v48 = vld [vmem:[%s13004_s4 + $0x88] sm:$0xff]  ;;  %v8579_v47 = vld [vmem:[%s13004_s4 + $0x98] sm:$0xff] }
  0x85   :  { %226 = vmatprep.subr.mxu0 %v8500_v36  ;;  %297 = vmatprep.subr.mxu1 %v8507_v35  ;;  %13571 = vst [vmem:[#allocation171_spill] sm:$0xff] %v8567_v41  ;;  %13572 = vst [vmem:[#allocation172_spill] sm:$0xff] %v8572_v48  ;;  %v8584_v46 = vld [vmem:[%s13004_s4 + $0x80] sm:$0xff]  ;;  %v8591_v45 = vld [vmem:[%s13004_s4 + $0x90] sm:$0xff] }
  0x86   :  { %227 = vmatpush1.msra.mxu0 %v8512_v34  ;;  %298 = vmatpush1.msra.mxu1 %v8519_v33  ;;  %13573 = vst [vmem:[#allocation173_spill] sm:$0xff] %v8579_v47  ;;  %13574 = vst [vmem:[#allocation174_spill] sm:$0xff] %v8584_v46  ;;  %v8596_v52 = vld [vmem:[%s13004_s4 + $0x68] sm:$0xff]  ;;  %v8603_v51 = vld [vmem:[%s13004_s4 + $0x78] sm:$0xff] }
  0x87   :  { %228 = vmatprep.subr.mxu0 %v8524_v40  ;;  %299 = vmatprep.subr.mxu1 %v8531_v39  ;;  %13575 = vst [vmem:[#allocation175_spill] sm:$0xff] %v8591_v45  ;;  %13576 = vst [vmem:[#allocation176_spill] sm:$0xff] %v8596_v52  ;;  %v8608_v50 = vld [vmem:[%s13004_s4 + $0x60] sm:$0xff]  ;;  %v8615_v49 = vld [vmem:[%s13004_s4 + $0x70] sm:$0xff] }
  0x88   :  { %229 = vmatpush1.msra.mxu0 %v8536_v38  ;;  %300 = vmatpush1.msra.mxu1 %v8543_v37  ;;  %13577 = vst [vmem:[#allocation177_spill] sm:$0xff] %v8603_v51  ;;  %13578 = vst [vmem:[#allocation178_spill] sm:$0xff] %v8608_v50  ;;  %v8620_v56 = vld [vmem:[%s13004_s4 + $0x48] sm:$0xff]  ;;  %v8627_v55 = vld [vmem:[%s13004_s4 + $0x58] sm:$0xff] }
  0x89   :  { %230 = vmatprep.subr.mxu0 %v8548_v44  ;;  %301 = vmatprep.subr.mxu1 %v8555_v43  ;;  %13579 = vst [vmem:[#allocation179_spill] sm:$0xff] %v8615_v49  ;;  %13580 = vst [vmem:[#allocation180_spill] sm:$0xff] %v8620_v56  ;;  %v8632_v54 = vld [vmem:[%s13004_s4 + $0x40] sm:$0xff]  ;;  %v8639_v53 = vld [vmem:[%s13004_s4 + $0x50] sm:$0xff] }
  0x8a   :  { %231 = vmatpush1.msra.mxu0 %v8560_v42  ;;  %302 = vmatpush1.msra.mxu1 %v8567_v41  ;;  %13581 = vst [vmem:[#allocation181_spill] sm:$0xff] %v8627_v55  ;;  %13582 = vst [vmem:[#allocation182_spill] sm:$0xff] %v8632_v54  ;;  %v8644_v60 = vld [vmem:[%s13004_s4 + $0x28] sm:$0xff]  ;;  %v8651_v59 = vld [vmem:[%s13004_s4 + $0x38] sm:$0xff] }
  0x8b   :  { %232 = vmatprep.subr.mxu0 %v8572_v48  ;;  %303 = vmatprep.subr.mxu1 %v8579_v47  ;;  %13583 = vst [vmem:[#allocation183_spill] sm:$0xff] %v8639_v53  ;;  %13584 = vst [vmem:[#allocation184_spill] sm:$0xff] %v8644_v60  ;;  %v8656_v58 = vld [vmem:[%s13004_s4 + $0x20] sm:$0xff]  ;;  %v8663_v57 = vld [vmem:[%s13004_s4 + $0x30] sm:$0xff] }
  0x8c   :  { %233 = vmatpush1.msra.mxu0 %v8584_v46  ;;  %304 = vmatpush1.msra.mxu1 %v8591_v45  ;;  %13585 = vst [vmem:[#allocation185_spill] sm:$0xff] %v8651_v59  ;;  %13586 = vst [vmem:[#allocation186_spill] sm:$0xff] %v8656_v58  ;;  %v8668_v0 = vld [vmem:[%s13004_s4 + $0x8] sm:$0xff]  ;;  %v8675_v63 = vld [vmem:[%s13004_s4 + $0x18] sm:$0xff] }
  0x8d   :  { %234 = vmatprep.subr.mxu0 %v8596_v52  ;;  %305 = vmatprep.subr.mxu1 %v8603_v51  ;;  %13587 = vst [vmem:[#allocation187_spill] sm:$0xff] %v8663_v57  ;;  %13588 = vst [vmem:[#allocation188_spill] sm:$0xff] %v8668_v0  ;;  %v8680_v62 = vld [vmem:[%s13004_s4] sm:$0xff]  ;;  %v8687_v61 = vld [vmem:[%s13004_s4 + $0x10] sm:$0xff] }
  0x8e   :  { %235 = vmatpush1.msra.mxu0 %v8608_v50  ;;  %306 = vmatpush1.msra.mxu1 %v8615_v49  ;;  %13589 = vst [vmem:[#allocation189_spill] sm:$0xff] %v8675_v63  ;;  %13590 = vst [vmem:[#allocation190_spill] sm:$0xff] %v8680_v62 }
  0x8f   :  { %236 = vmatprep.subr.mxu0 %v8620_v56  ;;  %307 = vmatprep.subr.mxu1 %v8627_v55  ;;  %13591 = vst [vmem:[#allocation191_spill] sm:$0xff] %v8687_v61 }
  0x90   :  { %237 = vmatpush1.msra.mxu0 %v8632_v54  ;;  %308 = vmatpush1.msra.mxu1 %v8639_v53  ;;  %v8749_v53 = vld [vmem:[%s13003_s3 + $0x1b8] sm:$0xff] }
  0x91   :  { %238 = vmatprep.subr.mxu0 %v8644_v60  ;;  %309 = vmatprep.subr.mxu1 %v8651_v59  ;;  %v8694_v60 = vld [vmem:[%s13003_s3 + $0x1e8] sm:$0xff]  ;;  %v8699_v59 = vld [vmem:[%s13003_s3 + $0x1f8] sm:$0xff]  ;;  %13602 = vst [vmem:[#allocation201_spill] sm:$0xff] %v8749_v53 }
  0x92   :  { %239 = vmatpush1.msra.mxu0 %v8656_v58  ;;  %310 = vmatpush1.msra.mxu1 %v8663_v57  ;;  %13592 = vst [vmem:[#allocation192_spill] sm:$0xff] %v8694_v60  ;;  %13593 = vst [vmem:[#allocation193_spill] sm:$0xff] %v8699_v59  ;;  %v8706_v57 = vld [vmem:[%s13003_s3 + $0x1e0] sm:$0xff]  ;;  %v8713_v58 = vld [vmem:[%s13003_s3 + $0x1f0] sm:$0xff] }
  0x93   :  { %240 = vmatprep.subr.mxu0 %v8668_v0  ;;  %311 = vmatprep.subr.mxu1 %v8675_v63  ;;  %13594 = vst [vmem:[#allocation194_spill] sm:$0xff] %v8706_v57  ;;  %v13595_v0 = vmov 0.0   ;;  %13596 = vst [vmem:[#allocation195_spill] sm:$0xff] %v8713_v58  ;;  %v8718_v63 = vld [vmem:[%s13003_s3 + $0x1c8] sm:$0xff] }
  0x94   :  { %241 = vmatpush1.msra.mxu0 %v8680_v62  ;;  %312 = vmatpush1.msra.mxu1 %v8687_v61  ;;  %13597 = vst [vmem:[#allocation196_spill] sm:$0xff] %v8718_v63  ;;  %v8725_v61 = vld [vmem:[%s13003_s3 + $0x1d8] sm:$0xff]  ;;  %v8730_v62 = vld [vmem:[%s13003_s3 + $0x1c0] sm:$0xff] }
  0x95   :  { %275 = vmatmul.mubr.f32.vlgmr.msra.gmra.mxu0 %v13595_v0  ;;  %352 = vmatprep.subr.mxu0 %v8694_v60  ;;  %13598 = vst [vmem:[#allocation197_spill] sm:$0xff] %v8725_v61  ;;  %13599 = vst [vmem:[#allocation198_spill] sm:$0xff] %v8730_v62  ;;  %v8737_v60 = vld [vmem:[%s13003_s3 + $0x1d0] sm:$0xff] }
  0x96   :  { %423 = vmatprep.subr.mxu1 %v8699_v59  ;;  %346 = vmatmul.mubr.f32.vlgmr.msra.gmra.mxu1 %v13595_v0  ;;  %13600 = vst [vmem:[#allocation199_spill] sm:$0xff] %v8737_v60  ;;  %v8742_v59 = vld [vmem:[%s13003_s3 + $0x1a8] sm:$0xff] }
  0x97   :  { %353 = vmatpush1.msra.mxu0 %v8706_v57  ;;  %13601 = vst [vmem:[#allocation200_spill] sm:$0xff] %v8742_v59  ;;  %424 = vmatpush1.msra.mxu1 %v8713_v58  ;;  %v8754_v57 = vld [vmem:[%s13003_s3 + $0x1a0] sm:$0xff]  ;;  %v8761_v58 = vld [vmem:[%s13003_s3 + $0x1b0] sm:$0xff] }
  0x98   :  { %354 = vmatprep.subr.mxu0 %v8718_v63  ;;  %13603 = vst [vmem:[#allocation202_spill] sm:$0xff] %v8754_v57  ;;  %425 = vmatprep.subr.mxu1 %v8725_v61  ;;  %13604 = vst [vmem:[#allocation203_spill] sm:$0xff] %v8761_v58  ;;  %v8766_v63 = vld [vmem:[%s13003_s3 + $0x188] sm:$0xff]  ;;  %v8773_v61 = vld [vmem:[%s13003_s3 + $0x198] sm:$0xff] }
  0x99   :  { %355 = vmatpush1.msra.mxu0 %v8730_v62  ;;  %13605 = vst [vmem:[#allocation204_spill] sm:$0xff] %v8766_v63  ;;  %426 = vmatpush1.msra.mxu1 %v8737_v60  ;;  %13606 = vst [vmem:[#allocation205_spill] sm:$0xff] %v8773_v61  ;;  %v8778_v62 = vld [vmem:[%s13003_s3 + $0x180] sm:$0xff]  ;;  %v8785_v60 = vld [vmem:[%s13003_s3 + $0x190] sm:$0xff] }
  0x9a   :  { %356 = vmatprep.subr.mxu0 %v8742_v59  ;;  %13607 = vst [vmem:[#allocation206_spill] sm:$0xff] %v8778_v62  ;;  %427 = vmatprep.subr.mxu1 %v8749_v53  ;;  %13608 = vst [vmem:[#allocation207_spill] sm:$0xff] %v8785_v60  ;;  %v8790_v59 = vld [vmem:[%s13003_s3 + $0x168] sm:$0xff]  ;;  %v8797_v53 = vld [vmem:[%s13003_s3 + $0x178] sm:$0xff] }
  0x9b   :  { %357 = vmatpush1.msra.mxu0 %v8754_v57  ;;  %13609 = vst [vmem:[#allocation208_spill] sm:$0xff] %v8790_v59  ;;  %428 = vmatpush1.msra.mxu1 %v8761_v58  ;;  %13610 = vst [vmem:[#allocation209_spill] sm:$0xff] %v8797_v53  ;;  %v8802_v57 = vld [vmem:[%s13003_s3 + $0x160] sm:$0xff]  ;;  %v8809_v58 = vld [vmem:[%s13003_s3 + $0x170] sm:$0xff] }
  0x9c   :  { %358 = vmatprep.subr.mxu0 %v8766_v63  ;;  %13611 = vst [vmem:[#allocation210_spill] sm:$0xff] %v8802_v57  ;;  %429 = vmatprep.subr.mxu1 %v8773_v61  ;;  %13612 = vst [vmem:[#allocation211_spill] sm:$0xff] %v8809_v58  ;;  %v8814_v63 = vld [vmem:[%s13003_s3 + $0x148] sm:$0xff]  ;;  %v8821_v61 = vld [vmem:[%s13003_s3 + $0x158] sm:$0xff] }
  0x9d   :  { %359 = vmatpush1.msra.mxu0 %v8778_v62  ;;  %13613 = vst [vmem:[#allocation212_spill] sm:$0xff] %v8814_v63  ;;  %430 = vmatpush1.msra.mxu1 %v8785_v60  ;;  %13614 = vst [vmem:[#allocation213_spill] sm:$0xff] %v8821_v61  ;;  %v8826_v62 = vld [vmem:[%s13003_s3 + $0x140] sm:$0xff]  ;;  %v8833_v60 = vld [vmem:[%s13003_s3 + $0x150] sm:$0xff] }
  0x9e   :  { %360 = vmatprep.subr.mxu0 %v8790_v59  ;;  %13615 = vst [vmem:[#allocation214_spill] sm:$0xff] %v8826_v62  ;;  %431 = vmatprep.subr.mxu1 %v8797_v53  ;;  %13616 = vst [vmem:[#allocation215_spill] sm:$0xff] %v8833_v60  ;;  %v8838_v59 = vld [vmem:[%s13003_s3 + $0x128] sm:$0xff]  ;;  %v8845_v53 = vld [vmem:[%s13003_s3 + $0x138] sm:$0xff] }
  0x9f   :  { %361 = vmatpush1.msra.mxu0 %v8802_v57  ;;  %13617 = vst [vmem:[#allocation216_spill] sm:$0xff] %v8838_v59  ;;  %432 = vmatpush1.msra.mxu1 %v8809_v58  ;;  %13618 = vst [vmem:[#allocation217_spill] sm:$0xff] %v8845_v53  ;;  %v8850_v57 = vld [vmem:[%s13003_s3 + $0x120] sm:$0xff]  ;;  %v8857_v58 = vld [vmem:[%s13003_s3 + $0x130] sm:$0xff] }
  0xa0   :  { %362 = vmatprep.subr.mxu0 %v8814_v63  ;;  %13619 = vst [vmem:[#allocation218_spill] sm:$0xff] %v8850_v57  ;;  %433 = vmatprep.subr.mxu1 %v8821_v61  ;;  %13620 = vst [vmem:[#allocation219_spill] sm:$0xff] %v8857_v58  ;;  %v8862_v63 = vld [vmem:[%s13003_s3 + $0x108] sm:$0xff]  ;;  %v8869_v61 = vld [vmem:[%s13003_s3 + $0x118] sm:$0xff] }
  0xa1   :  { %363 = vmatpush1.msra.mxu0 %v8826_v62  ;;  %13621 = vst [vmem:[#allocation220_spill] sm:$0xff] %v8862_v63  ;;  %434 = vmatpush1.msra.mxu1 %v8833_v60  ;;  %13622 = vst [vmem:[#allocation221_spill] sm:$0xff] %v8869_v61  ;;  %v8874_v62 = vld [vmem:[%s13003_s3 + $0x100] sm:$0xff]  ;;  %v8881_v60 = vld [vmem:[%s13003_s3 + $0x110] sm:$0xff] }
  0xa2   :  { %364 = vmatprep.subr.mxu0 %v8838_v59  ;;  %13623 = vst [vmem:[#allocation222_spill] sm:$0xff] %v8874_v62  ;;  %435 = vmatprep.subr.mxu1 %v8845_v53  ;;  %13624 = vst [vmem:[#allocation223_spill] sm:$0xff] %v8881_v60  ;;  %v8886_v59 = vld [vmem:[%s13003_s3 + $0xe8] sm:$0xff]  ;;  %v8893_v53 = vld [vmem:[%s13003_s3 + $0xf8] sm:$0xff] }
  0xa3   :  { %365 = vmatpush1.msra.mxu0 %v8850_v57  ;;  %13625 = vst [vmem:[#allocation224_spill] sm:$0xff] %v8886_v59  ;;  %436 = vmatpush1.msra.mxu1 %v8857_v58  ;;  %13626 = vst [vmem:[#allocation225_spill] sm:$0xff] %v8893_v53  ;;  %v8898_v57 = vld [vmem:[%s13003_s3 + $0xe0] sm:$0xff]  ;;  %v8905_v58 = vld [vmem:[%s13003_s3 + $0xf0] sm:$0xff] }
  0xa4   :  { %366 = vmatprep.subr.mxu0 %v8862_v63  ;;  %13627 = vst [vmem:[#allocation226_spill] sm:$0xff] %v8898_v57  ;;  %437 = vmatprep.subr.mxu1 %v8869_v61  ;;  %13628 = vst [vmem:[#allocation227_spill] sm:$0xff] %v8905_v58  ;;  %v8910_v63 = vld [vmem:[%s13003_s3 + $0xc8] sm:$0xff]  ;;  %v8917_v61 = vld [vmem:[%s13003_s3 + $0xd8] sm:$0xff] }
  0xa5   :  { %367 = vmatpush1.msra.mxu0 %v8874_v62  ;;  %13629 = vst [vmem:[#allocation228_spill] sm:$0xff] %v8910_v63  ;;  %438 = vmatpush1.msra.mxu1 %v8881_v60  ;;  %13630 = vst [vmem:[#allocation229_spill] sm:$0xff] %v8917_v61  ;;  %v8922_v62 = vld [vmem:[%s13003_s3 + $0xc0] sm:$0xff]  ;;  %v8929_v60 = vld [vmem:[%s13003_s3 + $0xd0] sm:$0xff] }
  0xa6   :  { %368 = vmatprep.subr.mxu0 %v8886_v59  ;;  %13631 = vst [vmem:[#allocation230_spill] sm:$0xff] %v8922_v62  ;;  %439 = vmatprep.subr.mxu1 %v8893_v53  ;;  %13632 = vst [vmem:[#allocation231_spill] sm:$0xff] %v8929_v60  ;;  %v8934_v59 = vld [vmem:[%s13003_s3 + $0xa8] sm:$0xff]  ;;  %v8941_v53 = vld [vmem:[%s13003_s3 + $0xb8] sm:$0xff] }
  0xa7   :  { %369 = vmatpush1.msra.mxu0 %v8898_v57  ;;  %13633 = vst [vmem:[#allocation232_spill] sm:$0xff] %v8934_v59  ;;  %440 = vmatpush1.msra.mxu1 %v8905_v58  ;;  %13634 = vst [vmem:[#allocation233_spill] sm:$0xff] %v8941_v53  ;;  %v8946_v57 = vld [vmem:[%s13003_s3 + $0xa0] sm:$0xff]  ;;  %v8953_v58 = vld [vmem:[%s13003_s3 + $0xb0] sm:$0xff] }
  0xa8   :  { %370 = vmatprep.subr.mxu0 %v8910_v63  ;;  %13635 = vst [vmem:[#allocation234_spill] sm:$0xff] %v8946_v57  ;;  %441 = vmatprep.subr.mxu1 %v8917_v61  ;;  %13636 = vst [vmem:[#allocation235_spill] sm:$0xff] %v8953_v58  ;;  %v8958_v63 = vld [vmem:[%s13003_s3 + $0x88] sm:$0xff]  ;;  %v8965_v61 = vld [vmem:[%s13003_s3 + $0x98] sm:$0xff] }
  0xa9   :  { %371 = vmatpush1.msra.mxu0 %v8922_v62  ;;  %13637 = vst [vmem:[#allocation236_spill] sm:$0xff] %v8958_v63  ;;  %442 = vmatpush1.msra.mxu1 %v8929_v60  ;;  %13638 = vst [vmem:[#allocation237_spill] sm:$0xff] %v8965_v61  ;;  %v8970_v62 = vld [vmem:[%s13003_s3 + $0x80] sm:$0xff]  ;;  %v8977_v60 = vld [vmem:[%s13003_s3 + $0x90] sm:$0xff] }
  0xaa   :  { %372 = vmatprep.subr.mxu0 %v8934_v59  ;;  %13639 = vst [vmem:[#allocation238_spill] sm:$0xff] %v8970_v62  ;;  %443 = vmatprep.subr.mxu1 %v8941_v53  ;;  %13640 = vst [vmem:[#allocation239_spill] sm:$0xff] %v8977_v60  ;;  %v8982_v59 = vld [vmem:[%s13003_s3 + $0x68] sm:$0xff]  ;;  %v8989_v53 = vld [vmem:[%s13003_s3 + $0x78] sm:$0xff] }
  0xab   :  { %373 = vmatpush1.msra.mxu0 %v8946_v57  ;;  %13641 = vst [vmem:[#allocation240_spill] sm:$0xff] %v8982_v59  ;;  %444 = vmatpush1.msra.mxu1 %v8953_v58  ;;  %13642 = vst [vmem:[#allocation241_spill] sm:$0xff] %v8989_v53  ;;  %v8994_v57 = vld [vmem:[%s13003_s3 + $0x60] sm:$0xff]  ;;  %v9001_v58 = vld [vmem:[%s13003_s3 + $0x70] sm:$0xff] }
  0xac   :  { %374 = vmatprep.subr.mxu0 %v8958_v63  ;;  %13643 = vst [vmem:[#allocation242_spill] sm:$0xff] %v8994_v57  ;;  %445 = vmatprep.subr.mxu1 %v8965_v61  ;;  %13644 = vst [vmem:[#allocation243_spill] sm:$0xff] %v9001_v58  ;;  %v9006_v63 = vld [vmem:[%s13003_s3 + $0x48] sm:$0xff]  ;;  %v9013_v61 = vld [vmem:[%s13003_s3 + $0x58] sm:$0xff] }
  0xad   :  { %375 = vmatpush1.msra.mxu0 %v8970_v62  ;;  %13645 = vst [vmem:[#allocation244_spill] sm:$0xff] %v9006_v63  ;;  %446 = vmatpush1.msra.mxu1 %v8977_v60  ;;  %13646 = vst [vmem:[#allocation245_spill] sm:$0xff] %v9013_v61  ;;  %v9018_v62 = vld [vmem:[%s13003_s3 + $0x40] sm:$0xff]  ;;  %v9025_v60 = vld [vmem:[%s13003_s3 + $0x50] sm:$0xff] }
  0xae   :  { %376 = vmatprep.subr.mxu0 %v8982_v59  ;;  %13647 = vst [vmem:[#allocation246_spill] sm:$0xff] %v9018_v62  ;;  %447 = vmatprep.subr.mxu1 %v8989_v53  ;;  %13648 = vst [vmem:[#allocation247_spill] sm:$0xff] %v9025_v60  ;;  %v9030_v59 = vld [vmem:[%s13003_s3 + $0x28] sm:$0xff]  ;;  %v9037_v53 = vld [vmem:[%s13003_s3 + $0x38] sm:$0xff] }
  0xaf   :  { %377 = vmatpush1.msra.mxu0 %v8994_v57  ;;  %13649 = vst [vmem:[#allocation248_spill] sm:$0xff] %v9030_v59  ;;  %448 = vmatpush1.msra.mxu1 %v9001_v58  ;;  %v9042_v57 = vld [vmem:[%s13003_s3 + $0x20] sm:$0xff]  ;;  %v9049_v58 = vld [vmem:[%s13003_s3 + $0x30] sm:$0xff] }
  0xb0   :  { %378 = vmatprep.subr.mxu0 %v9006_v63  ;;  %449 = vmatprep.subr.mxu1 %v9013_v61  ;;  %v9054_v63 = vld [vmem:[%s13003_s3 + $0x8] sm:$0xff]  ;;  %v9061_v61 = vld [vmem:[%s13003_s3 + $0x18] sm:$0xff] }
  0xb1   :  { %379 = vmatpush1.msra.mxu0 %v9018_v62  ;;  %450 = vmatpush1.msra.mxu1 %v9025_v60  ;;  %v9066_v62 = vld [vmem:[%s13003_s3] sm:$0xff]  ;;  %v9073_v60 = vld [vmem:[%s13003_s3 + $0x10] sm:$0xff] }
  0xb2   :  { %380 = vmatprep.subr.mxu0 %v9030_v59  ;;  %451 = vmatprep.subr.mxu1 %v9037_v53  ;;  %v207_v59 = vld [vmem:[%s13001_s1] sm:$0xff] }
  0xb3   :  { %381 = vmatpush1.msra.mxu0 %v9042_v57  ;;  %452 = vmatpush1.msra.mxu1 %v9049_v58 }
  0xb4   :  { %382 = vmatprep.subr.mxu0 %v9054_v63  ;;  %453 = vmatprep.subr.mxu1 %v9061_v61 }
  0xb5   :  { %383 = vmatpush1.msra.mxu0 %v9066_v62  ;;  %416 = vmatprep.mubr.f32.mxu0 %v13595_v0 }
  0xb6   :  { %454 = vmatpush1.msra.mxu1 %v9073_v60  ;;  %487 = vmatprep.mubr.f32.mxu1 %v13595_v0 }
  0xb7   :  { %417 = vmatmul.mubr.f32.vlgmr.msra.gmra.mxu0 %v207_v59  ;;  %488 = vmatmul.mubr.f32.vlgmr.msra.gmra.mxu1 %v207_v59  ;;  %v13650_v59 = vld [vmem:[#allocation183_spill] sm:$0xff] }
  0xb8   :  { %549 = vmatprep.subr.mxu0 %v8313_v1  ;;  %620 = vmatprep.subr.mxu1 %v8319_v8 }
  0xb9   :  { %550 = vmatpush1.msra.mxu0 %v8324_v4  ;;  %621 = vmatpush1.msra.mxu1 %v8329_v2 }
  0xba   :  { %551 = vmatprep.subr.mxu0 %v8336_v3  ;;  %622 = vmatprep.subr.mxu1 %v8341_v7 }
  0xbb   :  { %552 = vmatpush1.msra.mxu0 %v8346_v6  ;;  %623 = vmatpush1.msra.mxu1 %v8353_v5 }
  0xbc   :  { %553 = vmatprep.subr.mxu0 %v8358_v12  ;;  %624 = vmatprep.subr.mxu1 %v8363_v11 }
  0xbd   :  { %554 = vmatpush1.msra.mxu0 %v8370_v10  ;;  %625 = vmatpush1.msra.mxu1 %v8375_v9 }
  0xbe   :  { %555 = vmatprep.subr.mxu0 %v8380_v16  ;;  %626 = vmatprep.subr.mxu1 %v8387_v15 }
  0xbf   :  { %556 = vmatpush1.msra.mxu0 %v8392_v14  ;;  %627 = vmatpush1.msra.mxu1 %v8399_v13 }
  0xc0   :  { %557 = vmatprep.subr.mxu0 %v8404_v20  ;;  %628 = vmatprep.subr.mxu1 %v8411_v19 }
  0xc1   :  { %558 = vmatpush1.msra.mxu0 %v8416_v18  ;;  %629 = vmatpush1.msra.mxu1 %v8423_v17 }
  0xc2   :  { %559 = vmatprep.subr.mxu0 %v8428_v24  ;;  %630 = vmatprep.subr.mxu1 %v8435_v23 }
  0xc3   :  { %560 = vmatpush1.msra.mxu0 %v8440_v22  ;;  %631 = vmatpush1.msra.mxu1 %v8447_v21 }
  0xc4   :  { %561 = vmatprep.subr.mxu0 %v8452_v28  ;;  %632 = vmatprep.subr.mxu1 %v8459_v27 }
  0xc5   :  { %562 = vmatpush1.msra.mxu0 %v8464_v26  ;;  %633 = vmatpush1.msra.mxu1 %v8471_v25 }
  0xc6   :  { %563 = vmatprep.subr.mxu0 %v8476_v32  ;;  %634 = vmatprep.subr.mxu1 %v8483_v31 }
  0xc7   :  { %564 = vmatpush1.msra.mxu0 %v8488_v30  ;;  %635 = vmatpush1.msra.mxu1 %v8495_v29 }
  0xc8   :  { %565 = vmatprep.subr.mxu0 %v8500_v36  ;;  %636 = vmatprep.subr.mxu1 %v8507_v35 }
  0xc9   :  { %566 = vmatpush1.msra.mxu0 %v8512_v34  ;;  %637 = vmatpush1.msra.mxu1 %v8519_v33 }
  0xca   :  { %567 = vmatprep.subr.mxu0 %v8524_v40  ;;  %638 = vmatprep.subr.mxu1 %v8531_v39 }
  0xcb   :  { %568 = vmatpush1.msra.mxu0 %v8536_v38  ;;  %639 = vmatpush1.msra.mxu1 %v8543_v37 }
  0xcc   :  { %569 = vmatprep.subr.mxu0 %v8548_v44  ;;  %640 = vmatprep.subr.mxu1 %v8555_v43 }
  0xcd   :  { %570 = vmatpush1.msra.mxu0 %v8560_v42  ;;  %641 = vmatpush1.msra.mxu1 %v8567_v41 }
  0xce   :  { %571 = vmatprep.subr.mxu0 %v8572_v48  ;;  %642 = vmatprep.subr.mxu1 %v8579_v47  ;;  %v13651_v47 = vld [vmem:[#allocation184_spill] sm:$0xff] }
  0xcf   :  { %572 = vmatpush1.msra.mxu0 %v8584_v46  ;;  %643 = vmatpush1.msra.mxu1 %v8591_v45  ;;  %v13652_v46 = vld [vmem:[#allocation185_spill] sm:$0xff]  ;;  %v13653_v45 = vld [vmem:[#allocation186_spill] sm:$0xff] }
  0xd0   :  { %573 = vmatprep.subr.mxu0 %v8596_v52  ;;  %644 = vmatprep.subr.mxu1 %v8603_v51  ;;  %v13654_v52 = vld [vmem:[#allocation187_spill] sm:$0xff]  ;;  %v13655_v51 = vld [vmem:[#allocation188_spill] sm:$0xff] }
  0xd1   :  { %574 = vmatpush1.msra.mxu0 %v8608_v50  ;;  %645 = vmatpush1.msra.mxu1 %v8615_v49  ;;  %v13656_v50 = vld [vmem:[#allocation189_spill] sm:$0xff]  ;;  %v13657_v49 = vld [vmem:[#allocation190_spill] sm:$0xff] }
  0xd2   :  { %575 = vmatprep.subr.mxu0 %v8620_v56  ;;  %646 = vmatprep.subr.mxu1 %v8627_v55  ;;  %v13658_v56 = vld [vmem:[#allocation191_spill] sm:$0xff] }
  0xd3   :  { %576 = vmatpush1.msra.mxu0 %v8632_v54  ;;  %647 = vmatpush1.msra.mxu1 %v13650_v59  ;;  %v13659_v59 = vld [vmem:[#allocation192_spill] sm:$0xff] }
  0xd4   :  { %577 = vmatprep.subr.mxu0 %v13651_v47  ;;  %648 = vmatprep.subr.mxu1 %v13652_v46  ;;  %v13660_v47 = vld [vmem:[#allocation193_spill] sm:$0xff]  ;;  %v495_v46 = vlaneseq }
  0xd5   :  { %578 = vmatpush1.msra.mxu0 %v13653_v45  ;;  %649 = vmatpush1.msra.mxu1 %v13654_v52 }
  0xd6   :  { %579 = vmatprep.subr.mxu0 %v13655_v51  ;;  %650 = vmatprep.subr.mxu1 %v13656_v50  ;;  %v2918_v45 = vand.u32 127, %v495_v46  ;;  %v9155_v52 = vshrl.u32 %v495_v46, 7 }
  0xd7   :  { %580 = vmatpush1.msra.mxu0 %v13657_v49  ;;  %651 = vmatpush1.msra.mxu1 %v13658_v56  ;;  %v206_v56 = vld [vmem:[%s13005_s5] sm:$0xf] }
  0xd8   :  { %613 = vmatprep.mubr.f32.mxu0 %v13595_v0  ;;  %684 = vmatprep.mubr.f32.mxu1 %v13595_v0  ;;  %v9153_v54 = vcvt.s32.f32 %v2918_v45  ;;  %13662 = vst [vmem:[#allocation250_spill] sm:$0xff] %v9155_v52  ;;  %v13179_v50 = vsub.s32 0, %v9155_v52  ;;  %v13182_v0 = vsub.s32 1, %v9155_v52  ;;  %v13183_v38 = vsub.s32 3, %v9155_v52 }
  0xd9   :  { %691 = vmatprep.subr.mxu0 %v13659_v59  ;;  %762 = vmatprep.subr.mxu1 %v13660_v47 }
  0xda   :  { %13661 = vst [vmem:[#allocation249_spill] sm:$0xff] %v9153_v54  ;;  %v9164_v47 = vrot.slane %v206_v56, %v13179_v50  ;;  %v9168_v46 = vrot.slane %v206_v56, %v13182_v0 }
 0x155   :  { %v276_v51 = vpop.f32.mrf.mxu0 }
 0x156   :  { %v347_v49 = vpop.f32.mrf.mxu1 }
 0x157   :  { %v278_v55 = vpop.f32.mrf.mxu0 }
 0x158   :  { %v349_v45 = vpop.f32.mrf.mxu1 }
 0x177   :  { %v418_v59 = vpop.f32.mrf.mxu0  ;;  %v489_v42 = vpop.f32.mrf.mxu1 }
 0x178   :  { %v419_v54 = vadd.f32 %v418_v59, %v276_v51  ;;  %v9175_v51 = vrot.slane %v206_v56, %v13183_v38  ;;  %v13186_v59 = vsub.s32 2, %v9155_v52  ;;  %v490_v0 = vadd.f32 %v489_v42, %v347_v49  ;;  %v9184_v52 = vld [vmem:[#allocation13] sm:$0xff] }
 0x179   :  { %v420_v48 = vpop.f32.mrf.mxu0  ;;  %v491_v39 = vpop.f32.mrf.mxu1 }
 0x17a   :  { %v515_v41 = vadd.f32 %v9164_v47, %v419_v54  ;;  %v421_v43 = vadd.f32 %v420_v48, %v278_v55  ;;  %v492_v40 = vadd.f32 %v491_v39, %v349_v45 }
 0x17c   :  { %v6450_v44 = vmul.f32 -1.442695, %v515_v41  ;;  %v516_v37 = vadd.f32 %v9168_v46, %v421_v43  ;;  %v518_v54 = vadd.f32 %v9175_v51, %v492_v40  ;;  %v9181_v41 = vrot.slane %v206_v56, %v13186_v59  ;;  %v13677_v59 = vld [vmem:[#allocation208_spill] sm:$0xff] }
 0x17e   :  { %7281 = vpow2.f32 %v6450_v44  ;;  %v6451_v50 = vmul.f32 -1.442695, %v516_v37  ;;  %v6452_v43 = vmul.f32 -1.442695, %v518_v54  ;;  %v517_v37 = vadd.f32 %v9181_v41, %v490_v0 }
 0x180   :  { %7283 = vpow2.f32 %v6451_v50 }
 0x181   :  { %7285 = vpow2.f32 %v6452_v43 }
 0x18b   :  { %v7282_v48 = vpop.eup %7281 }
 0x18c   :  { %v522_v44 = vadd.f32 1.0, %v7282_v48 }
 0x18d   :  { %v7284_v50 = vpop.eup %7283 }
 0x18e   :  { %7287 = vrcp.f32 %v522_v44  ;;  %v528_v39 = vadd.f32 1.0, %v7284_v50  ;;  %v7286_v55 = vpop.eup %7285  ;;  %v13664_v44 = vld [vmem:[#allocation195_spill] sm:$0xff]  ;;  %v13665_v50 = vld [vmem:[#allocation196_spill] sm:$0xff] }
 0x18f   :  { %7289 = vtanh.f32 %v517_v37  ;;  %v535_v42 = vadd.f32 1.0, %v7286_v55  ;;  %v13663_v37 = vld [vmem:[#allocation194_spill] sm:$0xff]  ;;  %v13668_v55 = vld [vmem:[#allocation199_spill] sm:$0xff] }
 0x190   :  { %7291 = vrcp.f32 %v528_v39  ;;  %v13667_v39 = vld [vmem:[#allocation198_spill] sm:$0xff] }
 0x191   :  { %7293 = vrcp.f32 %v535_v42  ;;  %v13671_v42 = vld [vmem:[#allocation202_spill] sm:$0xff] }
 0x19b   :  { %v7288_v45 = vpop.eup %7287 }
 0x19c   :  { %v7290_v38 = vpop.eup %7289 }
 0x19d   :  { %v7292_v40 = vpop.eup %7291  ;;  %v539_v49 = vmul.f32 %v7290_v38, %v7288_v45  ;;  %v13666_v38 = vld [vmem:[#allocation197_spill] sm:$0xff]  ;;  %v13669_v45 = vld [vmem:[#allocation200_spill] sm:$0xff] }
 0x19e   :  { %v538_v56 = vmul.f32 %v9184_v52, %v7292_v40  ;;  %v7294_v0 = vpop.eup %7293  ;;  %v13670_v40 = vld [vmem:[#allocation201_spill] sm:$0xff] }
 0x1a0   :  { %v9187_v54 = vadd.f32 %v539_v49, %v538_v56  ;;  %v13672_v49 = vld [vmem:[#allocation203_spill] sm:$0xff]  ;;  %v13673_v56 = vld [vmem:[#allocation204_spill] sm:$0xff] }
 0x1a2   :  { %7295 = vtanh.f32 %v9187_v54 }
 0x1af   :  { %v7296_v43 = vpop.eup %7295 }
 0x1b0   :  { %v542_v48 = vmul.f32 %v7296_v43, %v7294_v0  ;;  %v13674_v0 = vld [vmem:[#allocation205_spill] sm:$0xff]  ;;  %v13675_v43 = vld [vmem:[#allocation206_spill] sm:$0xff] }
 0x1b2   :  { %614 = vmatmul.mubr.f32.vlgmr.msra.gmra.mxu0 %v542_v48  ;;  %685 = vmatmul.mubr.f32.vlgmr.msra.gmra.mxu1 %v542_v48  ;;  %v13676_v48 = vld [vmem:[#allocation207_spill] sm:$0xff] }
 0x1b3   :  { %692 = vmatpush1.msra.mxu0 %v13663_v37  ;;  %763 = vmatpush1.msra.mxu1 %v13664_v44 }
 0x1b4   :  { %693 = vmatprep.subr.mxu0 %v13665_v50  ;;  %764 = vmatprep.subr.mxu1 %v13666_v38 }
 0x1b5   :  { %694 = vmatpush1.msra.mxu0 %v13667_v39  ;;  %765 = vmatpush1.msra.mxu1 %v13668_v55  ;;  %v13678_v39 = vld [vmem:[#allocation209_spill] sm:$0xff]  ;;  %v13679_v55 = vld [vmem:[#allocation210_spill] sm:$0xff] }
 0x1b6   :  { %695 = vmatprep.subr.mxu0 %v13669_v45  ;;  %766 = vmatprep.subr.mxu1 %v13670_v40  ;;  %v13680_v45 = vld [vmem:[#allocation211_spill] sm:$0xff]  ;;  %v13681_v40 = vld [vmem:[#allocation212_spill] sm:$0xff] }
 0x1b7   :  { %696 = vmatpush1.msra.mxu0 %v13671_v42  ;;  %767 = vmatpush1.msra.mxu1 %v13672_v49  ;;  %v13682_v42 = vld [vmem:[#allocation213_spill] sm:$0xff]  ;;  %v13683_v49 = vld [vmem:[#allocation214_spill] sm:$0xff] }
 0x1b8   :  { %697 = vmatprep.subr.mxu0 %v13673_v56  ;;  %768 = vmatprep.subr.mxu1 %v13674_v0  ;;  %v13684_v56 = vld [vmem:[#allocation215_spill] sm:$0xff]  ;;  %v13685_v0 = vld [vmem:[#allocation216_spill] sm:$0xff] }
 0x1b9   :  { %698 = vmatpush1.msra.mxu0 %v13675_v43  ;;  %769 = vmatpush1.msra.mxu1 %v13676_v48  ;;  %v13686_v43 = vld [vmem:[#allocation217_spill] sm:$0xff]  ;;  %v13687_v48 = vld [vmem:[#allocation218_spill] sm:$0xff] }
 0x1ba   :  { %699 = vmatprep.subr.mxu0 %v13677_v59  ;;  %770 = vmatprep.subr.mxu1 %v13678_v39  ;;  %v13688_v59 = vld [vmem:[#allocation219_spill] sm:$0xff]  ;;  %v13689_v39 = vld [vmem:[#allocation220_spill] sm:$0xff] }
 0x1bb   :  { %700 = vmatpush1.msra.mxu0 %v13679_v55  ;;  %771 = vmatpush1.msra.mxu1 %v13680_v45  ;;  %v13690_v55 = vld [vmem:[#allocation221_spill] sm:$0xff]  ;;  %v13691_v45 = vld [vmem:[#allocation222_spill] sm:$0xff] }
 0x1bc   :  { %701 = vmatprep.subr.mxu0 %v13681_v40  ;;  %772 = vmatprep.subr.mxu1 %v13682_v42  ;;  %v13692_v40 = vld [vmem:[#allocation223_spill] sm:$0xff]  ;;  %v13693_v42 = vld [vmem:[#allocation224_spill] sm:$0xff] }
 0x1bd   :  { %702 = vmatpush1.msra.mxu0 %v13683_v49  ;;  %773 = vmatpush1.msra.mxu1 %v13684_v56  ;;  %v13694_v49 = vld [vmem:[#allocation225_spill] sm:$0xff]  ;;  %v13695_v56 = vld [vmem:[#allocation226_spill] sm:$0xff] }
 0x1be   :  { %703 = vmatprep.subr.mxu0 %v13685_v0  ;;  %774 = vmatprep.subr.mxu1 %v13686_v43  ;;  %v13696_v0 = vld [vmem:[#allocation227_spill] sm:$0xff]  ;;  %v13697_v43 = vld [vmem:[#allocation228_spill] sm:$0xff] }
 0x1bf   :  { %704 = vmatpush1.msra.mxu0 %v13687_v48  ;;  %775 = vmatpush1.msra.mxu1 %v13688_v59  ;;  %v13698_v48 = vld [vmem:[#allocation229_spill] sm:$0xff]  ;;  %v13699_v59 = vld [vmem:[#allocation230_spill] sm:$0xff] }
 0x1c0   :  { %705 = vmatprep.subr.mxu0 %v13689_v39  ;;  %776 = vmatprep.subr.mxu1 %v13690_v55  ;;  %v13700_v39 = vld [vmem:[#allocation231_spill] sm:$0xff]  ;;  %v13701_v55 = vld [vmem:[#allocation232_spill] sm:$0xff] }
 0x1c1   :  { %706 = vmatpush1.msra.mxu0 %v13691_v45  ;;  %777 = vmatpush1.msra.mxu1 %v13692_v40  ;;  %v13702_v45 = vld [vmem:[#allocation233_spill] sm:$0xff]  ;;  %v13703_v40 = vld [vmem:[#allocation234_spill] sm:$0xff] }
 0x1c2   :  { %707 = vmatprep.subr.mxu0 %v13693_v42  ;;  %778 = vmatprep.subr.mxu1 %v13694_v49  ;;  %v13704_v42 = vld [vmem:[#allocation235_spill] sm:$0xff]  ;;  %v13705_v49 = vld [vmem:[#allocation236_spill] sm:$0xff] }
 0x1c3   :  { %708 = vmatpush1.msra.mxu0 %v13695_v56  ;;  %779 = vmatpush1.msra.mxu1 %v13696_v0  ;;  %v13706_v56 = vld [vmem:[#allocation237_spill] sm:$0xff]  ;;  %v13707_v0 = vld [vmem:[#allocation238_spill] sm:$0xff] }
 0x1c4   :  { %709 = vmatprep.subr.mxu0 %v13697_v43  ;;  %780 = vmatprep.subr.mxu1 %v13698_v48  ;;  %v13708_v43 = vld [vmem:[#allocation239_spill] sm:$0xff]  ;;  %v13709_v48 = vld [vmem:[#allocation240_spill] sm:$0xff] }
 0x1c5   :  { %710 = vmatpush1.msra.mxu0 %v13699_v59  ;;  %781 = vmatpush1.msra.mxu1 %v13700_v39  ;;  %v13710_v59 = vld [vmem:[#allocation241_spill] sm:$0xff]  ;;  %v13711_v39 = vld [vmem:[#allocation242_spill] sm:$0xff] }
 0x1c6   :  { %711 = vmatprep.subr.mxu0 %v13701_v55  ;;  %782 = vmatprep.subr.mxu1 %v13702_v45  ;;  %v13712_v55 = vld [vmem:[#allocation243_spill] sm:$0xff]  ;;  %v13713_v45 = vld [vmem:[#allocation244_spill] sm:$0xff] }
 0x1c7   :  { %712 = vmatpush1.msra.mxu0 %v13703_v40  ;;  %783 = vmatpush1.msra.mxu1 %v13704_v42  ;;  %v13714_v40 = vld [vmem:[#allocation245_spill] sm:$0xff]  ;;  %v13715_v42 = vld [vmem:[#allocation246_spill] sm:$0xff] }
 0x1c8   :  { %713 = vmatprep.subr.mxu0 %v13705_v49  ;;  %784 = vmatprep.subr.mxu1 %v13706_v56  ;;  %v13716_v49 = vld [vmem:[#allocation247_spill] sm:$0xff]  ;;  %v13717_v56 = vld [vmem:[#allocation248_spill] sm:$0xff] }
 0x1c9   :  { %714 = vmatpush1.msra.mxu0 %v13707_v0  ;;  %785 = vmatpush1.msra.mxu1 %v13708_v43 }
 0x1ca   :  { %715 = vmatprep.subr.mxu0 %v13709_v48  ;;  %786 = vmatprep.subr.mxu1 %v13710_v59 }
 0x1cb   :  { %716 = vmatpush1.msra.mxu0 %v13711_v39  ;;  %787 = vmatpush1.msra.mxu1 %v13712_v55 }
 0x1cc   :  { %717 = vmatprep.subr.mxu0 %v13713_v45  ;;  %788 = vmatprep.subr.mxu1 %v13714_v40  ;;  %v6453_v40 = vld [vmem:[%s13001_s1 + $0x8] sm:$0xff] }
 0x1cd   :  { %718 = vmatpush1.msra.mxu0 %v13715_v42  ;;  %789 = vmatpush1.msra.mxu1 %v13716_v49 }
 0x1ce   :  { %719 = vmatprep.subr.mxu0 %v13717_v56  ;;  %790 = vmatprep.subr.mxu1 %v9037_v53 }
 0x1cf   :  { %720 = vmatpush1.msra.mxu0 %v9042_v57  ;;  %791 = vmatpush1.msra.mxu1 %v9049_v58 }
 0x1d0   :  { %721 = vmatprep.subr.mxu0 %v9054_v63  ;;  %792 = vmatprep.subr.mxu1 %v9061_v61 }
 0x1d1   :  { %722 = vmatpush1.msra.mxu0 %v9066_v62  ;;  %755 = vmatprep.mubr.f32.mxu0 %v9184_v52 }
 0x1d2   :  { %793 = vmatpush1.msra.mxu1 %v9073_v60  ;;  %826 = vmatprep.mubr.f32.mxu1 %v9184_v52 }
 0x1d3   :  { %756 = vmatmul.mubr.f32.vlgmr.msra.gmra.mxu0 %v6453_v40  ;;  %827 = vmatmul.mubr.f32.vlgmr.msra.gmra.mxu1 %v6453_v40 }
 0x1d4   :  { %867 = vmatprep.subr.mxu0 %v8313_v1  ;;  %938 = vmatprep.subr.mxu1 %v8319_v8  ;;  %v13718_v1 = vld [vmem:[#allocation164_spill] sm:$0xff]  ;;  %v13725_v8 = vld [vmem:[#allocation171_spill] sm:$0xff] }
 0x1d5   :  { %868 = vmatpush1.msra.mxu0 %v8324_v4  ;;  %939 = vmatpush1.msra.mxu1 %v8329_v2  ;;  %v13719_v2 = vld [vmem:[#allocation165_spill] sm:$0xff]  ;;  %v13721_v4 = vld [vmem:[#allocation167_spill] sm:$0xff] }
 0x1d6   :  { %869 = vmatprep.subr.mxu0 %v8336_v3  ;;  %940 = vmatprep.subr.mxu1 %v8341_v7  ;;  %v13720_v3 = vld [vmem:[#allocation166_spill] sm:$0xff] }
 0x1d7   :  { %870 = vmatpush1.msra.mxu0 %v8346_v6  ;;  %941 = vmatpush1.msra.mxu1 %v8353_v5  ;;  %v13722_v5 = vld [vmem:[#allocation168_spill] sm:$0xff]  ;;  %v13723_v6 = vld [vmem:[#allocation169_spill] sm:$0xff]  ;;  %v13724_v7 = vld [vmem:[#allocation170_spill] sm:$0xff] }
 0x1d8   :  { %871 = vmatprep.subr.mxu0 %v8358_v12  ;;  %942 = vmatprep.subr.mxu1 %v8363_v11  ;;  %v13728_v11 = vld [vmem:[#allocation174_spill] sm:$0xff]  ;;  %v13729_v12 = vld [vmem:[#allocation175_spill] sm:$0xff] }
 0x1d9   :  { %872 = vmatpush1.msra.mxu0 %v8370_v10  ;;  %943 = vmatpush1.msra.mxu1 %v8375_v9  ;;  %v13726_v9 = vld [vmem:[#allocation172_spill] sm:$0xff]  ;;  %v13727_v10 = vld [vmem:[#allocation173_spill] sm:$0xff] }
 0x1da   :  { %873 = vmatprep.subr.mxu0 %v8380_v16  ;;  %944 = vmatprep.subr.mxu1 %v8387_v15  ;;  %v13732_v15 = vld [vmem:[#allocation178_spill] sm:$0xff]  ;;  %v13733_v16 = vld [vmem:[#allocation179_spill] sm:$0xff] }
 0x1db   :  { %874 = vmatpush1.msra.mxu0 %v8392_v14  ;;  %945 = vmatpush1.msra.mxu1 %v8399_v13  ;;  %v13730_v13 = vld [vmem:[#allocation176_spill] sm:$0xff]  ;;  %v13731_v14 = vld [vmem:[#allocation177_spill] sm:$0xff] }
 0x1dc   :  { %875 = vmatprep.subr.mxu0 %v8404_v20  ;;  %946 = vmatprep.subr.mxu1 %v8411_v19  ;;  %v13736_v19 = vld [vmem:[#allocation182_spill] sm:$0xff]  ;;  %v13737_v20 = vld [vmem:[#allocation183_spill] sm:$0xff] }
 0x1dd   :  { %876 = vmatpush1.msra.mxu0 %v8416_v18  ;;  %947 = vmatpush1.msra.mxu1 %v8423_v17  ;;  %v13734_v17 = vld [vmem:[#allocation180_spill] sm:$0xff]  ;;  %v13735_v18 = vld [vmem:[#allocation181_spill] sm:$0xff] }
 0x1de   :  { %877 = vmatprep.subr.mxu0 %v8428_v24  ;;  %948 = vmatprep.subr.mxu1 %v8435_v23  ;;  %v13740_v23 = vld [vmem:[#allocation186_spill] sm:$0xff]  ;;  %v13741_v24 = vld [vmem:[#allocation187_spill] sm:$0xff] }
 0x1df   :  { %878 = vmatpush1.msra.mxu0 %v8440_v22  ;;  %949 = vmatpush1.msra.mxu1 %v8447_v21  ;;  %v13738_v21 = vld [vmem:[#allocation184_spill] sm:$0xff]  ;;  %v13739_v22 = vld [vmem:[#allocation185_spill] sm:$0xff] }
 0x1e0   :  { %879 = vmatprep.subr.mxu0 %v8452_v28  ;;  %950 = vmatprep.subr.mxu1 %v8459_v27  ;;  %v13744_v27 = vld [vmem:[#allocation190_spill] sm:$0xff]  ;;  %v13745_v28 = vld [vmem:[#allocation191_spill] sm:$0xff] }
 0x1e1   :  { %880 = vmatpush1.msra.mxu0 %v8464_v26  ;;  %951 = vmatpush1.msra.mxu1 %v8471_v25  ;;  %v13742_v25 = vld [vmem:[#allocation188_spill] sm:$0xff]  ;;  %v13743_v26 = vld [vmem:[#allocation189_spill] sm:$0xff] }
 0x1e2   :  { %881 = vmatprep.subr.mxu0 %v8476_v32  ;;  %952 = vmatprep.subr.mxu1 %v8483_v31 }
 0x1e3   :  { %882 = vmatpush1.msra.mxu0 %v8488_v30  ;;  %953 = vmatpush1.msra.mxu1 %v8495_v29  ;;  %v13746_v29 = vld [vmem:[#allocation192_spill] sm:$0xff]  ;;  %v13747_v30 = vld [vmem:[#allocation193_spill] sm:$0xff] }
 0x1e4   :  { %883 = vmatprep.subr.mxu0 %v8500_v36  ;;  %954 = vmatprep.subr.mxu1 %v8507_v35 }
 0x1e5   :  { %884 = vmatpush1.msra.mxu0 %v8512_v34  ;;  %955 = vmatpush1.msra.mxu1 %v8519_v33 }
 0x1e6   :  { %885 = vmatprep.subr.mxu0 %v13718_v1  ;;  %956 = vmatprep.subr.mxu1 %v13719_v2 }
 0x1e7   :  { %886 = vmatpush1.msra.mxu0 %v13720_v3  ;;  %957 = vmatpush1.msra.mxu1 %v13721_v4 }
 0x1e8   :  { %887 = vmatprep.subr.mxu0 %v13722_v5  ;;  %958 = vmatprep.subr.mxu1 %v13723_v6 }
 0x1e9   :  { %888 = vmatpush1.msra.mxu0 %v13724_v7  ;;  %959 = vmatpush1.msra.mxu1 %v13725_v8 }
 0x1ea   :  { %889 = vmatprep.subr.mxu0 %v13726_v9  ;;  %960 = vmatprep.subr.mxu1 %v13727_v10 }
 0x1eb   :  { %890 = vmatpush1.msra.mxu0 %v13728_v11  ;;  %961 = vmatpush1.msra.mxu1 %v13729_v12 }
 0x1ec   :  { %891 = vmatprep.subr.mxu0 %v13730_v13  ;;  %962 = vmatprep.subr.mxu1 %v13731_v14 }
 0x1ed   :  { %892 = vmatpush1.msra.mxu0 %v13732_v15  ;;  %963 = vmatpush1.msra.mxu1 %v13733_v16 }
 0x1ee   :  { %893 = vmatprep.subr.mxu0 %v13734_v17  ;;  %964 = vmatprep.subr.mxu1 %v13735_v18 }
 0x1ef   :  { %894 = vmatpush1.msra.mxu0 %v13736_v19  ;;  %965 = vmatpush1.msra.mxu1 %v13737_v20 }
 0x1f0   :  { %895 = vmatprep.subr.mxu0 %v13738_v21  ;;  %966 = vmatprep.subr.mxu1 %v13739_v22 }
 0x1f1   :  { %896 = vmatpush1.msra.mxu0 %v13740_v23  ;;  %967 = vmatpush1.msra.mxu1 %v13741_v24 }
 0x1f2   :  { %897 = vmatprep.subr.mxu0 %v13742_v25  ;;  %968 = vmatprep.subr.mxu1 %v13743_v26 }
 0x1f3   :  { %898 = vmatpush1.msra.mxu0 %v13744_v27  ;;  %969 = vmatpush1.msra.mxu1 %v13745_v28  ;;  %v13748_v28 = vld [vmem:[#allocation198_spill] sm:$0xff] }
 0x1f4   :  { %931 = vmatprep.mubr.f32.mxu0 %v9184_v52  ;;  %1002 = vmatprep.mubr.f32.mxu1 %v9184_v52 }
 0x1f5   :  { %1009 = vmatprep.subr.mxu0 %v13746_v29  ;;  %1080 = vmatprep.subr.mxu1 %v13747_v30  ;;  %v13750_v29 = vld [vmem:[#allocation200_spill] sm:$0xff]  ;;  %v13751_v30 = vld [vmem:[#allocation201_spill] sm:$0xff] }
 0x272   :  { %v615_v31 = vpop.f32.mrf.mxu0  ;;  %v686_v32 = vpop.f32.mrf.mxu1 }
 0x274   :  { %v617_v33 = vpop.f32.mrf.mxu0  ;;  %v688_v35 = vpop.f32.mrf.mxu1 }
 0x293   :  { %v757_v34 = vpop.f32.mrf.mxu0  ;;  %v828_v2 = vpop.f32.mrf.mxu1 }
 0x294   :  { %v758_v36 = vadd.f32 %v757_v34, %v615_v31  ;;  %v829_v10 = vadd.f32 %v828_v2, %v686_v32  ;;  %v13752_v31 = vld [vmem:[#allocation202_spill] sm:$0xff]  ;;  %v13753_v32 = vld [vmem:[#allocation203_spill] sm:$0xff]  ;;  %v13759_v34 = vld [vmem:[#allocation209_spill] sm:$0xff] }
 0x295   :  { %v759_v40 = vpop.f32.mrf.mxu0  ;;  %v830_v7 = vpop.f32.mrf.mxu1  ;;  %v13764_v2 = vld [vmem:[#allocation214_spill] sm:$0xff] }
 0x296   :  { %v833_v1 = vadd.f32 %v758_v36, %v9164_v47  ;;  %v760_v3 = vadd.f32 %v759_v40, %v617_v33  ;;  %v831_v8 = vadd.f32 %v830_v7, %v688_v35  ;;  %v835_v13 = vadd.f32 %v829_v10, %v9181_v41  ;;  %v13754_v33 = vld [vmem:[#allocation204_spill] sm:$0xff]  ;;  %v13760_v35 = vld [vmem:[#allocation210_spill] sm:$0xff]  ;;  %v13761_v36 = vld [vmem:[#allocation211_spill] sm:$0xff] }
 0x297   :  { %v13762_v40 = vld [vmem:[#allocation212_spill] sm:$0xff]  ;;  %v13769_v7 = vld [vmem:[#allocation219_spill] sm:$0xff]  ;;  %v13772_v10 = vld [vmem:[#allocation222_spill] sm:$0xff] }
 0x298   :  { %v6454_v4 = vmul.f32 -1.442695, %v833_v1  ;;  %v834_v5 = vadd.f32 %v760_v3, %v9168_v46  ;;  %v836_v9 = vadd.f32 %v831_v8, %v9175_v51  ;;  %v13763_v1 = vld [vmem:[#allocation213_spill] sm:$0xff]  ;;  %v13765_v3 = vld [vmem:[#allocation215_spill] sm:$0xff]  ;;  %v13770_v8 = vld [vmem:[#allocation220_spill] sm:$0xff] }
 0x29a   :  { %7297 = vpow2.f32 %v6454_v4  ;;  %v6455_v6 = vmul.f32 -1.442695, %v834_v5  ;;  %v6456_v11 = vmul.f32 -1.442695, %v836_v9  ;;  %v13766_v4 = vld [vmem:[#allocation216_spill] sm:$0xff]  ;;  %v13767_v5 = vld [vmem:[#allocation217_spill] sm:$0xff] }
 0x29b   :  { %v13771_v9 = vld [vmem:[#allocation221_spill] sm:$0xff] }
 0x29c   :  { %7299 = vpow2.f32 %v6455_v6  ;;  %v13768_v6 = vld [vmem:[#allocation218_spill] sm:$0xff] }
 0x29d   :  { %7301 = vpow2.f32 %v6456_v11  ;;  %v13773_v11 = vld [vmem:[#allocation223_spill] sm:$0xff] }
 0x2a7   :  { %v7298_v12 = vpop.eup %7297 }
 0x2a8   :  { %v840_v14 = vadd.f32 1.0, %v7298_v12  ;;  %v13774_v12 = vld [vmem:[#allocation224_spill] sm:$0xff] }
 0x2a9   :  { %v7300_v15 = vpop.eup %7299 }
 0x2aa   :  { %7303 = vrcp.f32 %v840_v14  ;;  %v846_v16 = vadd.f32 1.0, %v7300_v15  ;;  %v7302_v17 = vpop.eup %7301  ;;  %v13776_v14 = vld [vmem:[#allocation226_spill] sm:$0xff]  ;;  %v13777_v15 = vld [vmem:[#allocation227_spill] sm:$0xff] }
 0x2ab   :  { %7305 = vtanh.f32 %v835_v13  ;;  %v853_v21 = vadd.f32 1.0, %v7302_v17  ;;  %v13775_v13 = vld [vmem:[#allocation225_spill] sm:$0xff] }
 0x2ac   :  { %7307 = vrcp.f32 %v846_v16  ;;  %v13778_v16 = vld [vmem:[#allocation228_spill] sm:$0xff]  ;;  %v13779_v17 = vld [vmem:[#allocation229_spill] sm:$0xff] }
 0x2ad   :  { %7309 = vrcp.f32 %v853_v21  ;;  %v13783_v21 = vld [vmem:[#allocation233_spill] sm:$0xff] }
 0x2b7   :  { %v7304_v18 = vpop.eup %7303 }
 0x2b8   :  { %v7306_v19 = vpop.eup %7305 }
 0x2b9   :  { %v7308_v20 = vpop.eup %7307  ;;  %v857_v22 = vmul.f32 %v7306_v19, %v7304_v18  ;;  %v13780_v18 = vld [vmem:[#allocation230_spill] sm:$0xff]  ;;  %v13781_v19 = vld [vmem:[#allocation231_spill] sm:$0xff] }
 0x2ba   :  { %v856_v23 = vmul.f32 %v7308_v20, %v9187_v54  ;;  %v7310_v25 = vpop.eup %7309  ;;  %v13749_v54 = vld [vmem:[#allocation199_spill] sm:$0xff]  ;;  %v13782_v20 = vld [vmem:[#allocation232_spill] sm:$0xff] }
 0x2bc   :  { %v9330_v24 = vadd.f32 %v857_v22, %v856_v23  ;;  %v13784_v22 = vld [vmem:[#allocation234_spill] sm:$0xff]  ;;  %v13785_v23 = vld [vmem:[#allocation235_spill] sm:$0xff] }
 0x2be   :  { %7311 = vtanh.f32 %v9330_v24 }
 0x2cb   :  { %v7312_v26 = vpop.eup %7311 }
 0x2cc   :  { %v860_v27 = vmul.f32 %v7312_v26, %v7310_v25  ;;  %v13786_v25 = vld [vmem:[#allocation236_spill] sm:$0xff]  ;;  %v13787_v26 = vld [vmem:[#allocation237_spill] sm:$0xff] }
 0x2ce   :  { %932 = vmatmul.mubr.f32.vlgmr.msra.gmra.mxu0 %v860_v27  ;;  %1003 = vmatmul.mubr.f32.vlgmr.msra.gmra.mxu1 %v860_v27  ;;  %v13788_v27 = vld [vmem:[#allocation245_spill] sm:$0xff] }
 0x2cf   :  { %1010 = vmatpush1.msra.mxu0 %v13663_v37  ;;  %1081 = vmatpush1.msra.mxu1 %v13664_v44  ;;  %v13755_v37 = vld [vmem:[#allocation205_spill] sm:$0xff]  ;;  %v13756_v44 = vld [vmem:[#allocation206_spill] sm:$0xff] }
 0x2d0   :  { %1011 = vmatprep.subr.mxu0 %v13665_v50  ;;  %1082 = vmatprep.subr.mxu1 %v13666_v38  ;;  %v13757_v50 = vld [vmem:[#allocation207_spill] sm:$0xff]  ;;  %v13758_v38 = vld [vmem:[#allocation208_spill] sm:$0xff] }
 0x2d1   :  { %1012 = vmatpush1.msra.mxu0 %v13748_v28  ;;  %1083 = vmatpush1.msra.mxu1 %v13749_v54  ;;  %v9499_v28 = vld [vmem:[%s13004_s4 + $0x168] sm:$0xff]  ;;  %v9505_v54 = vld [vmem:[%s13004_s4 + $0x178] sm:$0xff] }
 0x2d2   :  { %1013 = vmatprep.subr.mxu0 %v13750_v29  ;;  %1084 = vmatprep.subr.mxu1 %v13751_v30  ;;  %v9511_v29 = vld [vmem:[%s13004_s4 + $0x160] sm:$0xff]  ;;  %v9517_v30 = vld [vmem:[%s13004_s4 + $0x170] sm:$0xff] }
 0x2d3   :  { %1014 = vmatpush1.msra.mxu0 %v13752_v31  ;;  %1085 = vmatpush1.msra.mxu1 %v13753_v32  ;;  %v9523_v31 = vld [vmem:[%s13004_s4 + $0x148] sm:$0xff]  ;;  %v9529_v32 = vld [vmem:[%s13004_s4 + $0x158] sm:$0xff] }
 0x2d4   :  { %1015 = vmatprep.subr.mxu0 %v13754_v33  ;;  %1086 = vmatprep.subr.mxu1 %v13755_v37  ;;  %13789 = vst [vmem:[#allocation194_spill] sm:$0xff] %v9523_v31  ;;  %13790 = vst [vmem:[#allocation195_spill] sm:$0xff] %v9529_v32  ;;  %v9535_v33 = vld [vmem:[%s13004_s4 + $0x140] sm:$0xff]  ;;  %v9541_v37 = vld [vmem:[%s13004_s4 + $0x150] sm:$0xff] }
 0x2d5   :  { %1016 = vmatpush1.msra.mxu0 %v13756_v44  ;;  %1087 = vmatpush1.msra.mxu1 %v13757_v50  ;;  %13791 = vst [vmem:[#allocation196_spill] sm:$0xff] %v9535_v33  ;;  %13792 = vst [vmem:[#allocation197_spill] sm:$0xff] %v9541_v37  ;;  %v9547_v44 = vld [vmem:[%s13004_s4 + $0x128] sm:$0xff]  ;;  %v9553_v50 = vld [vmem:[%s13004_s4 + $0x138] sm:$0xff] }
 0x2d6   :  { %1017 = vmatprep.subr.mxu0 %v13758_v38  ;;  %1088 = vmatprep.subr.mxu1 %v13759_v34  ;;  %13793 = vst [vmem:[#allocation238_spill] sm:$0xff] %v9547_v44  ;;  %13794 = vst [vmem:[#allocation239_spill] sm:$0xff] %v9553_v50  ;;  %v9559_v38 = vld [vmem:[%s13004_s4 + $0x120] sm:$0xff]  ;;  %v9565_v34 = vld [vmem:[%s13004_s4 + $0x130] sm:$0xff] }
 0x2d7   :  { %1018 = vmatpush1.msra.mxu0 %v13760_v35  ;;  %1089 = vmatpush1.msra.mxu1 %v13761_v36  ;;  %13795 = vst [vmem:[#allocation240_spill] sm:$0xff] %v9559_v38  ;;  %13796 = vst [vmem:[#allocation241_spill] sm:$0xff] %v9565_v34  ;;  %v9571_v35 = vld [vmem:[%s13004_s4 + $0x108] sm:$0xff]  ;;  %v9577_v36 = vld [vmem:[%s13004_s4 + $0x118] sm:$0xff] }
 0x2d8   :  { %1019 = vmatprep.subr.mxu0 %v13762_v40  ;;  %1090 = vmatprep.subr.mxu1 %v13763_v1  ;;  %13797 = vst [vmem:[#allocation242_spill] sm:$0xff] %v9571_v35  ;;  %13798 = vst [vmem:[#allocation243_spill] sm:$0xff] %v9577_v36  ;;  %v9583_v40 = vld [vmem:[%s13004_s4 + $0x100] sm:$0xff]  ;;  %v9589_v1 = vld [vmem:[%s13004_s4 + $0x110] sm:$0xff] }
 0x2d9   :  { %1020 = vmatpush1.msra.mxu0 %v13764_v2  ;;  %1091 = vmatpush1.msra.mxu1 %v13765_v3  ;;  %13799 = vst [vmem:[#allocation244_spill] sm:$0xff] %v9583_v40  ;;  %13800 = vst [vmem:[#allocation246_spill] sm:$0xff] %v9589_v1  ;;  %v9595_v2 = vld [vmem:[%s13004_s4 + $0xe8] sm:$0xff]  ;;  %v9601_v3 = vld [vmem:[%s13004_s4 + $0xf8] sm:$0xff] }
 0x2da   :  { %1021 = vmatprep.subr.mxu0 %v13766_v4  ;;  %1092 = vmatprep.subr.mxu1 %v13767_v5  ;;  %13801 = vst [vmem:[#allocation247_spill] sm:$0xff] %v9595_v2  ;;  %13802 = vst [vmem:[#allocation248_spill] sm:$0xff] %v9601_v3  ;;  %v9607_v4 = vld [vmem:[%s13004_s4 + $0xe0] sm:$0xff]  ;;  %v9613_v5 = vld [vmem:[%s13004_s4 + $0xf0] sm:$0xff] }
 0x2db   :  { %1022 = vmatpush1.msra.mxu0 %v13768_v6  ;;  %1093 = vmatpush1.msra.mxu1 %v13769_v7  ;;  %13803 = vst [vmem:[#allocation164_spill] sm:$0xff] %v9607_v4  ;;  %13804 = vst [vmem:[#allocation165_spill] sm:$0xff] %v9613_v5  ;;  %v9619_v6 = vld [vmem:[%s13004_s4 + $0xc8] sm:$0xff]  ;;  %v9625_v7 = vld [vmem:[%s13004_s4 + $0xd8] sm:$0xff] }
 0x2dc   :  { %1023 = vmatprep.subr.mxu0 %v13770_v8  ;;  %1094 = vmatprep.subr.mxu1 %v13771_v9  ;;  %13805 = vst [vmem:[#allocation166_spill] sm:$0xff] %v9619_v6  ;;  %13806 = vst [vmem:[#allocation167_spill] sm:$0xff] %v9625_v7  ;;  %v9631_v8 = vld [vmem:[%s13004_s4 + $0xc0] sm:$0xff]  ;;  %v9637_v9 = vld [vmem:[%s13004_s4 + $0xd0] sm:$0xff] }
 0x2dd   :  { %1024 = vmatpush1.msra.mxu0 %v13772_v10  ;;  %1095 = vmatpush1.msra.mxu1 %v13773_v11  ;;  %13807 = vst [vmem:[#allocation168_spill] sm:$0xff] %v9631_v8  ;;  %13808 = vst [vmem:[#allocation169_spill] sm:$0xff] %v9637_v9  ;;  %v9643_v10 = vld [vmem:[%s13004_s4 + $0xa8] sm:$0xff]  ;;  %v9649_v11 = vld [vmem:[%s13004_s4 + $0xb8] sm:$0xff] }
 0x2de   :  { %1025 = vmatprep.subr.mxu0 %v13774_v12  ;;  %1096 = vmatprep.subr.mxu1 %v13775_v13  ;;  %13809 = vst [vmem:[#allocation170_spill] sm:$0xff] %v9643_v10  ;;  %13810 = vst [vmem:[#allocation171_spill] sm:$0xff] %v9649_v11  ;;  %v9655_v12 = vld [vmem:[%s13004_s4 + $0xa0] sm:$0xff]  ;;  %v9661_v13 = vld [vmem:[%s13004_s4 + $0xb0] sm:$0xff] }
 0x2df   :  { %1026 = vmatpush1.msra.mxu0 %v13776_v14  ;;  %1097 = vmatpush1.msra.mxu1 %v13777_v15  ;;  %13811 = vst [vmem:[#allocation172_spill] sm:$0xff] %v9655_v12  ;;  %13812 = vst [vmem:[#allocation173_spill] sm:$0xff] %v9661_v13  ;;  %v9667_v14 = vld [vmem:[%s13004_s4 + $0x88] sm:$0xff]  ;;  %v9673_v15 = vld [vmem:[%s13004_s4 + $0x98] sm:$0xff] }
 0x2e0   :  { %1027 = vmatprep.subr.mxu0 %v13778_v16  ;;  %1098 = vmatprep.subr.mxu1 %v13779_v17  ;;  %13813 = vst [vmem:[#allocation174_spill] sm:$0xff] %v9667_v14  ;;  %13814 = vst [vmem:[#allocation175_spill] sm:$0xff] %v9673_v15  ;;  %v9679_v16 = vld [vmem:[%s13004_s4 + $0x80] sm:$0xff]  ;;  %v9685_v17 = vld [vmem:[%s13004_s4 + $0x90] sm:$0xff] }
 0x2e1   :  { %1028 = vmatpush1.msra.mxu0 %v13780_v18  ;;  %1099 = vmatpush1.msra.mxu1 %v13781_v19  ;;  %13815 = vst [vmem:[#allocation176_spill] sm:$0xff] %v9679_v16  ;;  %13816 = vst [vmem:[#allocation177_spill] sm:$0xff] %v9685_v17  ;;  %v9691_v18 = vld [vmem:[%s13004_s4 + $0x68] sm:$0xff]  ;;  %v9697_v19 = vld [vmem:[%s13004_s4 + $0x78] sm:$0xff] }
 0x2e2   :  { %1029 = vmatprep.subr.mxu0 %v13782_v20  ;;  %1100 = vmatprep.subr.mxu1 %v13783_v21  ;;  %13817 = vst [vmem:[#allocation178_spill] sm:$0xff] %v9691_v18  ;;  %13818 = vst [vmem:[#allocation179_spill] sm:$0xff] %v9697_v19  ;;  %v9703_v20 = vld [vmem:[%s13004_s4 + $0x60] sm:$0xff]  ;;  %v9709_v21 = vld [vmem:[%s13004_s4 + $0x70] sm:$0xff] }
 0x2e3   :  { %1030 = vmatpush1.msra.mxu0 %v13784_v22  ;;  %1101 = vmatpush1.msra.mxu1 %v13785_v23  ;;  %13819 = vst [vmem:[#allocation180_spill] sm:$0xff] %v9703_v20  ;;  %13820 = vst [vmem:[#allocation181_spill] sm:$0xff] %v9709_v21  ;;  %v9715_v22 = vld [vmem:[%s13004_s4 + $0x48] sm:$0xff]  ;;  %v9721_v23 = vld [vmem:[%s13004_s4 + $0x58] sm:$0xff] }
 0x2e4   :  { %1031 = vmatprep.subr.mxu0 %v13786_v25  ;;  %1102 = vmatprep.subr.mxu1 %v13787_v26  ;;  %13821 = vst [vmem:[#allocation182_spill] sm:$0xff] %v9715_v22  ;;  %13822 = vst [vmem:[#allocation183_spill] sm:$0xff] %v9721_v23  ;;  %v9727_v25 = vld [vmem:[%s13004_s4 + $0x40] sm:$0xff]  ;;  %v9733_v26 = vld [vmem:[%s13004_s4 + $0x50] sm:$0xff] }
 0x2e5   :  { %1032 = vmatpush1.msra.mxu0 %v13707_v0  ;;  %1103 = vmatpush1.msra.mxu1 %v13708_v43  ;;  %v9481_v0 = vld [vmem:[%s13004_s4 + $0x198] sm:$0xff]  ;;  %v9487_v43 = vld [vmem:[%s13004_s4 + $0x180] sm:$0xff]  ;;  %13823 = vst [vmem:[#allocation184_spill] sm:$0xff] %v9727_v25  ;;  %13824 = vst [vmem:[#allocation185_spill] sm:$0xff] %v9733_v26 }
 0x2e6   :  { %1033 = vmatprep.subr.mxu0 %v13709_v48  ;;  %1104 = vmatprep.subr.mxu1 %v13710_v59  ;;  %v6457_v59 = vld [vmem:[%s13001_s1 + $0x10] sm:$0xff] }
 0x2e7   :  { %1034 = vmatpush1.msra.mxu0 %v13711_v39  ;;  %1105 = vmatpush1.msra.mxu1 %v13712_v55  ;;  %v9445_v39 = vld [vmem:[%s13004_s4 + $0x1d0] sm:$0xff]  ;;  %v9451_v55 = vld [vmem:[%s13004_s4 + $0x1a8] sm:$0xff] }
 0x2e8   :  { %1035 = vmatprep.subr.mxu0 %v13713_v45  ;;  %1106 = vmatprep.subr.mxu1 %v13788_v27  ;;  %v9457_v45 = vld [vmem:[%s13004_s4 + $0x1b8] sm:$0xff]  ;;  %v9493_v48 = vld [vmem:[%s13004_s4 + $0x190] sm:$0xff]  ;;  %v9739_v27 = vld [vmem:[%s13004_s4 + $0x28] sm:$0xff] }
 0x2e9   :  { %1036 = vmatpush1.msra.mxu0 %v13715_v42  ;;  %1107 = vmatpush1.msra.mxu1 %v13716_v49  ;;  %v9463_v42 = vld [vmem:[%s13004_s4 + $0x1a0] sm:$0xff]  ;;  %v9469_v49 = vld [vmem:[%s13004_s4 + $0x1b0] sm:$0xff]  ;;  %13825 = vst [vmem:[#allocation186_spill] sm:$0xff] %v9739_v27 }
 0x2ea   :  { %1037 = vmatprep.subr.mxu0 %v13717_v56  ;;  %1108 = vmatprep.subr.mxu1 %v9037_v53  ;;  %v9403_v53 = vld [vmem:[%s13004_s4 + $0x1e8] sm:$0xff] }
 0x2eb   :  { %1038 = vmatpush1.msra.mxu0 %v9042_v57  ;;  %1109 = vmatpush1.msra.mxu1 %v9049_v58  ;;  %v9409_v57 = vld [vmem:[%s13004_s4 + $0x1f8] sm:$0xff]  ;;  %v9415_v58 = vld [vmem:[%s13004_s4 + $0x1e0] sm:$0xff]  ;;  %v9475_v56 = vld [vmem:[%s13004_s4 + $0x188] sm:$0xff] }
 0x2ec   :  { %1039 = vmatprep.subr.mxu0 %v9054_v63  ;;  %1110 = vmatprep.subr.mxu1 %v9061_v61  ;;  %v9427_v61 = vld [vmem:[%s13004_s4 + $0x1c8] sm:$0xff]  ;;  %v9439_v63 = vld [vmem:[%s13004_s4 + $0x1c0] sm:$0xff] }
 0x2ed   :  { %1040 = vmatpush1.msra.mxu0 %v9066_v62  ;;  %1073 = vmatprep.mubr.f32.mxu0 %v9184_v52  ;;  %v9433_v62 = vld [vmem:[%s13004_s4 + $0x1d8] sm:$0xff] }
 0x2ee   :  { %1111 = vmatpush1.msra.mxu1 %v9073_v60  ;;  %1144 = vmatprep.mubr.f32.mxu1 %v9184_v52  ;;  %v9421_v60 = vld [vmem:[%s13004_s4 + $0x1f0] sm:$0xff] }
 0x2ef   :  { %1074 = vmatmul.mubr.f32.vlgmr.msra.gmra.mxu0 %v6457_v59  ;;  %1145 = vmatmul.mubr.f32.vlgmr.msra.gmra.mxu1 %v6457_v59  ;;  %v9745_v59 = vld [vmem:[%s13004_s4 + $0x38] sm:$0xff] }
 0x2f0   :  { %1185 = vmatprep.subr.mxu0 %v9403_v53  ;;  %1256 = vmatprep.subr.mxu1 %v9409_v57  ;;  %13826 = vst [vmem:[#allocation187_spill] sm:$0xff] %v9745_v59 }
 0x2f1   :  { %1186 = vmatpush1.msra.mxu0 %v9415_v58  ;;  %1257 = vmatpush1.msra.mxu1 %v9421_v60 }
 0x2f2   :  { %1187 = vmatprep.subr.mxu0 %v9427_v61  ;;  %1258 = vmatprep.subr.mxu1 %v9433_v62 }
 0x2f3   :  { %1188 = vmatpush1.msra.mxu0 %v9439_v63  ;;  %1259 = vmatpush1.msra.mxu1 %v9445_v39 }
 0x2f4   :  { %1189 = vmatprep.subr.mxu0 %v9451_v55  ;;  %1260 = vmatprep.subr.mxu1 %v9457_v45 }
 0x2f5   :  { %1190 = vmatpush1.msra.mxu0 %v9463_v42  ;;  %1261 = vmatpush1.msra.mxu1 %v9469_v49 }
 0x2f6   :  { %1191 = vmatprep.subr.mxu0 %v9475_v56  ;;  %1262 = vmatprep.subr.mxu1 %v9481_v0 }
 0x2f7   :  { %1192 = vmatpush1.msra.mxu0 %v9487_v43  ;;  %1263 = vmatpush1.msra.mxu1 %v9493_v48 }
 0x2f8   :  { %1193 = vmatprep.subr.mxu0 %v9499_v28  ;;  %1264 = vmatprep.subr.mxu1 %v9505_v54 }
 0x2f9   :  { %1194 = vmatpush1.msra.mxu0 %v9511_v29  ;;  %1265 = vmatpush1.msra.mxu1 %v9517_v30 }
 0x2fa   :  { %1195 = vmatprep.subr.mxu0 %v9523_v31  ;;  %1266 = vmatprep.subr.mxu1 %v9529_v32 }
 0x2fb   :  { %1196 = vmatpush1.msra.mxu0 %v9535_v33  ;;  %1267 = vmatpush1.msra.mxu1 %v9541_v37 }
 0x2fc   :  { %1197 = vmatprep.subr.mxu0 %v9547_v44  ;;  %1268 = vmatprep.subr.mxu1 %v9553_v50 }
 0x2fd   :  { %1198 = vmatpush1.msra.mxu0 %v9559_v38  ;;  %1269 = vmatpush1.msra.mxu1 %v9565_v34 }
 0x2fe   :  { %1199 = vmatprep.subr.mxu0 %v9571_v35  ;;  %1270 = vmatprep.subr.mxu1 %v9577_v36 }
 0x2ff   :  { %1200 = vmatpush1.msra.mxu0 %v9583_v40  ;;  %1271 = vmatpush1.msra.mxu1 %v9589_v1 }
 0x300   :  { %1201 = vmatprep.subr.mxu0 %v9595_v2  ;;  %1272 = vmatprep.subr.mxu1 %v9601_v3 }
 0x301   :  { %1202 = vmatpush1.msra.mxu0 %v9607_v4  ;;  %1273 = vmatpush1.msra.mxu1 %v9613_v5 }
 0x302   :  { %1203 = vmatprep.subr.mxu0 %v9619_v6  ;;  %1274 = vmatprep.subr.mxu1 %v9625_v7 }
 0x303   :  { %1204 = vmatpush1.msra.mxu0 %v9631_v8  ;;  %1275 = vmatpush1.msra.mxu1 %v9637_v9 }
 0x304   :  { %1205 = vmatprep.subr.mxu0 %v9643_v10  ;;  %1276 = vmatprep.subr.mxu1 %v9649_v11 }
 0x305   :  { %1206 = vmatpush1.msra.mxu0 %v9655_v12  ;;  %1277 = vmatpush1.msra.mxu1 %v9661_v13 }
 0x306   :  { %1207 = vmatprep.subr.mxu0 %v9667_v14  ;;  %1278 = vmatprep.subr.mxu1 %v9673_v15 }
 0x307   :  { %1208 = vmatpush1.msra.mxu0 %v9679_v16  ;;  %1279 = vmatpush1.msra.mxu1 %v9685_v17 }
 0x308   :  { %1209 = vmatprep.subr.mxu0 %v9691_v18  ;;  %1280 = vmatprep.subr.mxu1 %v9697_v19 }
 0x309   :  { %1210 = vmatpush1.msra.mxu0 %v9703_v20  ;;  %1281 = vmatpush1.msra.mxu1 %v9709_v21 }
 0x30a   :  { %1211 = vmatprep.subr.mxu0 %v9715_v22  ;;  %1282 = vmatprep.subr.mxu1 %v9721_v23 }
 0x30b   :  { %1212 = vmatpush1.msra.mxu0 %v9727_v25  ;;  %1283 = vmatpush1.msra.mxu1 %v9733_v26  ;;  %v9751_v25 = vld [vmem:[%s13004_s4 + $0x20] sm:$0xff]  ;;  %v9757_v26 = vld [vmem:[%s13004_s4 + $0x30] sm:$0xff] }
 0x30c   :  { %1213 = vmatprep.subr.mxu0 %v9739_v27  ;;  %1284 = vmatprep.subr.mxu1 %v9745_v59  ;;  %13827 = vst [vmem:[#allocation188_spill] sm:$0xff] %v9751_v25  ;;  %13828 = vst [vmem:[#allocation189_spill] sm:$0xff] %v9757_v26  ;;  %v9763_v27 = vld [vmem:[%s13004_s4 + $0x8] sm:$0xff]  ;;  %v9769_v59 = vld [vmem:[%s13004_s4 + $0x18] sm:$0xff] }
 0x30d   :  { %1214 = vmatpush1.msra.mxu0 %v9751_v25  ;;  %1285 = vmatpush1.msra.mxu1 %v9757_v26  ;;  %13829 = vst [vmem:[#allocation190_spill] sm:$0xff] %v9763_v27  ;;  %13830 = vst [vmem:[#allocation191_spill] sm:$0xff] %v9769_v59  ;;  %v9775_v25 = vld [vmem:[%s13004_s4] sm:$0xff]  ;;  %v9781_v26 = vld [vmem:[%s13004_s4 + $0x10] sm:$0xff] }
 0x30e   :  { %1215 = vmatprep.subr.mxu0 %v9763_v27  ;;  %1286 = vmatprep.subr.mxu1 %v9769_v59  ;;  %13831 = vst [vmem:[#allocation192_spill] sm:$0xff] %v9775_v25  ;;  %13832 = vst [vmem:[#allocation193_spill] sm:$0xff] %v9781_v26  ;;  %v9789_v59 = vld [vmem:[%s13003_s3 + $0x1e8] sm:$0xff] }
 0x30f   :  { %1216 = vmatpush1.msra.mxu0 %v9775_v25  ;;  %1287 = vmatpush1.msra.mxu1 %v9781_v26  ;;  %13833 = vst [vmem:[#allocation198_spill] sm:$0xff] %v9789_v59  ;;  %v9795_v25 = vld [vmem:[%s13003_s3 + $0x1f8] sm:$0xff] }
 0x310   :  { %1249 = vmatprep.mubr.f32.mxu0 %v9184_v52  ;;  %1320 = vmatprep.mubr.f32.mxu1 %v9184_v52  ;;  %13834 = vst [vmem:[#allocation199_spill] sm:$0xff] %v9795_v25 }
 0x311   :  { %1327 = vmatprep.subr.mxu0 %v9789_v59  ;;  %1398 = vmatprep.subr.mxu1 %v9795_v25 }
 0x38e   :  { %v933_v27 = vpop.f32.mrf.mxu0  ;;  %v1004_v26 = vpop.f32.mrf.mxu1 }
 0x390   :  { %v935_v23 = vpop.f32.mrf.mxu0  ;;  %v1006_v21 = vpop.f32.mrf.mxu1 }
 0x3af   :  { %v1075_v22 = vpop.f32.mrf.mxu0  ;;  %v1146_v17 = vpop.f32.mrf.mxu1 }
 0x3b0   :  { %v1076_v20 = vadd.f32 %v1075_v22, %v933_v27  ;;  %v1147_v11 = vadd.f32 %v1146_v17, %v1004_v26  ;;  %v9839_v26 = vld [vmem:[%s13003_s3 + $0x1d0] sm:$0xff] }
 0x3b1   :  { %v1077_v19 = vpop.f32.mrf.mxu0  ;;  %v1148_v13 = vpop.f32.mrf.mxu1 }
 0x3b2   :  { %v1151_v18 = vadd.f32 %v1076_v20, %v9164_v47  ;;  %v1078_v16 = vadd.f32 %v1077_v19, %v935_v23  ;;  %v1149_v12 = vadd.f32 %v1148_v13, %v1006_v21  ;;  %v1153_v22 = vadd.f32 %v1147_v11, %v9181_v41  ;;  %v9821_v21 = vld [vmem:[%s13003_s3 + $0x1c8] sm:$0xff]  ;;  %v9827_v23 = vld [vmem:[%s13003_s3 + $0x1d8] sm:$0xff] }
 0x3b4   :  { %v6458_v15 = vmul.f32 -1.442695, %v1151_v18  ;;  %v1152_v59 = vadd.f32 %v1078_v16, %v9168_v46  ;;  %v1154_v25 = vadd.f32 %v1149_v12, %v9175_v51 }
 0x3b6   :  { %7313 = vpow2.f32 %v6458_v15  ;;  %v6459_v14 = vmul.f32 -1.442695, %v1152_v59  ;;  %v6460_v10 = vmul.f32 -1.442695, %v1154_v25  ;;  %v9833_v25 = vld [vmem:[%s13003_s3 + $0x1c0] sm:$0xff]  ;;  %v9845_v59 = vld [vmem:[%s13003_s3 + $0x1a8] sm:$0xff] }
 0x3b8   :  { %7315 = vpow2.f32 %v6459_v14 }
 0x3b9   :  { %7317 = vpow2.f32 %v6460_v10 }
 0x3c3   :  { %v7314_v9 = vpop.eup %7313 }
 0x3c4   :  { %v1158_v27 = vadd.f32 1.0, %v7314_v9 }
 0x3c5   :  { %v7316_v8 = vpop.eup %7315 }
 0x3c6   :  { %7319 = vrcp.f32 %v1158_v27  ;;  %v1164_v19 = vadd.f32 1.0, %v7316_v8  ;;  %v7318_v16 = vpop.eup %7317  ;;  %v9809_v8 = vld [vmem:[%s13003_s3 + $0x1e0] sm:$0xff] }
 0x3c7   :  { %7321 = vtanh.f32 %v1153_v22  ;;  %v1171_v14 = vadd.f32 1.0, %v7318_v16  ;;  %v9851_v22 = vld [vmem:[%s13003_s3 + $0x1b8] sm:$0xff]  ;;  %v9857_v27 = vld [vmem:[%s13003_s3 + $0x1a0] sm:$0xff]  ;;  %v9869_v16 = vld [vmem:[%s13003_s3 + $0x188] sm:$0xff] }
 0x3c8   :  { %7323 = vrcp.f32 %v1164_v19  ;;  %v9863_v19 = vld [vmem:[%s13003_s3 + $0x1b0] sm:$0xff] }
 0x3c9   :  { %7325 = vrcp.f32 %v1171_v14  ;;  %v9893_v14 = vld [vmem:[%s13003_s3 + $0x168] sm:$0xff] }
 0x3d3   :  { %v7320_v15 = vpop.eup %7319 }
 0x3d4   :  { %v7322_v18 = vpop.eup %7321 }
 0x3d5   :  { %v7324_v20 = vpop.eup %7323  ;;  %v1175_v13 = vmul.f32 %v7322_v18, %v7320_v15  ;;  %v9875_v15 = vld [vmem:[%s13003_s3 + $0x198] sm:$0xff]  ;;  %v9881_v18 = vld [vmem:[%s13003_s3 + $0x180] sm:$0xff] }
 0x3d6   :  { %v1174_v12 = vmul.f32 %v7324_v20, %v9330_v24  ;;  %v7326_v9 = vpop.eup %7325  ;;  %v9815_v24 = vld [vmem:[%s13003_s3 + $0x1f0] sm:$0xff] }
 0x3d7   :  { %v9887_v20 = vld [vmem:[%s13003_s3 + $0x190] sm:$0xff] }
 0x3d8   :  { %v9803_v17 = vadd.f32 %v1175_v13, %v1174_v12  ;;  %v9899_v13 = vld [vmem:[%s13003_s3 + $0x178] sm:$0xff]  ;;  %v9905_v12 = vld [vmem:[%s13003_s3 + $0x160] sm:$0xff] }
 0x3d9   :  { %13835 = vst [vmem:[#allocation200_spill] sm:$0xff] %v9905_v12 }
 0x3da   :  { %7327 = vtanh.f32 %v9803_v17 }
 0x3e7   :  { %v7328_v11 = vpop.eup %7327 }
 0x3e8   :  { %v1178_v10 = vmul.f32 %v7328_v11, %v7326_v9  ;;  %v9911_v9 = vld [vmem:[%s13003_s3 + $0x170] sm:$0xff]  ;;  %v9917_v11 = vld [vmem:[%s13003_s3 + $0x148] sm:$0xff] }
 0x3e9   :  { %13836 = vst [vmem:[#allocation201_spill] sm:$0xff] %v9911_v9  ;;  %13837 = vst [vmem:[#allocation202_spill] sm:$0xff] %v9917_v11 }
 0x3ea   :  { %1250 = vmatmul.mubr.f32.vlgmr.msra.gmra.mxu0 %v1178_v10  ;;  %1321 = vmatmul.mubr.f32.vlgmr.msra.gmra.mxu1 %v1178_v10  ;;  %v9923_v10 = vld [vmem:[%s13003_s3 + $0x158] sm:$0xff] }
 0x3eb   :  { %1328 = vmatpush1.msra.mxu0 %v9809_v8  ;;  %1399 = vmatpush1.msra.mxu1 %v9815_v24  ;;  %13838 = vst [vmem:[#allocation203_spill] sm:$0xff] %v9923_v10 }
 0x3ec   :  { %1329 = vmatprep.subr.mxu0 %v9821_v21  ;;  %1400 = vmatprep.subr.mxu1 %v9827_v23 }
 0x3ed   :  { %1330 = vmatpush1.msra.mxu0 %v9833_v25  ;;  %1401 = vmatpush1.msra.mxu1 %v9839_v26 }
 0x3ee   :  { %1331 = vmatprep.subr.mxu0 %v9845_v59  ;;  %1402 = vmatprep.subr.mxu1 %v9851_v22 }
 0x3ef   :  { %1332 = vmatpush1.msra.mxu0 %v9857_v27  ;;  %1403 = vmatpush1.msra.mxu1 %v9863_v19 }
 0x3f0   :  { %1333 = vmatprep.subr.mxu0 %v9869_v16  ;;  %1404 = vmatprep.subr.mxu1 %v9875_v15 }
 0x3f1   :  { %1334 = vmatpush1.msra.mxu0 %v9881_v18  ;;  %1405 = vmatpush1.msra.mxu1 %v9887_v20 }
 0x3f2   :  { %1335 = vmatprep.subr.mxu0 %v9893_v14  ;;  %1406 = vmatprep.subr.mxu1 %v9899_v13 }
 0x3f3   :  { %1336 = vmatpush1.msra.mxu0 %v9905_v12  ;;  %1407 = vmatpush1.msra.mxu1 %v9911_v9  ;;  %v9929_v12 = vld [vmem:[%s13003_s3 + $0x140] sm:$0xff]  ;;  %v9935_v9 = vld [vmem:[%s13003_s3 + $0x150] sm:$0xff] }
 0x3f4   :  { %1337 = vmatprep.subr.mxu0 %v9917_v11  ;;  %1408 = vmatprep.subr.mxu1 %v9923_v10  ;;  %13839 = vst [vmem:[#allocation204_spill] sm:$0xff] %v9929_v12  ;;  %13840 = vst [vmem:[#allocation205_spill] sm:$0xff] %v9935_v9  ;;  %v9941_v11 = vld [vmem:[%s13003_s3 + $0x128] sm:$0xff]  ;;  %v9947_v10 = vld [vmem:[%s13003_s3 + $0x138] sm:$0xff] }
 0x3f5   :  { %1338 = vmatpush1.msra.mxu0 %v9929_v12  ;;  %1409 = vmatpush1.msra.mxu1 %v9935_v9  ;;  %13841 = vst [vmem:[#allocation206_spill] sm:$0xff] %v9941_v11  ;;  %13842 = vst [vmem:[#allocation207_spill] sm:$0xff] %v9947_v10  ;;  %v9953_v12 = vld [vmem:[%s13003_s3 + $0x120] sm:$0xff]  ;;  %v9959_v9 = vld [vmem:[%s13003_s3 + $0x130] sm:$0xff] }
 0x3f6   :  { %1339 = vmatprep.subr.mxu0 %v9941_v11  ;;  %1410 = vmatprep.subr.mxu1 %v9947_v10  ;;  %13843 = vst [vmem:[#allocation208_spill] sm:$0xff] %v9953_v12  ;;  %13844 = vst [vmem:[#allocation209_spill] sm:$0xff] %v9959_v9  ;;  %v9965_v11 = vld [vmem:[%s13003_s3 + $0x108] sm:$0xff]  ;;  %v9971_v10 = vld [vmem:[%s13003_s3 + $0x118] sm:$0xff] }
 0x3f7   :  { %1340 = vmatpush1.msra.mxu0 %v9953_v12  ;;  %1411 = vmatpush1.msra.mxu1 %v9959_v9  ;;  %13845 = vst [vmem:[#allocation210_spill] sm:$0xff] %v9965_v11  ;;  %13846 = vst [vmem:[#allocation211_spill] sm:$0xff] %v9971_v10  ;;  %v9977_v12 = vld [vmem:[%s13003_s3 + $0x100] sm:$0xff]  ;;  %v9983_v9 = vld [vmem:[%s13003_s3 + $0x110] sm:$0xff] }
 0x3f8   :  { %1341 = vmatprep.subr.mxu0 %v9965_v11  ;;  %1412 = vmatprep.subr.mxu1 %v9971_v10  ;;  %13847 = vst [vmem:[#allocation212_spill] sm:$0xff] %v9977_v12  ;;  %13848 = vst [vmem:[#allocation213_spill] sm:$0xff] %v9983_v9  ;;  %v9989_v11 = vld [vmem:[%s13003_s3 + $0xe8] sm:$0xff]  ;;  %v9995_v10 = vld [vmem:[%s13003_s3 + $0xf8] sm:$0xff] }
 0x3f9   :  { %1342 = vmatpush1.msra.mxu0 %v9977_v12  ;;  %1413 = vmatpush1.msra.mxu1 %v9983_v9  ;;  %13849 = vst [vmem:[#allocation214_spill] sm:$0xff] %v9989_v11  ;;  %13850 = vst [vmem:[#allocation215_spill] sm:$0xff] %v9995_v10  ;;  %v10001_v12 = vld [vmem:[%s13003_s3 + $0xe0] sm:$0xff]  ;;  %v10007_v9 = vld [vmem:[%s13003_s3 + $0xf0] sm:$0xff] }
 0x3fa   :  { %1343 = vmatprep.subr.mxu0 %v9989_v11  ;;  %1414 = vmatprep.subr.mxu1 %v9995_v10  ;;  %13851 = vst [vmem:[#allocation216_spill] sm:$0xff] %v10001_v12  ;;  %13852 = vst [vmem:[#allocation217_spill] sm:$0xff] %v10007_v9  ;;  %v10013_v11 = vld [vmem:[%s13003_s3 + $0xc8] sm:$0xff]  ;;  %v10019_v10 = vld [vmem:[%s13003_s3 + $0xd8] sm:$0xff] }
 0x3fb   :  { %1344 = vmatpush1.msra.mxu0 %v10001_v12  ;;  %1415 = vmatpush1.msra.mxu1 %v10007_v9  ;;  %13853 = vst [vmem:[#allocation218_spill] sm:$0xff] %v10013_v11  ;;  %13854 = vst [vmem:[#allocation219_spill] sm:$0xff] %v10019_v10  ;;  %v10025_v12 = vld [vmem:[%s13003_s3 + $0xc0] sm:$0xff]  ;;  %v10031_v9 = vld [vmem:[%s13003_s3 + $0xd0] sm:$0xff] }
 0x3fc   :  { %1345 = vmatprep.subr.mxu0 %v10013_v11  ;;  %1416 = vmatprep.subr.mxu1 %v10019_v10  ;;  %13855 = vst [vmem:[#allocation220_spill] sm:$0xff] %v10025_v12  ;;  %13856 = vst [vmem:[#allocation221_spill] sm:$0xff] %v10031_v9  ;;  %v10037_v11 = vld [vmem:[%s13003_s3 + $0xa8] sm:$0xff]  ;;  %v10043_v10 = vld [vmem:[%s13003_s3 + $0xb8] sm:$0xff] }
 0x3fd   :  { %1346 = vmatpush1.msra.mxu0 %v10025_v12  ;;  %1417 = vmatpush1.msra.mxu1 %v10031_v9  ;;  %13857 = vst [vmem:[#allocation222_spill] sm:$0xff] %v10037_v11  ;;  %13858 = vst [vmem:[#allocation223_spill] sm:$0xff] %v10043_v10  ;;  %v10049_v12 = vld [vmem:[%s13003_s3 + $0xa0] sm:$0xff]  ;;  %v10055_v9 = vld [vmem:[%s13003_s3 + $0xb0] sm:$0xff] }
 0x3fe   :  { %1347 = vmatprep.subr.mxu0 %v10037_v11  ;;  %1418 = vmatprep.subr.mxu1 %v10043_v10  ;;  %13859 = vst [vmem:[#allocation224_spill] sm:$0xff] %v10049_v12  ;;  %13860 = vst [vmem:[#allocation225_spill] sm:$0xff] %v10055_v9  ;;  %v10061_v11 = vld [vmem:[%s13003_s3 + $0x88] sm:$0xff]  ;;  %v10067_v10 = vld [vmem:[%s13003_s3 + $0x98] sm:$0xff] }
 0x3ff   :  { %1348 = vmatpush1.msra.mxu0 %v10049_v12  ;;  %1419 = vmatpush1.msra.mxu1 %v10055_v9  ;;  %13861 = vst [vmem:[#allocation226_spill] sm:$0xff] %v10061_v11  ;;  %13862 = vst [vmem:[#allocation227_spill] sm:$0xff] %v10067_v10  ;;  %v10073_v12 = vld [vmem:[%s13003_s3 + $0x80] sm:$0xff]  ;;  %v10079_v9 = vld [vmem:[%s13003_s3 + $0x90] sm:$0xff] }
 0x400   :  { %1349 = vmatprep.subr.mxu0 %v10061_v11  ;;  %1420 = vmatprep.subr.mxu1 %v10067_v10  ;;  %13863 = vst [vmem:[#allocation228_spill] sm:$0xff] %v10073_v12  ;;  %13864 = vst [vmem:[#allocation229_spill] sm:$0xff] %v10079_v9  ;;  %v10085_v11 = vld [vmem:[%s13003_s3 + $0x68] sm:$0xff]  ;;  %v10091_v10 = vld [vmem:[%s13003_s3 + $0x78] sm:$0xff] }
 0x401   :  { %1350 = vmatpush1.msra.mxu0 %v10073_v12  ;;  %1421 = vmatpush1.msra.mxu1 %v10079_v9  ;;  %13865 = vst [vmem:[#allocation230_spill] sm:$0xff] %v10085_v11  ;;  %13866 = vst [vmem:[#allocation231_spill] sm:$0xff] %v10091_v10  ;;  %v10097_v12 = vld [vmem:[%s13003_s3 + $0x60] sm:$0xff]  ;;  %v10103_v9 = vld [vmem:[%s13003_s3 + $0x70] sm:$0xff] }
 0x402   :  { %1351 = vmatprep.subr.mxu0 %v10085_v11  ;;  %1422 = vmatprep.subr.mxu1 %v10091_v10  ;;  %13867 = vst [vmem:[#allocation232_spill] sm:$0xff] %v10097_v12  ;;  %13868 = vst [vmem:[#allocation233_spill] sm:$0xff] %v10103_v9  ;;  %v10109_v11 = vld [vmem:[%s13003_s3 + $0x48] sm:$0xff]  ;;  %v10115_v10 = vld [vmem:[%s13003_s3 + $0x58] sm:$0xff] }
 0x403   :  { %1352 = vmatpush1.msra.mxu0 %v10097_v12  ;;  %1423 = vmatpush1.msra.mxu1 %v10103_v9  ;;  %13869 = vst [vmem:[#allocation234_spill] sm:$0xff] %v10109_v11  ;;  %13870 = vst [vmem:[#allocation235_spill] sm:$0xff] %v10115_v10  ;;  %v10121_v12 = vld [vmem:[%s13003_s3 + $0x40] sm:$0xff]  ;;  %v10127_v9 = vld [vmem:[%s13003_s3 + $0x50] sm:$0xff] }
 0x404   :  { %1353 = vmatprep.subr.mxu0 %v10109_v11  ;;  %1424 = vmatprep.subr.mxu1 %v10115_v10  ;;  %13871 = vst [vmem:[#allocation236_spill] sm:$0xff] %v10121_v12  ;;  %13872 = vst [vmem:[#allocation237_spill] sm:$0xff] %v10127_v9  ;;  %v10133_v11 = vld [vmem:[%s13003_s3 + $0x28] sm:$0xff]  ;;  %v10139_v10 = vld [vmem:[%s13003_s3 + $0x38] sm:$0xff] }
 0x405   :  { %1354 = vmatpush1.msra.mxu0 %v10121_v12  ;;  %1425 = vmatpush1.msra.mxu1 %v10127_v9  ;;  %13873 = vst [vmem:[#allocation245_spill] sm:$0xff] %v10133_v11  ;;  %13874 = vst [vmem:[#allocation251_spill] sm:$0xff] %v10139_v10  ;;  %v10145_v12 = vld [vmem:[%s13003_s3 + $0x20] sm:$0xff]  ;;  %v10151_v9 = vld [vmem:[%s13003_s3 + $0x30] sm:$0xff] }
 0x406   :  { %1355 = vmatprep.subr.mxu0 %v10133_v11  ;;  %1426 = vmatprep.subr.mxu1 %v10139_v10  ;;  %13875 = vst [vmem:[#allocation252_spill] sm:$0xff] %v10145_v12  ;;  %13876 = vst [vmem:[#allocation253_spill] sm:$0xff] %v10151_v9  ;;  %v10157_v11 = vld [vmem:[%s13003_s3 + $0x8] sm:$0xff]  ;;  %v10163_v10 = vld [vmem:[%s13003_s3 + $0x18] sm:$0xff] }
 0x407   :  { %1356 = vmatpush1.msra.mxu0 %v10145_v12  ;;  %1427 = vmatpush1.msra.mxu1 %v10151_v9  ;;  %13877 = vst [vmem:[#allocation254_spill] sm:$0xff] %v10157_v11  ;;  %v6461_v12 = vld [vmem:[%s13001_s1 + $0x18] sm:$0xff]  ;;  %v10172_v9 = vld [vmem:[%s13003_s3] sm:$0xff] }
 0x408   :  { %1357 = vmatprep.subr.mxu0 %v10157_v11  ;;  %1428 = vmatprep.subr.mxu1 %v10163_v10  ;;  %v10179_v11 = vld [vmem:[%s13003_s3 + $0x10] sm:$0xff] }
 0x409   :  { %1358 = vmatpush1.msra.mxu0 %v10172_v9  ;;  %1391 = vmatprep.mubr.f32.mxu0 %v9184_v52 }
 0x40a   :  { %1429 = vmatpush1.msra.mxu1 %v10179_v11  ;;  %1462 = vmatprep.mubr.f32.mxu1 %v9184_v52 }
 0x40b   :  { %1392 = vmatmul.mubr.f32.vlgmr.msra.gmra.mxu0 %v6461_v12  ;;  %1463 = vmatmul.mubr.f32.vlgmr.msra.gmra.mxu1 %v6461_v12  ;;  %v13878_v12 = vld [vmem:[#allocation168_spill] sm:$0xff] }
 0x40c   :  { %1503 = vmatprep.subr.mxu0 %v9403_v53  ;;  %1574 = vmatprep.subr.mxu1 %v9409_v57 }
 0x40d   :  { %1504 = vmatpush1.msra.mxu0 %v9415_v58  ;;  %1575 = vmatpush1.msra.mxu1 %v9421_v60 }
 0x40e   :  { %1505 = vmatprep.subr.mxu0 %v9427_v61  ;;  %1576 = vmatprep.subr.mxu1 %v9433_v62 }
 0x40f   :  { %1506 = vmatpush1.msra.mxu0 %v9439_v63  ;;  %1577 = vmatpush1.msra.mxu1 %v9445_v39 }
 0x410   :  { %1507 = vmatprep.subr.mxu0 %v9451_v55  ;;  %1578 = vmatprep.subr.mxu1 %v9457_v45 }
 0x411   :  { %1508 = vmatpush1.msra.mxu0 %v9463_v42  ;;  %1579 = vmatpush1.msra.mxu1 %v9469_v49 }
 0x412   :  { %1509 = vmatprep.subr.mxu0 %v9475_v56  ;;  %1580 = vmatprep.subr.mxu1 %v9481_v0 }
 0x413   :  { %1510 = vmatpush1.msra.mxu0 %v9487_v43  ;;  %1581 = vmatpush1.msra.mxu1 %v9493_v48 }
 0x414   :  { %1511 = vmatprep.subr.mxu0 %v9499_v28  ;;  %1582 = vmatprep.subr.mxu1 %v9505_v54 }
 0x415   :  { %1512 = vmatpush1.msra.mxu0 %v9511_v29  ;;  %1583 = vmatpush1.msra.mxu1 %v9517_v30 }
 0x416   :  { %1513 = vmatprep.subr.mxu0 %v9523_v31  ;;  %1584 = vmatprep.subr.mxu1 %v9529_v32 }
 0x417   :  { %1514 = vmatpush1.msra.mxu0 %v9535_v33  ;;  %1585 = vmatpush1.msra.mxu1 %v9541_v37 }
 0x418   :  { %1515 = vmatprep.subr.mxu0 %v9547_v44  ;;  %1586 = vmatprep.subr.mxu1 %v9553_v50 }
 0x419   :  { %1516 = vmatpush1.msra.mxu0 %v9559_v38  ;;  %1587 = vmatpush1.msra.mxu1 %v9565_v34 }
 0x41a   :  { %1517 = vmatprep.subr.mxu0 %v9571_v35  ;;  %1588 = vmatprep.subr.mxu1 %v9577_v36  ;;  %v13879_v35 = vld [vmem:[#allocation169_spill] sm:$0xff]  ;;  %v13880_v36 = vld [vmem:[#allocation170_spill] sm:$0xff] }
 0x41b   :  { %1518 = vmatpush1.msra.mxu0 %v9583_v40  ;;  %1589 = vmatpush1.msra.mxu1 %v9589_v1  ;;  %v13881_v40 = vld [vmem:[#allocation171_spill] sm:$0xff]  ;;  %v13882_v1 = vld [vmem:[#allocation172_spill] sm:$0xff] }
 0x41c   :  { %1519 = vmatprep.subr.mxu0 %v9595_v2  ;;  %1590 = vmatprep.subr.mxu1 %v9601_v3  ;;  %v13883_v2 = vld [vmem:[#allocation173_spill] sm:$0xff]  ;;  %v13884_v3 = vld [vmem:[#allocation174_spill] sm:$0xff] }
 0x41d   :  { %1520 = vmatpush1.msra.mxu0 %v9607_v4  ;;  %1591 = vmatpush1.msra.mxu1 %v9613_v5  ;;  %v13885_v4 = vld [vmem:[#allocation175_spill] sm:$0xff]  ;;  %v13886_v5 = vld [vmem:[#allocation176_spill] sm:$0xff] }
 0x41e   :  { %1521 = vmatprep.subr.mxu0 %v9619_v6  ;;  %1592 = vmatprep.subr.mxu1 %v9625_v7  ;;  %v13887_v6 = vld [vmem:[#allocation177_spill] sm:$0xff]  ;;  %v13888_v7 = vld [vmem:[#allocation178_spill] sm:$0xff] }
 0x41f   :  { %1522 = vmatpush1.msra.mxu0 %v13878_v12  ;;  %1593 = vmatpush1.msra.mxu1 %v13879_v35  ;;  %v13889_v12 = vld [vmem:[#allocation179_spill] sm:$0xff]  ;;  %v13890_v35 = vld [vmem:[#allocation180_spill] sm:$0xff] }
 0x420   :  { %1523 = vmatprep.subr.mxu0 %v13880_v36  ;;  %1594 = vmatprep.subr.mxu1 %v13881_v40  ;;  %v13891_v36 = vld [vmem:[#allocation181_spill] sm:$0xff]  ;;  %v13892_v40 = vld [vmem:[#allocation182_spill] sm:$0xff] }
 0x421   :  { %1524 = vmatpush1.msra.mxu0 %v13882_v1  ;;  %1595 = vmatpush1.msra.mxu1 %v13883_v2  ;;  %v13893_v1 = vld [vmem:[#allocation183_spill] sm:$0xff]  ;;  %v13894_v2 = vld [vmem:[#allocation184_spill] sm:$0xff] }
 0x422   :  { %1525 = vmatprep.subr.mxu0 %v13884_v3  ;;  %1596 = vmatprep.subr.mxu1 %v13885_v4  ;;  %v13895_v3 = vld [vmem:[#allocation185_spill] sm:$0xff]  ;;  %v13896_v4 = vld [vmem:[#allocation186_spill] sm:$0xff] }
 0x423   :  { %1526 = vmatpush1.msra.mxu0 %v13886_v5  ;;  %1597 = vmatpush1.msra.mxu1 %v13887_v6  ;;  %v13897_v5 = vld [vmem:[#allocation187_spill] sm:$0xff]  ;;  %v13898_v6 = vld [vmem:[#allocation188_spill] sm:$0xff] }
 0x424   :  { %1527 = vmatprep.subr.mxu0 %v13888_v7  ;;  %1598 = vmatprep.subr.mxu1 %v13889_v12  ;;  %v13899_v7 = vld [vmem:[#allocation189_spill] sm:$0xff]  ;;  %v13900_v12 = vld [vmem:[#allocation190_spill] sm:$0xff] }
 0x425   :  { %1528 = vmatpush1.msra.mxu0 %v13890_v35  ;;  %1599 = vmatpush1.msra.mxu1 %v13891_v36  ;;  %v13901_v35 = vld [vmem:[#allocation191_spill] sm:$0xff]  ;;  %v13902_v36 = vld [vmem:[#allocation192_spill] sm:$0xff] }
 0x426   :  { %1529 = vmatprep.subr.mxu0 %v13892_v40  ;;  %1600 = vmatprep.subr.mxu1 %v13893_v1  ;;  %v13903_v40 = vld [vmem:[#allocation193_spill] sm:$0xff] }
 0x427   :  { %1530 = vmatpush1.msra.mxu0 %v13894_v2  ;;  %1601 = vmatpush1.msra.mxu1 %v13895_v3  ;;  %v13904_v3 = vld [vmem:[#allocation198_spill] sm:$0xff] }
 0x428   :  { %1531 = vmatprep.subr.mxu0 %v13896_v4  ;;  %1602 = vmatprep.subr.mxu1 %v13897_v5  ;;  %v13905_v4 = vld [vmem:[#allocation199_spill] sm:$0xff] }
 0x429   :  { %1532 = vmatpush1.msra.mxu0 %v13898_v6  ;;  %1603 = vmatpush1.msra.mxu1 %v13899_v7 }
 0x42a   :  { %1533 = vmatprep.subr.mxu0 %v13900_v12  ;;  %1604 = vmatprep.subr.mxu1 %v13901_v35 }
 0x42b   :  { %1534 = vmatpush1.msra.mxu0 %v13902_v36  ;;  %1605 = vmatpush1.msra.mxu1 %v13903_v40 }
 0x42c   :  { %1567 = vmatprep.mubr.f32.mxu0 %v9184_v52  ;;  %1638 = vmatprep.mubr.f32.mxu1 %v9184_v52 }
 0x42d   :  { %1645 = vmatprep.subr.mxu0 %v13904_v3  ;;  %1716 = vmatprep.subr.mxu1 %v13905_v4 }
 0x4aa   :  { %v1251_v5 = vpop.f32.mrf.mxu0  ;;  %v1322_v6 = vpop.f32.mrf.mxu1 }
 0x4ac   :  { %v1253_v2 = vpop.f32.mrf.mxu0  ;;  %v1324_v1 = vpop.f32.mrf.mxu1 }
 0x4cb   :  { %v1393_v7 = vpop.f32.mrf.mxu0  ;;  %v1464_v36 = vpop.f32.mrf.mxu1 }
 0x4cc   :  { %v1394_v12 = vadd.f32 %v1393_v7, %v1251_v5  ;;  %v1465_v37 = vadd.f32 %v1464_v36, %v1322_v6  ;;  %v13909_v6 = vld [vmem:[#allocation203_spill] sm:$0xff] }
 0x4cd   :  { %v1395_v34 = vpop.f32.mrf.mxu0  ;;  %v1466_v44 = vpop.f32.mrf.mxu1 }
 0x4ce   :  { %v1469_v35 = vadd.f32 %v1394_v12, %v9164_v47  ;;  %v1396_v38 = vadd.f32 %v1395_v34, %v1253_v2  ;;  %v1467_v3 = vadd.f32 %v1466_v44, %v1324_v1  ;;  %v1471_v5 = vadd.f32 %v1465_v37, %v9181_v41  ;;  %v13911_v12 = vld [vmem:[#allocation205_spill] sm:$0xff] }
 0x4d0   :  { %v6462_v40 = vmul.f32 -1.442695, %v1469_v35  ;;  %v1470_v50 = vadd.f32 %v1396_v38, %v9168_v46  ;;  %v1472_v4 = vadd.f32 %v1467_v3, %v9175_v51  ;;  %v13907_v3 = vld [vmem:[#allocation201_spill] sm:$0xff] }
 0x4d2   :  { %7329 = vpow2.f32 %v6462_v40  ;;  %v6463_v52 = vmul.f32 -1.442695, %v1470_v50  ;;  %v6464_v33 = vmul.f32 -1.442695, %v1472_v4  ;;  %v13908_v4 = vld [vmem:[#allocation202_spill] sm:$0xff] }
 0x4d4   :  { %7331 = vpow2.f32 %v6463_v52  ;;  %v13912_v52 = vld [vmem:[#allocation206_spill] sm:$0xff] }
 0x4d5   :  { %7333 = vpow2.f32 %v6464_v33 }
 0x4df   :  { %v7330_v32 = vpop.eup %7329 }
 0x4e0   :  { %v1476_v7 = vadd.f32 1.0, %v7330_v32 }
 0x4e1   :  { %v7332_v31 = vpop.eup %7331 }
 0x4e2   :  { %7335 = vrcp.f32 %v1476_v7  ;;  %v1482_v34 = vadd.f32 1.0, %v7332_v31  ;;  %v7334_v38 = vpop.eup %7333  ;;  %v13906_v31 = vld [vmem:[#allocation200_spill] sm:$0xff] }
 0x4e3   :  { %7337 = vtanh.f32 %v1471_v5  ;;  %v1489_v2 = vadd.f32 1.0, %v7334_v38  ;;  %v13913_v5 = vld [vmem:[#allocation207_spill] sm:$0xff]  ;;  %v13914_v7 = vld [vmem:[#allocation208_spill] sm:$0xff]  ;;  %v13916_v38 = vld [vmem:[#allocation210_spill] sm:$0xff] }
 0x4e4   :  { %7339 = vrcp.f32 %v1482_v34  ;;  %v13915_v34 = vld [vmem:[#allocation209_spill] sm:$0xff] }
 0x4e5   :  { %7341 = vrcp.f32 %v1489_v2  ;;  %v13920_v2 = vld [vmem:[#allocation214_spill] sm:$0xff] }
 0x4ef   :  { %v7336_v35 = vpop.eup %7335 }
 0x4f0   :  { %v7338_v50 = vpop.eup %7337 }
 0x4f1   :  { %v7340_v40 = vpop.eup %7339  ;;  %v1493_v44 = vmul.f32 %v7338_v50, %v7336_v35  ;;  %v13917_v35 = vld [vmem:[#allocation211_spill] sm:$0xff]  ;;  %v13918_v50 = vld [vmem:[#allocation212_spill] sm:$0xff] }
 0x4f2   :  { %v1492_v1 = vmul.f32 %v7340_v40, %v9803_v17  ;;  %v7342_v32 = vpop.eup %7341  ;;  %v13910_v17 = vld [vmem:[#allocation204_spill] sm:$0xff]  ;;  %v13919_v40 = vld [vmem:[#allocation213_spill] sm:$0xff] }
 0x4f4   :  { %v10256_v36 = vadd.f32 %v1493_v44, %v1492_v1  ;;  %v13921_v44 = vld [vmem:[#allocation215_spill] sm:$0xff]  ;;  %v13922_v1 = vld [vmem:[#allocation216_spill] sm:$0xff] }
 0x4f6   :  { %7343 = vtanh.f32 %v10256_v36 }
 0x503   :  { %v7344_v37 = vpop.eup %7343 }
 0x504   :  { %v1496_v33 = vmul.f32 %v7344_v37, %v7342_v32  ;;  %v13923_v32 = vld [vmem:[#allocation217_spill] sm:$0xff]  ;;  %v13924_v37 = vld [vmem:[#allocation218_spill] sm:$0xff] }
 0x506   :  { %1568 = vmatmul.mubr.f32.vlgmr.msra.gmra.mxu0 %v1496_v33  ;;  %1639 = vmatmul.mubr.f32.vlgmr.msra.gmra.mxu1 %v1496_v33  ;;  %v13925_v33 = vld [vmem:[#allocation219_spill] sm:$0xff] }
 0x507   :  { %1646 = vmatpush1.msra.mxu0 %v9809_v8  ;;  %1717 = vmatpush1.msra.mxu1 %v9815_v24 }
 0x508   :  { %1647 = vmatprep.subr.mxu0 %v9821_v21  ;;  %1718 = vmatprep.subr.mxu1 %v9827_v23 }
 0x509   :  { %1648 = vmatpush1.msra.mxu0 %v9833_v25  ;;  %1719 = vmatpush1.msra.mxu1 %v9839_v26 }
 0x50a   :  { %1649 = vmatprep.subr.mxu0 %v9845_v59  ;;  %1720 = vmatprep.subr.mxu1 %v9851_v22 }
 0x50b   :  { %1650 = vmatpush1.msra.mxu0 %v9857_v27  ;;  %1721 = vmatpush1.msra.mxu1 %v9863_v19 }
 0x50c   :  { %1651 = vmatprep.subr.mxu0 %v9869_v16  ;;  %1722 = vmatprep.subr.mxu1 %v9875_v15 }
 0x50d   :  { %1652 = vmatpush1.msra.mxu0 %v9881_v18  ;;  %1723 = vmatpush1.msra.mxu1 %v9887_v20 }
 0x50e   :  { %1653 = vmatprep.subr.mxu0 %v9893_v14  ;;  %1724 = vmatprep.subr.mxu1 %v9899_v13 }
 0x50f   :  { %1654 = vmatpush1.msra.mxu0 %v13906_v31  ;;  %1725 = vmatpush1.msra.mxu1 %v13907_v3 }
 0x510   :  { %1655 = vmatprep.subr.mxu0 %v13908_v4  ;;  %1726 = vmatprep.subr.mxu1 %v13909_v6 }
 0x511   :  { %1656 = vmatpush1.msra.mxu0 %v13910_v17  ;;  %1727 = vmatpush1.msra.mxu1 %v13911_v12 }
 0x512   :  { %1657 = vmatprep.subr.mxu0 %v13912_v52  ;;  %1728 = vmatprep.subr.mxu1 %v13913_v5 }
 0x513   :  { %1658 = vmatpush1.msra.mxu0 %v13914_v7  ;;  %1729 = vmatpush1.msra.mxu1 %v13915_v34  ;;  %v13926_v34 = vld [vmem:[#allocation220_spill] sm:$0xff] }
 0x514   :  { %1659 = vmatprep.subr.mxu0 %v13916_v38  ;;  %1730 = vmatprep.subr.mxu1 %v13917_v35  ;;  %v13927_v38 = vld [vmem:[#allocation221_spill] sm:$0xff]  ;;  %v13928_v35 = vld [vmem:[#allocation222_spill] sm:$0xff] }
 0x515   :  { %1660 = vmatpush1.msra.mxu0 %v13918_v50  ;;  %1731 = vmatpush1.msra.mxu1 %v13919_v40  ;;  %v13929_v50 = vld [vmem:[#allocation223_spill] sm:$0xff]  ;;  %v13930_v40 = vld [vmem:[#allocation224_spill] sm:$0xff] }
 0x516   :  { %1661 = vmatprep.subr.mxu0 %v13920_v2  ;;  %1732 = vmatprep.subr.mxu1 %v13921_v44  ;;  %v13931_v2 = vld [vmem:[#allocation225_spill] sm:$0xff]  ;;  %v13932_v44 = vld [vmem:[#allocation226_spill] sm:$0xff] }
 0x517   :  { %1662 = vmatpush1.msra.mxu0 %v13922_v1  ;;  %1733 = vmatpush1.msra.mxu1 %v13923_v32  ;;  %v13933_v1 = vld [vmem:[#allocation227_spill] sm:$0xff]  ;;  %v13934_v32 = vld [vmem:[#allocation228_spill] sm:$0xff] }
 0x518   :  { %1663 = vmatprep.subr.mxu0 %v13924_v37  ;;  %1734 = vmatprep.subr.mxu1 %v13925_v33  ;;  %v13935_v37 = vld [vmem:[#allocation229_spill] sm:$0xff]  ;;  %v13936_v33 = vld [vmem:[#allocation230_spill] sm:$0xff] }
 0x519   :  { %1664 = vmatpush1.msra.mxu0 %v13926_v34  ;;  %1735 = vmatpush1.msra.mxu1 %v13927_v38  ;;  %v13937_v34 = vld [vmem:[#allocation231_spill] sm:$0xff]  ;;  %v13938_v38 = vld [vmem:[#allocation232_spill] sm:$0xff] }
 0x51a   :  { %1665 = vmatprep.subr.mxu0 %v13928_v35  ;;  %1736 = vmatprep.subr.mxu1 %v13929_v50  ;;  %v13939_v35 = vld [vmem:[#allocation233_spill] sm:$0xff]  ;;  %v13940_v50 = vld [vmem:[#allocation234_spill] sm:$0xff] }
 0x51b   :  { %1666 = vmatpush1.msra.mxu0 %v13930_v40  ;;  %1737 = vmatpush1.msra.mxu1 %v13931_v2  ;;  %v13941_v40 = vld [vmem:[#allocation235_spill] sm:$0xff]  ;;  %v13942_v2 = vld [vmem:[#allocation236_spill] sm:$0xff] }
 0x51c   :  { %1667 = vmatprep.subr.mxu0 %v13932_v44  ;;  %1738 = vmatprep.subr.mxu1 %v13933_v1  ;;  %v13943_v44 = vld [vmem:[#allocation237_spill] sm:$0xff] }
 0x51d   :  { %1668 = vmatpush1.msra.mxu0 %v13934_v32  ;;  %1739 = vmatpush1.msra.mxu1 %v13935_v37  ;;  %v13944_v1 = vld [vmem:[#allocation245_spill] sm:$0xff]  ;;  %v13945_v32 = vld [vmem:[#allocation251_spill] sm:$0xff]  ;;  %v13946_v37 = vld [vmem:[#allocation252_spill] sm:$0xff] }
 0x51e   :  { %1669 = vmatprep.subr.mxu0 %v13936_v33  ;;  %1740 = vmatprep.subr.mxu1 %v13937_v34  ;;  %v13947_v33 = vld [vmem:[#allocation253_spill] sm:$0xff]  ;;  %v13948_v34 = vld [vmem:[#allocation254_spill] sm:$0xff] }
 0x51f   :  { %1670 = vmatpush1.msra.mxu0 %v13938_v38  ;;  %1741 = vmatpush1.msra.mxu1 %v13939_v35 }
 0x520   :  { %1671 = vmatprep.subr.mxu0 %v13940_v50  ;;  %1742 = vmatprep.subr.mxu1 %v13941_v40  ;;  %v6465_v40 = vld [vmem:[%s13001_s1 + $0x20] sm:$0xff] }
 0x521   :  { %1672 = vmatpush1.msra.mxu0 %v13942_v2  ;;  %1743 = vmatpush1.msra.mxu1 %v13943_v44  ;;  %v10323_v2 = vld [vmem:[#allocation13] sm:$0xff] }
 0x522   :  { %1673 = vmatprep.subr.mxu0 %v13944_v1  ;;  %1744 = vmatprep.subr.mxu1 %v13945_v32 }
 0x523   :  { %1674 = vmatpush1.msra.mxu0 %v13946_v37  ;;  %1745 = vmatpush1.msra.mxu1 %v13947_v33 }
 0x524   :  { %1675 = vmatprep.subr.mxu0 %v13948_v34  ;;  %1746 = vmatprep.subr.mxu1 %v10163_v10 }
 0x525   :  { %1676 = vmatpush1.msra.mxu0 %v10172_v9  ;;  %1709 = vmatprep.mubr.f32.mxu0 %v10323_v2 }
 0x526   :  { %1747 = vmatpush1.msra.mxu1 %v10179_v11  ;;  %1780 = vmatprep.mubr.f32.mxu1 %v10323_v2 }
 0x527   :  { %1710 = vmatmul.mubr.f32.vlgmr.msra.gmra.mxu0 %v6465_v40  ;;  %1781 = vmatmul.mubr.f32.vlgmr.msra.gmra.mxu1 %v6465_v40  ;;  %v13969_v40 = vld [vmem:[#allocation170_spill] sm:$0xff] }
 0x528   :  { %1821 = vmatprep.subr.mxu0 %v9403_v53  ;;  %1892 = vmatprep.subr.mxu1 %v9409_v57  ;;  %v13949_v53 = vld [vmem:[#allocation194_spill] sm:$0xff]  ;;  %v13950_v57 = vld [vmem:[#allocation195_spill] sm:$0xff] }
 0x529   :  { %1822 = vmatpush1.msra.mxu0 %v9415_v58  ;;  %1893 = vmatpush1.msra.mxu1 %v9421_v60  ;;  %v13951_v58 = vld [vmem:[#allocation196_spill] sm:$0xff]  ;;  %v13952_v60 = vld [vmem:[#allocation197_spill] sm:$0xff] }
 0x52a   :  { %1823 = vmatprep.subr.mxu0 %v9427_v61  ;;  %1894 = vmatprep.subr.mxu1 %v9433_v62  ;;  %v13953_v61 = vld [vmem:[#allocation238_spill] sm:$0xff]  ;;  %v13954_v62 = vld [vmem:[#allocation239_spill] sm:$0xff] }
 0x52b   :  { %1824 = vmatpush1.msra.mxu0 %v9439_v63  ;;  %1895 = vmatpush1.msra.mxu1 %v9445_v39  ;;  %v13955_v63 = vld [vmem:[#allocation240_spill] sm:$0xff]  ;;  %v13956_v39 = vld [vmem:[#allocation241_spill] sm:$0xff] }
 0x52c   :  { %1825 = vmatprep.subr.mxu0 %v9451_v55  ;;  %1896 = vmatprep.subr.mxu1 %v9457_v45  ;;  %v13957_v55 = vld [vmem:[#allocation242_spill] sm:$0xff]  ;;  %v13958_v45 = vld [vmem:[#allocation243_spill] sm:$0xff] }
 0x52d   :  { %1826 = vmatpush1.msra.mxu0 %v9463_v42  ;;  %1897 = vmatpush1.msra.mxu1 %v9469_v49  ;;  %v13959_v42 = vld [vmem:[#allocation244_spill] sm:$0xff]  ;;  %v13960_v49 = vld [vmem:[#allocation246_spill] sm:$0xff] }
 0x52e   :  { %1827 = vmatprep.subr.mxu0 %v9475_v56  ;;  %1898 = vmatprep.subr.mxu1 %v9481_v0  ;;  %v13961_v56 = vld [vmem:[#allocation247_spill] sm:$0xff]  ;;  %v13962_v0 = vld [vmem:[#allocation248_spill] sm:$0xff] }
 0x52f   :  { %1828 = vmatpush1.msra.mxu0 %v9487_v43  ;;  %1899 = vmatpush1.msra.mxu1 %v9493_v48  ;;  %v13963_v43 = vld [vmem:[#allocation164_spill] sm:$0xff]  ;;  %v13964_v48 = vld [vmem:[#allocation165_spill] sm:$0xff] }
 0x530   :  { %1829 = vmatprep.subr.mxu0 %v9499_v28  ;;  %1900 = vmatprep.subr.mxu1 %v9505_v54  ;;  %v13965_v28 = vld [vmem:[#allocation166_spill] sm:$0xff]  ;;  %v13966_v54 = vld [vmem:[#allocation167_spill] sm:$0xff] }
 0x531   :  { %1830 = vmatpush1.msra.mxu0 %v9511_v29  ;;  %1901 = vmatpush1.msra.mxu1 %v9517_v30  ;;  %v13967_v29 = vld [vmem:[#allocation168_spill] sm:$0xff]  ;;  %v13968_v30 = vld [vmem:[#allocation169_spill] sm:$0xff] }
 0x532   :  { %1831 = vmatprep.subr.mxu0 %v13949_v53  ;;  %1902 = vmatprep.subr.mxu1 %v13950_v57  ;;  %v13970_v53 = vld [vmem:[#allocation171_spill] sm:$0xff]  ;;  %v13971_v57 = vld [vmem:[#allocation172_spill] sm:$0xff] }
 0x533   :  { %1832 = vmatpush1.msra.mxu0 %v13951_v58  ;;  %1903 = vmatpush1.msra.mxu1 %v13952_v60  ;;  %v13972_v58 = vld [vmem:[#allocation173_spill] sm:$0xff]  ;;  %v13973_v60 = vld [vmem:[#allocation174_spill] sm:$0xff] }
 0x534   :  { %1833 = vmatprep.subr.mxu0 %v13953_v61  ;;  %1904 = vmatprep.subr.mxu1 %v13954_v62  ;;  %v13974_v61 = vld [vmem:[#allocation175_spill] sm:$0xff]  ;;  %v13975_v62 = vld [vmem:[#allocation176_spill] sm:$0xff] }
 0x535   :  { %1834 = vmatpush1.msra.mxu0 %v13955_v63  ;;  %1905 = vmatpush1.msra.mxu1 %v13956_v39  ;;  %v13976_v63 = vld [vmem:[#allocation177_spill] sm:$0xff]  ;;  %v13977_v39 = vld [vmem:[#allocation178_spill] sm:$0xff] }
 0x536   :  { %1835 = vmatprep.subr.mxu0 %v13957_v55  ;;  %1906 = vmatprep.subr.mxu1 %v13958_v45  ;;  %v13978_v55 = vld [vmem:[#allocation179_spill] sm:$0xff]  ;;  %v13979_v45 = vld [vmem:[#allocation180_spill] sm:$0xff] }
 0x537   :  { %1836 = vmatpush1.msra.mxu0 %v13959_v42  ;;  %1907 = vmatpush1.msra.mxu1 %v13960_v49  ;;  %v13980_v42 = vld [vmem:[#allocation181_spill] sm:$0xff]  ;;  %v13981_v49 = vld [vmem:[#allocation182_spill] sm:$0xff] }
 0x538   :  { %1837 = vmatprep.subr.mxu0 %v13961_v56  ;;  %1908 = vmatprep.subr.mxu1 %v13962_v0  ;;  %v13982_v56 = vld [vmem:[#allocation183_spill] sm:$0xff]  ;;  %v13983_v0 = vld [vmem:[#allocation184_spill] sm:$0xff] }
 0x539   :  { %1838 = vmatpush1.msra.mxu0 %v13963_v43  ;;  %1909 = vmatpush1.msra.mxu1 %v13964_v48  ;;  %v13984_v43 = vld [vmem:[#allocation185_spill] sm:$0xff]  ;;  %v13985_v48 = vld [vmem:[#allocation186_spill] sm:$0xff] }
 0x53a   :  { %1839 = vmatprep.subr.mxu0 %v13965_v28  ;;  %1910 = vmatprep.subr.mxu1 %v13966_v54  ;;  %v13986_v28 = vld [vmem:[#allocation187_spill] sm:$0xff]  ;;  %v13987_v54 = vld [vmem:[#allocation188_spill] sm:$0xff] }
 0x53b   :  { %1840 = vmatpush1.msra.mxu0 %v13967_v29  ;;  %1911 = vmatpush1.msra.mxu1 %v13968_v30  ;;  %v13988_v29 = vld [vmem:[#allocation189_spill] sm:$0xff]  ;;  %v13989_v30 = vld [vmem:[#allocation190_spill] sm:$0xff] }
 0x53c   :  { %1841 = vmatprep.subr.mxu0 %v13969_v40  ;;  %1912 = vmatprep.subr.mxu1 %v13970_v53  ;;  %v13990_v40 = vld [vmem:[#allocation191_spill] sm:$0xff]  ;;  %v13991_v53 = vld [vmem:[#allocation192_spill] sm:$0xff] }
 0x53d   :  { %1842 = vmatpush1.msra.mxu0 %v13971_v57  ;;  %1913 = vmatpush1.msra.mxu1 %v13972_v58  ;;  %v13992_v57 = vld [vmem:[#allocation193_spill] sm:$0xff]  ;;  %v13993_v58 = vld [vmem:[#allocation198_spill] sm:$0xff] }
 0x53e   :  { %1843 = vmatprep.subr.mxu0 %v13973_v60  ;;  %1914 = vmatprep.subr.mxu1 %v13974_v61  ;;  %v13994_v60 = vld [vmem:[#allocation199_spill] sm:$0xff] }
 0x53f   :  { %1844 = vmatpush1.msra.mxu0 %v13975_v62  ;;  %1915 = vmatpush1.msra.mxu1 %v13976_v63 }
 0x540   :  { %1845 = vmatprep.subr.mxu0 %v13977_v39  ;;  %1916 = vmatprep.subr.mxu1 %v13978_v55 }
 0x541   :  { %1846 = vmatpush1.msra.mxu0 %v13979_v45  ;;  %1917 = vmatpush1.msra.mxu1 %v13980_v42 }
 0x542   :  { %1847 = vmatprep.subr.mxu0 %v13981_v49  ;;  %1918 = vmatprep.subr.mxu1 %v13982_v56 }
 0x543   :  { %1848 = vmatpush1.msra.mxu0 %v13983_v0  ;;  %1919 = vmatpush1.msra.mxu1 %v13984_v43 }
 0x544   :  { %1849 = vmatprep.subr.mxu0 %v13985_v48  ;;  %1920 = vmatprep.subr.mxu1 %v13986_v28 }
 0x545   :  { %1850 = vmatpush1.msra.mxu0 %v13987_v54  ;;  %1921 = vmatpush1.msra.mxu1 %v13988_v29 }
 0x546   :  { %1851 = vmatprep.subr.mxu0 %v13989_v30  ;;  %1922 = vmatprep.subr.mxu1 %v13990_v40 }
 0x547   :  { %1852 = vmatpush1.msra.mxu0 %v13991_v53  ;;  %1923 = vmatpush1.msra.mxu1 %v13992_v57 }
 0x548   :  { %1885 = vmatprep.mubr.f32.mxu0 %v10323_v2  ;;  %1956 = vmatprep.mubr.f32.mxu1 %v10323_v2 }
 0x549   :  { %1963 = vmatprep.subr.mxu0 %v13993_v58  ;;  %2034 = vmatprep.subr.mxu1 %v13994_v60 }
 0x5c6   :  { %v1569_v61 = vpop.f32.mrf.mxu0  ;;  %v1640_v62 = vpop.f32.mrf.mxu1 }
 0x5c8   :  { %v1571_v63 = vpop.f32.mrf.mxu0  ;;  %v1642_v55 = vpop.f32.mrf.mxu1 }
 0x5e7   :  { %v1711_v39 = vpop.f32.mrf.mxu0  ;;  %v1782_v56 = vpop.f32.mrf.mxu1 }
 0x5e8   :  { %v1712_v45 = vadd.f32 %v1711_v39, %v1569_v61  ;;  %v1783_v40 = vadd.f32 %v1782_v56, %v1640_v62 }
 0x5e9   :  { %v1713_v42 = vpop.f32.mrf.mxu0  ;;  %v1784_v54 = vpop.f32.mrf.mxu1 }
 0x5ea   :  { %v1787_v49 = vadd.f32 %v1712_v45, %v9164_v47  ;;  %v1714_v0 = vadd.f32 %v1713_v42, %v1571_v63  ;;  %v1785_v29 = vadd.f32 %v1784_v54, %v1642_v55  ;;  %v1789_v58 = vadd.f32 %v1783_v40, %v9181_v41  ;;  %v10546_v54 = vld [vmem:[%s13004_s4 + $0x188] sm:$0xff]  ;;  %v10564_v40 = vld [vmem:[%s13004_s4 + $0x190] sm:$0xff] }
 0x5ec   :  { %v6466_v43 = vmul.f32 -1.442695, %v1787_v49  ;;  %v1788_v48 = vadd.f32 %v1714_v0, %v9168_v46  ;;  %v1790_v30 = vadd.f32 %v1785_v29, %v9175_v51  ;;  %v10552_v29 = vld [vmem:[%s13004_s4 + $0x198] sm:$0xff] }
 0x5ee   :  { %7345 = vpow2.f32 %v6466_v43  ;;  %v6467_v28 = vmul.f32 -1.442695, %v1788_v48  ;;  %v6468_v53 = vmul.f32 -1.442695, %v1790_v30  ;;  %v10558_v30 = vld [vmem:[%s13004_s4 + $0x180] sm:$0xff] }
 0x5f0   :  { %7347 = vpow2.f32 %v6467_v28 }
 0x5f1   :  { %7349 = vpow2.f32 %v6468_v53  ;;  %v10570_v53 = vld [vmem:[%s13004_s4 + $0x168] sm:$0xff] }
 0x5fb   :  { %v7346_v57 = vpop.eup %7345 }
 0x5fc   :  { %v1794_v60 = vadd.f32 1.0, %v7346_v57  ;;  %v10576_v57 = vld [vmem:[%s13004_s4 + $0x178] sm:$0xff] }
 0x5fd   :  { %v7348_v61 = vpop.eup %7347 }
 0x5fe   :  { %7351 = vrcp.f32 %v1794_v60  ;;  %v1800_v63 = vadd.f32 1.0, %v7348_v61  ;;  %v7350_v39 = vpop.eup %7349  ;;  %v10588_v60 = vld [vmem:[%s13004_s4 + $0x170] sm:$0xff]  ;;  %v10594_v61 = vld [vmem:[%s13004_s4 + $0x148] sm:$0xff] }
 0x5ff   :  { %7353 = vtanh.f32 %v1789_v58  ;;  %v1807_v0 = vadd.f32 1.0, %v7350_v39  ;;  %v10582_v58 = vld [vmem:[%s13004_s4 + $0x160] sm:$0xff] }
 0x600   :  { %7355 = vrcp.f32 %v1800_v63  ;;  %v10600_v63 = vld [vmem:[%s13004_s4 + $0x158] sm:$0xff]  ;;  %v10606_v39 = vld [vmem:[%s13004_s4 + $0x140] sm:$0xff] }
 0x601   :  { %7357 = vrcp.f32 %v1807_v0  ;;  %v10630_v0 = vld [vmem:[%s13004_s4 + $0x120] sm:$0xff] }
 0x60b   :  { %v7352_v45 = vpop.eup %7351 }
 0x60c   :  { %v7354_v42 = vpop.eup %7353 }
 0x60d   :  { %v7356_v49 = vpop.eup %7355  ;;  %v1811_v55 = vmul.f32 %v7354_v42, %v7352_v45  ;;  %v10612_v45 = vld [vmem:[%s13004_s4 + $0x150] sm:$0xff]  ;;  %v10618_v42 = vld [vmem:[%s13004_s4 + $0x128] sm:$0xff] }
 0x60e   :  { %v1810_v43 = vmul.f32 %v7356_v49, %v10256_v36  ;;  %v7358_v56 = vpop.eup %7357  ;;  %v14011_v36 = vld [vmem:[#allocation225_spill] sm:$0xff] }
 0x60f   :  { %v10624_v49 = vld [vmem:[%s13004_s4 + $0x138] sm:$0xff] }
 0x610   :  { %v10401_v62 = vadd.f32 %v1811_v55, %v1810_v43  ;;  %v10636_v55 = vld [vmem:[%s13004_s4 + $0x130] sm:$0xff]  ;;  %v10642_v43 = vld [vmem:[%s13004_s4 + $0x108] sm:$0xff] }
 0x612   :  { %7359 = vtanh.f32 %v10401_v62 }
 0x61f   :  { %v7360_v48 = vpop.eup %7359 }
 0x620   :  { %v1814_v28 = vmul.f32 %v7360_v48, %v7358_v56  ;;  %v10648_v56 = vld [vmem:[%s13004_s4 + $0x118] sm:$0xff]  ;;  %v10654_v48 = vld [vmem:[%s13004_s4 + $0x100] sm:$0xff] }
 0x622   :  { %1886 = vmatmul.mubr.f32.vlgmr.msra.gmra.mxu0 %v1814_v28  ;;  %1957 = vmatmul.mubr.f32.vlgmr.msra.gmra.mxu1 %v1814_v28  ;;  %v10660_v28 = vld [vmem:[%s13004_s4 + $0x110] sm:$0xff] }
 0x623   :  { %1964 = vmatpush1.msra.mxu0 %v9809_v8  ;;  %2035 = vmatpush1.msra.mxu1 %v9815_v24  ;;  %v13995_v8 = vld [vmem:[#allocation209_spill] sm:$0xff]  ;;  %v13996_v24 = vld [vmem:[#allocation210_spill] sm:$0xff] }
 0x624   :  { %1965 = vmatprep.subr.mxu0 %v9821_v21  ;;  %2036 = vmatprep.subr.mxu1 %v9827_v23  ;;  %v13997_v21 = vld [vmem:[#allocation211_spill] sm:$0xff]  ;;  %v13998_v23 = vld [vmem:[#allocation212_spill] sm:$0xff] }
 0x625   :  { %1966 = vmatpush1.msra.mxu0 %v9833_v25  ;;  %2037 = vmatpush1.msra.mxu1 %v9839_v26  ;;  %v13999_v25 = vld [vmem:[#allocation213_spill] sm:$0xff]  ;;  %v14000_v26 = vld [vmem:[#allocation214_spill] sm:$0xff] }
 0x626   :  { %1967 = vmatprep.subr.mxu0 %v9845_v59  ;;  %2038 = vmatprep.subr.mxu1 %v9851_v22  ;;  %v14001_v59 = vld [vmem:[#allocation215_spill] sm:$0xff]  ;;  %v14002_v22 = vld [vmem:[#allocation216_spill] sm:$0xff] }
 0x627   :  { %1968 = vmatpush1.msra.mxu0 %v9857_v27  ;;  %2039 = vmatpush1.msra.mxu1 %v9863_v19  ;;  %v14003_v27 = vld [vmem:[#allocation217_spill] sm:$0xff]  ;;  %v14004_v19 = vld [vmem:[#allocation218_spill] sm:$0xff] }
 0x628   :  { %1969 = vmatprep.subr.mxu0 %v9869_v16  ;;  %2040 = vmatprep.subr.mxu1 %v9875_v15  ;;  %v14005_v16 = vld [vmem:[#allocation219_spill] sm:$0xff]  ;;  %v14006_v15 = vld [vmem:[#allocation220_spill] sm:$0xff] }
 0x629   :  { %1970 = vmatpush1.msra.mxu0 %v9881_v18  ;;  %2041 = vmatpush1.msra.mxu1 %v9887_v20  ;;  %v14007_v18 = vld [vmem:[#allocation221_spill] sm:$0xff]  ;;  %v14008_v20 = vld [vmem:[#allocation222_spill] sm:$0xff] }
 0x62a   :  { %1971 = vmatprep.subr.mxu0 %v9893_v14  ;;  %2042 = vmatprep.subr.mxu1 %v9899_v13  ;;  %v14009_v14 = vld [vmem:[#allocation223_spill] sm:$0xff]  ;;  %v14010_v13 = vld [vmem:[#allocation224_spill] sm:$0xff] }
 0x62b   :  { %1972 = vmatpush1.msra.mxu0 %v13906_v31  ;;  %2043 = vmatpush1.msra.mxu1 %v13907_v3  ;;  %v14012_v31 = vld [vmem:[#allocation226_spill] sm:$0xff]  ;;  %v14013_v3 = vld [vmem:[#allocation227_spill] sm:$0xff] }
 0x62c   :  { %1973 = vmatprep.subr.mxu0 %v13908_v4  ;;  %2044 = vmatprep.subr.mxu1 %v13909_v6  ;;  %v14014_v4 = vld [vmem:[#allocation228_spill] sm:$0xff]  ;;  %v14015_v6 = vld [vmem:[#allocation229_spill] sm:$0xff] }
 0x62d   :  { %1974 = vmatpush1.msra.mxu0 %v13910_v17  ;;  %2045 = vmatpush1.msra.mxu1 %v13911_v12  ;;  %v14016_v17 = vld [vmem:[#allocation230_spill] sm:$0xff]  ;;  %v14017_v12 = vld [vmem:[#allocation231_spill] sm:$0xff] }
 0x62e   :  { %1975 = vmatprep.subr.mxu0 %v13912_v52  ;;  %2046 = vmatprep.subr.mxu1 %v13913_v5  ;;  %v14018_v52 = vld [vmem:[#allocation235_spill] sm:$0xff]  ;;  %v14019_v5 = vld [vmem:[#allocation236_spill] sm:$0xff] }
 0x62f   :  { %1976 = vmatpush1.msra.mxu0 %v13914_v7  ;;  %2047 = vmatpush1.msra.mxu1 %v13995_v8  ;;  %v6469_v7 = vld [vmem:[%s13001_s1 + $0x28] sm:$0xff] }
 0x630   :  { %1977 = vmatprep.subr.mxu0 %v13996_v24  ;;  %2048 = vmatprep.subr.mxu1 %v13997_v21  ;;  %v10666_v8 = vld [vmem:[%s13004_s4 + $0xe8] sm:$0xff]  ;;  %v10672_v24 = vld [vmem:[%s13004_s4 + $0xf8] sm:$0xff]  ;;  %v10678_v21 = vld [vmem:[%s13004_s4 + $0xe0] sm:$0xff] }
 0x631   :  { %1978 = vmatpush1.msra.mxu0 %v13998_v23  ;;  %2049 = vmatpush1.msra.mxu1 %v13999_v25  ;;  %v10684_v23 = vld [vmem:[%s13004_s4 + $0xf0] sm:$0xff]  ;;  %v10690_v25 = vld [vmem:[%s13004_s4 + $0xc8] sm:$0xff] }
 0x632   :  { %1979 = vmatprep.subr.mxu0 %v14000_v26  ;;  %2050 = vmatprep.subr.mxu1 %v14001_v59  ;;  %v10696_v26 = vld [vmem:[%s13004_s4 + $0xd8] sm:$0xff]  ;;  %v10702_v59 = vld [vmem:[%s13004_s4 + $0xc0] sm:$0xff] }
 0x633   :  { %1980 = vmatpush1.msra.mxu0 %v14002_v22  ;;  %2051 = vmatpush1.msra.mxu1 %v14003_v27  ;;  %14020 = vst [vmem:[#allocation200_spill] sm:$0xff] %v10702_v59  ;;  %v10708_v22 = vld [vmem:[%s13004_s4 + $0xd0] sm:$0xff]  ;;  %v10714_v27 = vld [vmem:[%s13004_s4 + $0xa8] sm:$0xff] }
 0x634   :  { %1981 = vmatprep.subr.mxu0 %v14004_v19  ;;  %2052 = vmatprep.subr.mxu1 %v14005_v16  ;;  %14021 = vst [vmem:[#allocation201_spill] sm:$0xff] %v10708_v22  ;;  %14022 = vst [vmem:[#allocation202_spill] sm:$0xff] %v10714_v27  ;;  %v10720_v19 = vld [vmem:[%s13004_s4 + $0xb8] sm:$0xff]  ;;  %v10726_v16 = vld [vmem:[%s13004_s4 + $0xa0] sm:$0xff] }
 0x635   :  { %1982 = vmatpush1.msra.mxu0 %v14006_v15  ;;  %2053 = vmatpush1.msra.mxu1 %v14007_v18  ;;  %14023 = vst [vmem:[#allocation203_spill] sm:$0xff] %v10720_v19  ;;  %14024 = vst [vmem:[#allocation204_spill] sm:$0xff] %v10726_v16  ;;  %v10732_v15 = vld [vmem:[%s13004_s4 + $0xb0] sm:$0xff]  ;;  %v10738_v18 = vld [vmem:[%s13004_s4 + $0x88] sm:$0xff] }
 0x636   :  { %1983 = vmatprep.subr.mxu0 %v14008_v20  ;;  %2054 = vmatprep.subr.mxu1 %v14009_v14  ;;  %14025 = vst [vmem:[#allocation205_spill] sm:$0xff] %v10732_v15  ;;  %14026 = vst [vmem:[#allocation206_spill] sm:$0xff] %v10738_v18  ;;  %v10744_v20 = vld [vmem:[%s13004_s4 + $0x98] sm:$0xff]  ;;  %v10750_v14 = vld [vmem:[%s13004_s4 + $0x80] sm:$0xff] }
 0x637   :  { %1984 = vmatpush1.msra.mxu0 %v14010_v13  ;;  %2055 = vmatpush1.msra.mxu1 %v14011_v36  ;;  %14027 = vst [vmem:[#allocation207_spill] sm:$0xff] %v10744_v20  ;;  %14028 = vst [vmem:[#allocation208_spill] sm:$0xff] %v10750_v14  ;;  %v10756_v13 = vld [vmem:[%s13004_s4 + $0x90] sm:$0xff]  ;;  %v10762_v36 = vld [vmem:[%s13004_s4 + $0x68] sm:$0xff] }
 0x638   :  { %1985 = vmatprep.subr.mxu0 %v14012_v31  ;;  %2056 = vmatprep.subr.mxu1 %v14013_v3  ;;  %14029 = vst [vmem:[#allocation232_spill] sm:$0xff] %v10756_v13  ;;  %14030 = vst [vmem:[#allocation233_spill] sm:$0xff] %v10762_v36  ;;  %v10768_v31 = vld [vmem:[%s13004_s4 + $0x78] sm:$0xff]  ;;  %v10774_v3 = vld [vmem:[%s13004_s4 + $0x60] sm:$0xff] }
 0x639   :  { %1986 = vmatpush1.msra.mxu0 %v14014_v4  ;;  %2057 = vmatpush1.msra.mxu1 %v14015_v6  ;;  %14031 = vst [vmem:[#allocation234_spill] sm:$0xff] %v10768_v31  ;;  %14032 = vst [vmem:[#allocation237_spill] sm:$0xff] %v10774_v3  ;;  %v10780_v4 = vld [vmem:[%s13004_s4 + $0x70] sm:$0xff]  ;;  %v10786_v6 = vld [vmem:[%s13004_s4 + $0x48] sm:$0xff] }
 0x63a   :  { %1987 = vmatprep.subr.mxu0 %v14016_v17  ;;  %2058 = vmatprep.subr.mxu1 %v14017_v12  ;;  %14033 = vst [vmem:[#allocation245_spill] sm:$0xff] %v10780_v4  ;;  %14034 = vst [vmem:[#allocation251_spill] sm:$0xff] %v10786_v6  ;;  %v10792_v17 = vld [vmem:[%s13004_s4 + $0x58] sm:$0xff]  ;;  %v10798_v12 = vld [vmem:[%s13004_s4 + $0x40] sm:$0xff] }
 0x63b   :  { %1988 = vmatpush1.msra.mxu0 %v13938_v38  ;;  %2059 = vmatpush1.msra.mxu1 %v13939_v35  ;;  %v10498_v38 = vld [vmem:[%s13004_s4 + $0x1c8] sm:$0xff]  ;;  %v10504_v35 = vld [vmem:[%s13004_s4 + $0x1d8] sm:$0xff]  ;;  %14035 = vst [vmem:[#allocation252_spill] sm:$0xff] %v10792_v17  ;;  %14036 = vst [vmem:[#allocation253_spill] sm:$0xff] %v10798_v12 }
 0x63c   :  { %1989 = vmatprep.subr.mxu0 %v13940_v50  ;;  %2060 = vmatprep.subr.mxu1 %v14018_v52  ;;  %v10510_v50 = vld [vmem:[%s13004_s4 + $0x1c0] sm:$0xff]  ;;  %v10804_v52 = vld [vmem:[%s13004_s4 + $0x50] sm:$0xff] }
 0x63d   :  { %1990 = vmatpush1.msra.mxu0 %v14019_v5  ;;  %2061 = vmatpush1.msra.mxu1 %v13943_v44  ;;  %v10516_v44 = vld [vmem:[%s13004_s4 + $0x1d0] sm:$0xff]  ;;  %14037 = vst [vmem:[#allocation254_spill] sm:$0xff] %v10804_v52  ;;  %v10810_v5 = vld [vmem:[%s13004_s4 + $0x28] sm:$0xff] }
 0x63e   :  { %1991 = vmatprep.subr.mxu0 %v13944_v1  ;;  %2062 = vmatprep.subr.mxu1 %v13945_v32  ;;  %v10522_v1 = vld [vmem:[%s13004_s4 + $0x1a8] sm:$0xff]  ;;  %v10528_v32 = vld [vmem:[%s13004_s4 + $0x1b8] sm:$0xff]  ;;  %14038 = vst [vmem:[#allocation194_spill] sm:$0xff] %v10810_v5 }
 0x63f   :  { %1992 = vmatpush1.msra.mxu0 %v13946_v37  ;;  %2063 = vmatpush1.msra.mxu1 %v13947_v33  ;;  %v10534_v37 = vld [vmem:[%s13004_s4 + $0x1a0] sm:$0xff]  ;;  %v10540_v33 = vld [vmem:[%s13004_s4 + $0x1b0] sm:$0xff] }
 0x640   :  { %1993 = vmatprep.subr.mxu0 %v13948_v34  ;;  %2064 = vmatprep.subr.mxu1 %v10163_v10  ;;  %v10474_v34 = vld [vmem:[%s13004_s4 + $0x1e8] sm:$0xff]  ;;  %v10480_v10 = vld [vmem:[%s13004_s4 + $0x1f8] sm:$0xff] }
 0x641   :  { %1994 = vmatpush1.msra.mxu0 %v10172_v9  ;;  %2027 = vmatprep.mubr.f32.mxu0 %v10323_v2  ;;  %v10486_v9 = vld [vmem:[%s13004_s4 + $0x1e0] sm:$0xff] }
 0x642   :  { %2065 = vmatpush1.msra.mxu1 %v10179_v11  ;;  %2098 = vmatprep.mubr.f32.mxu1 %v10323_v2  ;;  %v10492_v11 = vld [vmem:[%s13004_s4 + $0x1f0] sm:$0xff] }
 0x643   :  { %2028 = vmatmul.mubr.f32.vlgmr.msra.gmra.mxu0 %v6469_v7  ;;  %2099 = vmatmul.mubr.f32.vlgmr.msra.gmra.mxu1 %v6469_v7  ;;  %v10816_v7 = vld [vmem:[%s13004_s4 + $0x38] sm:$0xff] }
 0x644   :  { %2139 = vmatprep.subr.mxu0 %v10474_v34  ;;  %2210 = vmatprep.subr.mxu1 %v10480_v10  ;;  %14039 = vst [vmem:[#allocation195_spill] sm:$0xff] %v10816_v7 }
 0x645   :  { %2140 = vmatpush1.msra.mxu0 %v10486_v9  ;;  %2211 = vmatpush1.msra.mxu1 %v10492_v11 }
 0x646   :  { %2141 = vmatprep.subr.mxu0 %v10498_v38  ;;  %2212 = vmatprep.subr.mxu1 %v10504_v35 }
 0x647   :  { %2142 = vmatpush1.msra.mxu0 %v10510_v50  ;;  %2213 = vmatpush1.msra.mxu1 %v10516_v44 }
 0x648   :  { %2143 = vmatprep.subr.mxu0 %v10522_v1  ;;  %2214 = vmatprep.subr.mxu1 %v10528_v32 }
 0x649   :  { %2144 = vmatpush1.msra.mxu0 %v10534_v37  ;;  %2215 = vmatpush1.msra.mxu1 %v10540_v33 }
 0x64a   :  { %2145 = vmatprep.subr.mxu0 %v10546_v54  ;;  %2216 = vmatprep.subr.mxu1 %v10552_v29 }
 0x64b   :  { %2146 = vmatpush1.msra.mxu0 %v10558_v30  ;;  %2217 = vmatpush1.msra.mxu1 %v10564_v40 }
 0x64c   :  { %2147 = vmatprep.subr.mxu0 %v10570_v53  ;;  %2218 = vmatprep.subr.mxu1 %v10576_v57 }
 0x64d   :  { %2148 = vmatpush1.msra.mxu0 %v10582_v58  ;;  %2219 = vmatpush1.msra.mxu1 %v10588_v60 }
 0x64e   :  { %2149 = vmatprep.subr.mxu0 %v10594_v61  ;;  %2220 = vmatprep.subr.mxu1 %v10600_v63 }
 0x64f   :  { %2150 = vmatpush1.msra.mxu0 %v10606_v39  ;;  %2221 = vmatpush1.msra.mxu1 %v10612_v45 }
 0x650   :  { %2151 = vmatprep.subr.mxu0 %v10618_v42  ;;  %2222 = vmatprep.subr.mxu1 %v10624_v49 }
 0x651   :  { %2152 = vmatpush1.msra.mxu0 %v10630_v0  ;;  %2223 = vmatpush1.msra.mxu1 %v10636_v55 }
 0x652   :  { %2153 = vmatprep.subr.mxu0 %v10642_v43  ;;  %2224 = vmatprep.subr.mxu1 %v10648_v56 }
 0x653   :  { %2154 = vmatpush1.msra.mxu0 %v10654_v48  ;;  %2225 = vmatpush1.msra.mxu1 %v10660_v28 }
 0x654   :  { %2155 = vmatprep.subr.mxu0 %v10666_v8  ;;  %2226 = vmatprep.subr.mxu1 %v10672_v24 }
 0x655   :  { %2156 = vmatpush1.msra.mxu0 %v10678_v21  ;;  %2227 = vmatpush1.msra.mxu1 %v10684_v23 }
 0x656   :  { %2157 = vmatprep.subr.mxu0 %v10690_v25  ;;  %2228 = vmatprep.subr.mxu1 %v10696_v26 }
 0x657   :  { %2158 = vmatpush1.msra.mxu0 %v10702_v59  ;;  %2229 = vmatpush1.msra.mxu1 %v10708_v22 }
 0x658   :  { %2159 = vmatprep.subr.mxu0 %v10714_v27  ;;  %2230 = vmatprep.subr.mxu1 %v10720_v19 }
 0x659   :  { %2160 = vmatpush1.msra.mxu0 %v10726_v16  ;;  %2231 = vmatpush1.msra.mxu1 %v10732_v15 }
 0x65a   :  { %2161 = vmatprep.subr.mxu0 %v10738_v18  ;;  %2232 = vmatprep.subr.mxu1 %v10744_v20 }
 0x65b   :  { %2162 = vmatpush1.msra.mxu0 %v10750_v14  ;;  %2233 = vmatpush1.msra.mxu1 %v10756_v13 }
 0x65c   :  { %2163 = vmatprep.subr.mxu0 %v10762_v36  ;;  %2234 = vmatprep.subr.mxu1 %v10768_v31 }
 0x65d   :  { %2164 = vmatpush1.msra.mxu0 %v10774_v3  ;;  %2235 = vmatpush1.msra.mxu1 %v10780_v4 }
 0x65e   :  { %2165 = vmatprep.subr.mxu0 %v10786_v6  ;;  %2236 = vmatprep.subr.mxu1 %v10792_v17 }
 0x65f   :  { %2166 = vmatpush1.msra.mxu0 %v10798_v12  ;;  %2237 = vmatpush1.msra.mxu1 %v10804_v52  ;;  %v10822_v12 = vld [vmem:[%s13004_s4 + $0x20] sm:$0xff]  ;;  %v10828_v52 = vld [vmem:[%s13004_s4 + $0x30] sm:$0xff] }
 0x660   :  { %2167 = vmatprep.subr.mxu0 %v10810_v5  ;;  %2238 = vmatprep.subr.mxu1 %v10816_v7  ;;  %14040 = vst [vmem:[#allocation196_spill] sm:$0xff] %v10822_v12  ;;  %14041 = vst [vmem:[#allocation197_spill] sm:$0xff] %v10828_v52  ;;  %v10834_v5 = vld [vmem:[%s13004_s4 + $0x8] sm:$0xff]  ;;  %v10840_v7 = vld [vmem:[%s13004_s4 + $0x18] sm:$0xff] }
 0x661   :  { %2168 = vmatpush1.msra.mxu0 %v10822_v12  ;;  %2239 = vmatpush1.msra.mxu1 %v10828_v52  ;;  %14042 = vst [vmem:[#allocation238_spill] sm:$0xff] %v10834_v5  ;;  %14043 = vst [vmem:[#allocation239_spill] sm:$0xff] %v10840_v7  ;;  %v10846_v12 = vld [vmem:[%s13004_s4] sm:$0xff]  ;;  %v10852_v52 = vld [vmem:[%s13004_s4 + $0x10] sm:$0xff] }
 0x662   :  { %2169 = vmatprep.subr.mxu0 %v10834_v5  ;;  %2240 = vmatprep.subr.mxu1 %v10840_v7  ;;  %14044 = vst [vmem:[#allocation240_spill] sm:$0xff] %v10846_v12  ;;  %14045 = vst [vmem:[#allocation241_spill] sm:$0xff] %v10852_v52  ;;  %v10860_v7 = vld [vmem:[%s13003_s3 + $0x1e8] sm:$0xff] }
 0x663   :  { %2170 = vmatpush1.msra.mxu0 %v10846_v12  ;;  %2241 = vmatpush1.msra.mxu1 %v10852_v52  ;;  %14046 = vst [vmem:[#allocation242_spill] sm:$0xff] %v10860_v7  ;;  %v10866_v12 = vld [vmem:[%s13003_s3 + $0x1f8] sm:$0xff] }
 0x664   :  { %2203 = vmatprep.mubr.f32.mxu0 %v10323_v2  ;;  %2274 = vmatprep.mubr.f32.mxu1 %v10323_v2  ;;  %14047 = vst [vmem:[#allocation243_spill] sm:$0xff] %v10866_v12 }
 0x665   :  { %2281 = vmatprep.subr.mxu0 %v10860_v7  ;;  %2352 = vmatprep.subr.mxu1 %v10866_v12 }
 0x6e2   :  { %v1887_v5 = vpop.f32.mrf.mxu0  ;;  %v1958_v52 = vpop.f32.mrf.mxu1 }
 0x6e4   :  { %v1889_v17 = vpop.f32.mrf.mxu0  ;;  %v1960_v4 = vpop.f32.mrf.mxu1 }
 0x703   :  { %v2029_v6 = vpop.f32.mrf.mxu0  ;;  %v2100_v13 = vpop.f32.mrf.mxu1 }
 0x704   :  { %v2030_v3 = vadd.f32 %v2029_v6, %v1887_v5  ;;  %v2101_v19 = vadd.f32 %v2100_v13, %v1958_v52  ;;  %v10910_v52 = vld [vmem:[%s13003_s3 + $0x1d0] sm:$0xff] }
 0x705   :  { %v2031_v31 = vpop.f32.mrf.mxu0  ;;  %v2102_v15 = vpop.f32.mrf.mxu1 }
 0x706   :  { %v2105_v36 = vadd.f32 %v2030_v3, %v9164_v47  ;;  %v2032_v14 = vadd.f32 %v2031_v31, %v1889_v17  ;;  %v2103_v16 = vadd.f32 %v2102_v15, %v1960_v4  ;;  %v2107_v6 = vadd.f32 %v2101_v19, %v9181_v41  ;;  %v10892_v4 = vld [vmem:[%s13003_s3 + $0x1c8] sm:$0xff]  ;;  %v10898_v17 = vld [vmem:[%s13003_s3 + $0x1d8] sm:$0xff] }
 0x708   :  { %v6470_v20 = vmul.f32 -1.442695, %v2105_v36  ;;  %v2106_v7 = vadd.f32 %v2032_v14, %v9168_v46  ;;  %v2108_v12 = vadd.f32 %v2103_v16, %v9175_v51 }
 0x70a   :  { %7361 = vpow2.f32 %v6470_v20  ;;  %v6471_v18 = vmul.f32 -1.442695, %v2106_v7  ;;  %v6472_v27 = vmul.f32 -1.442695, %v2108_v12  ;;  %v10904_v12 = vld [vmem:[%s13003_s3 + $0x1c0] sm:$0xff]  ;;  %v10916_v7 = vld [vmem:[%s13003_s3 + $0x1a8] sm:$0xff] }
 0x70c   :  { %7363 = vpow2.f32 %v6471_v18 }
 0x70d   :  { %7365 = vpow2.f32 %v6472_v27 }
 0x717   :  { %v7362_v22 = vpop.eup %7361 }
 0x718   :  { %v2112_v5 = vadd.f32 1.0, %v7362_v22 }
 0x719   :  { %v7364_v59 = vpop.eup %7363 }
 0x71a   :  { %7367 = vrcp.f32 %v2112_v5  ;;  %v2118_v31 = vadd.f32 1.0, %v7364_v59  ;;  %v7366_v14 = vpop.eup %7365  ;;  %v10880_v59 = vld [vmem:[%s13003_s3 + $0x1e0] sm:$0xff] }
 0x71b   :  { %7369 = vtanh.f32 %v2107_v6  ;;  %v2125_v18 = vadd.f32 1.0, %v7366_v14  ;;  %v10922_v6 = vld [vmem:[%s13003_s3 + $0x1b8] sm:$0xff]  ;;  %v10928_v5 = vld [vmem:[%s13003_s3 + $0x1a0] sm:$0xff]  ;;  %v10940_v14 = vld [vmem:[%s13003_s3 + $0x188] sm:$0xff] }
 0x71c   :  { %7371 = vrcp.f32 %v2118_v31  ;;  %v10934_v31 = vld [vmem:[%s13003_s3 + $0x1b0] sm:$0xff] }
 0x71d   :  { %7373 = vrcp.f32 %v2125_v18  ;;  %v10964_v18 = vld [vmem:[%s13003_s3 + $0x168] sm:$0xff] }
 0x727   :  { %v7368_v20 = vpop.eup %7367 }
 0x728   :  { %v7370_v36 = vpop.eup %7369 }
 0x729   :  { %v7372_v3 = vpop.eup %7371  ;;  %v2129_v15 = vmul.f32 %v7370_v36, %v7368_v20  ;;  %v10946_v20 = vld [vmem:[%s13003_s3 + $0x198] sm:$0xff]  ;;  %v10952_v36 = vld [vmem:[%s13003_s3 + $0x180] sm:$0xff] }
 0x72a   :  { %v2128_v16 = vmul.f32 %v7372_v3, %v10401_v62  ;;  %v7374_v22 = vpop.eup %7373  ;;  %v10886_v62 = vld [vmem:[%s13003_s3 + $0x1f0] sm:$0xff] }
 0x72b   :  { %v10958_v3 = vld [vmem:[%s13003_s3 + $0x190] sm:$0xff] }
 0x72c   :  { %v10874_v13 = vadd.f32 %v2129_v15, %v2128_v16  ;;  %v10970_v15 = vld [vmem:[%s13003_s3 + $0x178] sm:$0xff]  ;;  %v10976_v16 = vld [vmem:[%s13003_s3 + $0x160] sm:$0xff] }
 0x72d   :  { %14048 = vst [vmem:[#allocation244_spill] sm:$0xff] %v10976_v16 }
 0x72e   :  { %7375 = vtanh.f32 %v10874_v13 }
 0x73b   :  { %v7376_v19 = vpop.eup %7375 }
 0x73c   :  { %v2132_v27 = vmul.f32 %v7376_v19, %v7374_v22  ;;  %v10982_v22 = vld [vmem:[%s13003_s3 + $0x170] sm:$0xff]  ;;  %v10988_v19 = vld [vmem:[%s13003_s3 + $0x148] sm:$0xff] }
 0x73d   :  { %14049 = vst [vmem:[#allocation246_spill] sm:$0xff] %v10982_v22  ;;  %14050 = vst [vmem:[#allocation247_spill] sm:$0xff] %v10988_v19 }
 0x73e   :  { %2204 = vmatmul.mubr.f32.vlgmr.msra.gmra.mxu0 %v2132_v27  ;;  %2275 = vmatmul.mubr.f32.vlgmr.msra.gmra.mxu1 %v2132_v27  ;;  %v10994_v27 = vld [vmem:[%s13003_s3 + $0x158] sm:$0xff] }
 0x73f   :  { %2282 = vmatpush1.msra.mxu0 %v10880_v59  ;;  %2353 = vmatpush1.msra.mxu1 %v10886_v62  ;;  %14051 = vst [vmem:[#allocation248_spill] sm:$0xff] %v10994_v27 }
 0x740   :  { %2283 = vmatprep.subr.mxu0 %v10892_v4  ;;  %2354 = vmatprep.subr.mxu1 %v10898_v17 }
 0x741   :  { %2284 = vmatpush1.msra.mxu0 %v10904_v12  ;;  %2355 = vmatpush1.msra.mxu1 %v10910_v52 }
 0x742   :  { %2285 = vmatprep.subr.mxu0 %v10916_v7  ;;  %2356 = vmatprep.subr.mxu1 %v10922_v6 }
 0x743   :  { %2286 = vmatpush1.msra.mxu0 %v10928_v5  ;;  %2357 = vmatpush1.msra.mxu1 %v10934_v31 }
 0x744   :  { %2287 = vmatprep.subr.mxu0 %v10940_v14  ;;  %2358 = vmatprep.subr.mxu1 %v10946_v20 }
 0x745   :  { %2288 = vmatpush1.msra.mxu0 %v10952_v36  ;;  %2359 = vmatpush1.msra.mxu1 %v10958_v3 }
 0x746   :  { %2289 = vmatprep.subr.mxu0 %v10964_v18  ;;  %2360 = vmatprep.subr.mxu1 %v10970_v15 }
 0x747   :  { %2290 = vmatpush1.msra.mxu0 %v10976_v16  ;;  %2361 = vmatpush1.msra.mxu1 %v10982_v22  ;;  %v11000_v16 = vld [vmem:[%s13003_s3 + $0x140] sm:$0xff]  ;;  %v11006_v22 = vld [vmem:[%s13003_s3 + $0x150] sm:$0xff] }
 0x748   :  { %2291 = vmatprep.subr.mxu0 %v10988_v19  ;;  %2362 = vmatprep.subr.mxu1 %v10994_v27  ;;  %14052 = vst [vmem:[#allocation164_spill] sm:$0xff] %v11000_v16  ;;  %14053 = vst [vmem:[#allocation165_spill] sm:$0xff] %v11006_v22  ;;  %v11012_v19 = vld [vmem:[%s13003_s3 + $0x128] sm:$0xff]  ;;  %v11018_v27 = vld [vmem:[%s13003_s3 + $0x138] sm:$0xff] }
 0x749   :  { %2292 = vmatpush1.msra.mxu0 %v11000_v16  ;;  %2363 = vmatpush1.msra.mxu1 %v11006_v22  ;;  %14054 = vst [vmem:[#allocation166_spill] sm:$0xff] %v11012_v19  ;;  %14055 = vst [vmem:[#allocation167_spill] sm:$0xff] %v11018_v27  ;;  %v11024_v16 = vld [vmem:[%s13003_s3 + $0x120] sm:$0xff]  ;;  %v11030_v22 = vld [vmem:[%s13003_s3 + $0x130] sm:$0xff] }
 0x74a   :  { %2293 = vmatprep.subr.mxu0 %v11012_v19  ;;  %2364 = vmatprep.subr.mxu1 %v11018_v27  ;;  %14056 = vst [vmem:[#allocation168_spill] sm:$0xff] %v11024_v16  ;;  %14057 = vst [vmem:[#allocation169_spill] sm:$0xff] %v11030_v22  ;;  %v11036_v19 = vld [vmem:[%s13003_s3 + $0x108] sm:$0xff]  ;;  %v11042_v27 = vld [vmem:[%s13003_s3 + $0x118] sm:$0xff] }
 0x74b   :  { %2294 = vmatpush1.msra.mxu0 %v11024_v16  ;;  %2365 = vmatpush1.msra.mxu1 %v11030_v22  ;;  %14058 = vst [vmem:[#allocation170_spill] sm:$0xff] %v11036_v19  ;;  %14059 = vst [vmem:[#allocation171_spill] sm:$0xff] %v11042_v27  ;;  %v11048_v16 = vld [vmem:[%s13003_s3 + $0x100] sm:$0xff]  ;;  %v11054_v22 = vld [vmem:[%s13003_s3 + $0x110] sm:$0xff] }
 0x74c   :  { %2295 = vmatprep.subr.mxu0 %v11036_v19  ;;  %2366 = vmatprep.subr.mxu1 %v11042_v27  ;;  %14060 = vst [vmem:[#allocation172_spill] sm:$0xff] %v11048_v16  ;;  %14061 = vst [vmem:[#allocation173_spill] sm:$0xff] %v11054_v22  ;;  %v11060_v19 = vld [vmem:[%s13003_s3 + $0xe8] sm:$0xff]  ;;  %v11066_v27 = vld [vmem:[%s13003_s3 + $0xf8] sm:$0xff] }
 0x74d   :  { %2296 = vmatpush1.msra.mxu0 %v11048_v16  ;;  %2367 = vmatpush1.msra.mxu1 %v11054_v22  ;;  %14062 = vst [vmem:[#allocation174_spill] sm:$0xff] %v11060_v19  ;;  %14063 = vst [vmem:[#allocation175_spill] sm:$0xff] %v11066_v27  ;;  %v11072_v16 = vld [vmem:[%s13003_s3 + $0xe0] sm:$0xff]  ;;  %v11078_v22 = vld [vmem:[%s13003_s3 + $0xf0] sm:$0xff] }
 0x74e   :  { %2297 = vmatprep.subr.mxu0 %v11060_v19  ;;  %2368 = vmatprep.subr.mxu1 %v11066_v27  ;;  %14064 = vst [vmem:[#allocation176_spill] sm:$0xff] %v11072_v16  ;;  %14065 = vst [vmem:[#allocation177_spill] sm:$0xff] %v11078_v22  ;;  %v11084_v19 = vld [vmem:[%s13003_s3 + $0xc8] sm:$0xff]  ;;  %v11090_v27 = vld [vmem:[%s13003_s3 + $0xd8] sm:$0xff] }
 0x74f   :  { %2298 = vmatpush1.msra.mxu0 %v11072_v16  ;;  %2369 = vmatpush1.msra.mxu1 %v11078_v22  ;;  %14066 = vst [vmem:[#allocation178_spill] sm:$0xff] %v11084_v19  ;;  %14067 = vst [vmem:[#allocation179_spill] sm:$0xff] %v11090_v27  ;;  %v11096_v16 = vld [vmem:[%s13003_s3 + $0xc0] sm:$0xff]  ;;  %v11102_v22 = vld [vmem:[%s13003_s3 + $0xd0] sm:$0xff] }
 0x750   :  { %2299 = vmatprep.subr.mxu0 %v11084_v19  ;;  %2370 = vmatprep.subr.mxu1 %v11090_v27  ;;  %14068 = vst [vmem:[#allocation180_spill] sm:$0xff] %v11096_v16  ;;  %14069 = vst [vmem:[#allocation181_spill] sm:$0xff] %v11102_v22  ;;  %v11108_v19 = vld [vmem:[%s13003_s3 + $0xa8] sm:$0xff]  ;;  %v11114_v27 = vld [vmem:[%s13003_s3 + $0xb8] sm:$0xff] }
 0x751   :  { %2300 = vmatpush1.msra.mxu0 %v11096_v16  ;;  %2371 = vmatpush1.msra.mxu1 %v11102_v22  ;;  %14070 = vst [vmem:[#allocation182_spill] sm:$0xff] %v11108_v19  ;;  %14071 = vst [vmem:[#allocation183_spill] sm:$0xff] %v11114_v27  ;;  %v11120_v16 = vld [vmem:[%s13003_s3 + $0xa0] sm:$0xff]  ;;  %v11126_v22 = vld [vmem:[%s13003_s3 + $0xb0] sm:$0xff] }
 0x752   :  { %2301 = vmatprep.subr.mxu0 %v11108_v19  ;;  %2372 = vmatprep.subr.mxu1 %v11114_v27  ;;  %14072 = vst [vmem:[#allocation184_spill] sm:$0xff] %v11120_v16  ;;  %14073 = vst [vmem:[#allocation185_spill] sm:$0xff] %v11126_v22  ;;  %v11132_v19 = vld [vmem:[%s13003_s3 + $0x88] sm:$0xff]  ;;  %v11138_v27 = vld [vmem:[%s13003_s3 + $0x98] sm:$0xff] }
 0x753   :  { %2302 = vmatpush1.msra.mxu0 %v11120_v16  ;;  %2373 = vmatpush1.msra.mxu1 %v11126_v22  ;;  %14074 = vst [vmem:[#allocation186_spill] sm:$0xff] %v11132_v19  ;;  %14075 = vst [vmem:[#allocation187_spill] sm:$0xff] %v11138_v27  ;;  %v11144_v16 = vld [vmem:[%s13003_s3 + $0x80] sm:$0xff]  ;;  %v11150_v22 = vld [vmem:[%s13003_s3 + $0x90] sm:$0xff] }
 0x754   :  { %2303 = vmatprep.subr.mxu0 %v11132_v19  ;;  %2374 = vmatprep.subr.mxu1 %v11138_v27  ;;  %14076 = vst [vmem:[#allocation188_spill] sm:$0xff] %v11144_v16  ;;  %14077 = vst [vmem:[#allocation189_spill] sm:$0xff] %v11150_v22  ;;  %v11156_v19 = vld [vmem:[%s13003_s3 + $0x68] sm:$0xff]  ;;  %v11162_v27 = vld [vmem:[%s13003_s3 + $0x78] sm:$0xff] }
 0x755   :  { %2304 = vmatpush1.msra.mxu0 %v11144_v16  ;;  %2375 = vmatpush1.msra.mxu1 %v11150_v22  ;;  %14078 = vst [vmem:[#allocation190_spill] sm:$0xff] %v11156_v19  ;;  %14079 = vst [vmem:[#allocation191_spill] sm:$0xff] %v11162_v27  ;;  %v11168_v16 = vld [vmem:[%s13003_s3 + $0x60] sm:$0xff]  ;;  %v11174_v22 = vld [vmem:[%s13003_s3 + $0x70] sm:$0xff] }
 0x756   :  { %2305 = vmatprep.subr.mxu0 %v11156_v19  ;;  %2376 = vmatprep.subr.mxu1 %v11162_v27  ;;  %14080 = vst [vmem:[#allocation192_spill] sm:$0xff] %v11168_v16  ;;  %14081 = vst [vmem:[#allocation193_spill] sm:$0xff] %v11174_v22  ;;  %v11180_v19 = vld [vmem:[%s13003_s3 + $0x48] sm:$0xff]  ;;  %v11186_v27 = vld [vmem:[%s13003_s3 + $0x58] sm:$0xff] }
 0x757   :  { %2306 = vmatpush1.msra.mxu0 %v11168_v16  ;;  %2377 = vmatpush1.msra.mxu1 %v11174_v22  ;;  %14082 = vst [vmem:[#allocation198_spill] sm:$0xff] %v11180_v19  ;;  %14083 = vst [vmem:[#allocation199_spill] sm:$0xff] %v11186_v27  ;;  %v11192_v16 = vld [vmem:[%s13003_s3 + $0x40] sm:$0xff]  ;;  %v11198_v22 = vld [vmem:[%s13003_s3 + $0x50] sm:$0xff] }
 0x758   :  { %2307 = vmatprep.subr.mxu0 %v11180_v19  ;;  %2378 = vmatprep.subr.mxu1 %v11186_v27  ;;  %14084 = vst [vmem:[#allocation209_spill] sm:$0xff] %v11192_v16  ;;  %14085 = vst [vmem:[#allocation210_spill] sm:$0xff] %v11198_v22  ;;  %v11204_v19 = vld [vmem:[%s13003_s3 + $0x28] sm:$0xff]  ;;  %v11210_v27 = vld [vmem:[%s13003_s3 + $0x38] sm:$0xff] }
 0x759   :  { %2308 = vmatpush1.msra.mxu0 %v11192_v16  ;;  %2379 = vmatpush1.msra.mxu1 %v11198_v22  ;;  %14086 = vst [vmem:[#allocation211_spill] sm:$0xff] %v11204_v19  ;;  %14087 = vst [vmem:[#allocation212_spill] sm:$0xff] %v11210_v27  ;;  %v11216_v16 = vld [vmem:[%s13003_s3 + $0x20] sm:$0xff]  ;;  %v11222_v22 = vld [vmem:[%s13003_s3 + $0x30] sm:$0xff] }
 0x75a   :  { %2309 = vmatprep.subr.mxu0 %v11204_v19  ;;  %2380 = vmatprep.subr.mxu1 %v11210_v27  ;;  %14088 = vst [vmem:[#allocation213_spill] sm:$0xff] %v11216_v16  ;;  %14089 = vst [vmem:[#allocation214_spill] sm:$0xff] %v11222_v22  ;;  %v11228_v19 = vld [vmem:[%s13003_s3 + $0x8] sm:$0xff]  ;;  %v11234_v27 = vld [vmem:[%s13003_s3 + $0x18] sm:$0xff] }
 0x75b   :  { %2310 = vmatpush1.msra.mxu0 %v11216_v16  ;;  %2381 = vmatpush1.msra.mxu1 %v11222_v22  ;;  %14090 = vst [vmem:[#allocation215_spill] sm:$0xff] %v11228_v19  ;;  %v6473_v16 = vld [vmem:[%s13001_s1 + $0x30] sm:$0xff]  ;;  %v11243_v22 = vld [vmem:[%s13003_s3] sm:$0xff] }
 0x75c   :  { %2311 = vmatprep.subr.mxu0 %v11228_v19  ;;  %2382 = vmatprep.subr.mxu1 %v11234_v27  ;;  %v11250_v19 = vld [vmem:[%s13003_s3 + $0x10] sm:$0xff] }
 0x75d   :  { %2312 = vmatpush1.msra.mxu0 %v11243_v22  ;;  %2345 = vmatprep.mubr.f32.mxu0 %v10323_v2 }
 0x75e   :  { %2383 = vmatpush1.msra.mxu1 %v11250_v19  ;;  %2416 = vmatprep.mubr.f32.mxu1 %v10323_v2 }
 0x75f   :  { %2346 = vmatmul.mubr.f32.vlgmr.msra.gmra.mxu0 %v6473_v16  ;;  %2417 = vmatmul.mubr.f32.vlgmr.msra.gmra.mxu1 %v6473_v16 }
 0x760   :  { %2457 = vmatprep.subr.mxu0 %v10474_v34  ;;  %2528 = vmatprep.subr.mxu1 %v10480_v10  ;;  %v14091_v34 = vld [vmem:[#allocation200_spill] sm:$0xff]  ;;  %v14092_v10 = vld [vmem:[#allocation201_spill] sm:$0xff] }
 0x761   :  { %2458 = vmatpush1.msra.mxu0 %v10486_v9  ;;  %2529 = vmatpush1.msra.mxu1 %v10492_v11  ;;  %v14093_v9 = vld [vmem:[#allocation202_spill] sm:$0xff]  ;;  %v14094_v11 = vld [vmem:[#allocation203_spill] sm:$0xff] }
 0x762   :  { %2459 = vmatprep.subr.mxu0 %v10498_v38  ;;  %2530 = vmatprep.subr.mxu1 %v10504_v35  ;;  %v14095_v38 = vld [vmem:[#allocation204_spill] sm:$0xff]  ;;  %v14096_v35 = vld [vmem:[#allocation205_spill] sm:$0xff] }
 0x763   :  { %2460 = vmatpush1.msra.mxu0 %v10510_v50  ;;  %2531 = vmatpush1.msra.mxu1 %v10516_v44  ;;  %v14097_v50 = vld [vmem:[#allocation206_spill] sm:$0xff]  ;;  %v14098_v44 = vld [vmem:[#allocation207_spill] sm:$0xff] }
 0x764   :  { %2461 = vmatprep.subr.mxu0 %v10522_v1  ;;  %2532 = vmatprep.subr.mxu1 %v10528_v32  ;;  %v14099_v1 = vld [vmem:[#allocation208_spill] sm:$0xff] }
 0x765   :  { %2462 = vmatpush1.msra.mxu0 %v10534_v37  ;;  %2533 = vmatpush1.msra.mxu1 %v10540_v33  ;;  %v14100_v32 = vld [vmem:[#allocation232_spill] sm:$0xff]  ;;  %v14101_v37 = vld [vmem:[#allocation233_spill] sm:$0xff]  ;;  %v14102_v33 = vld [vmem:[#allocation234_spill] sm:$0xff] }
 0x766   :  { %2463 = vmatprep.subr.mxu0 %v10546_v54  ;;  %2534 = vmatprep.subr.mxu1 %v10552_v29  ;;  %v14103_v54 = vld [vmem:[#allocation237_spill] sm:$0xff] }
 0x767   :  { %2464 = vmatpush1.msra.mxu0 %v10558_v30  ;;  %2535 = vmatpush1.msra.mxu1 %v10564_v40  ;;  %v14104_v29 = vld [vmem:[#allocation245_spill] sm:$0xff]  ;;  %v14105_v30 = vld [vmem:[#allocation251_spill] sm:$0xff]  ;;  %v14106_v40 = vld [vmem:[#allocation252_spill] sm:$0xff] }
 0x768   :  { %2465 = vmatprep.subr.mxu0 %v10570_v53  ;;  %2536 = vmatprep.subr.mxu1 %v10576_v57  ;;  %v14107_v53 = vld [vmem:[#allocation253_spill] sm:$0xff]  ;;  %v14108_v57 = vld [vmem:[#allocation254_spill] sm:$0xff] }
 0x769   :  { %2466 = vmatpush1.msra.mxu0 %v10582_v58  ;;  %2537 = vmatpush1.msra.mxu1 %v10588_v60  ;;  %v14109_v58 = vld [vmem:[#allocation194_spill] sm:$0xff]  ;;  %v14110_v60 = vld [vmem:[#allocation195_spill] sm:$0xff] }
 0x76a   :  { %2467 = vmatprep.subr.mxu0 %v10594_v61  ;;  %2538 = vmatprep.subr.mxu1 %v10600_v63  ;;  %v14111_v61 = vld [vmem:[#allocation196_spill] sm:$0xff]  ;;  %v14112_v63 = vld [vmem:[#allocation197_spill] sm:$0xff] }
 0x76b   :  { %2468 = vmatpush1.msra.mxu0 %v10606_v39  ;;  %2539 = vmatpush1.msra.mxu1 %v10612_v45  ;;  %v14113_v39 = vld [vmem:[#allocation238_spill] sm:$0xff]  ;;  %v14114_v45 = vld [vmem:[#allocation239_spill] sm:$0xff] }
 0x76c   :  { %2469 = vmatprep.subr.mxu0 %v10618_v42  ;;  %2540 = vmatprep.subr.mxu1 %v10624_v49  ;;  %v14115_v42 = vld [vmem:[#allocation240_spill] sm:$0xff]  ;;  %v14116_v49 = vld [vmem:[#allocation241_spill] sm:$0xff] }
 0x76d   :  { %2470 = vmatpush1.msra.mxu0 %v10630_v0  ;;  %2541 = vmatpush1.msra.mxu1 %v10636_v55  ;;  %v14117_v0 = vld [vmem:[#allocation242_spill] sm:$0xff]  ;;  %v14118_v55 = vld [vmem:[#allocation243_spill] sm:$0xff] }
 0x76e   :  { %2471 = vmatprep.subr.mxu0 %v10642_v43  ;;  %2542 = vmatprep.subr.mxu1 %v10648_v56 }
 0x76f   :  { %2472 = vmatpush1.msra.mxu0 %v10654_v48  ;;  %2543 = vmatpush1.msra.mxu1 %v10660_v28 }
 0x770   :  { %2473 = vmatprep.subr.mxu0 %v10666_v8  ;;  %2544 = vmatprep.subr.mxu1 %v10672_v24 }
 0x771   :  { %2474 = vmatpush1.msra.mxu0 %v10678_v21  ;;  %2545 = vmatpush1.msra.mxu1 %v10684_v23 }
 0x772   :  { %2475 = vmatprep.subr.mxu0 %v10690_v25  ;;  %2546 = vmatprep.subr.mxu1 %v10696_v26 }
 0x773   :  { %2476 = vmatpush1.msra.mxu0 %v14091_v34  ;;  %2547 = vmatpush1.msra.mxu1 %v14092_v10 }
 0x774   :  { %2477 = vmatprep.subr.mxu0 %v14093_v9  ;;  %2548 = vmatprep.subr.mxu1 %v14094_v11 }
 0x775   :  { %2478 = vmatpush1.msra.mxu0 %v14095_v38  ;;  %2549 = vmatpush1.msra.mxu1 %v14096_v35 }
 0x776   :  { %2479 = vmatprep.subr.mxu0 %v14097_v50  ;;  %2550 = vmatprep.subr.mxu1 %v14098_v44 }
 0x777   :  { %2480 = vmatpush1.msra.mxu0 %v14099_v1  ;;  %2551 = vmatpush1.msra.mxu1 %v14100_v32 }
 0x778   :  { %2481 = vmatprep.subr.mxu0 %v14101_v37  ;;  %2552 = vmatprep.subr.mxu1 %v14102_v33 }
 0x779   :  { %2482 = vmatpush1.msra.mxu0 %v14103_v54  ;;  %2553 = vmatpush1.msra.mxu1 %v14104_v29 }
 0x77a   :  { %2483 = vmatprep.subr.mxu0 %v14105_v30  ;;  %2554 = vmatprep.subr.mxu1 %v14106_v40 }
 0x77b   :  { %2484 = vmatpush1.msra.mxu0 %v14107_v53  ;;  %2555 = vmatpush1.msra.mxu1 %v14108_v57 }
 0x77c   :  { %2485 = vmatprep.subr.mxu0 %v14109_v58  ;;  %2556 = vmatprep.subr.mxu1 %v14110_v60 }
 0x77d   :  { %2486 = vmatpush1.msra.mxu0 %v14111_v61  ;;  %2557 = vmatpush1.msra.mxu1 %v14112_v63 }
 0x77e   :  { %2487 = vmatprep.subr.mxu0 %v14113_v39  ;;  %2558 = vmatprep.subr.mxu1 %v14114_v45  ;;  %v14136_v39 = vld [vmem:[#allocation177_spill] sm:$0xff]  ;;  %v14137_v45 = vld [vmem:[#allocation178_spill] sm:$0xff] }
 0x77f   :  { %2488 = vmatpush1.msra.mxu0 %v14115_v42  ;;  %2559 = vmatpush1.msra.mxu1 %v14116_v49  ;;  %v14138_v42 = vld [vmem:[#allocation179_spill] sm:$0xff]  ;;  %v14139_v49 = vld [vmem:[#allocation180_spill] sm:$0xff] }
 0x780   :  { %2521 = vmatprep.mubr.f32.mxu0 %v10323_v2  ;;  %2592 = vmatprep.mubr.f32.mxu1 %v10323_v2 }
 0x781   :  { %2599 = vmatprep.subr.mxu0 %v14117_v0  ;;  %2670 = vmatprep.subr.mxu1 %v14118_v55  ;;  %v14140_v0 = vld [vmem:[#allocation181_spill] sm:$0xff]  ;;  %v14141_v55 = vld [vmem:[#allocation182_spill] sm:$0xff] }
 0x7fe   :  { %v2205_v43 = vpop.f32.mrf.mxu0  ;;  %v2276_v56 = vpop.f32.mrf.mxu1 }
 0x800   :  { %v2207_v48 = vpop.f32.mrf.mxu0  ;;  %v2278_v8 = vpop.f32.mrf.mxu1 }
 0x81f   :  { %v2347_v28 = vpop.f32.mrf.mxu0  ;;  %v2418_v25 = vpop.f32.mrf.mxu1 }
 0x820   :  { %v2348_v24 = vadd.f32 %v2347_v28, %v2205_v43  ;;  %v2419_v38 = vadd.f32 %v2418_v25, %v2276_v56  ;;  %v14142_v43 = vld [vmem:[#allocation183_spill] sm:$0xff]  ;;  %v14143_v56 = vld [vmem:[#allocation184_spill] sm:$0xff]  ;;  %v14145_v28 = vld [vmem:[#allocation186_spill] sm:$0xff] }
 0x821   :  { %v2349_v21 = vpop.f32.mrf.mxu0  ;;  %v2420_v10 = vpop.f32.mrf.mxu1  ;;  %v14150_v25 = vld [vmem:[#allocation191_spill] sm:$0xff] }
 0x822   :  { %v2423_v23 = vadd.f32 %v2348_v24, %v9164_v47  ;;  %v2350_v26 = vadd.f32 %v2349_v21, %v2207_v48  ;;  %v2421_v9 = vadd.f32 %v2420_v10, %v2278_v8  ;;  %v2425_v44 = vadd.f32 %v2419_v38, %v9181_v41  ;;  %v14144_v48 = vld [vmem:[#allocation185_spill] sm:$0xff]  ;;  %v14146_v8 = vld [vmem:[#allocation187_spill] sm:$0xff]  ;;  %v14147_v24 = vld [vmem:[#allocation188_spill] sm:$0xff] }
 0x823   :  { %v14148_v21 = vld [vmem:[#allocation189_spill] sm:$0xff]  ;;  %v14158_v38 = vld [vmem:[#allocation212_spill] sm:$0xff] }
 0x824   :  { %v6474_v16 = vmul.f32 -1.442695, %v2423_v23  ;;  %v2424_v34 = vadd.f32 %v2350_v26, %v9168_v46  ;;  %v2426_v11 = vadd.f32 %v2421_v9, %v9175_v51  ;;  %v14149_v23 = vld [vmem:[#allocation190_spill] sm:$0xff]  ;;  %v14151_v26 = vld [vmem:[#allocation192_spill] sm:$0xff]  ;;  %v14155_v10 = vld [vmem:[#allocation209_spill] sm:$0xff] }
 0x825   :  { %v14156_v9 = vld [vmem:[#allocation210_spill] sm:$0xff] }
 0x826   :  { %7377 = vpow2.f32 %v6474_v16  ;;  %v6475_v2 = vmul.f32 -1.442695, %v2424_v34  ;;  %v6476_v35 = vmul.f32 -1.442695, %v2426_v11  ;;  %v14152_v16 = vld [vmem:[#allocation193_spill] sm:$0xff]  ;;  %v14153_v34 = vld [vmem:[#allocation198_spill] sm:$0xff] }
 0x827   :  { %v14157_v11 = vld [vmem:[#allocation211_spill] sm:$0xff] }
 0x828   :  { %7379 = vpow2.f32 %v6475_v2  ;;  %v14154_v2 = vld [vmem:[#allocation199_spill] sm:$0xff] }
 0x829   :  { %7381 = vpow2.f32 %v6476_v35  ;;  %v14159_v35 = vld [vmem:[#allocation213_spill] sm:$0xff] }
 0x833   :  { %v7378_v50 = vpop.eup %7377 }
 0x834   :  { %v2430_v1 = vadd.f32 1.0, %v7378_v50  ;;  %v14160_v50 = vld [vmem:[#allocation214_spill] sm:$0xff] }
 0x835   :  { %v7380_v32 = vpop.eup %7379 }
 0x836   :  { %7383 = vrcp.f32 %v2430_v1  ;;  %v2436_v37 = vadd.f32 1.0, %v7380_v32  ;;  %v7382_v33 = vpop.eup %7381  ;;  %v6477_v1 = vld [vmem:[%s13001_s1 + $0x38] sm:$0xff]  ;;  %v7667_v32 = vld [vmem:[#allocation13] sm:$0xff] }
 0x837   :  { %7385 = vtanh.f32 %v2425_v44  ;;  %v2443_v40 = vadd.f32 1.0, %v7382_v33  ;;  %v14161_v44 = vld [vmem:[#allocation215_spill] sm:$0xff] }
 0x838   :  { %7387 = vrcp.f32 %v2436_v37 }
 0x839   :  { %7389 = vrcp.f32 %v2443_v40 }
 0x843   :  { %v7384_v54 = vpop.eup %7383 }
 0x844   :  { %v7386_v29 = vpop.eup %7385 }
 0x845   :  { %v7388_v30 = vpop.eup %7387  ;;  %v2447_v53 = vmul.f32 %v7386_v29, %v7384_v54 }
 0x846   :  { %v2446_v57 = vmul.f32 %v7388_v30, %v10874_v13  ;;  %v7390_v60 = vpop.eup %7389  ;;  %v14119_v13 = vld [vmem:[#allocation244_spill] sm:$0xff] }
 0x848   :  { %v11327_v58 = vadd.f32 %v2447_v53, %v2446_v57 }
 0x84a   :  { %7391 = vtanh.f32 %v11327_v58 }
 0x857   :  { %v7392_v61 = vpop.eup %7391 }
 0x858   :  { %v2450_v63 = vmul.f32 %v7392_v61, %v7390_v60 }
 0x85a   :  { %2522 = vmatmul.mubr.f32.vlgmr.msra.gmra.mxu0 %v2450_v63  ;;  %2593 = vmatmul.mubr.f32.vlgmr.msra.gmra.mxu1 %v2450_v63 }
 0x85b   :  { %2600 = vmatpush1.msra.mxu0 %v10880_v59  ;;  %2671 = vmatpush1.msra.mxu1 %v10886_v62  ;;  %v14120_v59 = vld [vmem:[#allocation246_spill] sm:$0xff]  ;;  %v14121_v62 = vld [vmem:[#allocation247_spill] sm:$0xff] }
 0x85c   :  { %2601 = vmatprep.subr.mxu0 %v10892_v4  ;;  %2672 = vmatprep.subr.mxu1 %v10898_v17  ;;  %v14122_v4 = vld [vmem:[#allocation248_spill] sm:$0xff] }
 0x85d   :  { %2602 = vmatpush1.msra.mxu0 %v10904_v12  ;;  %2673 = vmatpush1.msra.mxu1 %v10910_v52  ;;  %v14123_v17 = vld [vmem:[#allocation164_spill] sm:$0xff]  ;;  %v14124_v12 = vld [vmem:[#allocation165_spill] sm:$0xff]  ;;  %v14125_v52 = vld [vmem:[#allocation166_spill] sm:$0xff] }
 0x85e   :  { %2603 = vmatprep.subr.mxu0 %v10916_v7  ;;  %2674 = vmatprep.subr.mxu1 %v10922_v6  ;;  %v14126_v7 = vld [vmem:[#allocation167_spill] sm:$0xff]  ;;  %v14127_v6 = vld [vmem:[#allocation168_spill] sm:$0xff] }
 0x85f   :  { %2604 = vmatpush1.msra.mxu0 %v10928_v5  ;;  %2675 = vmatpush1.msra.mxu1 %v10934_v31  ;;  %v14128_v5 = vld [vmem:[#allocation169_spill] sm:$0xff]  ;;  %v14129_v31 = vld [vmem:[#allocation170_spill] sm:$0xff] }
 0x860   :  { %2605 = vmatprep.subr.mxu0 %v10940_v14  ;;  %2676 = vmatprep.subr.mxu1 %v10946_v20  ;;  %v14130_v14 = vld [vmem:[#allocation171_spill] sm:$0xff]  ;;  %v14131_v20 = vld [vmem:[#allocation172_spill] sm:$0xff] }
 0x861   :  { %2606 = vmatpush1.msra.mxu0 %v10952_v36  ;;  %2677 = vmatpush1.msra.mxu1 %v10958_v3  ;;  %v14132_v36 = vld [vmem:[#allocation173_spill] sm:$0xff]  ;;  %v14133_v3 = vld [vmem:[#allocation174_spill] sm:$0xff] }
 0x862   :  { %2607 = vmatprep.subr.mxu0 %v10964_v18  ;;  %2678 = vmatprep.subr.mxu1 %v10970_v15  ;;  %v14134_v18 = vld [vmem:[#allocation175_spill] sm:$0xff]  ;;  %v14135_v15 = vld [vmem:[#allocation176_spill] sm:$0xff] }
 0x863   :  { %2608 = vmatpush1.msra.mxu0 %v14119_v13  ;;  %2679 = vmatpush1.msra.mxu1 %v14120_v59 }
 0x864   :  { %2609 = vmatprep.subr.mxu0 %v14121_v62  ;;  %2680 = vmatprep.subr.mxu1 %v14122_v4 }
 0x865   :  { %2610 = vmatpush1.msra.mxu0 %v14123_v17  ;;  %2681 = vmatpush1.msra.mxu1 %v14124_v12 }
 0x866   :  { %2611 = vmatprep.subr.mxu0 %v14125_v52  ;;  %2682 = vmatprep.subr.mxu1 %v14126_v7 }
 0x867   :  { %2612 = vmatpush1.msra.mxu0 %v14127_v6  ;;  %2683 = vmatpush1.msra.mxu1 %v14128_v5 }
 0x868   :  { %2613 = vmatprep.subr.mxu0 %v14129_v31  ;;  %2684 = vmatprep.subr.mxu1 %v14130_v14 }
 0x869   :  { %2614 = vmatpush1.msra.mxu0 %v14131_v20  ;;  %2685 = vmatpush1.msra.mxu1 %v14132_v36 }
 0x86a   :  { %2615 = vmatprep.subr.mxu0 %v14133_v3  ;;  %2686 = vmatprep.subr.mxu1 %v14134_v18 }
 0x86b   :  { %2616 = vmatpush1.msra.mxu0 %v14135_v15  ;;  %2687 = vmatpush1.msra.mxu1 %v14136_v39 }
 0x86c   :  { %2617 = vmatprep.subr.mxu0 %v14137_v45  ;;  %2688 = vmatprep.subr.mxu1 %v14138_v42 }
 0x86d   :  { %2618 = vmatpush1.msra.mxu0 %v14139_v49  ;;  %2689 = vmatpush1.msra.mxu1 %v14140_v0 }
 0x86e   :  { %2619 = vmatprep.subr.mxu0 %v14141_v55  ;;  %2690 = vmatprep.subr.mxu1 %v14142_v43 }
 0x86f   :  { %2620 = vmatpush1.msra.mxu0 %v14143_v56  ;;  %2691 = vmatpush1.msra.mxu1 %v14144_v48 }
 0x870   :  { %2621 = vmatprep.subr.mxu0 %v14145_v28  ;;  %2692 = vmatprep.subr.mxu1 %v14146_v8 }
 0x871   :  { %2622 = vmatpush1.msra.mxu0 %v14147_v24  ;;  %2693 = vmatpush1.msra.mxu1 %v14148_v21 }
 0x872   :  { %2623 = vmatprep.subr.mxu0 %v14149_v23  ;;  %2694 = vmatprep.subr.mxu1 %v14150_v25 }
 0x873   :  { %2624 = vmatpush1.msra.mxu0 %v14151_v26  ;;  %2695 = vmatpush1.msra.mxu1 %v14152_v16 }
 0x874   :  { %2625 = vmatprep.subr.mxu0 %v14153_v34  ;;  %2696 = vmatprep.subr.mxu1 %v14154_v2 }
 0x875   :  { %2626 = vmatpush1.msra.mxu0 %v14155_v10  ;;  %2697 = vmatpush1.msra.mxu1 %v14156_v9 }
 0x876   :  { %2627 = vmatprep.subr.mxu0 %v14157_v11  ;;  %2698 = vmatprep.subr.mxu1 %v14158_v38 }
 0x877   :  { %2628 = vmatpush1.msra.mxu0 %v14159_v35  ;;  %2699 = vmatpush1.msra.mxu1 %v14160_v50 }
 0x878   :  { %2629 = vmatprep.subr.mxu0 %v14161_v44  ;;  %2700 = vmatprep.subr.mxu1 %v11234_v27 }
 0x879   :  { %2630 = vmatpush1.msra.mxu0 %v11243_v22  ;;  %2663 = vmatprep.mubr.f32.mxu0 %v7667_v32 }
 0x87a   :  { %2701 = vmatpush1.msra.mxu1 %v11250_v19  ;;  %2734 = vmatprep.mubr.f32.mxu1 %v7667_v32 }
 0x87b   :  { %2664 = vmatmul.mubr.f32.vlgmr.msra.gmra.mxu0 %v6477_v1  ;;  %2735 = vmatmul.mubr.f32.vlgmr.msra.gmra.mxu1 %v6477_v1 }
 0x91a   :  { %v2523_v37 = vpop.f32.mrf.mxu0  ;;  %v2594_v33 = vpop.f32.mrf.mxu1 }
 0x91c   :  { %v2525_v54 = vpop.f32.mrf.mxu0  ;;  %v2596_v30 = vpop.f32.mrf.mxu1 }
 0x93b   :  { %v2665_v29 = vpop.f32.mrf.mxu0  ;;  %v2736_v57 = vpop.f32.mrf.mxu1 }
 0x93c   :  { %v2666_v40 = vadd.f32 %v2665_v29, %v2523_v37  ;;  %v2737_v62 = vadd.f32 %v2736_v57, %v2594_v33 }
 0x93d   :  { %v2667_v27 = vpop.f32.mrf.mxu0  ;;  %v2738_v19 = vpop.f32.mrf.mxu1 }
 0x93e   :  { %v2741_v53 = vadd.f32 %v2666_v40, %v9164_v47  ;;  %v2668_v60 = vadd.f32 %v2667_v27, %v2525_v54  ;;  %v2739_v13 = vadd.f32 %v2738_v19, %v2596_v30  ;;  %v2743_v12 = vadd.f32 %v2737_v62, %v9181_v41 }
 0x940   :  { %v6478_v61 = vmul.f32 -1.442695, %v2741_v53  ;;  %v2742_v22 = vadd.f32 %v2668_v60, %v9168_v46  ;;  %v2744_v59 = vadd.f32 %v2739_v13, %v9175_v51 }
 0x942   :  { %7393 = vpow2.f32 %v6478_v61  ;;  %v6479_v63 = vmul.f32 -1.442695, %v2742_v22  ;;  %v6480_v4 = vmul.f32 -1.442695, %v2744_v59 }
 0x944   :  { %7395 = vpow2.f32 %v6479_v63 }
 0x945   :  { %7397 = vpow2.f32 %v6480_v4 }
 0x94f   :  { %v7394_v17 = vpop.eup %7393 }
 0x950   :  { %v2748_v52 = vadd.f32 1.0, %v7394_v17 }
 0x951   :  { %v7396_v7 = vpop.eup %7395 }
 0x952   :  { %7399 = vrcp.f32 %v2748_v52  ;;  %v2754_v47 = vadd.f32 1.0, %v7396_v7  ;;  %v7398_v46 = vpop.eup %7397 }
 0x953   :  { %7401 = vtanh.f32 %v2743_v12  ;;  %v2761_v14 = vadd.f32 1.0, %v7398_v46 }
 0x954   :  { %7403 = vrcp.f32 %v2754_v47 }
 0x955   :  { %7405 = vrcp.f32 %v2761_v14 }
 0x95f   :  { %v7400_v6 = vpop.eup %7399 }
 0x960   :  { %v7402_v5 = vpop.eup %7401 }
 0x961   :  { %v7404_v31 = vpop.eup %7403  ;;  %v2765_v20 = vmul.f32 %v7402_v5, %v7400_v6 }
 0x962   :  { %v2764_v51 = vmul.f32 %v7404_v31, %v11327_v58  ;;  %v7406_v41 = vpop.eup %7405 }
 0x964   :  { %v2766_v36 = vadd.f32 %v2765_v20, %v2764_v51 }
 0x966   :  { %7407 = vtanh.f32 %v2766_v36  ;;  %2770 = vst [vmem:[#allocation3] sm:$0xff] %v2766_v36 }
 0x972   :  { %2924 = sbr.rel (%p6481_p1) target bundleno = 2425 (0x979), region = 57 }
 0x973   :  { %v7408_v3 = vpop.eup %7407 }
 0x974   :  { %v2768_v18 = vmul.f32 %v7408_v3, %v7406_v41 }
 0x976   :  { %2769 = vst [vmem:[#allocation2] sm:$0xff] %v2768_v18 }
 0x977   :  { %v2925_v15 = vld [vmem:[%s13002_s2] sm:$0xff] }
 0x978   :  { %2926 = vst [vmem:[#allocation5] sm:$0xff] %v2925_v15 }
 0x979 PF:  { %p6482_p2 = scmp.ne.s32.totalorder %s7960_s6, 0 }
 0x97b   :  { %2930 = sbr.rel (%p6482_p2) target bundleno = 2660 (0xa64), region = 61 }
 0x980   :  { %v2947_v58 = vld [vmem:[%s13009_s9 + $0x78] sm:$0xff]  ;;  %v7866_v39 = vmov 0.0   ;;  %v2946_v45 = vld [vmem:[%s13009_s9 + $0x70] sm:$0xff]  ;;  %vm7867_vm0 = vmmov 0   ;;  %v2945_v42 = vld [vmem:[%s13009_s9 + $0x68] sm:$0xff] }
 0x981   :  { %6767 = vmatprep.subr.mxu0 %v7866_v39  ;;  %6799 = vmatprep.mubr.msk.f32.mxu0 %vm7867_vm0, %v7866_v39  ;;  %v2944_v49 = vld [vmem:[%s13009_s9 + $0x60] sm:$0xff]  ;;  %v2943_v0 = vld [vmem:[%s13009_s9 + $0x58] sm:$0xff]  ;;  %v2942_v55 = vld [vmem:[%s13009_s9 + $0x50] sm:$0xff] }
 0x982   :  { %6768 = vmatpush3.msra.mxu0 %v2947_v58  ;;  %v2941_v43 = vld [vmem:[%s13009_s9 + $0x48] sm:$0xff]  ;;  %v2940_v56 = vld [vmem:[%s13009_s9 + $0x40] sm:$0xff]  ;;  %v2939_v48 = vld [vmem:[%s13009_s9 + $0x38] sm:$0xff] }
 0x983   :  { %6769 = vmatprep.subr.mxu0 %v7866_v39  ;;  %v2938_v28 = vld [vmem:[%s13009_s9 + $0x30] sm:$0xff]  ;;  %v2937_v8 = vld [vmem:[%s13009_s9 + $0x28] sm:$0xff]  ;;  %v2936_v24 = vld [vmem:[%s13009_s9 + $0x20] sm:$0xff] }
 0x984   :  { %6770 = vmatpush3.msra.mxu0 %v2946_v45  ;;  %v2935_v21 = vld [vmem:[%s13009_s9 + $0x18] sm:$0xff]  ;;  %v2934_v23 = vld [vmem:[%s13009_s9 + $0x10] sm:$0xff]  ;;  %v2933_v25 = vld [vmem:[%s13009_s9 + $0x8] sm:$0xff] }
 0x985   :  { %6771 = vmatprep.subr.mxu0 %v7866_v39  ;;  %v2932_v26 = vld [vmem:[%s13009_s9] sm:$0xff]  ;;  %v2931_v16 = vld [vmem:[#allocation4] sm:$0xff] }
 0x986   :  { %6772 = vmatpush3.msra.mxu0 %v2945_v42 }
 0x987   :  { %6773 = vmatprep.subr.mxu0 %v7866_v39 }
 0x988   :  { %6774 = vmatpush3.msra.mxu0 %v2944_v49 }
 0x989   :  { %6775 = vmatprep.subr.mxu0 %v7866_v39 }
 0x98a   :  { %6776 = vmatpush3.msra.mxu0 %v2943_v0 }
 0x98b   :  { %6777 = vmatprep.subr.mxu0 %v7866_v39 }
 0x98c   :  { %6778 = vmatpush3.msra.mxu0 %v2942_v55 }
 0x98d   :  { %6779 = vmatprep.subr.mxu0 %v7866_v39 }
 0x98e   :  { %6780 = vmatpush3.msra.mxu0 %v2941_v43 }
 0x98f   :  { %6781 = vmatprep.subr.mxu0 %v7866_v39 }
 0x990   :  { %6782 = vmatpush3.msra.mxu0 %v2940_v56 }
 0x991   :  { %6783 = vmatprep.subr.mxu0 %v7866_v39 }
 0x992   :  { %6784 = vmatpush3.msra.mxu0 %v2939_v48 }
 0x993   :  { %6785 = vmatprep.subr.mxu0 %v7866_v39 }
 0x994   :  { %6786 = vmatpush3.msra.mxu0 %v2938_v28 }
 0x995   :  { %6787 = vmatprep.subr.mxu0 %v7866_v39 }
 0x996   :  { %6788 = vmatpush3.msra.mxu0 %v2937_v8 }
 0x997   :  { %6789 = vmatprep.subr.mxu0 %v7866_v39 }
 0x998   :  { %6790 = vmatpush3.msra.mxu0 %v2936_v24 }
 0x999   :  { %6791 = vmatprep.subr.mxu0 %v7866_v39 }
 0x99a   :  { %6792 = vmatpush3.msra.mxu0 %v2935_v21 }
 0x99b   :  { %6793 = vmatprep.subr.mxu0 %v7866_v39 }
 0x99c   :  { %6794 = vmatpush3.msra.mxu0 %v2934_v23 }
 0x99d   :  { %6795 = vmatprep.subr.mxu0 %v7866_v39 }
 0x99e   :  { %6796 = vmatpush3.msra.mxu0 %v2933_v25 }
 0x99f   :  { %6797 = vmatprep.subr.mxu0 %v7866_v39 }
 0x9a0   :  { %6798 = vmatpush3.msra.mxu0 %v2932_v26 }
 0x9a1   :  { %6800 = vmatmul.mubr.f32.vlgmr.msra.gmra.mxu0 %v2931_v16 }
 0xa61   :  { %v3014_v34 = vpop.f32.mrf.mxu0 }
 0xa62   :  { %3018 = vst [vmem:[#allocation5] sm:$0xff] %v3014_v34 }
 0xa63   :  { %v6801_v2 = vpop.f32.mrf.mxu0 }
 0xa64 PF:  { %v14162_v10 = vld [vmem:[#allocation143_spill] sm:$0xff]  ;;  %v14163_v9 = vld [vmem:[#allocation145_spill] sm:$0xff]  ;;  %v14164_v11 = vld [vmem:[#allocation142_spill] sm:$0xff]  ;;  %vm7868_vm1 = vmmov 0   ;;  %s6487_s16 = sld [smem:[#allocation7 + $0x1]] }
 0xa65   :  { %3022 = vmatprep.subr.mxu0 %v14162_v10  ;;  %3093 = vmatprep.subr.mxu1 %v14163_v9  ;;  %v14165_v38 = vld [vmem:[#allocation144_spill] sm:$0xff]  ;;  %v14166_v35 = vld [vmem:[#allocation139_spill] sm:$0xff]  ;;  %v14167_v50 = vld [vmem:[#allocation141_spill] sm:$0xff]  ;;  %v14225_v10 = vmov 0.0  }
 0xa66   :  { %3023 = vmatpush1.msra.mxu0 %v14164_v11  ;;  %3094 = vmatpush1.msra.mxu1 %v14165_v38  ;;  %v14168_v44 = vld [vmem:[#allocation138_spill] sm:$0xff]  ;;  %v14169_v1 = vld [vmem:[#allocation140_spill] sm:$0xff]  ;;  %v14170_v32 = vld [vmem:[#allocation135_spill] sm:$0xff] }
 0xa67   :  { %3024 = vmatprep.subr.mxu0 %v14166_v35  ;;  %3095 = vmatprep.subr.mxu1 %v14167_v50  ;;  %v14171_v37 = vld [vmem:[#allocation137_spill] sm:$0xff]  ;;  %v14172_v33 = vld [vmem:[#allocation134_spill] sm:$0xff]  ;;  %v14173_v54 = vld [vmem:[#allocation136_spill] sm:$0xff] }
 0xa68   :  { %3025 = vmatpush1.msra.mxu0 %v14168_v44  ;;  %3096 = vmatpush1.msra.mxu1 %v14169_v1  ;;  %v14174_v29 = vld [vmem:[#allocation131_spill] sm:$0xff]  ;;  %v14175_v30 = vld [vmem:[#allocation133_spill] sm:$0xff]  ;;  %v14176_v40 = vld [vmem:[#allocation130_spill] sm:$0xff] }
 0xa69   :  { %3026 = vmatprep.subr.mxu0 %v14170_v32  ;;  %3097 = vmatprep.subr.mxu1 %v14171_v37  ;;  %v14177_v27 = vld [vmem:[#allocation132_spill] sm:$0xff]  ;;  %v14178_v53 = vld [vmem:[#allocation127_spill] sm:$0xff]  ;;  %v14179_v57 = vld [vmem:[#allocation129_spill] sm:$0xff] }
 0xa6a   :  { %3027 = vmatpush1.msra.mxu0 %v14172_v33  ;;  %3098 = vmatpush1.msra.mxu1 %v14173_v54  ;;  %v14180_v60 = vld [vmem:[#allocation126_spill] sm:$0xff]  ;;  %v14181_v61 = vld [vmem:[#allocation128_spill] sm:$0xff]  ;;  %v14182_v22 = vld [vmem:[#allocation123_spill] sm:$0xff]  ;;  %p6488_p3 = scmp.le.s32.totalorder %s6487_s16, 0 }
 0xa6b   :  { %3028 = vmatprep.subr.mxu0 %v14174_v29  ;;  %3099 = vmatprep.subr.mxu1 %v14175_v30  ;;  %v14183_v63 = vld [vmem:[#allocation125_spill] sm:$0xff]  ;;  %v14184_v19 = vld [vmem:[#allocation122_spill] sm:$0xff]  ;;  %v14185_v13 = vld [vmem:[#allocation124_spill] sm:$0xff] }
 0xa6c   :  { %3029 = vmatpush1.msra.mxu0 %v14176_v40  ;;  %3100 = vmatpush1.msra.mxu1 %v14177_v27  ;;  %v14186_v59 = vld [vmem:[#allocation119_spill] sm:$0xff]  ;;  %v14187_v62 = vld [vmem:[#allocation121_spill] sm:$0xff]  ;;  %v14188_v4 = vld [vmem:[#allocation118_spill] sm:$0xff] }
 0xa6d   :  { %3030 = vmatprep.subr.mxu0 %v14178_v53  ;;  %3101 = vmatprep.subr.mxu1 %v14179_v57  ;;  %v14189_v17 = vld [vmem:[#allocation120_spill] sm:$0xff]  ;;  %v14190_v12 = vld [vmem:[#allocation115_spill] sm:$0xff]  ;;  %v14191_v52 = vld [vmem:[#allocation117_spill] sm:$0xff] }
 0xa6e   :  { %3031 = vmatpush1.msra.mxu0 %v14180_v60  ;;  %3102 = vmatpush1.msra.mxu1 %v14181_v61  ;;  %v14192_v7 = vld [vmem:[#allocation114_spill] sm:$0xff]  ;;  %v14193_v47 = vld [vmem:[#allocation116_spill] sm:$0xff]  ;;  %v14194_v46 = vld [vmem:[#allocation111_spill] sm:$0xff] }
 0xa6f   :  { %3032 = vmatprep.subr.mxu0 %v14182_v22  ;;  %3103 = vmatprep.subr.mxu1 %v14183_v63  ;;  %v14195_v6 = vld [vmem:[#allocation113_spill] sm:$0xff]  ;;  %v14196_v5 = vld [vmem:[#allocation110_spill] sm:$0xff]  ;;  %v14197_v31 = vld [vmem:[#allocation112_spill] sm:$0xff] }
 0xa70   :  { %3033 = vmatpush1.msra.mxu0 %v14184_v19  ;;  %3104 = vmatpush1.msra.mxu1 %v14185_v13  ;;  %v14198_v14 = vld [vmem:[#allocation107_spill] sm:$0xff]  ;;  %v14199_v20 = vld [vmem:[#allocation109_spill] sm:$0xff]  ;;  %v14200_v51 = vld [vmem:[#allocation106_spill] sm:$0xff] }
 0xa71   :  { %3034 = vmatprep.subr.mxu0 %v14186_v59  ;;  %3105 = vmatprep.subr.mxu1 %v14187_v62  ;;  %v14201_v36 = vld [vmem:[#allocation108_spill] sm:$0xff]  ;;  %v14202_v41 = vld [vmem:[#allocation103_spill] sm:$0xff]  ;;  %v14203_v3 = vld [vmem:[#allocation105_spill] sm:$0xff] }
 0xa72   :  { %3035 = vmatpush1.msra.mxu0 %v14188_v4  ;;  %3106 = vmatpush1.msra.mxu1 %v14189_v17  ;;  %v14204_v18 = vld [vmem:[#allocation102_spill] sm:$0xff]  ;;  %v14205_v15 = vld [vmem:[#allocation104_spill] sm:$0xff]  ;;  %v14206_v58 = vld [vmem:[#allocation99_spill] sm:$0xff] }
 0xa73   :  { %3036 = vmatprep.subr.mxu0 %v14190_v12  ;;  %3107 = vmatprep.subr.mxu1 %v14191_v52  ;;  %v14207_v39 = vld [vmem:[#allocation101_spill] sm:$0xff]  ;;  %v14208_v45 = vld [vmem:[#allocation98_spill] sm:$0xff]  ;;  %v14209_v42 = vld [vmem:[#allocation100_spill] sm:$0xff] }
 0xa74   :  { %3037 = vmatpush1.msra.mxu0 %v14192_v7  ;;  %3108 = vmatpush1.msra.mxu1 %v14193_v47  ;;  %v14210_v49 = vld [vmem:[#allocation95_spill] sm:$0xff]  ;;  %v14211_v0 = vld [vmem:[#allocation97_spill] sm:$0xff]  ;;  %v14212_v55 = vld [vmem:[#allocation94_spill] sm:$0xff] }
 0xa75   :  { %3038 = vmatprep.subr.mxu0 %v14194_v46  ;;  %3109 = vmatprep.subr.mxu1 %v14195_v6  ;;  %v14213_v43 = vld [vmem:[#allocation96_spill] sm:$0xff]  ;;  %v14214_v56 = vld [vmem:[#allocation91_spill] sm:$0xff]  ;;  %v14215_v48 = vld [vmem:[#allocation93_spill] sm:$0xff] }
 0xa76   :  { %3039 = vmatpush1.msra.mxu0 %v14196_v5  ;;  %3110 = vmatpush1.msra.mxu1 %v14197_v31  ;;  %v14216_v28 = vld [vmem:[#allocation90_spill] sm:$0xff]  ;;  %v14217_v8 = vld [vmem:[#allocation92_spill] sm:$0xff]  ;;  %v14218_v24 = vld [vmem:[#allocation87_spill] sm:$0xff] }
 0xa77   :  { %3040 = vmatprep.subr.mxu0 %v14198_v14  ;;  %3111 = vmatprep.subr.mxu1 %v14199_v20  ;;  %v14219_v21 = vld [vmem:[#allocation89_spill] sm:$0xff]  ;;  %v14220_v23 = vld [vmem:[#allocation86_spill] sm:$0xff]  ;;  %v14221_v25 = vld [vmem:[#allocation88_spill] sm:$0xff] }
 0xa78   :  { %3041 = vmatpush1.msra.mxu0 %v14200_v51  ;;  %3112 = vmatpush1.msra.mxu1 %v14201_v36  ;;  %v3020_v26 = vld [vmem:[#allocation2] sm:$0xff]  ;;  %v14222_v16 = vld [vmem:[#allocation83_spill] sm:$0xff]  ;;  %v14223_v34 = vld [vmem:[#allocation85_spill] sm:$0xff] }
 0xa79   :  { %3042 = vmatprep.subr.mxu0 %v14202_v41  ;;  %3113 = vmatprep.subr.mxu1 %v14203_v3  ;;  %v14224_v2 = vld [vmem:[#allocation82_spill] sm:$0xff]  ;;  %v14226_v9 = vld [vmem:[#allocation84_spill] sm:$0xff]  ;;  %v14227_v11 = vld [vmem:[#allocation79_spill] sm:$0xff] }
 0xa7a   :  { %3043 = vmatpush1.msra.mxu0 %v14204_v18  ;;  %3114 = vmatpush1.msra.mxu1 %v14205_v15  ;;  %v14228_v38 = vld [vmem:[#allocation81_spill] sm:$0xff]  ;;  %v14229_v35 = vld [vmem:[#allocation78_spill] sm:$0xff]  ;;  %v14230_v50 = vld [vmem:[#allocation80_spill] sm:$0xff] }
 0xa7b   :  { %3044 = vmatprep.subr.mxu0 %v14206_v58  ;;  %3115 = vmatprep.subr.mxu1 %v14207_v39  ;;  %v14231_v44 = vld [vmem:[#allocation75_spill] sm:$0xff]  ;;  %v14232_v1 = vld [vmem:[#allocation77_spill] sm:$0xff]  ;;  %v14233_v32 = vld [vmem:[#allocation74_spill] sm:$0xff] }
 0xa7c   :  { %3045 = vmatpush1.msra.mxu0 %v14208_v45  ;;  %3116 = vmatpush1.msra.mxu1 %v14209_v42  ;;  %v14234_v37 = vld [vmem:[#allocation76_spill] sm:$0xff]  ;;  %v14235_v33 = vld [vmem:[#allocation71_spill] sm:$0xff]  ;;  %v14236_v54 = vld [vmem:[#allocation73_spill] sm:$0xff] }
 0xa7d   :  { %3046 = vmatprep.subr.mxu0 %v14210_v49  ;;  %3117 = vmatprep.subr.mxu1 %v14211_v0  ;;  %v14237_v29 = vld [vmem:[#allocation70_spill] sm:$0xff]  ;;  %v14238_v30 = vld [vmem:[#allocation72_spill] sm:$0xff]  ;;  %v14239_v40 = vld [vmem:[#allocation67_spill] sm:$0xff] }
 0xa7e   :  { %3047 = vmatpush1.msra.mxu0 %v14212_v55  ;;  %3118 = vmatpush1.msra.mxu1 %v14213_v43  ;;  %v14240_v27 = vld [vmem:[#allocation69_spill] sm:$0xff]  ;;  %v14241_v53 = vld [vmem:[#allocation66_spill] sm:$0xff]  ;;  %v14242_v57 = vld [vmem:[#allocation68_spill] sm:$0xff] }
 0xa7f   :  { %3048 = vmatprep.subr.mxu0 %v14214_v56  ;;  %3119 = vmatprep.subr.mxu1 %v14215_v48  ;;  %v14243_v60 = vld [vmem:[#allocation63_spill] sm:$0xff]  ;;  %v14244_v61 = vld [vmem:[#allocation65_spill] sm:$0xff]  ;;  %v14245_v22 = vld [vmem:[#allocation62_spill] sm:$0xff] }
 0xa80   :  { %3049 = vmatpush1.msra.mxu0 %v14216_v28  ;;  %3120 = vmatpush1.msra.mxu1 %v14217_v8  ;;  %v14246_v63 = vld [vmem:[#allocation64_spill] sm:$0xff]  ;;  %v14247_v19 = vld [vmem:[#allocation59_spill] sm:$0xff]  ;;  %v14248_v13 = vld [vmem:[#allocation61_spill] sm:$0xff] }
 0xa81   :  { %3050 = vmatprep.subr.mxu0 %v14218_v24  ;;  %3121 = vmatprep.subr.mxu1 %v14219_v21  ;;  %v14249_v59 = vld [vmem:[#allocation58_spill] sm:$0xff]  ;;  %v14250_v62 = vld [vmem:[#allocation60_spill] sm:$0xff]  ;;  %v14251_v4 = vld [vmem:[#allocation55_spill] sm:$0xff] }
 0xa82   :  { %3051 = vmatpush1.msra.mxu0 %v14220_v23  ;;  %3122 = vmatpush1.msra.mxu1 %v14221_v25  ;;  %v14252_v17 = vld [vmem:[#allocation57_spill] sm:$0xff]  ;;  %v14253_v12 = vld [vmem:[#allocation54_spill] sm:$0xff]  ;;  %v14254_v52 = vld [vmem:[#allocation56_spill] sm:$0xff] }
 0xa83   :  { %3052 = vmatprep.subr.mxu0 %v14222_v16  ;;  %3123 = vmatprep.subr.mxu1 %v14223_v34  ;;  %v14255_v7 = vld [vmem:[#allocation51_spill] sm:$0xff]  ;;  %v14256_v47 = vld [vmem:[#allocation53_spill] sm:$0xff]  ;;  %v14257_v46 = vld [vmem:[#allocation50_spill] sm:$0xff] }
 0xa84   :  { %3053 = vmatpush1.msra.mxu0 %v14224_v2  ;;  %3086 = vmatprep.mubr.f32.mxu0 %v14225_v10  ;;  %v14258_v6 = vld [vmem:[#allocation52_spill] sm:$0xff]  ;;  %v14259_v5 = vld [vmem:[#allocation47_spill] sm:$0xff]  ;;  %v14260_v31 = vld [vmem:[#allocation49_spill] sm:$0xff] }
 0xa85   :  { %3124 = vmatpush1.msra.mxu1 %v14226_v9  ;;  %3087 = vmatmul.mubr.f32.vlgmr.msra.gmra.mxu0 %v3020_v26  ;;  %v14261_v14 = vld [vmem:[#allocation46_spill] sm:$0xff]  ;;  %v14262_v20 = vld [vmem:[#allocation48_spill] sm:$0xff]  ;;  %v14263_v51 = vld [vmem:[#allocation43_spill] sm:$0xff] }
 0xa86   :  { %3157 = vmatprep.mubr.f32.mxu1 %v14225_v10  ;;  %3164 = vmatprep.subr.mxu0 %v14227_v11  ;;  %v14264_v36 = vld [vmem:[#allocation45_spill] sm:$0xff]  ;;  %v14265_v41 = vld [vmem:[#allocation42_spill] sm:$0xff]  ;;  %v14266_v3 = vld [vmem:[#allocation44_spill] sm:$0xff] }
 0xa87   :  { %3235 = vmatprep.subr.mxu1 %v14228_v38  ;;  %3158 = vmatmul.mubr.f32.vlgmr.msra.gmra.mxu1 %v3020_v26  ;;  %v14267_v18 = vld [vmem:[#allocation39_spill] sm:$0xff]  ;;  %v14268_v15 = vld [vmem:[#allocation41_spill] sm:$0xff]  ;;  %v14269_v58 = vld [vmem:[#allocation38_spill] sm:$0xff] }
 0xa88   :  { %3165 = vmatpush1.msra.mxu0 %v14229_v35  ;;  %3236 = vmatpush1.msra.mxu1 %v14230_v50  ;;  %v14270_v39 = vld [vmem:[#allocation40_spill] sm:$0xff]  ;;  %v14271_v45 = vld [vmem:[#allocation35_spill] sm:$0xff]  ;;  %v14272_v42 = vld [vmem:[#allocation37_spill] sm:$0xff] }
 0xa89   :  { %3166 = vmatprep.subr.mxu0 %v14231_v44  ;;  %3237 = vmatprep.subr.mxu1 %v14232_v1  ;;  %v14273_v49 = vld [vmem:[#allocation34_spill] sm:$0xff]  ;;  %v14274_v0 = vld [vmem:[#allocation36_spill] sm:$0xff]  ;;  %v14275_v55 = vld [vmem:[#allocation31_spill] sm:$0xff] }
 0xa8a   :  { %3167 = vmatpush1.msra.mxu0 %v14233_v32  ;;  %3238 = vmatpush1.msra.mxu1 %v14234_v37  ;;  %v14276_v43 = vld [vmem:[#allocation33_spill] sm:$0xff]  ;;  %v14277_v56 = vld [vmem:[#allocation30_spill] sm:$0xff]  ;;  %v14278_v48 = vld [vmem:[#allocation32_spill] sm:$0xff] }
 0xa8b   :  { %3168 = vmatprep.subr.mxu0 %v14235_v33  ;;  %3239 = vmatprep.subr.mxu1 %v14236_v54  ;;  %v14279_v28 = vld [vmem:[#allocation27_spill] sm:$0xff]  ;;  %v14280_v8 = vld [vmem:[#allocation29_spill] sm:$0xff]  ;;  %v14281_v24 = vld [vmem:[#allocation26_spill] sm:$0xff] }
 0xa8c   :  { %3169 = vmatpush1.msra.mxu0 %v14237_v29  ;;  %3240 = vmatpush1.msra.mxu1 %v14238_v30  ;;  %v14282_v21 = vld [vmem:[#allocation28_spill] sm:$0xff]  ;;  %v14283_v23 = vld [vmem:[#allocation23_spill] sm:$0xff]  ;;  %v14284_v25 = vld [vmem:[#allocation25_spill] sm:$0xff] }
 0xa8d   :  { %3170 = vmatprep.subr.mxu0 %v14239_v40  ;;  %3241 = vmatprep.subr.mxu1 %v14240_v27  ;;  %v14285_v26 = vld [vmem:[#allocation22_spill] sm:$0xff]  ;;  %v14286_v16 = vld [vmem:[#allocation24_spill] sm:$0xff]  ;;  %v14287_v34 = vld [vmem:[#allocation19_spill] sm:$0xff] }
 0xa8e   :  { %3171 = vmatpush1.msra.mxu0 %v14241_v53  ;;  %3242 = vmatpush1.msra.mxu1 %v14242_v57  ;;  %v14288_v2 = vld [vmem:[#allocation21_spill] sm:$0xff]  ;;  %v14289_v11 = vld [vmem:[#allocation18_spill] sm:$0xff]  ;;  %v14290_v38 = vld [vmem:[#allocation20_spill] sm:$0xff] }
 0xa8f   :  { %3172 = vmatprep.subr.mxu0 %v14243_v60  ;;  %3243 = vmatprep.subr.mxu1 %v14244_v61  ;;  %v3019_v9 = vld [vmem:[#allocation5] sm:$0xff]  ;;  %v14291_v35 = vld [vmem:[#allocation162_spill] sm:$0xff]  ;;  %v14293_v44 = vld [vmem:[#allocation160_spill] sm:$0xff] }
 0xa90   :  { %3173 = vmatpush1.msra.mxu0 %v14245_v22  ;;  %3244 = vmatpush1.msra.mxu1 %v14246_v63  ;;  %v14292_v50 = vld [vmem:[#allocation161_spill] sm:$0xff]  ;;  %v14294_v1 = vld [vmem:[#allocation159_spill] sm:$0xff]  ;;  %v14295_v32 = vld [vmem:[#allocation158_spill] sm:$0xff] }
 0xa91   :  { %3174 = vmatprep.subr.mxu0 %v14247_v19  ;;  %3245 = vmatprep.subr.mxu1 %v14248_v13  ;;  %v14296_v37 = vld [vmem:[#allocation157_spill] sm:$0xff]  ;;  %v14297_v33 = vld [vmem:[#allocation156_spill] sm:$0xff]  ;;  %v14298_v54 = vld [vmem:[#allocation155_spill] sm:$0xff] }
 0xa92   :  { %3175 = vmatpush1.msra.mxu0 %v14249_v59  ;;  %3246 = vmatpush1.msra.mxu1 %v14250_v62  ;;  %v14299_v29 = vld [vmem:[#allocation154_spill] sm:$0xff]  ;;  %v14300_v30 = vld [vmem:[#allocation153_spill] sm:$0xff]  ;;  %v14301_v40 = vld [vmem:[#allocation152_spill] sm:$0xff] }
 0xa93   :  { %3176 = vmatprep.subr.mxu0 %v14251_v4  ;;  %3247 = vmatprep.subr.mxu1 %v14252_v17  ;;  %v14302_v27 = vld [vmem:[#allocation151_spill] sm:$0xff]  ;;  %v14303_v53 = vld [vmem:[#allocation150_spill] sm:$0xff]  ;;  %v14304_v57 = vld [vmem:[#allocation149_spill] sm:$0xff] }
 0xa94   :  { %3177 = vmatpush1.msra.mxu0 %v14253_v12  ;;  %3248 = vmatpush1.msra.mxu1 %v14254_v52  ;;  %v14305_v60 = vld [vmem:[#allocation148_spill] sm:$0xff]  ;;  %v14306_v61 = vld [vmem:[#allocation147_spill] sm:$0xff]  ;;  %v14307_v13 = vld [vmem:[#allocation250_spill] sm:$0xff] }
 0xa95   :  { %3178 = vmatprep.subr.mxu0 %v14255_v7  ;;  %3249 = vmatprep.subr.mxu1 %v14256_v47  ;;  %v14308_v59 = vsub.s32 0, %v14307_v13  ;;  %v14309_v62 = vld [vmem:[#allocation146_spill] sm:$0xff]  ;;  %v14310_v7 = vsub.s32 1, %v14307_v13 }
 0xa96   :  { %3179 = vmatpush1.msra.mxu0 %v14257_v46  ;;  %3250 = vmatpush1.msra.mxu1 %v14258_v6 }
 0xa97   :  { %3180 = vmatprep.subr.mxu0 %v14259_v5  ;;  %3251 = vmatprep.subr.mxu1 %v14260_v31  ;;  %v11622_v4 = vrot.slane %v14309_v62, %v14308_v59  ;;  %v11627_v47 = vrot.slane %v14309_v62, %v14310_v7 }
 0xa98   :  { %3181 = vmatpush1.msra.mxu0 %v14261_v14  ;;  %3252 = vmatpush1.msra.mxu1 %v14262_v20 }
 0xa99   :  { %3182 = vmatprep.subr.mxu0 %v14263_v51  ;;  %3253 = vmatprep.subr.mxu1 %v14264_v36 }
 0xa9a   :  { %3183 = vmatpush1.msra.mxu0 %v14265_v41  ;;  %3254 = vmatpush1.msra.mxu1 %v14266_v3  ;;  %v14311_v3 = vsub.s32 3, %v14307_v13 }
 0xa9b   :  { %3184 = vmatprep.subr.mxu0 %v14267_v18  ;;  %3255 = vmatprep.subr.mxu1 %v14268_v15 }
 0xa9c   :  { %3185 = vmatpush1.msra.mxu0 %v14269_v58  ;;  %3256 = vmatpush1.msra.mxu1 %v14270_v39  ;;  %v11634_v18 = vrot.slane %v14309_v62, %v14311_v3  ;;  %v14312_v39 = vsub.s32 2, %v14307_v13 }
 0xa9d   :  { %3186 = vmatprep.subr.mxu0 %v14271_v45  ;;  %3257 = vmatprep.subr.mxu1 %v14272_v42 }
 0xa9e   :  { %3187 = vmatpush1.msra.mxu0 %v14273_v49  ;;  %3258 = vmatpush1.msra.mxu1 %v14274_v0  ;;  %v11640_v45 = vrot.slane %v14309_v62, %v14312_v39 }
 0xa9f   :  { %3188 = vmatprep.subr.mxu0 %v14275_v55  ;;  %3259 = vmatprep.subr.mxu1 %v14276_v43 }
 0xaa0   :  { %3189 = vmatpush1.msra.mxu0 %v14277_v56  ;;  %3260 = vmatpush1.msra.mxu1 %v14278_v48 }
 0xaa1   :  { %3190 = vmatprep.subr.mxu0 %v14279_v28  ;;  %3261 = vmatprep.subr.mxu1 %v14280_v8  ;;  %v3021_v8 = vld [vmem:[#allocation3] sm:$0xff] }
 0xaa2   :  { %3191 = vmatpush1.msra.mxu0 %v14281_v24  ;;  %3262 = vmatpush1.msra.mxu1 %v14282_v21 }
 0xaa3   :  { %3192 = vmatprep.subr.mxu0 %v14283_v23  ;;  %3263 = vmatprep.subr.mxu1 %v14284_v25 }
 0xaa4   :  { %3193 = vmatpush1.msra.mxu0 %v14285_v26  ;;  %3264 = vmatpush1.msra.mxu1 %v14286_v16 }
 0xaa5   :  { %3194 = vmatprep.subr.mxu0 %v14287_v34  ;;  %3265 = vmatprep.subr.mxu1 %v14288_v2 }
 0xaa6   :  { %3195 = vmatpush1.msra.mxu0 %v14289_v11  ;;  %3228 = vmatprep.mubr.f32.mxu0 %v14225_v10 }
 0xaa7   :  { %3266 = vmatpush1.msra.mxu1 %v14290_v38  ;;  %3299 = vmatprep.mubr.f32.mxu1 %v14225_v10  ;;  %v14313_v38 = vld [vmem:[#allocation163_spill] sm:$0xff] }
 0xaa8   :  { %3229 = vmatmul.mubr.f32.vlgmr.msra.gmra.mxu0 %v3019_v9  ;;  %3300 = vmatmul.mubr.f32.vlgmr.msra.gmra.mxu1 %v3019_v9 }
 0xaa9   :  { %6802 = vmatprep.subr.mxu0 %v14225_v10  ;;  %6834 = vmatprep.mubr.msk.f32.mxu0 %vm7868_vm1, %v14225_v10 }
 0xaaa   :  { %6803 = vmatpush3.msra.mxu0 %v14291_v35 }
 0xaab   :  { %6804 = vmatprep.subr.mxu0 %v14225_v10 }
 0xaac   :  { %6805 = vmatpush3.msra.mxu0 %v14292_v50 }
 0xaad   :  { %6806 = vmatprep.subr.mxu0 %v14225_v10 }
 0xaae   :  { %6807 = vmatpush3.msra.mxu0 %v14293_v44 }
 0xaaf   :  { %6808 = vmatprep.subr.mxu0 %v14225_v10 }
 0xab0   :  { %6809 = vmatpush3.msra.mxu0 %v14294_v1  ;;  %v14314_v1 = vld [vmem:[#allocation249_spill] sm:$0xff] }
 0xab1   :  { %6810 = vmatprep.subr.mxu0 %v14225_v10 }
 0xab2   :  { %6811 = vmatpush3.msra.mxu0 %v14295_v32 }
 0xab3   :  { %6812 = vmatprep.subr.mxu0 %v14225_v10 }
 0xab4   :  { %6813 = vmatpush3.msra.mxu0 %v14296_v37 }
 0xab5   :  { %6814 = vmatprep.subr.mxu0 %v14225_v10 }
 0xab6   :  { %6815 = vmatpush3.msra.mxu0 %v14297_v33 }
 0xab7   :  { %6816 = vmatprep.subr.mxu0 %v14225_v10 }
 0xab8   :  { %6817 = vmatpush3.msra.mxu0 %v14298_v54 }
 0xab9   :  { %6818 = vmatprep.subr.mxu0 %v14225_v10 }
 0xaba   :  { %6819 = vmatpush3.msra.mxu0 %v14299_v29 }
 0xabb   :  { %6820 = vmatprep.subr.mxu0 %v14225_v10 }
 0xabc   :  { %6821 = vmatpush3.msra.mxu0 %v14300_v30 }
 0xabd   :  { %6822 = vmatprep.subr.mxu0 %v14225_v10 }
 0xabe   :  { %6823 = vmatpush3.msra.mxu0 %v14301_v40 }
 0xabf   :  { %6824 = vmatprep.subr.mxu0 %v14225_v10 }
 0xac0   :  { %6825 = vmatpush3.msra.mxu0 %v14302_v27 }
 0xac1   :  { %6826 = vmatprep.subr.mxu0 %v14225_v10 }
 0xac2   :  { %6827 = vmatpush3.msra.mxu0 %v14303_v53 }
 0xac3   :  { %6828 = vmatprep.subr.mxu0 %v14225_v10 }
 0xac4   :  { %6829 = vmatpush3.msra.mxu0 %v14304_v57 }
 0xac5   :  { %6830 = vmatprep.subr.mxu0 %v14225_v10 }
 0xac6   :  { %6831 = vmatpush3.msra.mxu0 %v14305_v60 }
 0xac7   :  { %6832 = vmatprep.subr.mxu0 %v14225_v10 }
 0xac8   :  { %6833 = vmatpush3.msra.mxu0 %v14306_v61 }
 0xb45   :  { %v3088_v22 = vpop.f32.mrf.mxu0 }
 0xb47   :  { %v3159_v63 = vpop.f32.mrf.mxu1  ;;  %v3090_v19 = vpop.f32.mrf.mxu0 }
 0xb49   :  { %v3161_v12 = vpop.f32.mrf.mxu1 }
 0xb68   :  { %v3230_v17 = vpop.f32.mrf.mxu0  ;;  %v3301_v5 = vpop.f32.mrf.mxu1 }
 0xb69   :  { %v3231_v52 = vadd.f32 %v3230_v17, %v3088_v22  ;;  %v3302_v58 = vadd.f32 %v3301_v5, %v3159_v63 }
 0xb6a   :  { %v3232_v46 = vpop.f32.mrf.mxu0  ;;  %v3303_v36 = vpop.f32.mrf.mxu1 }
 0xb6b   :  { %v3327_v6 = vadd.f32 %v11622_v4, %v3231_v52  ;;  %v3233_v31 = vadd.f32 %v3232_v46, %v3090_v19  ;;  %v3304_v41 = vadd.f32 %v3303_v36, %v3161_v12  ;;  %v3329_v0 = vadd.f32 %v11640_v45, %v3302_v58 }
 0xb6d   :  { %v6483_v14 = vmul.f32 -1.442695, %v3327_v6  ;;  %v3328_v20 = vadd.f32 %v11627_v47, %v3233_v31  ;;  %v3330_v15 = vadd.f32 %v11634_v18, %v3304_v41 }
 0xb6f   :  { %7668 = vpow2.f32 %v6483_v14  ;;  %v6484_v51 = vmul.f32 -1.442695, %v3328_v20  ;;  %v6485_v42 = vmul.f32 -1.442695, %v3330_v15 }
 0xb71   :  { %7670 = vpow2.f32 %v6484_v51 }
 0xb72   :  { %7672 = vpow2.f32 %v6485_v42 }
 0xb7c   :  { %v7669_v49 = vpop.eup %7668 }
 0xb7d   :  { %v3334_v55 = vadd.f32 1.0, %v7669_v49 }
 0xb7e   :  { %v7671_v43 = vpop.eup %7670 }
 0xb7f   :  { %7674 = vrcp.f32 %v3334_v55  ;;  %v3340_v56 = vadd.f32 1.0, %v7671_v43  ;;  %v7673_v48 = vpop.eup %7672 }
 0xb80   :  { %7676 = vtanh.f32 %v3329_v0  ;;  %v3347_v23 = vadd.f32 1.0, %v7673_v48 }
 0xb81   :  { %7678 = vrcp.f32 %v3340_v56 }
 0xb82   :  { %7680 = vrcp.f32 %v3347_v23 }
 0xb8c   :  { %v7675_v28 = vpop.eup %7674 }
 0xb8d   :  { %v7677_v24 = vpop.eup %7676 }
 0xb8e   :  { %v7679_v21 = vpop.eup %7678  ;;  %v3351_v25 = vmul.f32 %v7677_v24, %v7675_v28 }
 0xb8f   :  { %v3350_v26 = vmul.f32 %v7679_v21, %v3021_v8  ;;  %v7681_v34 = vpop.eup %7680 }
 0xb91   :  { %v3352_v16 = vadd.f32 %v3351_v25, %v3350_v26 }
 0xb93   :  { %3443 = vst [vmem:[#allocation3] sm:$0xff] %v3352_v16  ;;  %7682 = vtanh.f32 %v3352_v16 }
 0xba0   :  { %v7683_v2 = vpop.eup %7682 }
 0xba1   :  { %v3354_v9 = vmul.f32 %v7683_v2, %v7681_v34 }
 0xba3   :  { %6835 = vmatmul.mubr.f32.vlgmr.msra.gmra.mxu0 %v3354_v9  ;;  %3442 = vst [vmem:[#allocation2] sm:$0xff] %v3354_v9 }
 0xc63   :  { %v3427_v11 = vpop.f32.mrf.mxu0 }
 0xc64   :  { %v3428_v35 = vadd.f32 %v14313_v38, %v3427_v11 }
 0xc65   :  { %v6836_v50 = vpop.f32.mrf.mxu0 }
 0xc66   :  { %3432 = vst [vmem:[#allocation13 + $0x8] sm:$0xff] %v3428_v35  ;;  %3433 = vmax.xlane.f32.xlu0 %v3428_v35 }
 0xcef   :  { %v3434_v44 = vpop.xlane.xlu0 %3433 }
 0xcf0   :  { %vm3435_vm2 = vcmp.eq.f32.partialorder %v3428_v35, %v3434_v44 }
 0xcf1   :  { %v3436_v32 = vsel %vm3435_vm2, %v14314_v1, 128.0 }
 0xcf2   :  { %3437 = vmin.xlane.f32.xlu0 %v3436_v32 }
 0xd7a   :  { %3448 = sbr.rel (%p6488_p3) target bundleno = 3457 (0xd81), region = 65 }
 0xd7b   :  { %v3438_v37 = vpop.xlane.xlu0 %3437 }
 0xd7c   :  { %vm3439_vm3 = vcmp.eq.f32.partialorder %v14314_v1, %v3438_v37 }
 0xd7d   :  { %v3440_v33 = vsel %vm3439_vm3, 1.0, %v14225_v10 }
 0xd7e   :  { %3441 = vst [vmem:[#allocation4] sm:$0xff] %v3440_v33 }
 0xd7f   :  { %v6489_v54 = vld [vmem:[%s13002_s2 + $0x8] sm:$0xff] }
 0xd80   :  { %3451 = vst [vmem:[#allocation5] sm:$0xff] %v6489_v54 }
 0xd81 PF:  { %p6490_p4 = scmp.ne.s32.totalorder %s6487_s16, 0 }
 0xd83   :  { %3455 = sbr.rel (%p6490_p4) target bundleno = 3692 (0xe6c), region = 69 }
 0xd88   :  { %v3472_v29 = vld [vmem:[%s13009_s9 + $0x78] sm:$0xff]  ;;  %v7869_v30 = vmov 0.0   ;;  %v3471_v10 = vld [vmem:[%s13009_s9 + $0x70] sm:$0xff]  ;;  %vm7870_vm4 = vmmov 0   ;;  %v3470_v40 = vld [vmem:[%s13009_s9 + $0x68] sm:$0xff] }
 0xd89   :  { %6837 = vmatprep.subr.mxu0 %v7869_v30  ;;  %6869 = vmatprep.mubr.msk.f32.mxu0 %vm7870_vm4, %v7869_v30  ;;  %v3469_v27 = vld [vmem:[%s13009_s9 + $0x60] sm:$0xff]  ;;  %v3468_v53 = vld [vmem:[%s13009_s9 + $0x58] sm:$0xff]  ;;  %v3467_v57 = vld [vmem:[%s13009_s9 + $0x50] sm:$0xff] }
 0xd8a   :  { %6838 = vmatpush3.msra.mxu0 %v3472_v29  ;;  %v3466_v60 = vld [vmem:[%s13009_s9 + $0x48] sm:$0xff]  ;;  %v3465_v61 = vld [vmem:[%s13009_s9 + $0x40] sm:$0xff]  ;;  %v3464_v22 = vld [vmem:[%s13009_s9 + $0x38] sm:$0xff] }
 0xd8b   :  { %6839 = vmatprep.subr.mxu0 %v7869_v30  ;;  %v3463_v63 = vld [vmem:[%s13009_s9 + $0x30] sm:$0xff]  ;;  %v3462_v19 = vld [vmem:[%s13009_s9 + $0x28] sm:$0xff]  ;;  %v3461_v13 = vld [vmem:[%s13009_s9 + $0x20] sm:$0xff] }
 0xd8c   :  { %6840 = vmatpush3.msra.mxu0 %v3471_v10  ;;  %v3460_v59 = vld [vmem:[%s13009_s9 + $0x18] sm:$0xff]  ;;  %v3459_v62 = vld [vmem:[%s13009_s9 + $0x10] sm:$0xff]  ;;  %v3458_v17 = vld [vmem:[%s13009_s9 + $0x8] sm:$0xff] }
 0xd8d   :  { %6841 = vmatprep.subr.mxu0 %v7869_v30  ;;  %v3457_v12 = vld [vmem:[%s13009_s9] sm:$0xff]  ;;  %v3456_v52 = vld [vmem:[#allocation4] sm:$0xff] }
 0xd8e   :  { %6842 = vmatpush3.msra.mxu0 %v3470_v40 }
 0xd8f   :  { %6843 = vmatprep.subr.mxu0 %v7869_v30 }
 0xd90   :  { %6844 = vmatpush3.msra.mxu0 %v3469_v27 }
 0xd91   :  { %6845 = vmatprep.subr.mxu0 %v7869_v30 }
 0xd92   :  { %6846 = vmatpush3.msra.mxu0 %v3468_v53 }
 0xd93   :  { %6847 = vmatprep.subr.mxu0 %v7869_v30 }
 0xd94   :  { %6848 = vmatpush3.msra.mxu0 %v3467_v57 }
 0xd95   :  { %6849 = vmatprep.subr.mxu0 %v7869_v30 }
 0xd96   :  { %6850 = vmatpush3.msra.mxu0 %v3466_v60 }
 0xd97   :  { %6851 = vmatprep.subr.mxu0 %v7869_v30 }
 0xd98   :  { %6852 = vmatpush3.msra.mxu0 %v3465_v61 }
 0xd99   :  { %6853 = vmatprep.subr.mxu0 %v7869_v30 }
 0xd9a   :  { %6854 = vmatpush3.msra.mxu0 %v3464_v22 }
 0xd9b   :  { %6855 = vmatprep.subr.mxu0 %v7869_v30 }
 0xd9c   :  { %6856 = vmatpush3.msra.mxu0 %v3463_v63 }
 0xd9d   :  { %6857 = vmatprep.subr.mxu0 %v7869_v30 }
 0xd9e   :  { %6858 = vmatpush3.msra.mxu0 %v3462_v19 }
 0xd9f   :  { %6859 = vmatprep.subr.mxu0 %v7869_v30 }
 0xda0   :  { %6860 = vmatpush3.msra.mxu0 %v3461_v13 }
 0xda1   :  { %6861 = vmatprep.subr.mxu0 %v7869_v30 }
 0xda2   :  { %6862 = vmatpush3.msra.mxu0 %v3460_v59 }
 0xda3   :  { %6863 = vmatprep.subr.mxu0 %v7869_v30 }
 0xda4   :  { %6864 = vmatpush3.msra.mxu0 %v3459_v62 }
 0xda5   :  { %6865 = vmatprep.subr.mxu0 %v7869_v30 }
 0xda6   :  { %6866 = vmatpush3.msra.mxu0 %v3458_v17 }
 0xda7   :  { %6867 = vmatprep.subr.mxu0 %v7869_v30 }
 0xda8   :  { %6868 = vmatpush3.msra.mxu0 %v3457_v12 }
 0xda9   :  { %6870 = vmatmul.mubr.f32.vlgmr.msra.gmra.mxu0 %v3456_v52 }
 0xe69   :  { %v3539_v7 = vpop.f32.mrf.mxu0 }
 0xe6a   :  { %3543 = vst [vmem:[#allocation5] sm:$0xff] %v3539_v7 }
 0xe6b   :  { %v6871_v46 = vpop.f32.mrf.mxu0 }
 0xe6c PF:  { %v14315_v6 = vld [vmem:[#allocation143_spill] sm:$0xff]  ;;  %v14316_v5 = vld [vmem:[#allocation145_spill] sm:$0xff]  ;;  %v14317_v31 = vld [vmem:[#allocation142_spill] sm:$0xff]  ;;  %s6494_s7 = sld [smem:[#allocation7 + $0x2]] }
 0xe6d   :  { %3547 = vmatprep.subr.mxu0 %v14315_v6  ;;  %3618 = vmatprep.subr.mxu1 %v14316_v5  ;;  %v14318_v14 = vld [vmem:[#allocation144_spill] sm:$0xff]  ;;  %v14319_v20 = vld [vmem:[#allocation139_spill] sm:$0xff]  ;;  %v14320_v51 = vld [vmem:[#allocation141_spill] sm:$0xff] }
 0xe6e   :  { %3548 = vmatpush1.msra.mxu0 %v14317_v31  ;;  %3619 = vmatpush1.msra.mxu1 %v14318_v14  ;;  %v14321_v36 = vld [vmem:[#allocation138_spill] sm:$0xff]  ;;  %v14322_v41 = vld [vmem:[#allocation140_spill] sm:$0xff]  ;;  %v14323_v3 = vld [vmem:[#allocation135_spill] sm:$0xff] }
 0xe6f   :  { %3549 = vmatprep.subr.mxu0 %v14319_v20  ;;  %3620 = vmatprep.subr.mxu1 %v14320_v51  ;;  %v14324_v15 = vld [vmem:[#allocation137_spill] sm:$0xff]  ;;  %v14325_v58 = vld [vmem:[#allocation134_spill] sm:$0xff]  ;;  %v14326_v39 = vld [vmem:[#allocation136_spill] sm:$0xff]  ;;  %v14378_v20 = vmov 0.0  }
 0xe70   :  { %3550 = vmatpush1.msra.mxu0 %v14321_v36  ;;  %3621 = vmatpush1.msra.mxu1 %v14322_v41  ;;  %v14327_v42 = vld [vmem:[#allocation131_spill] sm:$0xff]  ;;  %v14328_v49 = vld [vmem:[#allocation133_spill] sm:$0xff]  ;;  %v14329_v0 = vld [vmem:[#allocation130_spill] sm:$0xff] }
 0xe71   :  { %3551 = vmatprep.subr.mxu0 %v14323_v3  ;;  %3622 = vmatprep.subr.mxu1 %v14324_v15  ;;  %v14330_v55 = vld [vmem:[#allocation132_spill] sm:$0xff]  ;;  %v14331_v43 = vld [vmem:[#allocation127_spill] sm:$0xff]  ;;  %v14332_v56 = vld [vmem:[#allocation129_spill] sm:$0xff] }
 0xe72   :  { %3552 = vmatpush1.msra.mxu0 %v14325_v58  ;;  %3623 = vmatpush1.msra.mxu1 %v14326_v39  ;;  %v14333_v48 = vld [vmem:[#allocation126_spill] sm:$0xff]  ;;  %v14334_v28 = vld [vmem:[#allocation128_spill] sm:$0xff]  ;;  %v14335_v8 = vld [vmem:[#allocation123_spill] sm:$0xff]  ;;  %p6495_p5 = scmp.le.s32.totalorder %s6494_s7, 0 }
 0xe73   :  { %3553 = vmatprep.subr.mxu0 %v14327_v42  ;;  %3624 = vmatprep.subr.mxu1 %v14328_v49  ;;  %v14336_v24 = vld [vmem:[#allocation125_spill] sm:$0xff]  ;;  %v14337_v21 = vld [vmem:[#allocation122_spill] sm:$0xff]  ;;  %v14338_v23 = vld [vmem:[#allocation124_spill] sm:$0xff] }
 0xe74   :  { %3554 = vmatpush1.msra.mxu0 %v14329_v0  ;;  %3625 = vmatpush1.msra.mxu1 %v14330_v55  ;;  %v14339_v25 = vld [vmem:[#allocation119_spill] sm:$0xff]  ;;  %v14340_v26 = vld [vmem:[#allocation121_spill] sm:$0xff]  ;;  %v14341_v16 = vld [vmem:[#allocation118_spill] sm:$0xff] }
 0xe75   :  { %3555 = vmatprep.subr.mxu0 %v14331_v43  ;;  %3626 = vmatprep.subr.mxu1 %v14332_v56  ;;  %v14342_v34 = vld [vmem:[#allocation120_spill] sm:$0xff]  ;;  %v14343_v2 = vld [vmem:[#allocation115_spill] sm:$0xff]  ;;  %v14344_v9 = vld [vmem:[#allocation117_spill] sm:$0xff] }
 0xe76   :  { %3556 = vmatpush1.msra.mxu0 %v14333_v48  ;;  %3627 = vmatpush1.msra.mxu1 %v14334_v28  ;;  %v14345_v11 = vld [vmem:[#allocation114_spill] sm:$0xff]  ;;  %v14346_v38 = vld [vmem:[#allocation116_spill] sm:$0xff]  ;;  %v14347_v35 = vld [vmem:[#allocation111_spill] sm:$0xff] }
 0xe77   :  { %3557 = vmatprep.subr.mxu0 %v14335_v8  ;;  %3628 = vmatprep.subr.mxu1 %v14336_v24  ;;  %v14348_v50 = vld [vmem:[#allocation113_spill] sm:$0xff]  ;;  %v14349_v44 = vld [vmem:[#allocation110_spill] sm:$0xff]  ;;  %v14350_v1 = vld [vmem:[#allocation112_spill] sm:$0xff] }
 0xe78   :  { %3558 = vmatpush1.msra.mxu0 %v14337_v21  ;;  %3629 = vmatpush1.msra.mxu1 %v14338_v23  ;;  %v14351_v32 = vld [vmem:[#allocation107_spill] sm:$0xff]  ;;  %v14352_v37 = vld [vmem:[#allocation109_spill] sm:$0xff]  ;;  %v14353_v33 = vld [vmem:[#allocation106_spill] sm:$0xff] }
 0xe79   :  { %3559 = vmatprep.subr.mxu0 %v14339_v25  ;;  %3630 = vmatprep.subr.mxu1 %v14340_v26  ;;  %v14354_v54 = vld [vmem:[#allocation108_spill] sm:$0xff]  ;;  %v14355_v29 = vld [vmem:[#allocation103_spill] sm:$0xff]  ;;  %v14356_v30 = vld [vmem:[#allocation105_spill] sm:$0xff] }
 0xe7a   :  { %3560 = vmatpush1.msra.mxu0 %v14341_v16  ;;  %3631 = vmatpush1.msra.mxu1 %v14342_v34  ;;  %v14357_v10 = vld [vmem:[#allocation102_spill] sm:$0xff]  ;;  %v14358_v40 = vld [vmem:[#allocation104_spill] sm:$0xff]  ;;  %v14359_v27 = vld [vmem:[#allocation99_spill] sm:$0xff] }
 0xe7b   :  { %3561 = vmatprep.subr.mxu0 %v14343_v2  ;;  %3632 = vmatprep.subr.mxu1 %v14344_v9  ;;  %v14360_v53 = vld [vmem:[#allocation101_spill] sm:$0xff]  ;;  %v14361_v57 = vld [vmem:[#allocation98_spill] sm:$0xff]  ;;  %v14362_v60 = vld [vmem:[#allocation100_spill] sm:$0xff] }
 0xe7c   :  { %3562 = vmatpush1.msra.mxu0 %v14345_v11  ;;  %3633 = vmatpush1.msra.mxu1 %v14346_v38  ;;  %v14363_v61 = vld [vmem:[#allocation95_spill] sm:$0xff]  ;;  %v14364_v22 = vld [vmem:[#allocation97_spill] sm:$0xff]  ;;  %v14365_v63 = vld [vmem:[#allocation94_spill] sm:$0xff] }
 0xe7d   :  { %3563 = vmatprep.subr.mxu0 %v14347_v35  ;;  %3634 = vmatprep.subr.mxu1 %v14348_v50  ;;  %v14366_v19 = vld [vmem:[#allocation96_spill] sm:$0xff]  ;;  %v14367_v13 = vld [vmem:[#allocation91_spill] sm:$0xff]  ;;  %v14368_v59 = vld [vmem:[#allocation93_spill] sm:$0xff] }
 0xe7e   :  { %3564 = vmatpush1.msra.mxu0 %v14349_v44  ;;  %3635 = vmatpush1.msra.mxu1 %v14350_v1  ;;  %v14369_v62 = vld [vmem:[#allocation90_spill] sm:$0xff]  ;;  %v14370_v17 = vld [vmem:[#allocation92_spill] sm:$0xff]  ;;  %v14371_v12 = vld [vmem:[#allocation87_spill] sm:$0xff] }
 0xe7f   :  { %3565 = vmatprep.subr.mxu0 %v14351_v32  ;;  %3636 = vmatprep.subr.mxu1 %v14352_v37  ;;  %v14372_v52 = vld [vmem:[#allocation89_spill] sm:$0xff]  ;;  %v14373_v7 = vld [vmem:[#allocation86_spill] sm:$0xff]  ;;  %v14374_v46 = vld [vmem:[#allocation88_spill] sm:$0xff] }
 0xe80   :  { %3566 = vmatpush1.msra.mxu0 %v14353_v33  ;;  %3637 = vmatpush1.msra.mxu1 %v14354_v54  ;;  %v3545_v6 = vld [vmem:[#allocation2] sm:$0xff]  ;;  %v14375_v5 = vld [vmem:[#allocation83_spill] sm:$0xff]  ;;  %v14376_v31 = vld [vmem:[#allocation85_spill] sm:$0xff] }
 0xe81   :  { %3567 = vmatprep.subr.mxu0 %v14355_v29  ;;  %3638 = vmatprep.subr.mxu1 %v14356_v30  ;;  %v14377_v14 = vld [vmem:[#allocation82_spill] sm:$0xff]  ;;  %v14379_v51 = vld [vmem:[#allocation84_spill] sm:$0xff]  ;;  %v14380_v36 = vld [vmem:[#allocation79_spill] sm:$0xff] }
 0xe82   :  { %3568 = vmatpush1.msra.mxu0 %v14357_v10  ;;  %3639 = vmatpush1.msra.mxu1 %v14358_v40  ;;  %v14381_v41 = vld [vmem:[#allocation81_spill] sm:$0xff]  ;;  %v14382_v3 = vld [vmem:[#allocation78_spill] sm:$0xff]  ;;  %v14383_v15 = vld [vmem:[#allocation80_spill] sm:$0xff] }
 0xe83   :  { %3569 = vmatprep.subr.mxu0 %v14359_v27  ;;  %3640 = vmatprep.subr.mxu1 %v14360_v53  ;;  %v14384_v58 = vld [vmem:[#allocation75_spill] sm:$0xff]  ;;  %v14385_v39 = vld [vmem:[#allocation77_spill] sm:$0xff]  ;;  %v14386_v42 = vld [vmem:[#allocation74_spill] sm:$0xff] }
 0xe84   :  { %3570 = vmatpush1.msra.mxu0 %v14361_v57  ;;  %3641 = vmatpush1.msra.mxu1 %v14362_v60  ;;  %v14387_v49 = vld [vmem:[#allocation76_spill] sm:$0xff]  ;;  %v14388_v0 = vld [vmem:[#allocation71_spill] sm:$0xff]  ;;  %v14389_v55 = vld [vmem:[#allocation73_spill] sm:$0xff] }
 0xe85   :  { %3571 = vmatprep.subr.mxu0 %v14363_v61  ;;  %3642 = vmatprep.subr.mxu1 %v14364_v22  ;;  %v14390_v43 = vld [vmem:[#allocation70_spill] sm:$0xff]  ;;  %v14391_v56 = vld [vmem:[#allocation72_spill] sm:$0xff]  ;;  %v14392_v48 = vld [vmem:[#allocation67_spill] sm:$0xff] }
 0xe86   :  { %3572 = vmatpush1.msra.mxu0 %v14365_v63  ;;  %3643 = vmatpush1.msra.mxu1 %v14366_v19  ;;  %v14393_v28 = vld [vmem:[#allocation69_spill] sm:$0xff]  ;;  %v14394_v8 = vld [vmem:[#allocation66_spill] sm:$0xff]  ;;  %v14395_v24 = vld [vmem:[#allocation68_spill] sm:$0xff] }
 0xe87   :  { %3573 = vmatprep.subr.mxu0 %v14367_v13  ;;  %3644 = vmatprep.subr.mxu1 %v14368_v59  ;;  %v14396_v21 = vld [vmem:[#allocation63_spill] sm:$0xff]  ;;  %v14397_v23 = vld [vmem:[#allocation65_spill] sm:$0xff]  ;;  %v14398_v25 = vld [vmem:[#allocation62_spill] sm:$0xff] }
 0xe88   :  { %3574 = vmatpush1.msra.mxu0 %v14369_v62  ;;  %3645 = vmatpush1.msra.mxu1 %v14370_v17  ;;  %v14399_v26 = vld [vmem:[#allocation64_spill] sm:$0xff]  ;;  %v14400_v16 = vld [vmem:[#allocation59_spill] sm:$0xff]  ;;  %v14401_v34 = vld [vmem:[#allocation61_spill] sm:$0xff] }
 0xe89   :  { %3575 = vmatprep.subr.mxu0 %v14371_v12  ;;  %3646 = vmatprep.subr.mxu1 %v14372_v52  ;;  %v14402_v2 = vld [vmem:[#allocation58_spill] sm:$0xff]  ;;  %v14403_v9 = vld [vmem:[#allocation60_spill] sm:$0xff]  ;;  %v14404_v11 = vld [vmem:[#allocation55_spill] sm:$0xff] }
 0xe8a   :  { %3576 = vmatpush1.msra.mxu0 %v14373_v7  ;;  %3647 = vmatpush1.msra.mxu1 %v14374_v46  ;;  %v14405_v38 = vld [vmem:[#allocation57_spill] sm:$0xff]  ;;  %v14406_v35 = vld [vmem:[#allocation54_spill] sm:$0xff]  ;;  %v14407_v50 = vld [vmem:[#allocation56_spill] sm:$0xff] }
 0xe8b   :  { %3577 = vmatprep.subr.mxu0 %v14375_v5  ;;  %3648 = vmatprep.subr.mxu1 %v14376_v31  ;;  %v14408_v44 = vld [vmem:[#allocation51_spill] sm:$0xff]  ;;  %v14409_v1 = vld [vmem:[#allocation53_spill] sm:$0xff]  ;;  %v14410_v32 = vld [vmem:[#allocation50_spill] sm:$0xff] }
 0xe8c   :  { %3578 = vmatpush1.msra.mxu0 %v14377_v14  ;;  %3611 = vmatprep.mubr.f32.mxu0 %v14378_v20  ;;  %v14411_v37 = vld [vmem:[#allocation52_spill] sm:$0xff]  ;;  %v14412_v33 = vld [vmem:[#allocation47_spill] sm:$0xff]  ;;  %v14413_v54 = vld [vmem:[#allocation49_spill] sm:$0xff] }
 0xe8d   :  { %3649 = vmatpush1.msra.mxu1 %v14379_v51  ;;  %3612 = vmatmul.mubr.f32.vlgmr.msra.gmra.mxu0 %v3545_v6  ;;  %v14414_v29 = vld [vmem:[#allocation46_spill] sm:$0xff]  ;;  %v14415_v30 = vld [vmem:[#allocation48_spill] sm:$0xff]  ;;  %v14416_v10 = vld [vmem:[#allocation43_spill] sm:$0xff] }
 0xe8e   :  { %3682 = vmatprep.mubr.f32.mxu1 %v14378_v20  ;;  %3689 = vmatprep.subr.mxu0 %v14380_v36  ;;  %v14417_v40 = vld [vmem:[#allocation45_spill] sm:$0xff]  ;;  %v14418_v27 = vld [vmem:[#allocation42_spill] sm:$0xff]  ;;  %v14419_v53 = vld [vmem:[#allocation44_spill] sm:$0xff] }
 0xe8f   :  { %3760 = vmatprep.subr.mxu1 %v14381_v41  ;;  %3683 = vmatmul.mubr.f32.vlgmr.msra.gmra.mxu1 %v3545_v6  ;;  %v14420_v57 = vld [vmem:[#allocation39_spill] sm:$0xff]  ;;  %v14421_v60 = vld [vmem:[#allocation41_spill] sm:$0xff]  ;;  %v14422_v61 = vld [vmem:[#allocation38_spill] sm:$0xff] }
 0xe90   :  { %3690 = vmatpush1.msra.mxu0 %v14382_v3  ;;  %3761 = vmatpush1.msra.mxu1 %v14383_v15  ;;  %v14423_v22 = vld [vmem:[#allocation40_spill] sm:$0xff]  ;;  %v14424_v63 = vld [vmem:[#allocation35_spill] sm:$0xff]  ;;  %v14425_v19 = vld [vmem:[#allocation37_spill] sm:$0xff] }
 0xe91   :  { %3691 = vmatprep.subr.mxu0 %v14384_v58  ;;  %3762 = vmatprep.subr.mxu1 %v14385_v39  ;;  %v14426_v13 = vld [vmem:[#allocation34_spill] sm:$0xff]  ;;  %v14427_v59 = vld [vmem:[#allocation36_spill] sm:$0xff]  ;;  %v14428_v62 = vld [vmem:[#allocation31_spill] sm:$0xff] }
 0xe92   :  { %3692 = vmatpush1.msra.mxu0 %v14386_v42  ;;  %3763 = vmatpush1.msra.mxu1 %v14387_v49  ;;  %v14429_v17 = vld [vmem:[#allocation33_spill] sm:$0xff]  ;;  %v14430_v12 = vld [vmem:[#allocation30_spill] sm:$0xff]  ;;  %v14431_v52 = vld [vmem:[#allocation32_spill] sm:$0xff] }
 0xe93   :  { %3693 = vmatprep.subr.mxu0 %v14388_v0  ;;  %3764 = vmatprep.subr.mxu1 %v14389_v55  ;;  %v14432_v7 = vld [vmem:[#allocation27_spill] sm:$0xff]  ;;  %v14433_v46 = vld [vmem:[#allocation29_spill] sm:$0xff]  ;;  %v14434_v6 = vld [vmem:[#allocation26_spill] sm:$0xff] }
 0xe94   :  { %3694 = vmatpush1.msra.mxu0 %v14390_v43  ;;  %3765 = vmatpush1.msra.mxu1 %v14391_v56  ;;  %v14435_v5 = vld [vmem:[#allocation28_spill] sm:$0xff]  ;;  %v14436_v31 = vld [vmem:[#allocation23_spill] sm:$0xff]  ;;  %v14437_v14 = vld [vmem:[#allocation25_spill] sm:$0xff] }
 0xe95   :  { %3695 = vmatprep.subr.mxu0 %v14392_v48  ;;  %3766 = vmatprep.subr.mxu1 %v14393_v28  ;;  %v14438_v51 = vld [vmem:[#allocation22_spill] sm:$0xff]  ;;  %v14439_v36 = vld [vmem:[#allocation24_spill] sm:$0xff]  ;;  %v14440_v41 = vld [vmem:[#allocation19_spill] sm:$0xff] }
 0xe96   :  { %3696 = vmatpush1.msra.mxu0 %v14394_v8  ;;  %3767 = vmatpush1.msra.mxu1 %v14395_v24  ;;  %v14441_v3 = vld [vmem:[#allocation21_spill] sm:$0xff]  ;;  %v14442_v58 = vld [vmem:[#allocation18_spill] sm:$0xff]  ;;  %v14443_v39 = vld [vmem:[#allocation20_spill] sm:$0xff] }
 0xe97   :  { %3697 = vmatprep.subr.mxu0 %v14396_v21  ;;  %3768 = vmatprep.subr.mxu1 %v14397_v23  ;;  %v3544_v15 = vld [vmem:[#allocation5] sm:$0xff]  ;;  %v14444_v42 = vld [vmem:[#allocation162_spill] sm:$0xff]  ;;  %v14446_v0 = vld [vmem:[#allocation160_spill] sm:$0xff] }
 0xe98   :  { %3698 = vmatpush1.msra.mxu0 %v14398_v25  ;;  %3769 = vmatpush1.msra.mxu1 %v14399_v26  ;;  %v14445_v49 = vld [vmem:[#allocation161_spill] sm:$0xff]  ;;  %v14447_v55 = vld [vmem:[#allocation159_spill] sm:$0xff]  ;;  %v14448_v43 = vld [vmem:[#allocation158_spill] sm:$0xff] }
 0xe99   :  { %3699 = vmatprep.subr.mxu0 %v14400_v16  ;;  %3770 = vmatprep.subr.mxu1 %v14401_v34  ;;  %v14449_v56 = vld [vmem:[#allocation157_spill] sm:$0xff]  ;;  %v14450_v48 = vld [vmem:[#allocation156_spill] sm:$0xff]  ;;  %v14451_v28 = vld [vmem:[#allocation155_spill] sm:$0xff] }
 0xe9a   :  { %3700 = vmatpush1.msra.mxu0 %v14402_v2  ;;  %3771 = vmatpush1.msra.mxu1 %v14403_v9  ;;  %v14452_v8 = vld [vmem:[#allocation154_spill] sm:$0xff]  ;;  %v14453_v24 = vld [vmem:[#allocation153_spill] sm:$0xff]  ;;  %v14454_v21 = vld [vmem:[#allocation152_spill] sm:$0xff] }
 0xe9b   :  { %3701 = vmatprep.subr.mxu0 %v14404_v11  ;;  %3772 = vmatprep.subr.mxu1 %v14405_v38  ;;  %v14455_v23 = vld [vmem:[#allocation151_spill] sm:$0xff]  ;;  %v14456_v25 = vld [vmem:[#allocation150_spill] sm:$0xff]  ;;  %v14457_v26 = vld [vmem:[#allocation149_spill] sm:$0xff] }
 0xe9c   :  { %3702 = vmatpush1.msra.mxu0 %v14406_v35  ;;  %3773 = vmatpush1.msra.mxu1 %v14407_v50  ;;  %v14458_v16 = vld [vmem:[#allocation148_spill] sm:$0xff]  ;;  %v14459_v34 = vld [vmem:[#allocation147_spill] sm:$0xff] }
 0xe9d   :  { %3703 = vmatprep.subr.mxu0 %v14408_v44  ;;  %3774 = vmatprep.subr.mxu1 %v14409_v1 }
 0xe9e   :  { %3704 = vmatpush1.msra.mxu0 %v14410_v32  ;;  %3775 = vmatpush1.msra.mxu1 %v14411_v37 }
 0xe9f   :  { %3705 = vmatprep.subr.mxu0 %v14412_v33  ;;  %3776 = vmatprep.subr.mxu1 %v14413_v54 }
 0xea0   :  { %3706 = vmatpush1.msra.mxu0 %v14414_v29  ;;  %3777 = vmatpush1.msra.mxu1 %v14415_v30 }
 0xea1   :  { %3707 = vmatprep.subr.mxu0 %v14416_v10  ;;  %3778 = vmatprep.subr.mxu1 %v14417_v40 }
 0xea2   :  { %3708 = vmatpush1.msra.mxu0 %v14418_v27  ;;  %3779 = vmatpush1.msra.mxu1 %v14419_v53 }
 0xea3   :  { %3709 = vmatprep.subr.mxu0 %v14420_v57  ;;  %3780 = vmatprep.subr.mxu1 %v14421_v60 }
 0xea4   :  { %3710 = vmatpush1.msra.mxu0 %v14422_v61  ;;  %3781 = vmatpush1.msra.mxu1 %v14423_v22 }
 0xea5   :  { %3711 = vmatprep.subr.mxu0 %v14424_v63  ;;  %3782 = vmatprep.subr.mxu1 %v14425_v19 }
 0xea6   :  { %3712 = vmatpush1.msra.mxu0 %v14426_v13  ;;  %3783 = vmatpush1.msra.mxu1 %v14427_v59  ;;  %v3546_v59 = vld [vmem:[#allocation3] sm:$0xff] }
 0xea7   :  { %3713 = vmatprep.subr.mxu0 %v14428_v62  ;;  %3784 = vmatprep.subr.mxu1 %v14429_v17 }
 0xea8   :  { %3714 = vmatpush1.msra.mxu0 %v14430_v12  ;;  %3785 = vmatpush1.msra.mxu1 %v14431_v52 }
 0xea9   :  { %3715 = vmatprep.subr.mxu0 %v14432_v7  ;;  %3786 = vmatprep.subr.mxu1 %v14433_v46 }
 0xeaa   :  { %3716 = vmatpush1.msra.mxu0 %v14434_v6  ;;  %3787 = vmatpush1.msra.mxu1 %v14435_v5 }
 0xeab   :  { %3717 = vmatprep.subr.mxu0 %v14436_v31  ;;  %3788 = vmatprep.subr.mxu1 %v14437_v14 }
 0xeac   :  { %3718 = vmatpush1.msra.mxu0 %v14438_v51  ;;  %3789 = vmatpush1.msra.mxu1 %v14439_v36  ;;  %v14460_v51 = vld [vmem:[#allocation163_spill] sm:$0xff] }
 0xead   :  { %3719 = vmatprep.subr.mxu0 %v14440_v41  ;;  %3790 = vmatprep.subr.mxu1 %v14441_v3 }
 0xeae   :  { %3720 = vmatpush1.msra.mxu0 %v14442_v58  ;;  %3753 = vmatprep.mubr.f32.mxu0 %v14378_v20 }
 0xeaf   :  { %3791 = vmatpush1.msra.mxu1 %v14443_v39  ;;  %3824 = vmatprep.mubr.f32.mxu1 %v14378_v20 }
 0xeb0   :  { %3754 = vmatmul.mubr.f32.vlgmr.msra.gmra.mxu0 %v3544_v15  ;;  %3825 = vmatmul.mubr.f32.vlgmr.msra.gmra.mxu1 %v3544_v15  ;;  %v14461_v15 = vld [vmem:[#allocation249_spill] sm:$0xff] }
 0xeb1   :  { %6872 = vmatprep.subr.mxu0 %v14378_v20  ;;  %6904 = vmatprep.mubr.msk.f32.mxu0 %vm7868_vm1, %v14378_v20 }
 0xeb2   :  { %6873 = vmatpush3.msra.mxu0 %v14444_v42 }
 0xeb3   :  { %6874 = vmatprep.subr.mxu0 %v14378_v20 }
 0xeb4   :  { %6875 = vmatpush3.msra.mxu0 %v14445_v49 }
 0xeb5   :  { %6876 = vmatprep.subr.mxu0 %v14378_v20 }
 0xeb6   :  { %6877 = vmatpush3.msra.mxu0 %v14446_v0 }
 0xeb7   :  { %6878 = vmatprep.subr.mxu0 %v14378_v20 }
 0xeb8   :  { %6879 = vmatpush3.msra.mxu0 %v14447_v55 }
 0xeb9   :  { %6880 = vmatprep.subr.mxu0 %v14378_v20 }
 0xeba   :  { %6881 = vmatpush3.msra.mxu0 %v14448_v43 }
 0xebb   :  { %6882 = vmatprep.subr.mxu0 %v14378_v20 }
 0xebc   :  { %6883 = vmatpush3.msra.mxu0 %v14449_v56 }
 0xebd   :  { %6884 = vmatprep.subr.mxu0 %v14378_v20 }
 0xebe   :  { %6885 = vmatpush3.msra.mxu0 %v14450_v48 }
 0xebf   :  { %6886 = vmatprep.subr.mxu0 %v14378_v20 }
 0xec0   :  { %6887 = vmatpush3.msra.mxu0 %v14451_v28 }
 0xec1   :  { %6888 = vmatprep.subr.mxu0 %v14378_v20 }
 0xec2   :  { %6889 = vmatpush3.msra.mxu0 %v14452_v8 }
 0xec3   :  { %6890 = vmatprep.subr.mxu0 %v14378_v20 }
 0xec4   :  { %6891 = vmatpush3.msra.mxu0 %v14453_v24 }
 0xec5   :  { %6892 = vmatprep.subr.mxu0 %v14378_v20 }
 0xec6   :  { %6893 = vmatpush3.msra.mxu0 %v14454_v21 }
 0xec7   :  { %6894 = vmatprep.subr.mxu0 %v14378_v20 }
 0xec8   :  { %6895 = vmatpush3.msra.mxu0 %v14455_v23 }
 0xec9   :  { %6896 = vmatprep.subr.mxu0 %v14378_v20 }
 0xeca   :  { %6897 = vmatpush3.msra.mxu0 %v14456_v25 }
 0xecb   :  { %6898 = vmatprep.subr.mxu0 %v14378_v20 }
 0xecc   :  { %6899 = vmatpush3.msra.mxu0 %v14457_v26 }
 0xecd   :  { %6900 = vmatprep.subr.mxu0 %v14378_v20 }
 0xece   :  { %6901 = vmatpush3.msra.mxu0 %v14458_v16 }
 0xecf   :  { %6902 = vmatprep.subr.mxu0 %v14378_v20 }
 0xed0   :  { %6903 = vmatpush3.msra.mxu0 %v14459_v34 }
 0xf4d   :  { %v3613_v2 = vpop.f32.mrf.mxu0 }
 0xf4f   :  { %v3684_v9 = vpop.f32.mrf.mxu1  ;;  %v3615_v11 = vpop.f32.mrf.mxu0 }
 0xf51   :  { %v3686_v35 = vpop.f32.mrf.mxu1 }
 0xf70   :  { %v3755_v38 = vpop.f32.mrf.mxu0  ;;  %v3826_v32 = vpop.f32.mrf.mxu1 }
 0xf71   :  { %v3756_v50 = vadd.f32 %v3755_v38, %v3613_v2  ;;  %v3827_v27 = vadd.f32 %v3826_v32, %v3684_v9 }
 0xf72   :  { %v3757_v44 = vpop.f32.mrf.mxu0  ;;  %v3828_v30 = vpop.f32.mrf.mxu1 }
 0xf73   :  { %v3831_v1 = vadd.f32 %v3756_v50, %v11622_v4  ;;  %v3758_v37 = vadd.f32 %v3757_v44, %v3615_v11  ;;  %v3829_v10 = vadd.f32 %v3828_v30, %v3686_v35  ;;  %v3833_v60 = vadd.f32 %v3827_v27, %v11640_v45 }
 0xf75   :  { %v6491_v33 = vmul.f32 -1.442695, %v3831_v1  ;;  %v3832_v54 = vadd.f32 %v3758_v37, %v11627_v47  ;;  %v3834_v40 = vadd.f32 %v3829_v10, %v11634_v18 }
 0xf77   :  { %7684 = vpow2.f32 %v6491_v33  ;;  %v6492_v29 = vmul.f32 -1.442695, %v3832_v54  ;;  %v6493_v53 = vmul.f32 -1.442695, %v3834_v40 }
 0xf79   :  { %7686 = vpow2.f32 %v6492_v29 }
 0xf7a   :  { %7688 = vpow2.f32 %v6493_v53 }
 0xf84   :  { %v7685_v57 = vpop.eup %7684 }
 0xf85   :  { %v3838_v61 = vadd.f32 1.0, %v7685_v57 }
 0xf86   :  { %v7687_v22 = vpop.eup %7686 }
 0xf87   :  { %7690 = vrcp.f32 %v3838_v61  ;;  %v3844_v63 = vadd.f32 1.0, %v7687_v22  ;;  %v7689_v19 = vpop.eup %7688 }
 0xf88   :  { %7692 = vtanh.f32 %v3833_v60  ;;  %v3851_v12 = vadd.f32 1.0, %v7689_v19 }
 0xf89   :  { %7694 = vrcp.f32 %v3844_v63 }
 0xf8a   :  { %7696 = vrcp.f32 %v3851_v12 }
 0xf94   :  { %v7691_v13 = vpop.eup %7690 }
 0xf95   :  { %v7693_v62 = vpop.eup %7692 }
 0xf96   :  { %v7695_v17 = vpop.eup %7694  ;;  %v3855_v52 = vmul.f32 %v7693_v62, %v7691_v13 }
 0xf97   :  { %v3854_v7 = vmul.f32 %v7695_v17, %v3546_v59  ;;  %v7697_v6 = vpop.eup %7696 }
 0xf99   :  { %v3856_v46 = vadd.f32 %v3855_v52, %v3854_v7 }
 0xf9b   :  { %3941 = vst [vmem:[#allocation3] sm:$0xff] %v3856_v46  ;;  %7698 = vtanh.f32 %v3856_v46 }
 0xfa8   :  { %v7699_v5 = vpop.eup %7698 }
 0xfa9   :  { %v3858_v31 = vmul.f32 %v7699_v5, %v7697_v6 }
 0xfab   :  { %6905 = vmatmul.mubr.f32.vlgmr.msra.gmra.mxu0 %v3858_v31  ;;  %3940 = vst [vmem:[#allocation2] sm:$0xff] %v3858_v31 }
0x106b   :  { %v3925_v14 = vpop.f32.mrf.mxu0 }
0x106c   :  { %v3926_v36 = vadd.f32 %v14460_v51, %v3925_v14 }
0x106d   :  { %v6906_v41 = vpop.f32.mrf.mxu0 }
0x106e   :  { %3930 = vst [vmem:[#allocation13 + $0x10] sm:$0xff] %v3926_v36  ;;  %3931 = vmax.xlane.f32.xlu0 %v3926_v36 }
0x10f7   :  { %v3932_v3 = vpop.xlane.xlu0 %3931 }
0x10f8   :  { %vm3933_vm5 = vcmp.eq.f32.partialorder %v3926_v36, %v3932_v3 }
0x10f9   :  { %v3934_v58 = vsel %vm3933_vm5, %v14461_v15, 128.0 }
0x10fa   :  { %3935 = vmin.xlane.f32.xlu0 %v3934_v58 }
0x1182   :  { %3946 = sbr.rel (%p6495_p5) target bundleno = 4489 (0x1189), region = 73 }
0x1183   :  { %v3936_v39 = vpop.xlane.xlu0 %3935 }
0x1184   :  { %vm3937_vm6 = vcmp.eq.f32.partialorder %v14461_v15, %v3936_v39 }
0x1185   :  { %v3938_v42 = vsel %vm3937_vm6, 1.0, %v14378_v20 }
0x1186   :  { %3939 = vst [vmem:[#allocation4] sm:$0xff] %v3938_v42 }
0x1187   :  { %v6496_v49 = vld [vmem:[%s13002_s2 + $0x10] sm:$0xff] }
0x1188   :  { %3949 = vst [vmem:[#allocation5] sm:$0xff] %v6496_v49 }
0x1189 PF:  { %p6497_p6 = scmp.ne.s32.totalorder %s6494_s7, 0 }
0x118b   :  { %3953 = sbr.rel (%p6497_p6) target bundleno = 4724 (0x1274), region = 77 }
0x1190   :  { %v3970_v0 = vld [vmem:[%s13009_s9 + $0x78] sm:$0xff]  ;;  %v7871_v55 = vmov 0.0   ;;  %v3969_v20 = vld [vmem:[%s13009_s9 + $0x70] sm:$0xff]  ;;  %vm7872_vm7 = vmmov 0   ;;  %v3968_v43 = vld [vmem:[%s13009_s9 + $0x68] sm:$0xff] }
0x1191   :  { %6907 = vmatprep.subr.mxu0 %v7871_v55  ;;  %6939 = vmatprep.mubr.msk.f32.mxu0 %vm7872_vm7, %v7871_v55  ;;  %v3967_v56 = vld [vmem:[%s13009_s9 + $0x60] sm:$0xff]  ;;  %v3966_v48 = vld [vmem:[%s13009_s9 + $0x58] sm:$0xff]  ;;  %v3965_v28 = vld [vmem:[%s13009_s9 + $0x50] sm:$0xff] }
0x1192   :  { %6908 = vmatpush3.msra.mxu0 %v3970_v0  ;;  %v3964_v8 = vld [vmem:[%s13009_s9 + $0x48] sm:$0xff]  ;;  %v3963_v24 = vld [vmem:[%s13009_s9 + $0x40] sm:$0xff]  ;;  %v3962_v21 = vld [vmem:[%s13009_s9 + $0x38] sm:$0xff] }
0x1193   :  { %6909 = vmatprep.subr.mxu0 %v7871_v55  ;;  %v3961_v23 = vld [vmem:[%s13009_s9 + $0x30] sm:$0xff]  ;;  %v3960_v25 = vld [vmem:[%s13009_s9 + $0x28] sm:$0xff]  ;;  %v3959_v26 = vld [vmem:[%s13009_s9 + $0x20] sm:$0xff] }
0x1194   :  { %6910 = vmatpush3.msra.mxu0 %v3969_v20  ;;  %v3958_v16 = vld [vmem:[%s13009_s9 + $0x18] sm:$0xff]  ;;  %v3957_v34 = vld [vmem:[%s13009_s9 + $0x10] sm:$0xff]  ;;  %v3956_v2 = vld [vmem:[%s13009_s9 + $0x8] sm:$0xff] }
0x1195   :  { %6911 = vmatprep.subr.mxu0 %v7871_v55  ;;  %v3955_v9 = vld [vmem:[%s13009_s9] sm:$0xff]  ;;  %v3954_v11 = vld [vmem:[#allocation4] sm:$0xff] }
0x1196   :  { %6912 = vmatpush3.msra.mxu0 %v3968_v43 }
0x1197   :  { %6913 = vmatprep.subr.mxu0 %v7871_v55 }
0x1198   :  { %6914 = vmatpush3.msra.mxu0 %v3967_v56 }
0x1199   :  { %6915 = vmatprep.subr.mxu0 %v7871_v55 }
0x119a   :  { %6916 = vmatpush3.msra.mxu0 %v3966_v48 }
0x119b   :  { %6917 = vmatprep.subr.mxu0 %v7871_v55 }
0x119c   :  { %6918 = vmatpush3.msra.mxu0 %v3965_v28 }
0x119d   :  { %6919 = vmatprep.subr.mxu0 %v7871_v55 }
0x119e   :  { %6920 = vmatpush3.msra.mxu0 %v3964_v8 }
0x119f   :  { %6921 = vmatprep.subr.mxu0 %v7871_v55 }
0x11a0   :  { %6922 = vmatpush3.msra.mxu0 %v3963_v24 }
0x11a1   :  { %6923 = vmatprep.subr.mxu0 %v7871_v55 }
0x11a2   :  { %6924 = vmatpush3.msra.mxu0 %v3962_v21 }
0x11a3   :  { %6925 = vmatprep.subr.mxu0 %v7871_v55 }
0x11a4   :  { %6926 = vmatpush3.msra.mxu0 %v3961_v23 }
0x11a5   :  { %6927 = vmatprep.subr.mxu0 %v7871_v55 }
0x11a6   :  { %6928 = vmatpush3.msra.mxu0 %v3960_v25 }
0x11a7   :  { %6929 = vmatprep.subr.mxu0 %v7871_v55 }
0x11a8   :  { %6930 = vmatpush3.msra.mxu0 %v3959_v26 }
0x11a9   :  { %6931 = vmatprep.subr.mxu0 %v7871_v55 }
0x11aa   :  { %6932 = vmatpush3.msra.mxu0 %v3958_v16 }
0x11ab   :  { %6933 = vmatprep.subr.mxu0 %v7871_v55 }
0x11ac   :  { %6934 = vmatpush3.msra.mxu0 %v3957_v34 }
0x11ad   :  { %6935 = vmatprep.subr.mxu0 %v7871_v55 }
0x11ae   :  { %6936 = vmatpush3.msra.mxu0 %v3956_v2 }
0x11af   :  { %6937 = vmatprep.subr.mxu0 %v7871_v55 }
0x11b0   :  { %6938 = vmatpush3.msra.mxu0 %v3955_v9 }
0x11b1   :  { %6940 = vmatmul.mubr.f32.vlgmr.msra.gmra.mxu0 %v3954_v11 }
0x1271   :  { %v4037_v38 = vpop.f32.mrf.mxu0 }
0x1272   :  { %4041 = vst [vmem:[#allocation5] sm:$0xff] %v4037_v38 }
0x1273   :  { %v6941_v35 = vpop.f32.mrf.mxu0 }
0x1274 PF:  { %v14462_v50 = vld [vmem:[#allocation143_spill] sm:$0xff]  ;;  %v14463_v44 = vld [vmem:[#allocation145_spill] sm:$0xff]  ;;  %v14464_v1 = vld [vmem:[#allocation142_spill] sm:$0xff]  ;;  %s6501_s25 = sld [smem:[#allocation7 + $0x3]] }
0x1275   :  { %4045 = vmatprep.subr.mxu0 %v14462_v50  ;;  %4116 = vmatprep.subr.mxu1 %v14463_v44  ;;  %v14465_v32 = vld [vmem:[#allocation144_spill] sm:$0xff]  ;;  %v14466_v37 = vld [vmem:[#allocation139_spill] sm:$0xff]  ;;  %v14467_v33 = vld [vmem:[#allocation141_spill] sm:$0xff] }
0x1276   :  { %4046 = vmatpush1.msra.mxu0 %v14464_v1  ;;  %4117 = vmatpush1.msra.mxu1 %v14465_v32  ;;  %v14468_v54 = vld [vmem:[#allocation138_spill] sm:$0xff]  ;;  %v14469_v29 = vld [vmem:[#allocation140_spill] sm:$0xff]  ;;  %v14470_v30 = vld [vmem:[#allocation135_spill] sm:$0xff] }
0x1277   :  { %4047 = vmatprep.subr.mxu0 %v14466_v37  ;;  %4118 = vmatprep.subr.mxu1 %v14467_v33  ;;  %v14471_v10 = vld [vmem:[#allocation137_spill] sm:$0xff]  ;;  %v14472_v40 = vld [vmem:[#allocation134_spill] sm:$0xff]  ;;  %v14473_v27 = vld [vmem:[#allocation136_spill] sm:$0xff]  ;;  %v14525_v37 = vmov 0.0  }
0x1278   :  { %4048 = vmatpush1.msra.mxu0 %v14468_v54  ;;  %4119 = vmatpush1.msra.mxu1 %v14469_v29  ;;  %v14474_v53 = vld [vmem:[#allocation131_spill] sm:$0xff]  ;;  %v14475_v57 = vld [vmem:[#allocation133_spill] sm:$0xff]  ;;  %v14476_v60 = vld [vmem:[#allocation130_spill] sm:$0xff] }
0x1279   :  { %4049 = vmatprep.subr.mxu0 %v14470_v30  ;;  %4120 = vmatprep.subr.mxu1 %v14471_v10  ;;  %v14477_v61 = vld [vmem:[#allocation132_spill] sm:$0xff]  ;;  %v14478_v22 = vld [vmem:[#allocation127_spill] sm:$0xff]  ;;  %v14479_v63 = vld [vmem:[#allocation129_spill] sm:$0xff] }
0x127a   :  { %4050 = vmatpush1.msra.mxu0 %v14472_v40  ;;  %4121 = vmatpush1.msra.mxu1 %v14473_v27  ;;  %v14480_v19 = vld [vmem:[#allocation126_spill] sm:$0xff]  ;;  %v14481_v13 = vld [vmem:[#allocation128_spill] sm:$0xff]  ;;  %v14482_v59 = vld [vmem:[#allocation123_spill] sm:$0xff]  ;;  %p6502_p7 = scmp.le.s32.totalorder %s6501_s25, 0 }
0x127b   :  { %4051 = vmatprep.subr.mxu0 %v14474_v53  ;;  %4122 = vmatprep.subr.mxu1 %v14475_v57  ;;  %v14483_v62 = vld [vmem:[#allocation125_spill] sm:$0xff]  ;;  %v14484_v17 = vld [vmem:[#allocation122_spill] sm:$0xff]  ;;  %v14485_v12 = vld [vmem:[#allocation124_spill] sm:$0xff] }
0x127c   :  { %4052 = vmatpush1.msra.mxu0 %v14476_v60  ;;  %4123 = vmatpush1.msra.mxu1 %v14477_v61  ;;  %v14486_v52 = vld [vmem:[#allocation119_spill] sm:$0xff]  ;;  %v14487_v7 = vld [vmem:[#allocation121_spill] sm:$0xff]  ;;  %v14488_v46 = vld [vmem:[#allocation118_spill] sm:$0xff] }
0x127d   :  { %4053 = vmatprep.subr.mxu0 %v14478_v22  ;;  %4124 = vmatprep.subr.mxu1 %v14479_v63  ;;  %v14489_v6 = vld [vmem:[#allocation120_spill] sm:$0xff]  ;;  %v14490_v5 = vld [vmem:[#allocation115_spill] sm:$0xff]  ;;  %v14491_v31 = vld [vmem:[#allocation117_spill] sm:$0xff] }
0x127e   :  { %4054 = vmatpush1.msra.mxu0 %v14480_v19  ;;  %4125 = vmatpush1.msra.mxu1 %v14481_v13  ;;  %v14492_v14 = vld [vmem:[#allocation114_spill] sm:$0xff]  ;;  %v14493_v51 = vld [vmem:[#allocation116_spill] sm:$0xff]  ;;  %v14494_v36 = vld [vmem:[#allocation111_spill] sm:$0xff] }
0x127f   :  { %4055 = vmatprep.subr.mxu0 %v14482_v59  ;;  %4126 = vmatprep.subr.mxu1 %v14483_v62  ;;  %v14495_v41 = vld [vmem:[#allocation113_spill] sm:$0xff]  ;;  %v14496_v3 = vld [vmem:[#allocation110_spill] sm:$0xff]  ;;  %v14497_v15 = vld [vmem:[#allocation112_spill] sm:$0xff] }
0x1280   :  { %4056 = vmatpush1.msra.mxu0 %v14484_v17  ;;  %4127 = vmatpush1.msra.mxu1 %v14485_v12  ;;  %v14498_v58 = vld [vmem:[#allocation107_spill] sm:$0xff]  ;;  %v14499_v39 = vld [vmem:[#allocation109_spill] sm:$0xff]  ;;  %v14500_v42 = vld [vmem:[#allocation106_spill] sm:$0xff] }
0x1281   :  { %4057 = vmatprep.subr.mxu0 %v14486_v52  ;;  %4128 = vmatprep.subr.mxu1 %v14487_v7  ;;  %v14501_v49 = vld [vmem:[#allocation108_spill] sm:$0xff]  ;;  %v14502_v0 = vld [vmem:[#allocation103_spill] sm:$0xff]  ;;  %v14503_v55 = vld [vmem:[#allocation105_spill] sm:$0xff] }
0x1282   :  { %4058 = vmatpush1.msra.mxu0 %v14488_v46  ;;  %4129 = vmatpush1.msra.mxu1 %v14489_v6  ;;  %v14504_v20 = vld [vmem:[#allocation102_spill] sm:$0xff]  ;;  %v14505_v43 = vld [vmem:[#allocation104_spill] sm:$0xff]  ;;  %v14506_v56 = vld [vmem:[#allocation99_spill] sm:$0xff] }
0x1283   :  { %4059 = vmatprep.subr.mxu0 %v14490_v5  ;;  %4130 = vmatprep.subr.mxu1 %v14491_v31  ;;  %v14507_v48 = vld [vmem:[#allocation101_spill] sm:$0xff]  ;;  %v14508_v28 = vld [vmem:[#allocation98_spill] sm:$0xff]  ;;  %v14509_v8 = vld [vmem:[#allocation100_spill] sm:$0xff] }
0x1284   :  { %4060 = vmatpush1.msra.mxu0 %v14492_v14  ;;  %4131 = vmatpush1.msra.mxu1 %v14493_v51  ;;  %v14510_v24 = vld [vmem:[#allocation95_spill] sm:$0xff]  ;;  %v14511_v21 = vld [vmem:[#allocation97_spill] sm:$0xff]  ;;  %v14512_v23 = vld [vmem:[#allocation94_spill] sm:$0xff] }
0x1285   :  { %4061 = vmatprep.subr.mxu0 %v14494_v36  ;;  %4132 = vmatprep.subr.mxu1 %v14495_v41  ;;  %v14513_v25 = vld [vmem:[#allocation96_spill] sm:$0xff]  ;;  %v14514_v26 = vld [vmem:[#allocation91_spill] sm:$0xff]  ;;  %v14515_v16 = vld [vmem:[#allocation93_spill] sm:$0xff] }
0x1286   :  { %4062 = vmatpush1.msra.mxu0 %v14496_v3  ;;  %4133 = vmatpush1.msra.mxu1 %v14497_v15  ;;  %v14516_v34 = vld [vmem:[#allocation90_spill] sm:$0xff]  ;;  %v14517_v2 = vld [vmem:[#allocation92_spill] sm:$0xff]  ;;  %v14518_v9 = vld [vmem:[#allocation87_spill] sm:$0xff] }
0x1287   :  { %4063 = vmatprep.subr.mxu0 %v14498_v58  ;;  %4134 = vmatprep.subr.mxu1 %v14499_v39  ;;  %v14519_v11 = vld [vmem:[#allocation89_spill] sm:$0xff]  ;;  %v14520_v38 = vld [vmem:[#allocation86_spill] sm:$0xff]  ;;  %v14521_v35 = vld [vmem:[#allocation88_spill] sm:$0xff] }
0x1288   :  { %4064 = vmatpush1.msra.mxu0 %v14500_v42  ;;  %4135 = vmatpush1.msra.mxu1 %v14501_v49  ;;  %v4043_v50 = vld [vmem:[#allocation2] sm:$0xff]  ;;  %v14522_v44 = vld [vmem:[#allocation83_spill] sm:$0xff]  ;;  %v14523_v1 = vld [vmem:[#allocation85_spill] sm:$0xff] }
0x1289   :  { %4065 = vmatprep.subr.mxu0 %v14502_v0  ;;  %4136 = vmatprep.subr.mxu1 %v14503_v55  ;;  %v14524_v32 = vld [vmem:[#allocation82_spill] sm:$0xff]  ;;  %v14526_v33 = vld [vmem:[#allocation84_spill] sm:$0xff]  ;;  %v14527_v54 = vld [vmem:[#allocation79_spill] sm:$0xff] }
0x128a   :  { %4066 = vmatpush1.msra.mxu0 %v14504_v20  ;;  %4137 = vmatpush1.msra.mxu1 %v14505_v43  ;;  %v14528_v29 = vld [vmem:[#allocation81_spill] sm:$0xff]  ;;  %v14529_v30 = vld [vmem:[#allocation78_spill] sm:$0xff]  ;;  %v14530_v10 = vld [vmem:[#allocation80_spill] sm:$0xff] }
0x128b   :  { %4067 = vmatprep.subr.mxu0 %v14506_v56  ;;  %4138 = vmatprep.subr.mxu1 %v14507_v48  ;;  %v14531_v40 = vld [vmem:[#allocation75_spill] sm:$0xff]  ;;  %v14532_v27 = vld [vmem:[#allocation77_spill] sm:$0xff]  ;;  %v14533_v53 = vld [vmem:[#allocation74_spill] sm:$0xff] }
0x128c   :  { %4068 = vmatpush1.msra.mxu0 %v14508_v28  ;;  %4139 = vmatpush1.msra.mxu1 %v14509_v8  ;;  %v14534_v57 = vld [vmem:[#allocation76_spill] sm:$0xff]  ;;  %v14535_v60 = vld [vmem:[#allocation71_spill] sm:$0xff]  ;;  %v14536_v61 = vld [vmem:[#allocation73_spill] sm:$0xff] }
0x128d   :  { %4069 = vmatprep.subr.mxu0 %v14510_v24  ;;  %4140 = vmatprep.subr.mxu1 %v14511_v21  ;;  %v14537_v22 = vld [vmem:[#allocation70_spill] sm:$0xff]  ;;  %v14538_v63 = vld [vmem:[#allocation72_spill] sm:$0xff]  ;;  %v14539_v19 = vld [vmem:[#allocation67_spill] sm:$0xff] }
0x128e   :  { %4070 = vmatpush1.msra.mxu0 %v14512_v23  ;;  %4141 = vmatpush1.msra.mxu1 %v14513_v25  ;;  %v14540_v13 = vld [vmem:[#allocation69_spill] sm:$0xff]  ;;  %v14541_v59 = vld [vmem:[#allocation66_spill] sm:$0xff]  ;;  %v14542_v62 = vld [vmem:[#allocation68_spill] sm:$0xff] }
0x128f   :  { %4071 = vmatprep.subr.mxu0 %v14514_v26  ;;  %4142 = vmatprep.subr.mxu1 %v14515_v16  ;;  %v14543_v17 = vld [vmem:[#allocation63_spill] sm:$0xff]  ;;  %v14544_v12 = vld [vmem:[#allocation65_spill] sm:$0xff]  ;;  %v14545_v52 = vld [vmem:[#allocation62_spill] sm:$0xff] }
0x1290   :  { %4072 = vmatpush1.msra.mxu0 %v14516_v34  ;;  %4143 = vmatpush1.msra.mxu1 %v14517_v2  ;;  %v14546_v7 = vld [vmem:[#allocation64_spill] sm:$0xff]  ;;  %v14547_v46 = vld [vmem:[#allocation59_spill] sm:$0xff]  ;;  %v14548_v6 = vld [vmem:[#allocation61_spill] sm:$0xff] }
0x1291   :  { %4073 = vmatprep.subr.mxu0 %v14518_v9  ;;  %4144 = vmatprep.subr.mxu1 %v14519_v11  ;;  %v14549_v5 = vld [vmem:[#allocation58_spill] sm:$0xff]  ;;  %v14550_v31 = vld [vmem:[#allocation60_spill] sm:$0xff]  ;;  %v14551_v14 = vld [vmem:[#allocation55_spill] sm:$0xff] }
0x1292   :  { %4074 = vmatpush1.msra.mxu0 %v14520_v38  ;;  %4145 = vmatpush1.msra.mxu1 %v14521_v35  ;;  %v14552_v51 = vld [vmem:[#allocation57_spill] sm:$0xff]  ;;  %v14553_v36 = vld [vmem:[#allocation54_spill] sm:$0xff]  ;;  %v14554_v41 = vld [vmem:[#allocation56_spill] sm:$0xff] }
0x1293   :  { %4075 = vmatprep.subr.mxu0 %v14522_v44  ;;  %4146 = vmatprep.subr.mxu1 %v14523_v1  ;;  %v14555_v3 = vld [vmem:[#allocation51_spill] sm:$0xff]  ;;  %v14556_v15 = vld [vmem:[#allocation53_spill] sm:$0xff]  ;;  %v14557_v58 = vld [vmem:[#allocation50_spill] sm:$0xff] }
0x1294   :  { %4076 = vmatpush1.msra.mxu0 %v14524_v32  ;;  %4109 = vmatprep.mubr.f32.mxu0 %v14525_v37  ;;  %v14558_v39 = vld [vmem:[#allocation52_spill] sm:$0xff]  ;;  %v14559_v42 = vld [vmem:[#allocation47_spill] sm:$0xff]  ;;  %v14560_v49 = vld [vmem:[#allocation49_spill] sm:$0xff] }
0x1295   :  { %4147 = vmatpush1.msra.mxu1 %v14526_v33  ;;  %4110 = vmatmul.mubr.f32.vlgmr.msra.gmra.mxu0 %v4043_v50  ;;  %v14561_v0 = vld [vmem:[#allocation46_spill] sm:$0xff]  ;;  %v14562_v55 = vld [vmem:[#allocation48_spill] sm:$0xff]  ;;  %v14563_v20 = vld [vmem:[#allocation43_spill] sm:$0xff] }
0x1296   :  { %4180 = vmatprep.mubr.f32.mxu1 %v14525_v37  ;;  %4187 = vmatprep.subr.mxu0 %v14527_v54  ;;  %v14564_v43 = vld [vmem:[#allocation45_spill] sm:$0xff]  ;;  %v14565_v56 = vld [vmem:[#allocation42_spill] sm:$0xff]  ;;  %v14566_v48 = vld [vmem:[#allocation44_spill] sm:$0xff] }
0x1297   :  { %4258 = vmatprep.subr.mxu1 %v14528_v29  ;;  %4181 = vmatmul.mubr.f32.vlgmr.msra.gmra.mxu1 %v4043_v50  ;;  %v14567_v28 = vld [vmem:[#allocation39_spill] sm:$0xff]  ;;  %v14568_v8 = vld [vmem:[#allocation41_spill] sm:$0xff]  ;;  %v14569_v24 = vld [vmem:[#allocation38_spill] sm:$0xff] }
0x1298   :  { %4188 = vmatpush1.msra.mxu0 %v14529_v30  ;;  %4259 = vmatpush1.msra.mxu1 %v14530_v10  ;;  %v14570_v21 = vld [vmem:[#allocation40_spill] sm:$0xff]  ;;  %v14571_v23 = vld [vmem:[#allocation35_spill] sm:$0xff]  ;;  %v14572_v25 = vld [vmem:[#allocation37_spill] sm:$0xff] }
0x1299   :  { %4189 = vmatprep.subr.mxu0 %v14531_v40  ;;  %4260 = vmatprep.subr.mxu1 %v14532_v27  ;;  %v14573_v26 = vld [vmem:[#allocation34_spill] sm:$0xff]  ;;  %v14574_v16 = vld [vmem:[#allocation36_spill] sm:$0xff]  ;;  %v14575_v34 = vld [vmem:[#allocation31_spill] sm:$0xff] }
0x129a   :  { %4190 = vmatpush1.msra.mxu0 %v14533_v53  ;;  %4261 = vmatpush1.msra.mxu1 %v14534_v57  ;;  %v14576_v2 = vld [vmem:[#allocation33_spill] sm:$0xff]  ;;  %v14577_v9 = vld [vmem:[#allocation30_spill] sm:$0xff]  ;;  %v14578_v11 = vld [vmem:[#allocation32_spill] sm:$0xff] }
0x129b   :  { %4191 = vmatprep.subr.mxu0 %v14535_v60  ;;  %4262 = vmatprep.subr.mxu1 %v14536_v61  ;;  %v14579_v38 = vld [vmem:[#allocation27_spill] sm:$0xff]  ;;  %v14580_v35 = vld [vmem:[#allocation29_spill] sm:$0xff]  ;;  %v14581_v50 = vld [vmem:[#allocation26_spill] sm:$0xff] }
0x129c   :  { %4192 = vmatpush1.msra.mxu0 %v14537_v22  ;;  %4263 = vmatpush1.msra.mxu1 %v14538_v63  ;;  %v14582_v44 = vld [vmem:[#allocation28_spill] sm:$0xff]  ;;  %v14583_v1 = vld [vmem:[#allocation23_spill] sm:$0xff]  ;;  %v14584_v32 = vld [vmem:[#allocation25_spill] sm:$0xff] }
0x129d   :  { %4193 = vmatprep.subr.mxu0 %v14539_v19  ;;  %4264 = vmatprep.subr.mxu1 %v14540_v13  ;;  %v14585_v33 = vld [vmem:[#allocation22_spill] sm:$0xff]  ;;  %v14586_v54 = vld [vmem:[#allocation24_spill] sm:$0xff]  ;;  %v14587_v29 = vld [vmem:[#allocation19_spill] sm:$0xff] }
0x129e   :  { %4194 = vmatpush1.msra.mxu0 %v14541_v59  ;;  %4265 = vmatpush1.msra.mxu1 %v14542_v62  ;;  %v14588_v30 = vld [vmem:[#allocation21_spill] sm:$0xff]  ;;  %v14589_v40 = vld [vmem:[#allocation18_spill] sm:$0xff]  ;;  %v14590_v27 = vld [vmem:[#allocation20_spill] sm:$0xff] }
0x129f   :  { %4195 = vmatprep.subr.mxu0 %v14543_v17  ;;  %4266 = vmatprep.subr.mxu1 %v14544_v12  ;;  %v4042_v10 = vld [vmem:[#allocation5] sm:$0xff]  ;;  %v14591_v53 = vld [vmem:[#allocation162_spill] sm:$0xff]  ;;  %v14593_v60 = vld [vmem:[#allocation160_spill] sm:$0xff] }
0x12a0   :  { %4196 = vmatpush1.msra.mxu0 %v14545_v52  ;;  %4267 = vmatpush1.msra.mxu1 %v14546_v7  ;;  %v14592_v57 = vld [vmem:[#allocation161_spill] sm:$0xff]  ;;  %v14594_v61 = vld [vmem:[#allocation159_spill] sm:$0xff]  ;;  %v14595_v22 = vld [vmem:[#allocation158_spill] sm:$0xff] }
0x12a1   :  { %4197 = vmatprep.subr.mxu0 %v14547_v46  ;;  %4268 = vmatprep.subr.mxu1 %v14548_v6  ;;  %v14596_v63 = vld [vmem:[#allocation157_spill] sm:$0xff]  ;;  %v14597_v19 = vld [vmem:[#allocation156_spill] sm:$0xff]  ;;  %v14598_v13 = vld [vmem:[#allocation155_spill] sm:$0xff] }
0x12a2   :  { %4198 = vmatpush1.msra.mxu0 %v14549_v5  ;;  %4269 = vmatpush1.msra.mxu1 %v14550_v31  ;;  %v14599_v59 = vld [vmem:[#allocation154_spill] sm:$0xff]  ;;  %v14600_v62 = vld [vmem:[#allocation153_spill] sm:$0xff]  ;;  %v14601_v17 = vld [vmem:[#allocation152_spill] sm:$0xff] }
0x12a3   :  { %4199 = vmatprep.subr.mxu0 %v14551_v14  ;;  %4270 = vmatprep.subr.mxu1 %v14552_v51  ;;  %v14602_v12 = vld [vmem:[#allocation151_spill] sm:$0xff]  ;;  %v14603_v52 = vld [vmem:[#allocation150_spill] sm:$0xff]  ;;  %v14604_v7 = vld [vmem:[#allocation149_spill] sm:$0xff] }
0x12a4   :  { %4200 = vmatpush1.msra.mxu0 %v14553_v36  ;;  %4271 = vmatpush1.msra.mxu1 %v14554_v41  ;;  %v14605_v46 = vld [vmem:[#allocation148_spill] sm:$0xff]  ;;  %v14606_v6 = vld [vmem:[#allocation147_spill] sm:$0xff] }
0x12a5   :  { %4201 = vmatprep.subr.mxu0 %v14555_v3  ;;  %4272 = vmatprep.subr.mxu1 %v14556_v15 }
0x12a6   :  { %4202 = vmatpush1.msra.mxu0 %v14557_v58  ;;  %4273 = vmatpush1.msra.mxu1 %v14558_v39 }
0x12a7   :  { %4203 = vmatprep.subr.mxu0 %v14559_v42  ;;  %4274 = vmatprep.subr.mxu1 %v14560_v49 }
0x12a8   :  { %4204 = vmatpush1.msra.mxu0 %v14561_v0  ;;  %4275 = vmatpush1.msra.mxu1 %v14562_v55 }
0x12a9   :  { %4205 = vmatprep.subr.mxu0 %v14563_v20  ;;  %4276 = vmatprep.subr.mxu1 %v14564_v43 }
0x12aa   :  { %4206 = vmatpush1.msra.mxu0 %v14565_v56  ;;  %4277 = vmatpush1.msra.mxu1 %v14566_v48 }
0x12ab   :  { %4207 = vmatprep.subr.mxu0 %v14567_v28  ;;  %4278 = vmatprep.subr.mxu1 %v14568_v8 }
0x12ac   :  { %4208 = vmatpush1.msra.mxu0 %v14569_v24  ;;  %4279 = vmatpush1.msra.mxu1 %v14570_v21 }
0x12ad   :  { %4209 = vmatprep.subr.mxu0 %v14571_v23  ;;  %4280 = vmatprep.subr.mxu1 %v14572_v25 }
0x12ae   :  { %4210 = vmatpush1.msra.mxu0 %v14573_v26  ;;  %4281 = vmatpush1.msra.mxu1 %v14574_v16  ;;  %v4044_v16 = vld [vmem:[#allocation3] sm:$0xff] }
0x12af   :  { %4211 = vmatprep.subr.mxu0 %v14575_v34  ;;  %4282 = vmatprep.subr.mxu1 %v14576_v2 }
0x12b0   :  { %4212 = vmatpush1.msra.mxu0 %v14577_v9  ;;  %4283 = vmatpush1.msra.mxu1 %v14578_v11 }
0x12b1   :  { %4213 = vmatprep.subr.mxu0 %v14579_v38  ;;  %4284 = vmatprep.subr.mxu1 %v14580_v35 }
0x12b2   :  { %4214 = vmatpush1.msra.mxu0 %v14581_v50  ;;  %4285 = vmatpush1.msra.mxu1 %v14582_v44 }
0x12b3   :  { %4215 = vmatprep.subr.mxu0 %v14583_v1  ;;  %4286 = vmatprep.subr.mxu1 %v14584_v32 }
0x12b4   :  { %4216 = vmatpush1.msra.mxu0 %v14585_v33  ;;  %4287 = vmatpush1.msra.mxu1 %v14586_v54  ;;  %v14607_v33 = vld [vmem:[#allocation163_spill] sm:$0xff] }
0x12b5   :  { %4217 = vmatprep.subr.mxu0 %v14587_v29  ;;  %4288 = vmatprep.subr.mxu1 %v14588_v30 }
0x12b6   :  { %4218 = vmatpush1.msra.mxu0 %v14589_v40  ;;  %4251 = vmatprep.mubr.f32.mxu0 %v14525_v37 }
0x12b7   :  { %4289 = vmatpush1.msra.mxu1 %v14590_v27  ;;  %4322 = vmatprep.mubr.f32.mxu1 %v14525_v37 }
0x12b8   :  { %4252 = vmatmul.mubr.f32.vlgmr.msra.gmra.mxu0 %v4042_v10  ;;  %4323 = vmatmul.mubr.f32.vlgmr.msra.gmra.mxu1 %v4042_v10  ;;  %v14608_v10 = vld [vmem:[#allocation249_spill] sm:$0xff] }
0x12b9   :  { %6942 = vmatprep.subr.mxu0 %v14525_v37  ;;  %6974 = vmatprep.mubr.msk.f32.mxu0 %vm7868_vm1, %v14525_v37 }
0x12ba   :  { %6943 = vmatpush3.msra.mxu0 %v14591_v53 }
0x12bb   :  { %6944 = vmatprep.subr.mxu0 %v14525_v37 }
0x12bc   :  { %6945 = vmatpush3.msra.mxu0 %v14592_v57 }
0x12bd   :  { %6946 = vmatprep.subr.mxu0 %v14525_v37 }
0x12be   :  { %6947 = vmatpush3.msra.mxu0 %v14593_v60 }
0x12bf   :  { %6948 = vmatprep.subr.mxu0 %v14525_v37 }
0x12c0   :  { %6949 = vmatpush3.msra.mxu0 %v14594_v61 }
0x12c1   :  { %6950 = vmatprep.subr.mxu0 %v14525_v37 }
0x12c2   :  { %6951 = vmatpush3.msra.mxu0 %v14595_v22 }
0x12c3   :  { %6952 = vmatprep.subr.mxu0 %v14525_v37 }
0x12c4   :  { %6953 = vmatpush3.msra.mxu0 %v14596_v63 }
0x12c5   :  { %6954 = vmatprep.subr.mxu0 %v14525_v37 }
0x12c6   :  { %6955 = vmatpush3.msra.mxu0 %v14597_v19 }
0x12c7   :  { %6956 = vmatprep.subr.mxu0 %v14525_v37 }
0x12c8   :  { %6957 = vmatpush3.msra.mxu0 %v14598_v13 }
0x12c9   :  { %6958 = vmatprep.subr.mxu0 %v14525_v37 }
0x12ca   :  { %6959 = vmatpush3.msra.mxu0 %v14599_v59 }
0x12cb   :  { %6960 = vmatprep.subr.mxu0 %v14525_v37 }
0x12cc   :  { %6961 = vmatpush3.msra.mxu0 %v14600_v62 }
0x12cd   :  { %6962 = vmatprep.subr.mxu0 %v14525_v37 }
0x12ce   :  { %6963 = vmatpush3.msra.mxu0 %v14601_v17 }
0x12cf   :  { %6964 = vmatprep.subr.mxu0 %v14525_v37 }
0x12d0   :  { %6965 = vmatpush3.msra.mxu0 %v14602_v12 }
0x12d1   :  { %6966 = vmatprep.subr.mxu0 %v14525_v37 }
0x12d2   :  { %6967 = vmatpush3.msra.mxu0 %v14603_v52 }
0x12d3   :  { %6968 = vmatprep.subr.mxu0 %v14525_v37 }
0x12d4   :  { %6969 = vmatpush3.msra.mxu0 %v14604_v7 }
0x12d5   :  { %6970 = vmatprep.subr.mxu0 %v14525_v37 }
0x12d6   :  { %6971 = vmatpush3.msra.mxu0 %v14605_v46 }
0x12d7   :  { %6972 = vmatprep.subr.mxu0 %v14525_v37 }
0x12d8   :  { %6973 = vmatpush3.msra.mxu0 %v14606_v6 }
0x1355   :  { %v4111_v5 = vpop.f32.mrf.mxu0 }
0x1357   :  { %v4182_v31 = vpop.f32.mrf.mxu1  ;;  %v4113_v14 = vpop.f32.mrf.mxu0 }
0x1359   :  { %v4184_v36 = vpop.f32.mrf.mxu1 }
0x1378   :  { %v4253_v51 = vpop.f32.mrf.mxu0  ;;  %v4324_v58 = vpop.f32.mrf.mxu1 }
0x1379   :  { %v4254_v41 = vadd.f32 %v4253_v51, %v4111_v5  ;;  %v4325_v56 = vadd.f32 %v4324_v58, %v4182_v31 }
0x137a   :  { %v4255_v3 = vpop.f32.mrf.mxu0  ;;  %v4326_v55 = vpop.f32.mrf.mxu1 }
0x137b   :  { %v4329_v15 = vadd.f32 %v4254_v41, %v11622_v4  ;;  %v4256_v39 = vadd.f32 %v4255_v3, %v4113_v14  ;;  %v4327_v20 = vadd.f32 %v4326_v55, %v4184_v36  ;;  %v4331_v8 = vadd.f32 %v4325_v56, %v11640_v45 }
0x137d   :  { %v6498_v42 = vmul.f32 -1.442695, %v4329_v15  ;;  %v4330_v49 = vadd.f32 %v4256_v39, %v11627_v47  ;;  %v4332_v43 = vadd.f32 %v4327_v20, %v11634_v18 }
0x137f   :  { %7700 = vpow2.f32 %v6498_v42  ;;  %v6499_v0 = vmul.f32 -1.442695, %v4330_v49  ;;  %v6500_v48 = vmul.f32 -1.442695, %v4332_v43 }
0x1381   :  { %7702 = vpow2.f32 %v6499_v0 }
0x1382   :  { %7704 = vpow2.f32 %v6500_v48 }
0x138c   :  { %v7701_v28 = vpop.eup %7700 }
0x138d   :  { %v4336_v24 = vadd.f32 1.0, %v7701_v28 }
0x138e   :  { %v7703_v21 = vpop.eup %7702 }
0x138f   :  { %7706 = vrcp.f32 %v4336_v24  ;;  %v4342_v23 = vadd.f32 1.0, %v7703_v21  ;;  %v7705_v25 = vpop.eup %7704 }
0x1390   :  { %7708 = vtanh.f32 %v4331_v8  ;;  %v4349_v9 = vadd.f32 1.0, %v7705_v25 }
0x1391   :  { %7710 = vrcp.f32 %v4342_v23 }
0x1392   :  { %7712 = vrcp.f32 %v4349_v9 }
0x139c   :  { %v7707_v26 = vpop.eup %7706 }
0x139d   :  { %v7709_v34 = vpop.eup %7708 }
0x139e   :  { %v7711_v2 = vpop.eup %7710  ;;  %v4353_v11 = vmul.f32 %v7709_v34, %v7707_v26 }
0x139f   :  { %v4352_v38 = vmul.f32 %v7711_v2, %v4044_v16  ;;  %v7713_v50 = vpop.eup %7712 }
0x13a1   :  { %v4354_v35 = vadd.f32 %v4353_v11, %v4352_v38 }
0x13a3   :  { %4439 = vst [vmem:[#allocation3] sm:$0xff] %v4354_v35  ;;  %7714 = vtanh.f32 %v4354_v35 }
0x13b0   :  { %v7715_v44 = vpop.eup %7714 }
0x13b1   :  { %v4356_v1 = vmul.f32 %v7715_v44, %v7713_v50 }
0x13b3   :  { %6975 = vmatmul.mubr.f32.vlgmr.msra.gmra.mxu0 %v4356_v1  ;;  %4438 = vst [vmem:[#allocation2] sm:$0xff] %v4356_v1 }
0x1473   :  { %v4423_v32 = vpop.f32.mrf.mxu0 }
0x1474   :  { %v4424_v54 = vadd.f32 %v14607_v33, %v4423_v32 }
0x1475   :  { %v6976_v29 = vpop.f32.mrf.mxu0 }
0x1476   :  { %4428 = vst [vmem:[#allocation13 + $0x18] sm:$0xff] %v4424_v54  ;;  %4429 = vmax.xlane.f32.xlu0 %v4424_v54 }
0x14ff   :  { %v4430_v30 = vpop.xlane.xlu0 %4429 }
0x1500   :  { %vm4431_vm8 = vcmp.eq.f32.partialorder %v4424_v54, %v4430_v30 }
0x1501   :  { %v4432_v40 = vsel %vm4431_vm8, %v14608_v10, 128.0 }
0x1502   :  { %4433 = vmin.xlane.f32.xlu0 %v4432_v40 }
0x158a   :  { %4444 = sbr.rel (%p6502_p7) target bundleno = 5521 (0x1591), region = 81 }
0x158b   :  { %v4434_v27 = vpop.xlane.xlu0 %4433 }
0x158c   :  { %vm4435_vm9 = vcmp.eq.f32.partialorder %v14608_v10, %v4434_v27 }
0x158d   :  { %v4436_v53 = vsel %vm4435_vm9, 1.0, %v14525_v37 }
0x158e   :  { %4437 = vst [vmem:[#allocation4] sm:$0xff] %v4436_v53 }
0x158f   :  { %v6503_v57 = vld [vmem:[%s13002_s2 + $0x18] sm:$0xff] }
0x1590   :  { %4447 = vst [vmem:[#allocation5] sm:$0xff] %v6503_v57 }
0x1591 PF:  { %p6504_p8 = scmp.ne.s32.totalorder %s6501_s25, 0 }
0x1593   :  { %4451 = sbr.rel (%p6504_p8) target bundleno = 5756 (0x167c), region = 85 }
0x1598   :  { %v4468_v60 = vld [vmem:[%s13009_s9 + $0x78] sm:$0xff]  ;;  %v7873_v61 = vmov 0.0   ;;  %v4467_v37 = vld [vmem:[%s13009_s9 + $0x70] sm:$0xff]  ;;  %vm7874_vm10 = vmmov 0   ;;  %v4466_v22 = vld [vmem:[%s13009_s9 + $0x68] sm:$0xff] }
0x1599   :  { %6977 = vmatprep.subr.mxu0 %v7873_v61  ;;  %7009 = vmatprep.mubr.msk.f32.mxu0 %vm7874_vm10, %v7873_v61  ;;  %v4465_v63 = vld [vmem:[%s13009_s9 + $0x60] sm:$0xff]  ;;  %v4464_v19 = vld [vmem:[%s13009_s9 + $0x58] sm:$0xff]  ;;  %v4463_v13 = vld [vmem:[%s13009_s9 + $0x50] sm:$0xff] }
0x159a   :  { %6978 = vmatpush3.msra.mxu0 %v4468_v60  ;;  %v4462_v59 = vld [vmem:[%s13009_s9 + $0x48] sm:$0xff]  ;;  %v4461_v62 = vld [vmem:[%s13009_s9 + $0x40] sm:$0xff]  ;;  %v4460_v17 = vld [vmem:[%s13009_s9 + $0x38] sm:$0xff] }
0x159b   :  { %6979 = vmatprep.subr.mxu0 %v7873_v61  ;;  %v4459_v12 = vld [vmem:[%s13009_s9 + $0x30] sm:$0xff]  ;;  %v4458_v52 = vld [vmem:[%s13009_s9 + $0x28] sm:$0xff]  ;;  %v4457_v7 = vld [vmem:[%s13009_s9 + $0x20] sm:$0xff] }
0x159c   :  { %6980 = vmatpush3.msra.mxu0 %v4467_v37  ;;  %v4456_v46 = vld [vmem:[%s13009_s9 + $0x18] sm:$0xff]  ;;  %v4455_v6 = vld [vmem:[%s13009_s9 + $0x10] sm:$0xff]  ;;  %v4454_v5 = vld [vmem:[%s13009_s9 + $0x8] sm:$0xff] }
0x159d   :  { %6981 = vmatprep.subr.mxu0 %v7873_v61  ;;  %v4453_v31 = vld [vmem:[%s13009_s9] sm:$0xff]  ;;  %v4452_v14 = vld [vmem:[#allocation4] sm:$0xff] }
0x159e   :  { %6982 = vmatpush3.msra.mxu0 %v4466_v22 }
0x159f   :  { %6983 = vmatprep.subr.mxu0 %v7873_v61 }
0x15a0   :  { %6984 = vmatpush3.msra.mxu0 %v4465_v63 }
0x15a1   :  { %6985 = vmatprep.subr.mxu0 %v7873_v61 }
0x15a2   :  { %6986 = vmatpush3.msra.mxu0 %v4464_v19 }
0x15a3   :  { %6987 = vmatprep.subr.mxu0 %v7873_v61 }
0x15a4   :  { %6988 = vmatpush3.msra.mxu0 %v4463_v13 }
0x15a5   :  { %6989 = vmatprep.subr.mxu0 %v7873_v61 }
0x15a6   :  { %6990 = vmatpush3.msra.mxu0 %v4462_v59 }
0x15a7   :  { %6991 = vmatprep.subr.mxu0 %v7873_v61 }
0x15a8   :  { %6992 = vmatpush3.msra.mxu0 %v4461_v62 }
0x15a9   :  { %6993 = vmatprep.subr.mxu0 %v7873_v61 }
0x15aa   :  { %6994 = vmatpush3.msra.mxu0 %v4460_v17 }
0x15ab   :  { %6995 = vmatprep.subr.mxu0 %v7873_v61 }
0x15ac   :  { %6996 = vmatpush3.msra.mxu0 %v4459_v12 }
0x15ad   :  { %6997 = vmatprep.subr.mxu0 %v7873_v61 }
0x15ae   :  { %6998 = vmatpush3.msra.mxu0 %v4458_v52 }
0x15af   :  { %6999 = vmatprep.subr.mxu0 %v7873_v61 }
0x15b0   :  { %7000 = vmatpush3.msra.mxu0 %v4457_v7 }
0x15b1   :  { %7001 = vmatprep.subr.mxu0 %v7873_v61 }
0x15b2   :  { %7002 = vmatpush3.msra.mxu0 %v4456_v46 }
0x15b3   :  { %7003 = vmatprep.subr.mxu0 %v7873_v61 }
0x15b4   :  { %7004 = vmatpush3.msra.mxu0 %v4455_v6 }
0x15b5   :  { %7005 = vmatprep.subr.mxu0 %v7873_v61 }
0x15b6   :  { %7006 = vmatpush3.msra.mxu0 %v4454_v5 }
0x15b7   :  { %7007 = vmatprep.subr.mxu0 %v7873_v61 }
0x15b8   :  { %7008 = vmatpush3.msra.mxu0 %v4453_v31 }
0x15b9   :  { %7010 = vmatmul.mubr.f32.vlgmr.msra.gmra.mxu0 %v4452_v14 }
0x1679   :  { %v4535_v51 = vpop.f32.mrf.mxu0 }
0x167a   :  { %4539 = vst [vmem:[#allocation5] sm:$0xff] %v4535_v51 }
0x167b   :  { %v7011_v36 = vpop.f32.mrf.mxu0 }
0x167c PF:  { %v14609_v41 = vld [vmem:[#allocation143_spill] sm:$0xff]  ;;  %v14610_v3 = vld [vmem:[#allocation145_spill] sm:$0xff]  ;;  %v14611_v15 = vld [vmem:[#allocation142_spill] sm:$0xff]  ;;  %s6508_s28 = sld [smem:[#allocation7 + $0x4]] }
0x167d   :  { %4543 = vmatprep.subr.mxu0 %v14609_v41  ;;  %4614 = vmatprep.subr.mxu1 %v14610_v3  ;;  %v14612_v58 = vld [vmem:[#allocation144_spill] sm:$0xff]  ;;  %v14613_v39 = vld [vmem:[#allocation139_spill] sm:$0xff]  ;;  %v14614_v42 = vld [vmem:[#allocation141_spill] sm:$0xff] }
0x167e   :  { %4544 = vmatpush1.msra.mxu0 %v14611_v15  ;;  %4615 = vmatpush1.msra.mxu1 %v14612_v58  ;;  %v14615_v49 = vld [vmem:[#allocation138_spill] sm:$0xff]  ;;  %v14616_v0 = vld [vmem:[#allocation140_spill] sm:$0xff]  ;;  %v14617_v55 = vld [vmem:[#allocation135_spill] sm:$0xff] }
0x167f   :  { %4545 = vmatprep.subr.mxu0 %v14613_v39  ;;  %4616 = vmatprep.subr.mxu1 %v14614_v42  ;;  %v14618_v20 = vld [vmem:[#allocation137_spill] sm:$0xff]  ;;  %v14619_v43 = vld [vmem:[#allocation134_spill] sm:$0xff]  ;;  %v14620_v56 = vld [vmem:[#allocation136_spill] sm:$0xff]  ;;  %v14672_v39 = vmov 0.0  }
0x1680   :  { %4546 = vmatpush1.msra.mxu0 %v14615_v49  ;;  %4617 = vmatpush1.msra.mxu1 %v14616_v0  ;;  %v14621_v48 = vld [vmem:[#allocation131_spill] sm:$0xff]  ;;  %v14622_v28 = vld [vmem:[#allocation133_spill] sm:$0xff]  ;;  %v14623_v8 = vld [vmem:[#allocation130_spill] sm:$0xff] }
0x1681   :  { %4547 = vmatprep.subr.mxu0 %v14617_v55  ;;  %4618 = vmatprep.subr.mxu1 %v14618_v20  ;;  %v14624_v24 = vld [vmem:[#allocation132_spill] sm:$0xff]  ;;  %v14625_v21 = vld [vmem:[#allocation127_spill] sm:$0xff]  ;;  %v14626_v23 = vld [vmem:[#allocation129_spill] sm:$0xff] }
0x1682   :  { %4548 = vmatpush1.msra.mxu0 %v14619_v43  ;;  %4619 = vmatpush1.msra.mxu1 %v14620_v56  ;;  %v14627_v25 = vld [vmem:[#allocation126_spill] sm:$0xff]  ;;  %v14628_v26 = vld [vmem:[#allocation128_spill] sm:$0xff]  ;;  %v14629_v16 = vld [vmem:[#allocation123_spill] sm:$0xff]  ;;  %p6509_p9 = scmp.le.s32.totalorder %s6508_s28, 0 }
0x1683   :  { %4549 = vmatprep.subr.mxu0 %v14621_v48  ;;  %4620 = vmatprep.subr.mxu1 %v14622_v28  ;;  %v14630_v34 = vld [vmem:[#allocation125_spill] sm:$0xff]  ;;  %v14631_v2 = vld [vmem:[#allocation122_spill] sm:$0xff]  ;;  %v14632_v9 = vld [vmem:[#allocation124_spill] sm:$0xff] }
0x1684   :  { %4550 = vmatpush1.msra.mxu0 %v14623_v8  ;;  %4621 = vmatpush1.msra.mxu1 %v14624_v24  ;;  %v14633_v11 = vld [vmem:[#allocation119_spill] sm:$0xff]  ;;  %v14634_v38 = vld [vmem:[#allocation121_spill] sm:$0xff]  ;;  %v14635_v35 = vld [vmem:[#allocation118_spill] sm:$0xff] }
0x1685   :  { %4551 = vmatprep.subr.mxu0 %v14625_v21  ;;  %4622 = vmatprep.subr.mxu1 %v14626_v23  ;;  %v14636_v50 = vld [vmem:[#allocation120_spill] sm:$0xff]  ;;  %v14637_v44 = vld [vmem:[#allocation115_spill] sm:$0xff]  ;;  %v14638_v1 = vld [vmem:[#allocation117_spill] sm:$0xff] }
0x1686   :  { %4552 = vmatpush1.msra.mxu0 %v14627_v25  ;;  %4623 = vmatpush1.msra.mxu1 %v14628_v26  ;;  %v14639_v32 = vld [vmem:[#allocation114_spill] sm:$0xff]  ;;  %v14640_v33 = vld [vmem:[#allocation116_spill] sm:$0xff]  ;;  %v14641_v54 = vld [vmem:[#allocation111_spill] sm:$0xff] }
0x1687   :  { %4553 = vmatprep.subr.mxu0 %v14629_v16  ;;  %4624 = vmatprep.subr.mxu1 %v14630_v34  ;;  %v14642_v29 = vld [vmem:[#allocation113_spill] sm:$0xff]  ;;  %v14643_v30 = vld [vmem:[#allocation110_spill] sm:$0xff]  ;;  %v14644_v10 = vld [vmem:[#allocation112_spill] sm:$0xff] }
0x1688   :  { %4554 = vmatpush1.msra.mxu0 %v14631_v2  ;;  %4625 = vmatpush1.msra.mxu1 %v14632_v9  ;;  %v14645_v40 = vld [vmem:[#allocation107_spill] sm:$0xff]  ;;  %v14646_v27 = vld [vmem:[#allocation109_spill] sm:$0xff]  ;;  %v14647_v53 = vld [vmem:[#allocation106_spill] sm:$0xff] }
0x1689   :  { %4555 = vmatprep.subr.mxu0 %v14633_v11  ;;  %4626 = vmatprep.subr.mxu1 %v14634_v38  ;;  %v14648_v57 = vld [vmem:[#allocation108_spill] sm:$0xff]  ;;  %v14649_v60 = vld [vmem:[#allocation103_spill] sm:$0xff]  ;;  %v14650_v61 = vld [vmem:[#allocation105_spill] sm:$0xff] }
0x168a   :  { %4556 = vmatpush1.msra.mxu0 %v14635_v35  ;;  %4627 = vmatpush1.msra.mxu1 %v14636_v50  ;;  %v14651_v37 = vld [vmem:[#allocation102_spill] sm:$0xff]  ;;  %v14652_v22 = vld [vmem:[#allocation104_spill] sm:$0xff]  ;;  %v14653_v63 = vld [vmem:[#allocation99_spill] sm:$0xff] }
0x168b   :  { %4557 = vmatprep.subr.mxu0 %v14637_v44  ;;  %4628 = vmatprep.subr.mxu1 %v14638_v1  ;;  %v14654_v19 = vld [vmem:[#allocation101_spill] sm:$0xff]  ;;  %v14655_v13 = vld [vmem:[#allocation98_spill] sm:$0xff]  ;;  %v14656_v59 = vld [vmem:[#allocation100_spill] sm:$0xff] }
0x168c   :  { %4558 = vmatpush1.msra.mxu0 %v14639_v32  ;;  %4629 = vmatpush1.msra.mxu1 %v14640_v33  ;;  %v14657_v62 = vld [vmem:[#allocation95_spill] sm:$0xff]  ;;  %v14658_v17 = vld [vmem:[#allocation97_spill] sm:$0xff]  ;;  %v14659_v12 = vld [vmem:[#allocation94_spill] sm:$0xff] }
0x168d   :  { %4559 = vmatprep.subr.mxu0 %v14641_v54  ;;  %4630 = vmatprep.subr.mxu1 %v14642_v29  ;;  %v14660_v52 = vld [vmem:[#allocation96_spill] sm:$0xff]  ;;  %v14661_v7 = vld [vmem:[#allocation91_spill] sm:$0xff]  ;;  %v14662_v46 = vld [vmem:[#allocation93_spill] sm:$0xff] }
0x168e   :  { %4560 = vmatpush1.msra.mxu0 %v14643_v30  ;;  %4631 = vmatpush1.msra.mxu1 %v14644_v10  ;;  %v14663_v6 = vld [vmem:[#allocation90_spill] sm:$0xff]  ;;  %v14664_v5 = vld [vmem:[#allocation92_spill] sm:$0xff]  ;;  %v14665_v31 = vld [vmem:[#allocation87_spill] sm:$0xff] }
0x168f   :  { %4561 = vmatprep.subr.mxu0 %v14645_v40  ;;  %4632 = vmatprep.subr.mxu1 %v14646_v27  ;;  %v14666_v14 = vld [vmem:[#allocation89_spill] sm:$0xff]  ;;  %v14667_v51 = vld [vmem:[#allocation86_spill] sm:$0xff]  ;;  %v14668_v36 = vld [vmem:[#allocation88_spill] sm:$0xff] }
0x1690   :  { %4562 = vmatpush1.msra.mxu0 %v14647_v53  ;;  %4633 = vmatpush1.msra.mxu1 %v14648_v57  ;;  %v4541_v41 = vld [vmem:[#allocation2] sm:$0xff]  ;;  %v14669_v3 = vld [vmem:[#allocation83_spill] sm:$0xff]  ;;  %v14670_v15 = vld [vmem:[#allocation85_spill] sm:$0xff] }
0x1691   :  { %4563 = vmatprep.subr.mxu0 %v14649_v60  ;;  %4634 = vmatprep.subr.mxu1 %v14650_v61  ;;  %v14671_v58 = vld [vmem:[#allocation82_spill] sm:$0xff]  ;;  %v14673_v42 = vld [vmem:[#allocation84_spill] sm:$0xff]  ;;  %v14674_v49 = vld [vmem:[#allocation79_spill] sm:$0xff] }
0x1692   :  { %4564 = vmatpush1.msra.mxu0 %v14651_v37  ;;  %4635 = vmatpush1.msra.mxu1 %v14652_v22  ;;  %v14675_v0 = vld [vmem:[#allocation81_spill] sm:$0xff]  ;;  %v14676_v55 = vld [vmem:[#allocation78_spill] sm:$0xff]  ;;  %v14677_v20 = vld [vmem:[#allocation80_spill] sm:$0xff] }
0x1693   :  { %4565 = vmatprep.subr.mxu0 %v14653_v63  ;;  %4636 = vmatprep.subr.mxu1 %v14654_v19  ;;  %v14678_v43 = vld [vmem:[#allocation75_spill] sm:$0xff]  ;;  %v14679_v56 = vld [vmem:[#allocation77_spill] sm:$0xff]  ;;  %v14680_v48 = vld [vmem:[#allocation74_spill] sm:$0xff] }
0x1694   :  { %4566 = vmatpush1.msra.mxu0 %v14655_v13  ;;  %4637 = vmatpush1.msra.mxu1 %v14656_v59  ;;  %v14681_v28 = vld [vmem:[#allocation76_spill] sm:$0xff]  ;;  %v14682_v8 = vld [vmem:[#allocation71_spill] sm:$0xff]  ;;  %v14683_v24 = vld [vmem:[#allocation73_spill] sm:$0xff] }
0x1695   :  { %4567 = vmatprep.subr.mxu0 %v14657_v62  ;;  %4638 = vmatprep.subr.mxu1 %v14658_v17  ;;  %v14684_v21 = vld [vmem:[#allocation70_spill] sm:$0xff]  ;;  %v14685_v23 = vld [vmem:[#allocation72_spill] sm:$0xff]  ;;  %v14686_v25 = vld [vmem:[#allocation67_spill] sm:$0xff] }
0x1696   :  { %4568 = vmatpush1.msra.mxu0 %v14659_v12  ;;  %4639 = vmatpush1.msra.mxu1 %v14660_v52  ;;  %v14687_v26 = vld [vmem:[#allocation69_spill] sm:$0xff]  ;;  %v14688_v16 = vld [vmem:[#allocation66_spill] sm:$0xff]  ;;  %v14689_v34 = vld [vmem:[#allocation68_spill] sm:$0xff] }
0x1697   :  { %4569 = vmatprep.subr.mxu0 %v14661_v7  ;;  %4640 = vmatprep.subr.mxu1 %v14662_v46  ;;  %v14690_v2 = vld [vmem:[#allocation63_spill] sm:$0xff]  ;;  %v14691_v9 = vld [vmem:[#allocation65_spill] sm:$0xff]  ;;  %v14692_v11 = vld [vmem:[#allocation62_spill] sm:$0xff] }
0x1698   :  { %4570 = vmatpush1.msra.mxu0 %v14663_v6  ;;  %4641 = vmatpush1.msra.mxu1 %v14664_v5  ;;  %v14693_v38 = vld [vmem:[#allocation64_spill] sm:$0xff]  ;;  %v14694_v35 = vld [vmem:[#allocation59_spill] sm:$0xff]  ;;  %v14695_v50 = vld [vmem:[#allocation61_spill] sm:$0xff] }
0x1699   :  { %4571 = vmatprep.subr.mxu0 %v14665_v31  ;;  %4642 = vmatprep.subr.mxu1 %v14666_v14  ;;  %v14696_v44 = vld [vmem:[#allocation58_spill] sm:$0xff]  ;;  %v14697_v1 = vld [vmem:[#allocation60_spill] sm:$0xff]  ;;  %v14698_v32 = vld [vmem:[#allocation55_spill] sm:$0xff] }
0x169a   :  { %4572 = vmatpush1.msra.mxu0 %v14667_v51  ;;  %4643 = vmatpush1.msra.mxu1 %v14668_v36  ;;  %v14699_v33 = vld [vmem:[#allocation57_spill] sm:$0xff]  ;;  %v14700_v54 = vld [vmem:[#allocation54_spill] sm:$0xff]  ;;  %v14701_v29 = vld [vmem:[#allocation56_spill] sm:$0xff] }
0x169b   :  { %4573 = vmatprep.subr.mxu0 %v14669_v3  ;;  %4644 = vmatprep.subr.mxu1 %v14670_v15  ;;  %v14702_v30 = vld [vmem:[#allocation51_spill] sm:$0xff]  ;;  %v14703_v10 = vld [vmem:[#allocation53_spill] sm:$0xff]  ;;  %v14704_v40 = vld [vmem:[#allocation50_spill] sm:$0xff] }
0x169c   :  { %4574 = vmatpush1.msra.mxu0 %v14671_v58  ;;  %4607 = vmatprep.mubr.f32.mxu0 %v14672_v39  ;;  %v14705_v27 = vld [vmem:[#allocation52_spill] sm:$0xff]  ;;  %v14706_v53 = vld [vmem:[#allocation47_spill] sm:$0xff]  ;;  %v14707_v57 = vld [vmem:[#allocation49_spill] sm:$0xff] }
0x169d   :  { %4645 = vmatpush1.msra.mxu1 %v14673_v42  ;;  %4608 = vmatmul.mubr.f32.vlgmr.msra.gmra.mxu0 %v4541_v41  ;;  %v14708_v60 = vld [vmem:[#allocation46_spill] sm:$0xff]  ;;  %v14709_v61 = vld [vmem:[#allocation48_spill] sm:$0xff]  ;;  %v14710_v37 = vld [vmem:[#allocation43_spill] sm:$0xff] }
0x169e   :  { %4678 = vmatprep.mubr.f32.mxu1 %v14672_v39  ;;  %4685 = vmatprep.subr.mxu0 %v14674_v49  ;;  %v14711_v22 = vld [vmem:[#allocation45_spill] sm:$0xff]  ;;  %v14712_v63 = vld [vmem:[#allocation42_spill] sm:$0xff]  ;;  %v14713_v19 = vld [vmem:[#allocation44_spill] sm:$0xff] }
0x169f   :  { %4756 = vmatprep.subr.mxu1 %v14675_v0  ;;  %4679 = vmatmul.mubr.f32.vlgmr.msra.gmra.mxu1 %v4541_v41  ;;  %v14714_v13 = vld [vmem:[#allocation39_spill] sm:$0xff]  ;;  %v14715_v59 = vld [vmem:[#allocation41_spill] sm:$0xff]  ;;  %v14716_v62 = vld [vmem:[#allocation38_spill] sm:$0xff] }
0x16a0   :  { %4686 = vmatpush1.msra.mxu0 %v14676_v55  ;;  %4757 = vmatpush1.msra.mxu1 %v14677_v20  ;;  %v14717_v17 = vld [vmem:[#allocation40_spill] sm:$0xff]  ;;  %v14718_v12 = vld [vmem:[#allocation35_spill] sm:$0xff]  ;;  %v14719_v52 = vld [vmem:[#allocation37_spill] sm:$0xff] }
0x16a1   :  { %4687 = vmatprep.subr.mxu0 %v14678_v43  ;;  %4758 = vmatprep.subr.mxu1 %v14679_v56  ;;  %v14720_v7 = vld [vmem:[#allocation34_spill] sm:$0xff]  ;;  %v14721_v46 = vld [vmem:[#allocation36_spill] sm:$0xff]  ;;  %v14722_v6 = vld [vmem:[#allocation31_spill] sm:$0xff] }
0x16a2   :  { %4688 = vmatpush1.msra.mxu0 %v14680_v48  ;;  %4759 = vmatpush1.msra.mxu1 %v14681_v28  ;;  %v14723_v5 = vld [vmem:[#allocation33_spill] sm:$0xff]  ;;  %v14724_v31 = vld [vmem:[#allocation30_spill] sm:$0xff]  ;;  %v14725_v14 = vld [vmem:[#allocation32_spill] sm:$0xff] }
0x16a3   :  { %4689 = vmatprep.subr.mxu0 %v14682_v8  ;;  %4760 = vmatprep.subr.mxu1 %v14683_v24  ;;  %v14726_v51 = vld [vmem:[#allocation27_spill] sm:$0xff]  ;;  %v14727_v36 = vld [vmem:[#allocation29_spill] sm:$0xff]  ;;  %v14728_v41 = vld [vmem:[#allocation26_spill] sm:$0xff] }
0x16a4   :  { %4690 = vmatpush1.msra.mxu0 %v14684_v21  ;;  %4761 = vmatpush1.msra.mxu1 %v14685_v23  ;;  %v14729_v3 = vld [vmem:[#allocation28_spill] sm:$0xff]  ;;  %v14730_v15 = vld [vmem:[#allocation23_spill] sm:$0xff]  ;;  %v14731_v58 = vld [vmem:[#allocation25_spill] sm:$0xff] }
0x16a5   :  { %4691 = vmatprep.subr.mxu0 %v14686_v25  ;;  %4762 = vmatprep.subr.mxu1 %v14687_v26  ;;  %v14732_v42 = vld [vmem:[#allocation22_spill] sm:$0xff]  ;;  %v14733_v49 = vld [vmem:[#allocation24_spill] sm:$0xff]  ;;  %v14734_v0 = vld [vmem:[#allocation19_spill] sm:$0xff] }
0x16a6   :  { %4692 = vmatpush1.msra.mxu0 %v14688_v16  ;;  %4763 = vmatpush1.msra.mxu1 %v14689_v34  ;;  %v14735_v55 = vld [vmem:[#allocation21_spill] sm:$0xff]  ;;  %v14736_v43 = vld [vmem:[#allocation18_spill] sm:$0xff]  ;;  %v14737_v56 = vld [vmem:[#allocation20_spill] sm:$0xff] }
0x16a7   :  { %4693 = vmatprep.subr.mxu0 %v14690_v2  ;;  %4764 = vmatprep.subr.mxu1 %v14691_v9  ;;  %v4540_v20 = vld [vmem:[#allocation5] sm:$0xff]  ;;  %v14738_v48 = vld [vmem:[#allocation162_spill] sm:$0xff]  ;;  %v14740_v8 = vld [vmem:[#allocation160_spill] sm:$0xff] }
0x16a8   :  { %4694 = vmatpush1.msra.mxu0 %v14692_v11  ;;  %4765 = vmatpush1.msra.mxu1 %v14693_v38  ;;  %v14739_v28 = vld [vmem:[#allocation161_spill] sm:$0xff]  ;;  %v14741_v24 = vld [vmem:[#allocation159_spill] sm:$0xff]  ;;  %v14742_v21 = vld [vmem:[#allocation158_spill] sm:$0xff] }
0x16a9   :  { %4695 = vmatprep.subr.mxu0 %v14694_v35  ;;  %4766 = vmatprep.subr.mxu1 %v14695_v50  ;;  %v14743_v23 = vld [vmem:[#allocation157_spill] sm:$0xff]  ;;  %v14744_v25 = vld [vmem:[#allocation156_spill] sm:$0xff]  ;;  %v14745_v26 = vld [vmem:[#allocation155_spill] sm:$0xff] }
0x16aa   :  { %4696 = vmatpush1.msra.mxu0 %v14696_v44  ;;  %4767 = vmatpush1.msra.mxu1 %v14697_v1  ;;  %v14746_v16 = vld [vmem:[#allocation154_spill] sm:$0xff]  ;;  %v14747_v34 = vld [vmem:[#allocation153_spill] sm:$0xff]  ;;  %v14748_v2 = vld [vmem:[#allocation152_spill] sm:$0xff] }
0x16ab   :  { %4697 = vmatprep.subr.mxu0 %v14698_v32  ;;  %4768 = vmatprep.subr.mxu1 %v14699_v33  ;;  %v14749_v9 = vld [vmem:[#allocation151_spill] sm:$0xff]  ;;  %v14750_v11 = vld [vmem:[#allocation150_spill] sm:$0xff]  ;;  %v14751_v38 = vld [vmem:[#allocation149_spill] sm:$0xff] }
0x16ac   :  { %4698 = vmatpush1.msra.mxu0 %v14700_v54  ;;  %4769 = vmatpush1.msra.mxu1 %v14701_v29  ;;  %v14752_v35 = vld [vmem:[#allocation148_spill] sm:$0xff]  ;;  %v14753_v50 = vld [vmem:[#allocation147_spill] sm:$0xff] }
0x16ad   :  { %4699 = vmatprep.subr.mxu0 %v14702_v30  ;;  %4770 = vmatprep.subr.mxu1 %v14703_v10 }
0x16ae   :  { %4700 = vmatpush1.msra.mxu0 %v14704_v40  ;;  %4771 = vmatpush1.msra.mxu1 %v14705_v27 }
0x16af   :  { %4701 = vmatprep.subr.mxu0 %v14706_v53  ;;  %4772 = vmatprep.subr.mxu1 %v14707_v57 }
0x16b0   :  { %4702 = vmatpush1.msra.mxu0 %v14708_v60  ;;  %4773 = vmatpush1.msra.mxu1 %v14709_v61 }
0x16b1   :  { %4703 = vmatprep.subr.mxu0 %v14710_v37  ;;  %4774 = vmatprep.subr.mxu1 %v14711_v22 }
0x16b2   :  { %4704 = vmatpush1.msra.mxu0 %v14712_v63  ;;  %4775 = vmatpush1.msra.mxu1 %v14713_v19 }
0x16b3   :  { %4705 = vmatprep.subr.mxu0 %v14714_v13  ;;  %4776 = vmatprep.subr.mxu1 %v14715_v59 }
0x16b4   :  { %4706 = vmatpush1.msra.mxu0 %v14716_v62  ;;  %4777 = vmatpush1.msra.mxu1 %v14717_v17 }
0x16b5   :  { %4707 = vmatprep.subr.mxu0 %v14718_v12  ;;  %4778 = vmatprep.subr.mxu1 %v14719_v52 }
0x16b6   :  { %4708 = vmatpush1.msra.mxu0 %v14720_v7  ;;  %4779 = vmatpush1.msra.mxu1 %v14721_v46  ;;  %v4542_v46 = vld [vmem:[#allocation3] sm:$0xff] }
0x16b7   :  { %4709 = vmatprep.subr.mxu0 %v14722_v6  ;;  %4780 = vmatprep.subr.mxu1 %v14723_v5 }
0x16b8   :  { %4710 = vmatpush1.msra.mxu0 %v14724_v31  ;;  %4781 = vmatpush1.msra.mxu1 %v14725_v14 }
0x16b9   :  { %4711 = vmatprep.subr.mxu0 %v14726_v51  ;;  %4782 = vmatprep.subr.mxu1 %v14727_v36 }
0x16ba   :  { %4712 = vmatpush1.msra.mxu0 %v14728_v41  ;;  %4783 = vmatpush1.msra.mxu1 %v14729_v3 }
0x16bb   :  { %4713 = vmatprep.subr.mxu0 %v14730_v15  ;;  %4784 = vmatprep.subr.mxu1 %v14731_v58 }
0x16bc   :  { %4714 = vmatpush1.msra.mxu0 %v14732_v42  ;;  %4785 = vmatpush1.msra.mxu1 %v14733_v49  ;;  %v14754_v42 = vld [vmem:[#allocation163_spill] sm:$0xff] }
0x16bd   :  { %4715 = vmatprep.subr.mxu0 %v14734_v0  ;;  %4786 = vmatprep.subr.mxu1 %v14735_v55 }
0x16be   :  { %4716 = vmatpush1.msra.mxu0 %v14736_v43  ;;  %4749 = vmatprep.mubr.f32.mxu0 %v14672_v39 }
0x16bf   :  { %4787 = vmatpush1.msra.mxu1 %v14737_v56  ;;  %4820 = vmatprep.mubr.f32.mxu1 %v14672_v39 }
0x16c0   :  { %4750 = vmatmul.mubr.f32.vlgmr.msra.gmra.mxu0 %v4540_v20  ;;  %4821 = vmatmul.mubr.f32.vlgmr.msra.gmra.mxu1 %v4540_v20  ;;  %v14755_v20 = vld [vmem:[#allocation249_spill] sm:$0xff] }
0x16c1   :  { %7012 = vmatprep.subr.mxu0 %v14672_v39  ;;  %7044 = vmatprep.mubr.msk.f32.mxu0 %vm7868_vm1, %v14672_v39 }
0x16c2   :  { %7013 = vmatpush3.msra.mxu0 %v14738_v48 }
0x16c3   :  { %7014 = vmatprep.subr.mxu0 %v14672_v39 }
0x16c4   :  { %7015 = vmatpush3.msra.mxu0 %v14739_v28 }
0x16c5   :  { %7016 = vmatprep.subr.mxu0 %v14672_v39 }
0x16c6   :  { %7017 = vmatpush3.msra.mxu0 %v14740_v8 }
0x16c7   :  { %7018 = vmatprep.subr.mxu0 %v14672_v39 }
0x16c8   :  { %7019 = vmatpush3.msra.mxu0 %v14741_v24 }
0x16c9   :  { %7020 = vmatprep.subr.mxu0 %v14672_v39 }
0x16ca   :  { %7021 = vmatpush3.msra.mxu0 %v14742_v21 }
0x16cb   :  { %7022 = vmatprep.subr.mxu0 %v14672_v39 }
0x16cc   :  { %7023 = vmatpush3.msra.mxu0 %v14743_v23 }
0x16cd   :  { %7024 = vmatprep.subr.mxu0 %v14672_v39 }
0x16ce   :  { %7025 = vmatpush3.msra.mxu0 %v14744_v25 }
0x16cf   :  { %7026 = vmatprep.subr.mxu0 %v14672_v39 }
0x16d0   :  { %7027 = vmatpush3.msra.mxu0 %v14745_v26 }
0x16d1   :  { %7028 = vmatprep.subr.mxu0 %v14672_v39 }
0x16d2   :  { %7029 = vmatpush3.msra.mxu0 %v14746_v16 }
0x16d3   :  { %7030 = vmatprep.subr.mxu0 %v14672_v39 }
0x16d4   :  { %7031 = vmatpush3.msra.mxu0 %v14747_v34 }
0x16d5   :  { %7032 = vmatprep.subr.mxu0 %v14672_v39 }
0x16d6   :  { %7033 = vmatpush3.msra.mxu0 %v14748_v2 }
0x16d7   :  { %7034 = vmatprep.subr.mxu0 %v14672_v39 }
0x16d8   :  { %7035 = vmatpush3.msra.mxu0 %v14749_v9 }
0x16d9   :  { %7036 = vmatprep.subr.mxu0 %v14672_v39 }
0x16da   :  { %7037 = vmatpush3.msra.mxu0 %v14750_v11 }
0x16db   :  { %7038 = vmatprep.subr.mxu0 %v14672_v39 }
0x16dc   :  { %7039 = vmatpush3.msra.mxu0 %v14751_v38 }
0x16dd   :  { %7040 = vmatprep.subr.mxu0 %v14672_v39 }
0x16de   :  { %7041 = vmatpush3.msra.mxu0 %v14752_v35 }
0x16df   :  { %7042 = vmatprep.subr.mxu0 %v14672_v39 }
0x16e0   :  { %7043 = vmatpush3.msra.mxu0 %v14753_v50 }
0x175d   :  { %v4609_v44 = vpop.f32.mrf.mxu0 }
0x175f   :  { %v4680_v1 = vpop.f32.mrf.mxu1  ;;  %v4611_v32 = vpop.f32.mrf.mxu0 }
0x1761   :  { %v4682_v54 = vpop.f32.mrf.mxu1 }
0x1780   :  { %v4751_v33 = vpop.f32.mrf.mxu0  ;;  %v4822_v40 = vpop.f32.mrf.mxu1 }
0x1781   :  { %v4752_v29 = vadd.f32 %v4751_v33, %v4609_v44  ;;  %v4823_v63 = vadd.f32 %v4822_v40, %v4680_v1 }
0x1782   :  { %v4753_v30 = vpop.f32.mrf.mxu0  ;;  %v4824_v61 = vpop.f32.mrf.mxu1 }
0x1783   :  { %v4827_v10 = vadd.f32 %v4752_v29, %v11622_v4  ;;  %v4754_v27 = vadd.f32 %v4753_v30, %v4611_v32  ;;  %v4825_v37 = vadd.f32 %v4824_v61, %v4682_v54  ;;  %v4829_v59 = vadd.f32 %v4823_v63, %v11640_v45 }
0x1785   :  { %v6505_v53 = vmul.f32 -1.442695, %v4827_v10  ;;  %v4828_v57 = vadd.f32 %v4754_v27, %v11627_v47  ;;  %v4830_v22 = vadd.f32 %v4825_v37, %v11634_v18 }
0x1787   :  { %7716 = vpow2.f32 %v6505_v53  ;;  %v6506_v60 = vmul.f32 -1.442695, %v4828_v57  ;;  %v6507_v19 = vmul.f32 -1.442695, %v4830_v22 }
0x1789   :  { %7718 = vpow2.f32 %v6506_v60 }
0x178a   :  { %7720 = vpow2.f32 %v6507_v19 }
0x1794   :  { %v7717_v13 = vpop.eup %7716 }
0x1795   :  { %v4834_v62 = vadd.f32 1.0, %v7717_v13 }
0x1796   :  { %v7719_v17 = vpop.eup %7718 }
0x1797   :  { %7722 = vrcp.f32 %v4834_v62  ;;  %v4840_v12 = vadd.f32 1.0, %v7719_v17  ;;  %v7721_v52 = vpop.eup %7720 }
0x1798   :  { %7724 = vtanh.f32 %v4829_v59  ;;  %v4847_v31 = vadd.f32 1.0, %v7721_v52 }
0x1799   :  { %7726 = vrcp.f32 %v4840_v12 }
0x179a   :  { %7728 = vrcp.f32 %v4847_v31 }
0x17a4   :  { %v7723_v7 = vpop.eup %7722 }
0x17a5   :  { %v7725_v6 = vpop.eup %7724 }
0x17a6   :  { %v7727_v5 = vpop.eup %7726  ;;  %v4851_v14 = vmul.f32 %v7725_v6, %v7723_v7 }
0x17a7   :  { %v4850_v51 = vmul.f32 %v7727_v5, %v4542_v46  ;;  %v7729_v41 = vpop.eup %7728 }
0x17a9   :  { %v4852_v36 = vadd.f32 %v4851_v14, %v4850_v51 }
0x17ab   :  { %4937 = vst [vmem:[#allocation3] sm:$0xff] %v4852_v36  ;;  %7730 = vtanh.f32 %v4852_v36 }
0x17b8   :  { %v7731_v3 = vpop.eup %7730 }
0x17b9   :  { %v4854_v15 = vmul.f32 %v7731_v3, %v7729_v41 }
0x17bb   :  { %7045 = vmatmul.mubr.f32.vlgmr.msra.gmra.mxu0 %v4854_v15  ;;  %4936 = vst [vmem:[#allocation2] sm:$0xff] %v4854_v15 }
0x187b   :  { %v4921_v58 = vpop.f32.mrf.mxu0 }
0x187c   :  { %v4922_v49 = vadd.f32 %v14754_v42, %v4921_v58 }
0x187d   :  { %v7046_v0 = vpop.f32.mrf.mxu0 }
0x187e   :  { %4926 = vst [vmem:[#allocation13 + $0x20] sm:$0xff] %v4922_v49  ;;  %4927 = vmax.xlane.f32.xlu0 %v4922_v49 }
0x1907   :  { %v4928_v55 = vpop.xlane.xlu0 %4927 }
0x1908   :  { %vm4929_vm11 = vcmp.eq.f32.partialorder %v4922_v49, %v4928_v55 }
0x1909   :  { %v4930_v43 = vsel %vm4929_vm11, %v14755_v20, 128.0 }
0x190a   :  { %4931 = vmin.xlane.f32.xlu0 %v4930_v43 }
0x1992   :  { %4942 = sbr.rel (%p6509_p9) target bundleno = 6553 (0x1999), region = 89 }
0x1993   :  { %v4932_v56 = vpop.xlane.xlu0 %4931 }
0x1994   :  { %vm4933_vm12 = vcmp.eq.f32.partialorder %v14755_v20, %v4932_v56 }
0x1995   :  { %v4934_v48 = vsel %vm4933_vm12, 1.0, %v14672_v39 }
0x1996   :  { %4935 = vst [vmem:[#allocation4] sm:$0xff] %v4934_v48 }
0x1997   :  { %v6510_v28 = vld [vmem:[%s13002_s2 + $0x20] sm:$0xff] }
0x1998   :  { %4945 = vst [vmem:[#allocation5] sm:$0xff] %v6510_v28 }
0x1999 PF:  { %p6511_p10 = scmp.ne.s32.totalorder %s6508_s28, 0 }
0x199b   :  { %4949 = sbr.rel (%p6511_p10) target bundleno = 6788 (0x1a84), region = 93 }
0x19a0   :  { %v4966_v8 = vld [vmem:[%s13009_s9 + $0x78] sm:$0xff]  ;;  %v7875_v24 = vmov 0.0   ;;  %v4965_v39 = vld [vmem:[%s13009_s9 + $0x70] sm:$0xff]  ;;  %vm7876_vm13 = vmmov 0   ;;  %v4964_v21 = vld [vmem:[%s13009_s9 + $0x68] sm:$0xff] }
0x19a1   :  { %7047 = vmatprep.subr.mxu0 %v7875_v24  ;;  %7079 = vmatprep.mubr.msk.f32.mxu0 %vm7876_vm13, %v7875_v24  ;;  %v4963_v23 = vld [vmem:[%s13009_s9 + $0x60] sm:$0xff]  ;;  %v4962_v25 = vld [vmem:[%s13009_s9 + $0x58] sm:$0xff]  ;;  %v4961_v26 = vld [vmem:[%s13009_s9 + $0x50] sm:$0xff] }
0x19a2   :  { %7048 = vmatpush3.msra.mxu0 %v4966_v8  ;;  %v4960_v16 = vld [vmem:[%s13009_s9 + $0x48] sm:$0xff]  ;;  %v4959_v34 = vld [vmem:[%s13009_s9 + $0x40] sm:$0xff]  ;;  %v4958_v2 = vld [vmem:[%s13009_s9 + $0x38] sm:$0xff] }
0x19a3   :  { %7049 = vmatprep.subr.mxu0 %v7875_v24  ;;  %v4957_v9 = vld [vmem:[%s13009_s9 + $0x30] sm:$0xff]  ;;  %v4956_v11 = vld [vmem:[%s13009_s9 + $0x28] sm:$0xff]  ;;  %v4955_v38 = vld [vmem:[%s13009_s9 + $0x20] sm:$0xff] }
0x19a4   :  { %7050 = vmatpush3.msra.mxu0 %v4965_v39  ;;  %v4954_v35 = vld [vmem:[%s13009_s9 + $0x18] sm:$0xff]  ;;  %v4953_v50 = vld [vmem:[%s13009_s9 + $0x10] sm:$0xff]  ;;  %v4952_v44 = vld [vmem:[%s13009_s9 + $0x8] sm:$0xff] }
0x19a5   :  { %7051 = vmatprep.subr.mxu0 %v7875_v24  ;;  %v4951_v1 = vld [vmem:[%s13009_s9] sm:$0xff]  ;;  %v4950_v32 = vld [vmem:[#allocation4] sm:$0xff] }
0x19a6   :  { %7052 = vmatpush3.msra.mxu0 %v4964_v21 }
0x19a7   :  { %7053 = vmatprep.subr.mxu0 %v7875_v24 }
0x19a8   :  { %7054 = vmatpush3.msra.mxu0 %v4963_v23 }
0x19a9   :  { %7055 = vmatprep.subr.mxu0 %v7875_v24 }
0x19aa   :  { %7056 = vmatpush3.msra.mxu0 %v4962_v25 }
0x19ab   :  { %7057 = vmatprep.subr.mxu0 %v7875_v24 }
0x19ac   :  { %7058 = vmatpush3.msra.mxu0 %v4961_v26 }
0x19ad   :  { %7059 = vmatprep.subr.mxu0 %v7875_v24 }
0x19ae   :  { %7060 = vmatpush3.msra.mxu0 %v4960_v16 }
0x19af   :  { %7061 = vmatprep.subr.mxu0 %v7875_v24 }
0x19b0   :  { %7062 = vmatpush3.msra.mxu0 %v4959_v34 }
0x19b1   :  { %7063 = vmatprep.subr.mxu0 %v7875_v24 }
0x19b2   :  { %7064 = vmatpush3.msra.mxu0 %v4958_v2 }
0x19b3   :  { %7065 = vmatprep.subr.mxu0 %v7875_v24 }
0x19b4   :  { %7066 = vmatpush3.msra.mxu0 %v4957_v9 }
0x19b5   :  { %7067 = vmatprep.subr.mxu0 %v7875_v24 }
0x19b6   :  { %7068 = vmatpush3.msra.mxu0 %v4956_v11 }
0x19b7   :  { %7069 = vmatprep.subr.mxu0 %v7875_v24 }
0x19b8   :  { %7070 = vmatpush3.msra.mxu0 %v4955_v38 }
0x19b9   :  { %7071 = vmatprep.subr.mxu0 %v7875_v24 }
0x19ba   :  { %7072 = vmatpush3.msra.mxu0 %v4954_v35 }
0x19bb   :  { %7073 = vmatprep.subr.mxu0 %v7875_v24 }
0x19bc   :  { %7074 = vmatpush3.msra.mxu0 %v4953_v50 }
0x19bd   :  { %7075 = vmatprep.subr.mxu0 %v7875_v24 }
0x19be   :  { %7076 = vmatpush3.msra.mxu0 %v4952_v44 }
0x19bf   :  { %7077 = vmatprep.subr.mxu0 %v7875_v24 }
0x19c0   :  { %7078 = vmatpush3.msra.mxu0 %v4951_v1 }
0x19c1   :  { %7080 = vmatmul.mubr.f32.vlgmr.msra.gmra.mxu0 %v4950_v32 }
0x1a81   :  { %v5033_v33 = vpop.f32.mrf.mxu0 }
0x1a82   :  { %5037 = vst [vmem:[#allocation5] sm:$0xff] %v5033_v33 }
0x1a83   :  { %v7081_v54 = vpop.f32.mrf.mxu0 }
0x1a84 PF:  { %v14756_v29 = vld [vmem:[#allocation143_spill] sm:$0xff]  ;;  %v14757_v30 = vld [vmem:[#allocation145_spill] sm:$0xff]  ;;  %v14758_v10 = vld [vmem:[#allocation142_spill] sm:$0xff]  ;;  %s6515_s16 = sld [smem:[#allocation7 + $0x5]] }
0x1a85   :  { %5041 = vmatprep.subr.mxu0 %v14756_v29  ;;  %5112 = vmatprep.subr.mxu1 %v14757_v30  ;;  %v14759_v40 = vld [vmem:[#allocation144_spill] sm:$0xff]  ;;  %v14760_v27 = vld [vmem:[#allocation139_spill] sm:$0xff]  ;;  %v14761_v53 = vld [vmem:[#allocation141_spill] sm:$0xff] }
0x1a86   :  { %5042 = vmatpush1.msra.mxu0 %v14758_v10  ;;  %5113 = vmatpush1.msra.mxu1 %v14759_v40  ;;  %v14762_v57 = vld [vmem:[#allocation138_spill] sm:$0xff]  ;;  %v14763_v60 = vld [vmem:[#allocation140_spill] sm:$0xff]  ;;  %v14764_v61 = vld [vmem:[#allocation135_spill] sm:$0xff] }
0x1a87   :  { %5043 = vmatprep.subr.mxu0 %v14760_v27  ;;  %5114 = vmatprep.subr.mxu1 %v14761_v53  ;;  %v14765_v37 = vld [vmem:[#allocation137_spill] sm:$0xff]  ;;  %v14766_v22 = vld [vmem:[#allocation134_spill] sm:$0xff]  ;;  %v14767_v63 = vld [vmem:[#allocation136_spill] sm:$0xff]  ;;  %v14819_v27 = vmov 0.0  }
0x1a88   :  { %5044 = vmatpush1.msra.mxu0 %v14762_v57  ;;  %5115 = vmatpush1.msra.mxu1 %v14763_v60  ;;  %v14768_v19 = vld [vmem:[#allocation131_spill] sm:$0xff]  ;;  %v14769_v13 = vld [vmem:[#allocation133_spill] sm:$0xff]  ;;  %v14770_v59 = vld [vmem:[#allocation130_spill] sm:$0xff] }
0x1a89   :  { %5045 = vmatprep.subr.mxu0 %v14764_v61  ;;  %5116 = vmatprep.subr.mxu1 %v14765_v37  ;;  %v14771_v62 = vld [vmem:[#allocation132_spill] sm:$0xff]  ;;  %v14772_v17 = vld [vmem:[#allocation127_spill] sm:$0xff]  ;;  %v14773_v12 = vld [vmem:[#allocation129_spill] sm:$0xff] }
0x1a8a   :  { %5046 = vmatpush1.msra.mxu0 %v14766_v22  ;;  %5117 = vmatpush1.msra.mxu1 %v14767_v63  ;;  %v14774_v52 = vld [vmem:[#allocation126_spill] sm:$0xff]  ;;  %v14775_v7 = vld [vmem:[#allocation128_spill] sm:$0xff]  ;;  %v14776_v46 = vld [vmem:[#allocation123_spill] sm:$0xff]  ;;  %p6516_p11 = scmp.le.s32.totalorder %s6515_s16, 0 }
0x1a8b   :  { %5047 = vmatprep.subr.mxu0 %v14768_v19  ;;  %5118 = vmatprep.subr.mxu1 %v14769_v13  ;;  %v14777_v6 = vld [vmem:[#allocation125_spill] sm:$0xff]  ;;  %v14778_v5 = vld [vmem:[#allocation122_spill] sm:$0xff]  ;;  %v14779_v31 = vld [vmem:[#allocation124_spill] sm:$0xff] }
0x1a8c   :  { %5048 = vmatpush1.msra.mxu0 %v14770_v59  ;;  %5119 = vmatpush1.msra.mxu1 %v14771_v62  ;;  %v14780_v14 = vld [vmem:[#allocation119_spill] sm:$0xff]  ;;  %v14781_v51 = vld [vmem:[#allocation121_spill] sm:$0xff]  ;;  %v14782_v36 = vld [vmem:[#allocation118_spill] sm:$0xff] }
0x1a8d   :  { %5049 = vmatprep.subr.mxu0 %v14772_v17  ;;  %5120 = vmatprep.subr.mxu1 %v14773_v12  ;;  %v14783_v41 = vld [vmem:[#allocation120_spill] sm:$0xff]  ;;  %v14784_v3 = vld [vmem:[#allocation115_spill] sm:$0xff]  ;;  %v14785_v15 = vld [vmem:[#allocation117_spill] sm:$0xff] }
0x1a8e   :  { %5050 = vmatpush1.msra.mxu0 %v14774_v52  ;;  %5121 = vmatpush1.msra.mxu1 %v14775_v7  ;;  %v14786_v58 = vld [vmem:[#allocation114_spill] sm:$0xff]  ;;  %v14787_v42 = vld [vmem:[#allocation116_spill] sm:$0xff]  ;;  %v14788_v49 = vld [vmem:[#allocation111_spill] sm:$0xff] }
0x1a8f   :  { %5051 = vmatprep.subr.mxu0 %v14776_v46  ;;  %5122 = vmatprep.subr.mxu1 %v14777_v6  ;;  %v14789_v0 = vld [vmem:[#allocation113_spill] sm:$0xff]  ;;  %v14790_v55 = vld [vmem:[#allocation110_spill] sm:$0xff]  ;;  %v14791_v20 = vld [vmem:[#allocation112_spill] sm:$0xff] }
0x1a90   :  { %5052 = vmatpush1.msra.mxu0 %v14778_v5  ;;  %5123 = vmatpush1.msra.mxu1 %v14779_v31  ;;  %v14792_v43 = vld [vmem:[#allocation107_spill] sm:$0xff]  ;;  %v14793_v56 = vld [vmem:[#allocation109_spill] sm:$0xff]  ;;  %v14794_v48 = vld [vmem:[#allocation106_spill] sm:$0xff] }
0x1a91   :  { %5053 = vmatprep.subr.mxu0 %v14780_v14  ;;  %5124 = vmatprep.subr.mxu1 %v14781_v51  ;;  %v14795_v28 = vld [vmem:[#allocation108_spill] sm:$0xff]  ;;  %v14796_v8 = vld [vmem:[#allocation103_spill] sm:$0xff]  ;;  %v14797_v24 = vld [vmem:[#allocation105_spill] sm:$0xff] }
0x1a92   :  { %5054 = vmatpush1.msra.mxu0 %v14782_v36  ;;  %5125 = vmatpush1.msra.mxu1 %v14783_v41  ;;  %v14798_v39 = vld [vmem:[#allocation102_spill] sm:$0xff]  ;;  %v14799_v21 = vld [vmem:[#allocation104_spill] sm:$0xff]  ;;  %v14800_v23 = vld [vmem:[#allocation99_spill] sm:$0xff] }
0x1a93   :  { %5055 = vmatprep.subr.mxu0 %v14784_v3  ;;  %5126 = vmatprep.subr.mxu1 %v14785_v15  ;;  %v14801_v25 = vld [vmem:[#allocation101_spill] sm:$0xff]  ;;  %v14802_v26 = vld [vmem:[#allocation98_spill] sm:$0xff]  ;;  %v14803_v16 = vld [vmem:[#allocation100_spill] sm:$0xff] }
0x1a94   :  { %5056 = vmatpush1.msra.mxu0 %v14786_v58  ;;  %5127 = vmatpush1.msra.mxu1 %v14787_v42  ;;  %v14804_v34 = vld [vmem:[#allocation95_spill] sm:$0xff]  ;;  %v14805_v2 = vld [vmem:[#allocation97_spill] sm:$0xff]  ;;  %v14806_v9 = vld [vmem:[#allocation94_spill] sm:$0xff] }
0x1a95   :  { %5057 = vmatprep.subr.mxu0 %v14788_v49  ;;  %5128 = vmatprep.subr.mxu1 %v14789_v0  ;;  %v14807_v11 = vld [vmem:[#allocation96_spill] sm:$0xff]  ;;  %v14808_v38 = vld [vmem:[#allocation91_spill] sm:$0xff]  ;;  %v14809_v35 = vld [vmem:[#allocation93_spill] sm:$0xff] }
0x1a96   :  { %5058 = vmatpush1.msra.mxu0 %v14790_v55  ;;  %5129 = vmatpush1.msra.mxu1 %v14791_v20  ;;  %v14810_v50 = vld [vmem:[#allocation90_spill] sm:$0xff]  ;;  %v14811_v44 = vld [vmem:[#allocation92_spill] sm:$0xff]  ;;  %v14812_v1 = vld [vmem:[#allocation87_spill] sm:$0xff] }
0x1a97   :  { %5059 = vmatprep.subr.mxu0 %v14792_v43  ;;  %5130 = vmatprep.subr.mxu1 %v14793_v56  ;;  %v14813_v32 = vld [vmem:[#allocation89_spill] sm:$0xff]  ;;  %v14814_v33 = vld [vmem:[#allocation86_spill] sm:$0xff]  ;;  %v14815_v54 = vld [vmem:[#allocation88_spill] sm:$0xff] }
0x1a98   :  { %5060 = vmatpush1.msra.mxu0 %v14794_v48  ;;  %5131 = vmatpush1.msra.mxu1 %v14795_v28  ;;  %v5039_v29 = vld [vmem:[#allocation2] sm:$0xff]  ;;  %v14816_v30 = vld [vmem:[#allocation83_spill] sm:$0xff]  ;;  %v14817_v10 = vld [vmem:[#allocation85_spill] sm:$0xff] }
0x1a99   :  { %5061 = vmatprep.subr.mxu0 %v14796_v8  ;;  %5132 = vmatprep.subr.mxu1 %v14797_v24  ;;  %v14818_v40 = vld [vmem:[#allocation82_spill] sm:$0xff]  ;;  %v14820_v53 = vld [vmem:[#allocation84_spill] sm:$0xff]  ;;  %v14821_v57 = vld [vmem:[#allocation79_spill] sm:$0xff] }
0x1a9a   :  { %5062 = vmatpush1.msra.mxu0 %v14798_v39  ;;  %5133 = vmatpush1.msra.mxu1 %v14799_v21  ;;  %v14822_v60 = vld [vmem:[#allocation81_spill] sm:$0xff]  ;;  %v14823_v61 = vld [vmem:[#allocation78_spill] sm:$0xff]  ;;  %v14824_v37 = vld [vmem:[#allocation80_spill] sm:$0xff] }
0x1a9b   :  { %5063 = vmatprep.subr.mxu0 %v14800_v23  ;;  %5134 = vmatprep.subr.mxu1 %v14801_v25  ;;  %v14825_v22 = vld [vmem:[#allocation75_spill] sm:$0xff]  ;;  %v14826_v63 = vld [vmem:[#allocation77_spill] sm:$0xff]  ;;  %v14827_v19 = vld [vmem:[#allocation74_spill] sm:$0xff] }
0x1a9c   :  { %5064 = vmatpush1.msra.mxu0 %v14802_v26  ;;  %5135 = vmatpush1.msra.mxu1 %v14803_v16  ;;  %v14828_v13 = vld [vmem:[#allocation76_spill] sm:$0xff]  ;;  %v14829_v59 = vld [vmem:[#allocation71_spill] sm:$0xff]  ;;  %v14830_v62 = vld [vmem:[#allocation73_spill] sm:$0xff] }
0x1a9d   :  { %5065 = vmatprep.subr.mxu0 %v14804_v34  ;;  %5136 = vmatprep.subr.mxu1 %v14805_v2  ;;  %v14831_v17 = vld [vmem:[#allocation70_spill] sm:$0xff]  ;;  %v14832_v12 = vld [vmem:[#allocation72_spill] sm:$0xff]  ;;  %v14833_v52 = vld [vmem:[#allocation67_spill] sm:$0xff] }
0x1a9e   :  { %5066 = vmatpush1.msra.mxu0 %v14806_v9  ;;  %5137 = vmatpush1.msra.mxu1 %v14807_v11  ;;  %v14834_v7 = vld [vmem:[#allocation69_spill] sm:$0xff]  ;;  %v14835_v46 = vld [vmem:[#allocation66_spill] sm:$0xff]  ;;  %v14836_v6 = vld [vmem:[#allocation68_spill] sm:$0xff] }
0x1a9f   :  { %5067 = vmatprep.subr.mxu0 %v14808_v38  ;;  %5138 = vmatprep.subr.mxu1 %v14809_v35  ;;  %v14837_v5 = vld [vmem:[#allocation63_spill] sm:$0xff]  ;;  %v14838_v31 = vld [vmem:[#allocation65_spill] sm:$0xff]  ;;  %v14839_v14 = vld [vmem:[#allocation62_spill] sm:$0xff] }
0x1aa0   :  { %5068 = vmatpush1.msra.mxu0 %v14810_v50  ;;  %5139 = vmatpush1.msra.mxu1 %v14811_v44  ;;  %v14840_v51 = vld [vmem:[#allocation64_spill] sm:$0xff]  ;;  %v14841_v36 = vld [vmem:[#allocation59_spill] sm:$0xff]  ;;  %v14842_v41 = vld [vmem:[#allocation61_spill] sm:$0xff] }
0x1aa1   :  { %5069 = vmatprep.subr.mxu0 %v14812_v1  ;;  %5140 = vmatprep.subr.mxu1 %v14813_v32  ;;  %v14843_v3 = vld [vmem:[#allocation58_spill] sm:$0xff]  ;;  %v14844_v15 = vld [vmem:[#allocation60_spill] sm:$0xff]  ;;  %v14845_v58 = vld [vmem:[#allocation55_spill] sm:$0xff] }
0x1aa2   :  { %5070 = vmatpush1.msra.mxu0 %v14814_v33  ;;  %5141 = vmatpush1.msra.mxu1 %v14815_v54  ;;  %v14846_v42 = vld [vmem:[#allocation57_spill] sm:$0xff]  ;;  %v14847_v49 = vld [vmem:[#allocation54_spill] sm:$0xff]  ;;  %v14848_v0 = vld [vmem:[#allocation56_spill] sm:$0xff] }
0x1aa3   :  { %5071 = vmatprep.subr.mxu0 %v14816_v30  ;;  %5142 = vmatprep.subr.mxu1 %v14817_v10  ;;  %v14849_v55 = vld [vmem:[#allocation51_spill] sm:$0xff]  ;;  %v14850_v20 = vld [vmem:[#allocation53_spill] sm:$0xff]  ;;  %v14851_v43 = vld [vmem:[#allocation50_spill] sm:$0xff] }
0x1aa4   :  { %5072 = vmatpush1.msra.mxu0 %v14818_v40  ;;  %5105 = vmatprep.mubr.f32.mxu0 %v14819_v27  ;;  %v14852_v56 = vld [vmem:[#allocation52_spill] sm:$0xff]  ;;  %v14853_v48 = vld [vmem:[#allocation47_spill] sm:$0xff]  ;;  %v14854_v28 = vld [vmem:[#allocation49_spill] sm:$0xff] }
0x1aa5   :  { %5143 = vmatpush1.msra.mxu1 %v14820_v53  ;;  %5106 = vmatmul.mubr.f32.vlgmr.msra.gmra.mxu0 %v5039_v29  ;;  %v14855_v8 = vld [vmem:[#allocation46_spill] sm:$0xff]  ;;  %v14856_v24 = vld [vmem:[#allocation48_spill] sm:$0xff]  ;;  %v14857_v39 = vld [vmem:[#allocation43_spill] sm:$0xff] }
0x1aa6   :  { %5176 = vmatprep.mubr.f32.mxu1 %v14819_v27  ;;  %5183 = vmatprep.subr.mxu0 %v14821_v57  ;;  %v14858_v21 = vld [vmem:[#allocation45_spill] sm:$0xff]  ;;  %v14859_v23 = vld [vmem:[#allocation42_spill] sm:$0xff]  ;;  %v14860_v25 = vld [vmem:[#allocation44_spill] sm:$0xff] }
0x1aa7   :  { %5254 = vmatprep.subr.mxu1 %v14822_v60  ;;  %5177 = vmatmul.mubr.f32.vlgmr.msra.gmra.mxu1 %v5039_v29  ;;  %v14861_v26 = vld [vmem:[#allocation39_spill] sm:$0xff]  ;;  %v14862_v16 = vld [vmem:[#allocation41_spill] sm:$0xff]  ;;  %v14863_v34 = vld [vmem:[#allocation38_spill] sm:$0xff] }
0x1aa8   :  { %5184 = vmatpush1.msra.mxu0 %v14823_v61  ;;  %5255 = vmatpush1.msra.mxu1 %v14824_v37  ;;  %v14864_v2 = vld [vmem:[#allocation40_spill] sm:$0xff]  ;;  %v14865_v9 = vld [vmem:[#allocation35_spill] sm:$0xff]  ;;  %v14866_v11 = vld [vmem:[#allocation37_spill] sm:$0xff] }
0x1aa9   :  { %5185 = vmatprep.subr.mxu0 %v14825_v22  ;;  %5256 = vmatprep.subr.mxu1 %v14826_v63  ;;  %v14867_v38 = vld [vmem:[#allocation34_spill] sm:$0xff]  ;;  %v14868_v35 = vld [vmem:[#allocation36_spill] sm:$0xff]  ;;  %v14869_v50 = vld [vmem:[#allocation31_spill] sm:$0xff] }
0x1aaa   :  { %5186 = vmatpush1.msra.mxu0 %v14827_v19  ;;  %5257 = vmatpush1.msra.mxu1 %v14828_v13  ;;  %v14870_v44 = vld [vmem:[#allocation33_spill] sm:$0xff]  ;;  %v14871_v1 = vld [vmem:[#allocation30_spill] sm:$0xff]  ;;  %v14872_v32 = vld [vmem:[#allocation32_spill] sm:$0xff] }
0x1aab   :  { %5187 = vmatprep.subr.mxu0 %v14829_v59  ;;  %5258 = vmatprep.subr.mxu1 %v14830_v62  ;;  %v14873_v33 = vld [vmem:[#allocation27_spill] sm:$0xff]  ;;  %v14874_v54 = vld [vmem:[#allocation29_spill] sm:$0xff]  ;;  %v14875_v29 = vld [vmem:[#allocation26_spill] sm:$0xff] }
0x1aac   :  { %5188 = vmatpush1.msra.mxu0 %v14831_v17  ;;  %5259 = vmatpush1.msra.mxu1 %v14832_v12  ;;  %v14876_v30 = vld [vmem:[#allocation28_spill] sm:$0xff]  ;;  %v14877_v10 = vld [vmem:[#allocation23_spill] sm:$0xff]  ;;  %v14878_v40 = vld [vmem:[#allocation25_spill] sm:$0xff] }
0x1aad   :  { %5189 = vmatprep.subr.mxu0 %v14833_v52  ;;  %5260 = vmatprep.subr.mxu1 %v14834_v7  ;;  %v14879_v53 = vld [vmem:[#allocation22_spill] sm:$0xff]  ;;  %v14880_v57 = vld [vmem:[#allocation24_spill] sm:$0xff]  ;;  %v14881_v60 = vld [vmem:[#allocation19_spill] sm:$0xff] }
0x1aae   :  { %5190 = vmatpush1.msra.mxu0 %v14835_v46  ;;  %5261 = vmatpush1.msra.mxu1 %v14836_v6  ;;  %v14882_v61 = vld [vmem:[#allocation21_spill] sm:$0xff]  ;;  %v14883_v22 = vld [vmem:[#allocation18_spill] sm:$0xff]  ;;  %v14884_v63 = vld [vmem:[#allocation20_spill] sm:$0xff] }
0x1aaf   :  { %5191 = vmatprep.subr.mxu0 %v14837_v5  ;;  %5262 = vmatprep.subr.mxu1 %v14838_v31  ;;  %v5038_v37 = vld [vmem:[#allocation5] sm:$0xff]  ;;  %v14885_v19 = vld [vmem:[#allocation162_spill] sm:$0xff]  ;;  %v14887_v59 = vld [vmem:[#allocation160_spill] sm:$0xff] }
0x1ab0   :  { %5192 = vmatpush1.msra.mxu0 %v14839_v14  ;;  %5263 = vmatpush1.msra.mxu1 %v14840_v51  ;;  %v14886_v13 = vld [vmem:[#allocation161_spill] sm:$0xff]  ;;  %v14888_v62 = vld [vmem:[#allocation159_spill] sm:$0xff]  ;;  %v14889_v17 = vld [vmem:[#allocation158_spill] sm:$0xff] }
0x1ab1   :  { %5193 = vmatprep.subr.mxu0 %v14841_v36  ;;  %5264 = vmatprep.subr.mxu1 %v14842_v41  ;;  %v14890_v12 = vld [vmem:[#allocation157_spill] sm:$0xff]  ;;  %v14891_v52 = vld [vmem:[#allocation156_spill] sm:$0xff]  ;;  %v14892_v7 = vld [vmem:[#allocation155_spill] sm:$0xff] }
0x1ab2   :  { %5194 = vmatpush1.msra.mxu0 %v14843_v3  ;;  %5265 = vmatpush1.msra.mxu1 %v14844_v15  ;;  %v14893_v46 = vld [vmem:[#allocation154_spill] sm:$0xff]  ;;  %v14894_v6 = vld [vmem:[#allocation153_spill] sm:$0xff]  ;;  %v14895_v5 = vld [vmem:[#allocation152_spill] sm:$0xff] }
0x1ab3   :  { %5195 = vmatprep.subr.mxu0 %v14845_v58  ;;  %5266 = vmatprep.subr.mxu1 %v14846_v42  ;;  %v14896_v31 = vld [vmem:[#allocation151_spill] sm:$0xff]  ;;  %v14897_v14 = vld [vmem:[#allocation150_spill] sm:$0xff]  ;;  %v14898_v51 = vld [vmem:[#allocation149_spill] sm:$0xff] }
0x1ab4   :  { %5196 = vmatpush1.msra.mxu0 %v14847_v49  ;;  %5267 = vmatpush1.msra.mxu1 %v14848_v0  ;;  %v14899_v36 = vld [vmem:[#allocation148_spill] sm:$0xff]  ;;  %v14900_v41 = vld [vmem:[#allocation147_spill] sm:$0xff] }
0x1ab5   :  { %5197 = vmatprep.subr.mxu0 %v14849_v55  ;;  %5268 = vmatprep.subr.mxu1 %v14850_v20 }
0x1ab6   :  { %5198 = vmatpush1.msra.mxu0 %v14851_v43  ;;  %5269 = vmatpush1.msra.mxu1 %v14852_v56 }
0x1ab7   :  { %5199 = vmatprep.subr.mxu0 %v14853_v48  ;;  %5270 = vmatprep.subr.mxu1 %v14854_v28 }
0x1ab8   :  { %5200 = vmatpush1.msra.mxu0 %v14855_v8  ;;  %5271 = vmatpush1.msra.mxu1 %v14856_v24 }
0x1ab9   :  { %5201 = vmatprep.subr.mxu0 %v14857_v39  ;;  %5272 = vmatprep.subr.mxu1 %v14858_v21 }
0x1aba   :  { %5202 = vmatpush1.msra.mxu0 %v14859_v23  ;;  %5273 = vmatpush1.msra.mxu1 %v14860_v25 }
0x1abb   :  { %5203 = vmatprep.subr.mxu0 %v14861_v26  ;;  %5274 = vmatprep.subr.mxu1 %v14862_v16 }
0x1abc   :  { %5204 = vmatpush1.msra.mxu0 %v14863_v34  ;;  %5275 = vmatpush1.msra.mxu1 %v14864_v2 }
0x1abd   :  { %5205 = vmatprep.subr.mxu0 %v14865_v9  ;;  %5276 = vmatprep.subr.mxu1 %v14866_v11 }
0x1abe   :  { %5206 = vmatpush1.msra.mxu0 %v14867_v38  ;;  %5277 = vmatpush1.msra.mxu1 %v14868_v35  ;;  %v5040_v35 = vld [vmem:[#allocation3] sm:$0xff] }
0x1abf   :  { %5207 = vmatprep.subr.mxu0 %v14869_v50  ;;  %5278 = vmatprep.subr.mxu1 %v14870_v44 }
0x1ac0   :  { %5208 = vmatpush1.msra.mxu0 %v14871_v1  ;;  %5279 = vmatpush1.msra.mxu1 %v14872_v32 }
0x1ac1   :  { %5209 = vmatprep.subr.mxu0 %v14873_v33  ;;  %5280 = vmatprep.subr.mxu1 %v14874_v54 }
0x1ac2   :  { %5210 = vmatpush1.msra.mxu0 %v14875_v29  ;;  %5281 = vmatpush1.msra.mxu1 %v14876_v30 }
0x1ac3   :  { %5211 = vmatprep.subr.mxu0 %v14877_v10  ;;  %5282 = vmatprep.subr.mxu1 %v14878_v40 }
0x1ac4   :  { %5212 = vmatpush1.msra.mxu0 %v14879_v53  ;;  %5283 = vmatpush1.msra.mxu1 %v14880_v57  ;;  %v14901_v53 = vld [vmem:[#allocation163_spill] sm:$0xff] }
0x1ac5   :  { %5213 = vmatprep.subr.mxu0 %v14881_v60  ;;  %5284 = vmatprep.subr.mxu1 %v14882_v61 }
0x1ac6   :  { %5214 = vmatpush1.msra.mxu0 %v14883_v22  ;;  %5247 = vmatprep.mubr.f32.mxu0 %v14819_v27 }
0x1ac7   :  { %5285 = vmatpush1.msra.mxu1 %v14884_v63  ;;  %5318 = vmatprep.mubr.f32.mxu1 %v14819_v27 }
0x1ac8   :  { %5248 = vmatmul.mubr.f32.vlgmr.msra.gmra.mxu0 %v5038_v37  ;;  %5319 = vmatmul.mubr.f32.vlgmr.msra.gmra.mxu1 %v5038_v37  ;;  %v14902_v37 = vld [vmem:[#allocation249_spill] sm:$0xff] }
0x1ac9   :  { %7082 = vmatprep.subr.mxu0 %v14819_v27  ;;  %7114 = vmatprep.mubr.msk.f32.mxu0 %vm7868_vm1, %v14819_v27 }
0x1aca   :  { %7083 = vmatpush3.msra.mxu0 %v14885_v19 }
0x1acb   :  { %7084 = vmatprep.subr.mxu0 %v14819_v27 }
0x1acc   :  { %7085 = vmatpush3.msra.mxu0 %v14886_v13 }
0x1acd   :  { %7086 = vmatprep.subr.mxu0 %v14819_v27 }
0x1ace   :  { %7087 = vmatpush3.msra.mxu0 %v14887_v59 }
0x1acf   :  { %7088 = vmatprep.subr.mxu0 %v14819_v27 }
0x1ad0   :  { %7089 = vmatpush3.msra.mxu0 %v14888_v62 }
0x1ad1   :  { %7090 = vmatprep.subr.mxu0 %v14819_v27 }
0x1ad2   :  { %7091 = vmatpush3.msra.mxu0 %v14889_v17 }
0x1ad3   :  { %7092 = vmatprep.subr.mxu0 %v14819_v27 }
0x1ad4   :  { %7093 = vmatpush3.msra.mxu0 %v14890_v12 }
0x1ad5   :  { %7094 = vmatprep.subr.mxu0 %v14819_v27 }
0x1ad6   :  { %7095 = vmatpush3.msra.mxu0 %v14891_v52 }
0x1ad7   :  { %7096 = vmatprep.subr.mxu0 %v14819_v27 }
0x1ad8   :  { %7097 = vmatpush3.msra.mxu0 %v14892_v7 }
0x1ad9   :  { %7098 = vmatprep.subr.mxu0 %v14819_v27 }
0x1ada   :  { %7099 = vmatpush3.msra.mxu0 %v14893_v46 }
0x1adb   :  { %7100 = vmatprep.subr.mxu0 %v14819_v27 }
0x1adc   :  { %7101 = vmatpush3.msra.mxu0 %v14894_v6 }
0x1add   :  { %7102 = vmatprep.subr.mxu0 %v14819_v27 }
0x1ade   :  { %7103 = vmatpush3.msra.mxu0 %v14895_v5 }
0x1adf   :  { %7104 = vmatprep.subr.mxu0 %v14819_v27 }
0x1ae0   :  { %7105 = vmatpush3.msra.mxu0 %v14896_v31 }
0x1ae1   :  { %7106 = vmatprep.subr.mxu0 %v14819_v27 }
0x1ae2   :  { %7107 = vmatpush3.msra.mxu0 %v14897_v14 }
0x1ae3   :  { %7108 = vmatprep.subr.mxu0 %v14819_v27 }
0x1ae4   :  { %7109 = vmatpush3.msra.mxu0 %v14898_v51 }
0x1ae5   :  { %7110 = vmatprep.subr.mxu0 %v14819_v27 }
0x1ae6   :  { %7111 = vmatpush3.msra.mxu0 %v14899_v36 }
0x1ae7   :  { %7112 = vmatprep.subr.mxu0 %v14819_v27 }
0x1ae8   :  { %7113 = vmatpush3.msra.mxu0 %v14900_v41 }
0x1b65   :  { %v5107_v3 = vpop.f32.mrf.mxu0 }
0x1b67   :  { %v5178_v15 = vpop.f32.mrf.mxu1  ;;  %v5109_v58 = vpop.f32.mrf.mxu0 }
0x1b69   :  { %v5180_v49 = vpop.f32.mrf.mxu1 }
0x1b88   :  { %v5249_v42 = vpop.f32.mrf.mxu0  ;;  %v5320_v43 = vpop.f32.mrf.mxu1 }
0x1b89   :  { %v5250_v0 = vadd.f32 %v5249_v42, %v5107_v3  ;;  %v5321_v23 = vadd.f32 %v5320_v43, %v5178_v15 }
0x1b8a   :  { %v5251_v55 = vpop.f32.mrf.mxu0  ;;  %v5322_v24 = vpop.f32.mrf.mxu1 }
0x1b8b   :  { %v5325_v20 = vadd.f32 %v5250_v0, %v11622_v4  ;;  %v5252_v56 = vadd.f32 %v5251_v55, %v5109_v58  ;;  %v5323_v39 = vadd.f32 %v5322_v24, %v5180_v49  ;;  %v5327_v16 = vadd.f32 %v5321_v23, %v11640_v45 }
0x1b8d   :  { %v6512_v48 = vmul.f32 -1.442695, %v5325_v20  ;;  %v5326_v28 = vadd.f32 %v5252_v56, %v11627_v47  ;;  %v5328_v21 = vadd.f32 %v5323_v39, %v11634_v18 }
0x1b8f   :  { %7732 = vpow2.f32 %v6512_v48  ;;  %v6513_v8 = vmul.f32 -1.442695, %v5326_v28  ;;  %v6514_v25 = vmul.f32 -1.442695, %v5328_v21 }
0x1b91   :  { %7734 = vpow2.f32 %v6513_v8 }
0x1b92   :  { %7736 = vpow2.f32 %v6514_v25 }
0x1b9c   :  { %v7733_v26 = vpop.eup %7732 }
0x1b9d   :  { %v5332_v34 = vadd.f32 1.0, %v7733_v26 }
0x1b9e   :  { %v7735_v2 = vpop.eup %7734 }
0x1b9f   :  { %7738 = vrcp.f32 %v5332_v34  ;;  %v5338_v9 = vadd.f32 1.0, %v7735_v2  ;;  %v7737_v11 = vpop.eup %7736 }
0x1ba0   :  { %7740 = vtanh.f32 %v5327_v16  ;;  %v5345_v1 = vadd.f32 1.0, %v7737_v11 }
0x1ba1   :  { %7742 = vrcp.f32 %v5338_v9 }
0x1ba2   :  { %7744 = vrcp.f32 %v5345_v1 }
0x1bac   :  { %v7739_v38 = vpop.eup %7738 }
0x1bad   :  { %v7741_v50 = vpop.eup %7740 }
0x1bae   :  { %v7743_v44 = vpop.eup %7742  ;;  %v5349_v32 = vmul.f32 %v7741_v50, %v7739_v38 }
0x1baf   :  { %v5348_v33 = vmul.f32 %v7743_v44, %v5040_v35  ;;  %v7745_v29 = vpop.eup %7744 }
0x1bb1   :  { %v5350_v54 = vadd.f32 %v5349_v32, %v5348_v33 }
0x1bb3   :  { %5435 = vst [vmem:[#allocation3] sm:$0xff] %v5350_v54  ;;  %7746 = vtanh.f32 %v5350_v54 }
0x1bc0   :  { %v7747_v30 = vpop.eup %7746 }
0x1bc1   :  { %v5352_v10 = vmul.f32 %v7747_v30, %v7745_v29 }
0x1bc3   :  { %7115 = vmatmul.mubr.f32.vlgmr.msra.gmra.mxu0 %v5352_v10  ;;  %5434 = vst [vmem:[#allocation2] sm:$0xff] %v5352_v10 }
0x1c83   :  { %v5419_v40 = vpop.f32.mrf.mxu0 }
0x1c84   :  { %v5420_v57 = vadd.f32 %v14901_v53, %v5419_v40 }
0x1c85   :  { %v7116_v60 = vpop.f32.mrf.mxu0 }
0x1c86   :  { %5424 = vst [vmem:[#allocation13 + $0x28] sm:$0xff] %v5420_v57  ;;  %5425 = vmax.xlane.f32.xlu0 %v5420_v57 }
0x1d0f   :  { %v5426_v61 = vpop.xlane.xlu0 %5425 }
0x1d10   :  { %vm5427_vm14 = vcmp.eq.f32.partialorder %v5420_v57, %v5426_v61 }
0x1d11   :  { %v5428_v22 = vsel %vm5427_vm14, %v14902_v37, 128.0 }
0x1d12   :  { %5429 = vmin.xlane.f32.xlu0 %v5428_v22 }
0x1d9a   :  { %5440 = sbr.rel (%p6516_p11) target bundleno = 7585 (0x1da1), region = 97 }
0x1d9b   :  { %v5430_v63 = vpop.xlane.xlu0 %5429 }
0x1d9c   :  { %vm5431_vm15 = vcmp.eq.f32.partialorder %v14902_v37, %v5430_v63 }
0x1d9d   :  { %v5432_v19 = vsel %vm5431_vm15, 1.0, %v14819_v27 }
0x1d9e   :  { %5433 = vst [vmem:[#allocation4] sm:$0xff] %v5432_v19 }
0x1d9f   :  { %v6517_v13 = vld [vmem:[%s13002_s2 + $0x28] sm:$0xff] }
0x1da0   :  { %5443 = vst [vmem:[#allocation5] sm:$0xff] %v6517_v13 }
0x1da1 PF:  { %p6518_p12 = scmp.ne.s32.totalorder %s6515_s16, 0 }
0x1da3   :  { %5447 = sbr.rel (%p6518_p12) target bundleno = 7820 (0x1e8c), region = 101 }
0x1da8   :  { %v5464_v59 = vld [vmem:[%s13009_s9 + $0x78] sm:$0xff]  ;;  %v7877_v62 = vmov 0.0   ;;  %v5463_v27 = vld [vmem:[%s13009_s9 + $0x70] sm:$0xff]  ;;  %vm7878_vm0 = vmmov 0   ;;  %v5462_v17 = vld [vmem:[%s13009_s9 + $0x68] sm:$0xff] }
0x1da9   :  { %7117 = vmatprep.subr.mxu0 %v7877_v62  ;;  %7149 = vmatprep.mubr.msk.f32.mxu0 %vm7878_vm0, %v7877_v62  ;;  %v5461_v12 = vld [vmem:[%s13009_s9 + $0x60] sm:$0xff]  ;;  %v5460_v52 = vld [vmem:[%s13009_s9 + $0x58] sm:$0xff]  ;;  %v5459_v7 = vld [vmem:[%s13009_s9 + $0x50] sm:$0xff] }
0x1daa   :  { %7118 = vmatpush3.msra.mxu0 %v5464_v59  ;;  %v5458_v46 = vld [vmem:[%s13009_s9 + $0x48] sm:$0xff]  ;;  %v5457_v6 = vld [vmem:[%s13009_s9 + $0x40] sm:$0xff]  ;;  %v5456_v5 = vld [vmem:[%s13009_s9 + $0x38] sm:$0xff] }
0x1dab   :  { %7119 = vmatprep.subr.mxu0 %v7877_v62  ;;  %v5455_v31 = vld [vmem:[%s13009_s9 + $0x30] sm:$0xff]  ;;  %v5454_v14 = vld [vmem:[%s13009_s9 + $0x28] sm:$0xff]  ;;  %v5453_v51 = vld [vmem:[%s13009_s9 + $0x20] sm:$0xff] }
0x1dac   :  { %7120 = vmatpush3.msra.mxu0 %v5463_v27  ;;  %v5452_v36 = vld [vmem:[%s13009_s9 + $0x18] sm:$0xff]  ;;  %v5451_v41 = vld [vmem:[%s13009_s9 + $0x10] sm:$0xff]  ;;  %v5450_v3 = vld [vmem:[%s13009_s9 + $0x8] sm:$0xff] }
0x1dad   :  { %7121 = vmatprep.subr.mxu0 %v7877_v62  ;;  %v5449_v15 = vld [vmem:[%s13009_s9] sm:$0xff]  ;;  %v5448_v58 = vld [vmem:[#allocation4] sm:$0xff] }
0x1dae   :  { %7122 = vmatpush3.msra.mxu0 %v5462_v17 }
0x1daf   :  { %7123 = vmatprep.subr.mxu0 %v7877_v62 }
0x1db0   :  { %7124 = vmatpush3.msra.mxu0 %v5461_v12 }
0x1db1   :  { %7125 = vmatprep.subr.mxu0 %v7877_v62 }
0x1db2   :  { %7126 = vmatpush3.msra.mxu0 %v5460_v52 }
0x1db3   :  { %7127 = vmatprep.subr.mxu0 %v7877_v62 }
0x1db4   :  { %7128 = vmatpush3.msra.mxu0 %v5459_v7 }
0x1db5   :  { %7129 = vmatprep.subr.mxu0 %v7877_v62 }
0x1db6   :  { %7130 = vmatpush3.msra.mxu0 %v5458_v46 }
0x1db7   :  { %7131 = vmatprep.subr.mxu0 %v7877_v62 }
0x1db8   :  { %7132 = vmatpush3.msra.mxu0 %v5457_v6 }
0x1db9   :  { %7133 = vmatprep.subr.mxu0 %v7877_v62 }
0x1dba   :  { %7134 = vmatpush3.msra.mxu0 %v5456_v5 }
0x1dbb   :  { %7135 = vmatprep.subr.mxu0 %v7877_v62 }
0x1dbc   :  { %7136 = vmatpush3.msra.mxu0 %v5455_v31 }
0x1dbd   :  { %7137 = vmatprep.subr.mxu0 %v7877_v62 }
0x1dbe   :  { %7138 = vmatpush3.msra.mxu0 %v5454_v14 }
0x1dbf   :  { %7139 = vmatprep.subr.mxu0 %v7877_v62 }
0x1dc0   :  { %7140 = vmatpush3.msra.mxu0 %v5453_v51 }
0x1dc1   :  { %7141 = vmatprep.subr.mxu0 %v7877_v62 }
0x1dc2   :  { %7142 = vmatpush3.msra.mxu0 %v5452_v36 }
0x1dc3   :  { %7143 = vmatprep.subr.mxu0 %v7877_v62 }
0x1dc4   :  { %7144 = vmatpush3.msra.mxu0 %v5451_v41 }
0x1dc5   :  { %7145 = vmatprep.subr.mxu0 %v7877_v62 }
0x1dc6   :  { %7146 = vmatpush3.msra.mxu0 %v5450_v3 }
0x1dc7   :  { %7147 = vmatprep.subr.mxu0 %v7877_v62 }
0x1dc8   :  { %7148 = vmatpush3.msra.mxu0 %v5449_v15 }
0x1dc9   :  { %7150 = vmatmul.mubr.f32.vlgmr.msra.gmra.mxu0 %v5448_v58 }
0x1e89   :  { %v5531_v42 = vpop.f32.mrf.mxu0 }
0x1e8a   :  { %5535 = vst [vmem:[#allocation5] sm:$0xff] %v5531_v42 }
0x1e8b   :  { %v7151_v49 = vpop.f32.mrf.mxu0 }
0x1e8c PF:  { %v14903_v0 = vld [vmem:[#allocation143_spill] sm:$0xff]  ;;  %v14904_v55 = vld [vmem:[#allocation145_spill] sm:$0xff]  ;;  %v14905_v20 = vld [vmem:[#allocation142_spill] sm:$0xff]  ;;  %s6522_s7 = sld [smem:[#allocation7 + $0x6]] }
0x1e8d   :  { %5539 = vmatprep.subr.mxu0 %v14903_v0  ;;  %5610 = vmatprep.subr.mxu1 %v14904_v55  ;;  %v14906_v43 = vld [vmem:[#allocation144_spill] sm:$0xff]  ;;  %v14907_v56 = vld [vmem:[#allocation139_spill] sm:$0xff]  ;;  %v14908_v48 = vld [vmem:[#allocation141_spill] sm:$0xff] }
0x1e8e   :  { %5540 = vmatpush1.msra.mxu0 %v14905_v20  ;;  %5611 = vmatpush1.msra.mxu1 %v14906_v43  ;;  %v14909_v28 = vld [vmem:[#allocation138_spill] sm:$0xff]  ;;  %v14910_v8 = vld [vmem:[#allocation140_spill] sm:$0xff]  ;;  %v14911_v24 = vld [vmem:[#allocation135_spill] sm:$0xff] }
0x1e8f   :  { %5541 = vmatprep.subr.mxu0 %v14907_v56  ;;  %5612 = vmatprep.subr.mxu1 %v14908_v48  ;;  %v14912_v39 = vld [vmem:[#allocation137_spill] sm:$0xff]  ;;  %v14913_v21 = vld [vmem:[#allocation134_spill] sm:$0xff]  ;;  %v14914_v23 = vld [vmem:[#allocation136_spill] sm:$0xff]  ;;  %v14966_v56 = vmov 0.0  }
0x1e90   :  { %5542 = vmatpush1.msra.mxu0 %v14909_v28  ;;  %5613 = vmatpush1.msra.mxu1 %v14910_v8  ;;  %v14915_v25 = vld [vmem:[#allocation131_spill] sm:$0xff]  ;;  %v14916_v26 = vld [vmem:[#allocation133_spill] sm:$0xff]  ;;  %v14917_v16 = vld [vmem:[#allocation130_spill] sm:$0xff] }
0x1e91   :  { %5543 = vmatprep.subr.mxu0 %v14911_v24  ;;  %5614 = vmatprep.subr.mxu1 %v14912_v39  ;;  %v14918_v34 = vld [vmem:[#allocation132_spill] sm:$0xff]  ;;  %v14919_v2 = vld [vmem:[#allocation127_spill] sm:$0xff]  ;;  %v14920_v9 = vld [vmem:[#allocation129_spill] sm:$0xff] }
0x1e92   :  { %5544 = vmatpush1.msra.mxu0 %v14913_v21  ;;  %5615 = vmatpush1.msra.mxu1 %v14914_v23  ;;  %v14921_v11 = vld [vmem:[#allocation126_spill] sm:$0xff]  ;;  %v14922_v38 = vld [vmem:[#allocation128_spill] sm:$0xff]  ;;  %v14923_v35 = vld [vmem:[#allocation123_spill] sm:$0xff]  ;;  %p6523_p13 = scmp.le.s32.totalorder %s6522_s7, 0 }
0x1e93   :  { %5545 = vmatprep.subr.mxu0 %v14915_v25  ;;  %5616 = vmatprep.subr.mxu1 %v14916_v26  ;;  %v14924_v50 = vld [vmem:[#allocation125_spill] sm:$0xff]  ;;  %v14925_v44 = vld [vmem:[#allocation122_spill] sm:$0xff]  ;;  %v14926_v1 = vld [vmem:[#allocation124_spill] sm:$0xff] }
0x1e94   :  { %5546 = vmatpush1.msra.mxu0 %v14917_v16  ;;  %5617 = vmatpush1.msra.mxu1 %v14918_v34  ;;  %v14927_v32 = vld [vmem:[#allocation119_spill] sm:$0xff]  ;;  %v14928_v33 = vld [vmem:[#allocation121_spill] sm:$0xff]  ;;  %v14929_v54 = vld [vmem:[#allocation118_spill] sm:$0xff] }
0x1e95   :  { %5547 = vmatprep.subr.mxu0 %v14919_v2  ;;  %5618 = vmatprep.subr.mxu1 %v14920_v9  ;;  %v14930_v29 = vld [vmem:[#allocation120_spill] sm:$0xff]  ;;  %v14931_v30 = vld [vmem:[#allocation115_spill] sm:$0xff]  ;;  %v14932_v10 = vld [vmem:[#allocation117_spill] sm:$0xff] }
0x1e96   :  { %5548 = vmatpush1.msra.mxu0 %v14921_v11  ;;  %5619 = vmatpush1.msra.mxu1 %v14922_v38  ;;  %v14933_v40 = vld [vmem:[#allocation114_spill] sm:$0xff]  ;;  %v14934_v53 = vld [vmem:[#allocation116_spill] sm:$0xff]  ;;  %v14935_v57 = vld [vmem:[#allocation111_spill] sm:$0xff] }
0x1e97   :  { %5549 = vmatprep.subr.mxu0 %v14923_v35  ;;  %5620 = vmatprep.subr.mxu1 %v14924_v50  ;;  %v14936_v60 = vld [vmem:[#allocation113_spill] sm:$0xff]  ;;  %v14937_v61 = vld [vmem:[#allocation110_spill] sm:$0xff]  ;;  %v14938_v37 = vld [vmem:[#allocation112_spill] sm:$0xff] }
0x1e98   :  { %5550 = vmatpush1.msra.mxu0 %v14925_v44  ;;  %5621 = vmatpush1.msra.mxu1 %v14926_v1  ;;  %v14939_v22 = vld [vmem:[#allocation107_spill] sm:$0xff]  ;;  %v14940_v63 = vld [vmem:[#allocation109_spill] sm:$0xff]  ;;  %v14941_v19 = vld [vmem:[#allocation106_spill] sm:$0xff] }
0x1e99   :  { %5551 = vmatprep.subr.mxu0 %v14927_v32  ;;  %5622 = vmatprep.subr.mxu1 %v14928_v33  ;;  %v14942_v13 = vld [vmem:[#allocation108_spill] sm:$0xff]  ;;  %v14943_v59 = vld [vmem:[#allocation103_spill] sm:$0xff]  ;;  %v14944_v62 = vld [vmem:[#allocation105_spill] sm:$0xff] }
0x1e9a   :  { %5552 = vmatpush1.msra.mxu0 %v14929_v54  ;;  %5623 = vmatpush1.msra.mxu1 %v14930_v29  ;;  %v14945_v27 = vld [vmem:[#allocation102_spill] sm:$0xff]  ;;  %v14946_v17 = vld [vmem:[#allocation104_spill] sm:$0xff]  ;;  %v14947_v12 = vld [vmem:[#allocation99_spill] sm:$0xff] }
0x1e9b   :  { %5553 = vmatprep.subr.mxu0 %v14931_v30  ;;  %5624 = vmatprep.subr.mxu1 %v14932_v10  ;;  %v14948_v52 = vld [vmem:[#allocation101_spill] sm:$0xff]  ;;  %v14949_v7 = vld [vmem:[#allocation98_spill] sm:$0xff]  ;;  %v14950_v46 = vld [vmem:[#allocation100_spill] sm:$0xff] }
0x1e9c   :  { %5554 = vmatpush1.msra.mxu0 %v14933_v40  ;;  %5625 = vmatpush1.msra.mxu1 %v14934_v53  ;;  %v14951_v6 = vld [vmem:[#allocation95_spill] sm:$0xff]  ;;  %v14952_v5 = vld [vmem:[#allocation97_spill] sm:$0xff]  ;;  %v14953_v31 = vld [vmem:[#allocation94_spill] sm:$0xff] }
0x1e9d   :  { %5555 = vmatprep.subr.mxu0 %v14935_v57  ;;  %5626 = vmatprep.subr.mxu1 %v14936_v60  ;;  %v14954_v14 = vld [vmem:[#allocation96_spill] sm:$0xff]  ;;  %v14955_v51 = vld [vmem:[#allocation91_spill] sm:$0xff]  ;;  %v14956_v36 = vld [vmem:[#allocation93_spill] sm:$0xff] }
0x1e9e   :  { %5556 = vmatpush1.msra.mxu0 %v14937_v61  ;;  %5627 = vmatpush1.msra.mxu1 %v14938_v37  ;;  %v14957_v41 = vld [vmem:[#allocation90_spill] sm:$0xff]  ;;  %v14958_v3 = vld [vmem:[#allocation92_spill] sm:$0xff]  ;;  %v14959_v15 = vld [vmem:[#allocation87_spill] sm:$0xff] }
0x1e9f   :  { %5557 = vmatprep.subr.mxu0 %v14939_v22  ;;  %5628 = vmatprep.subr.mxu1 %v14940_v63  ;;  %v14960_v58 = vld [vmem:[#allocation89_spill] sm:$0xff]  ;;  %v14961_v42 = vld [vmem:[#allocation86_spill] sm:$0xff]  ;;  %v14962_v49 = vld [vmem:[#allocation88_spill] sm:$0xff] }
0x1ea0   :  { %5558 = vmatpush1.msra.mxu0 %v14941_v19  ;;  %5629 = vmatpush1.msra.mxu1 %v14942_v13  ;;  %v5537_v0 = vld [vmem:[#allocation2] sm:$0xff]  ;;  %v14963_v55 = vld [vmem:[#allocation83_spill] sm:$0xff]  ;;  %v14964_v20 = vld [vmem:[#allocation85_spill] sm:$0xff] }
0x1ea1   :  { %5559 = vmatprep.subr.mxu0 %v14943_v59  ;;  %5630 = vmatprep.subr.mxu1 %v14944_v62  ;;  %v14965_v43 = vld [vmem:[#allocation82_spill] sm:$0xff]  ;;  %v14967_v48 = vld [vmem:[#allocation84_spill] sm:$0xff]  ;;  %v14968_v28 = vld [vmem:[#allocation79_spill] sm:$0xff] }
0x1ea2   :  { %5560 = vmatpush1.msra.mxu0 %v14945_v27  ;;  %5631 = vmatpush1.msra.mxu1 %v14946_v17  ;;  %v14969_v8 = vld [vmem:[#allocation81_spill] sm:$0xff]  ;;  %v14970_v24 = vld [vmem:[#allocation78_spill] sm:$0xff]  ;;  %v14971_v39 = vld [vmem:[#allocation80_spill] sm:$0xff] }
0x1ea3   :  { %5561 = vmatprep.subr.mxu0 %v14947_v12  ;;  %5632 = vmatprep.subr.mxu1 %v14948_v52  ;;  %v14972_v21 = vld [vmem:[#allocation75_spill] sm:$0xff]  ;;  %v14973_v23 = vld [vmem:[#allocation77_spill] sm:$0xff]  ;;  %v14974_v25 = vld [vmem:[#allocation74_spill] sm:$0xff] }
0x1ea4   :  { %5562 = vmatpush1.msra.mxu0 %v14949_v7  ;;  %5633 = vmatpush1.msra.mxu1 %v14950_v46  ;;  %v14975_v26 = vld [vmem:[#allocation76_spill] sm:$0xff]  ;;  %v14976_v16 = vld [vmem:[#allocation71_spill] sm:$0xff]  ;;  %v14977_v34 = vld [vmem:[#allocation73_spill] sm:$0xff] }
0x1ea5   :  { %5563 = vmatprep.subr.mxu0 %v14951_v6  ;;  %5634 = vmatprep.subr.mxu1 %v14952_v5  ;;  %v14978_v2 = vld [vmem:[#allocation70_spill] sm:$0xff]  ;;  %v14979_v9 = vld [vmem:[#allocation72_spill] sm:$0xff]  ;;  %v14980_v11 = vld [vmem:[#allocation67_spill] sm:$0xff] }
0x1ea6   :  { %5564 = vmatpush1.msra.mxu0 %v14953_v31  ;;  %5635 = vmatpush1.msra.mxu1 %v14954_v14  ;;  %v14981_v38 = vld [vmem:[#allocation69_spill] sm:$0xff]  ;;  %v14982_v35 = vld [vmem:[#allocation66_spill] sm:$0xff]  ;;  %v14983_v50 = vld [vmem:[#allocation68_spill] sm:$0xff] }
0x1ea7   :  { %5565 = vmatprep.subr.mxu0 %v14955_v51  ;;  %5636 = vmatprep.subr.mxu1 %v14956_v36  ;;  %v14984_v44 = vld [vmem:[#allocation63_spill] sm:$0xff]  ;;  %v14985_v1 = vld [vmem:[#allocation65_spill] sm:$0xff]  ;;  %v14986_v32 = vld [vmem:[#allocation62_spill] sm:$0xff] }
0x1ea8   :  { %5566 = vmatpush1.msra.mxu0 %v14957_v41  ;;  %5637 = vmatpush1.msra.mxu1 %v14958_v3  ;;  %v14987_v33 = vld [vmem:[#allocation64_spill] sm:$0xff]  ;;  %v14988_v54 = vld [vmem:[#allocation59_spill] sm:$0xff]  ;;  %v14989_v29 = vld [vmem:[#allocation61_spill] sm:$0xff] }
0x1ea9   :  { %5567 = vmatprep.subr.mxu0 %v14959_v15  ;;  %5638 = vmatprep.subr.mxu1 %v14960_v58  ;;  %v14990_v30 = vld [vmem:[#allocation58_spill] sm:$0xff]  ;;  %v14991_v10 = vld [vmem:[#allocation60_spill] sm:$0xff]  ;;  %v14992_v40 = vld [vmem:[#allocation55_spill] sm:$0xff] }
0x1eaa   :  { %5568 = vmatpush1.msra.mxu0 %v14961_v42  ;;  %5639 = vmatpush1.msra.mxu1 %v14962_v49  ;;  %v14993_v53 = vld [vmem:[#allocation57_spill] sm:$0xff]  ;;  %v14994_v57 = vld [vmem:[#allocation54_spill] sm:$0xff]  ;;  %v14995_v60 = vld [vmem:[#allocation56_spill] sm:$0xff] }
0x1eab   :  { %5569 = vmatprep.subr.mxu0 %v14963_v55  ;;  %5640 = vmatprep.subr.mxu1 %v14964_v20  ;;  %v14996_v61 = vld [vmem:[#allocation51_spill] sm:$0xff]  ;;  %v14997_v37 = vld [vmem:[#allocation53_spill] sm:$0xff]  ;;  %v14998_v22 = vld [vmem:[#allocation50_spill] sm:$0xff] }
0x1eac   :  { %5570 = vmatpush1.msra.mxu0 %v14965_v43  ;;  %5603 = vmatprep.mubr.f32.mxu0 %v14966_v56  ;;  %v14999_v63 = vld [vmem:[#allocation52_spill] sm:$0xff]  ;;  %v15000_v19 = vld [vmem:[#allocation47_spill] sm:$0xff]  ;;  %v15001_v13 = vld [vmem:[#allocation49_spill] sm:$0xff] }
0x1ead   :  { %5641 = vmatpush1.msra.mxu1 %v14967_v48  ;;  %5604 = vmatmul.mubr.f32.vlgmr.msra.gmra.mxu0 %v5537_v0  ;;  %v15002_v59 = vld [vmem:[#allocation46_spill] sm:$0xff]  ;;  %v15003_v62 = vld [vmem:[#allocation48_spill] sm:$0xff]  ;;  %v15004_v27 = vld [vmem:[#allocation43_spill] sm:$0xff] }
0x1eae   :  { %5674 = vmatprep.mubr.f32.mxu1 %v14966_v56  ;;  %5681 = vmatprep.subr.mxu0 %v14968_v28  ;;  %v15005_v17 = vld [vmem:[#allocation45_spill] sm:$0xff]  ;;  %v15006_v12 = vld [vmem:[#allocation42_spill] sm:$0xff]  ;;  %v15007_v52 = vld [vmem:[#allocation44_spill] sm:$0xff] }
0x1eaf   :  { %5752 = vmatprep.subr.mxu1 %v14969_v8  ;;  %5675 = vmatmul.mubr.f32.vlgmr.msra.gmra.mxu1 %v5537_v0  ;;  %v15008_v7 = vld [vmem:[#allocation39_spill] sm:$0xff]  ;;  %v15009_v46 = vld [vmem:[#allocation41_spill] sm:$0xff]  ;;  %v15010_v6 = vld [vmem:[#allocation38_spill] sm:$0xff] }
0x1eb0   :  { %5682 = vmatpush1.msra.mxu0 %v14970_v24  ;;  %5753 = vmatpush1.msra.mxu1 %v14971_v39  ;;  %v15011_v5 = vld [vmem:[#allocation40_spill] sm:$0xff]  ;;  %v15012_v31 = vld [vmem:[#allocation35_spill] sm:$0xff]  ;;  %v15013_v14 = vld [vmem:[#allocation37_spill] sm:$0xff] }
0x1eb1   :  { %5683 = vmatprep.subr.mxu0 %v14972_v21  ;;  %5754 = vmatprep.subr.mxu1 %v14973_v23  ;;  %v15014_v51 = vld [vmem:[#allocation34_spill] sm:$0xff]  ;;  %v15015_v36 = vld [vmem:[#allocation36_spill] sm:$0xff]  ;;  %v15016_v41 = vld [vmem:[#allocation31_spill] sm:$0xff] }
0x1eb2   :  { %5684 = vmatpush1.msra.mxu0 %v14974_v25  ;;  %5755 = vmatpush1.msra.mxu1 %v14975_v26  ;;  %v15017_v3 = vld [vmem:[#allocation33_spill] sm:$0xff]  ;;  %v15018_v15 = vld [vmem:[#allocation30_spill] sm:$0xff]  ;;  %v15019_v58 = vld [vmem:[#allocation32_spill] sm:$0xff] }
0x1eb3   :  { %5685 = vmatprep.subr.mxu0 %v14976_v16  ;;  %5756 = vmatprep.subr.mxu1 %v14977_v34  ;;  %v15020_v42 = vld [vmem:[#allocation27_spill] sm:$0xff]  ;;  %v15021_v49 = vld [vmem:[#allocation29_spill] sm:$0xff]  ;;  %v15022_v0 = vld [vmem:[#allocation26_spill] sm:$0xff] }
0x1eb4   :  { %5686 = vmatpush1.msra.mxu0 %v14978_v2  ;;  %5757 = vmatpush1.msra.mxu1 %v14979_v9  ;;  %v15023_v55 = vld [vmem:[#allocation28_spill] sm:$0xff]  ;;  %v15024_v20 = vld [vmem:[#allocation23_spill] sm:$0xff]  ;;  %v15025_v43 = vld [vmem:[#allocation25_spill] sm:$0xff] }
0x1eb5   :  { %5687 = vmatprep.subr.mxu0 %v14980_v11  ;;  %5758 = vmatprep.subr.mxu1 %v14981_v38  ;;  %v15026_v48 = vld [vmem:[#allocation22_spill] sm:$0xff]  ;;  %v15027_v28 = vld [vmem:[#allocation24_spill] sm:$0xff]  ;;  %v15028_v8 = vld [vmem:[#allocation19_spill] sm:$0xff] }
0x1eb6   :  { %5688 = vmatpush1.msra.mxu0 %v14982_v35  ;;  %5759 = vmatpush1.msra.mxu1 %v14983_v50  ;;  %v15029_v24 = vld [vmem:[#allocation21_spill] sm:$0xff]  ;;  %v15030_v21 = vld [vmem:[#allocation18_spill] sm:$0xff]  ;;  %v15031_v23 = vld [vmem:[#allocation20_spill] sm:$0xff] }
0x1eb7   :  { %5689 = vmatprep.subr.mxu0 %v14984_v44  ;;  %5760 = vmatprep.subr.mxu1 %v14985_v1  ;;  %v5536_v39 = vld [vmem:[#allocation5] sm:$0xff]  ;;  %v15032_v25 = vld [vmem:[#allocation162_spill] sm:$0xff]  ;;  %v15034_v16 = vld [vmem:[#allocation160_spill] sm:$0xff] }
0x1eb8   :  { %5690 = vmatpush1.msra.mxu0 %v14986_v32  ;;  %5761 = vmatpush1.msra.mxu1 %v14987_v33  ;;  %v15033_v26 = vld [vmem:[#allocation161_spill] sm:$0xff]  ;;  %v15035_v34 = vld [vmem:[#allocation159_spill] sm:$0xff]  ;;  %v15036_v2 = vld [vmem:[#allocation158_spill] sm:$0xff] }
0x1eb9   :  { %5691 = vmatprep.subr.mxu0 %v14988_v54  ;;  %5762 = vmatprep.subr.mxu1 %v14989_v29  ;;  %v15037_v9 = vld [vmem:[#allocation157_spill] sm:$0xff]  ;;  %v15038_v11 = vld [vmem:[#allocation156_spill] sm:$0xff]  ;;  %v15039_v38 = vld [vmem:[#allocation155_spill] sm:$0xff] }
0x1eba   :  { %5692 = vmatpush1.msra.mxu0 %v14990_v30  ;;  %5763 = vmatpush1.msra.mxu1 %v14991_v10  ;;  %v15040_v35 = vld [vmem:[#allocation154_spill] sm:$0xff]  ;;  %v15041_v50 = vld [vmem:[#allocation153_spill] sm:$0xff]  ;;  %v15042_v44 = vld [vmem:[#allocation152_spill] sm:$0xff] }
0x1ebb   :  { %5693 = vmatprep.subr.mxu0 %v14992_v40  ;;  %5764 = vmatprep.subr.mxu1 %v14993_v53  ;;  %v15043_v1 = vld [vmem:[#allocation151_spill] sm:$0xff]  ;;  %v15044_v32 = vld [vmem:[#allocation150_spill] sm:$0xff]  ;;  %v15045_v33 = vld [vmem:[#allocation149_spill] sm:$0xff] }
0x1ebc   :  { %5694 = vmatpush1.msra.mxu0 %v14994_v57  ;;  %5765 = vmatpush1.msra.mxu1 %v14995_v60  ;;  %v15046_v54 = vld [vmem:[#allocation148_spill] sm:$0xff]  ;;  %v15047_v29 = vld [vmem:[#allocation147_spill] sm:$0xff] }
0x1ebd   :  { %5695 = vmatprep.subr.mxu0 %v14996_v61  ;;  %5766 = vmatprep.subr.mxu1 %v14997_v37 }
0x1ebe   :  { %5696 = vmatpush1.msra.mxu0 %v14998_v22  ;;  %5767 = vmatpush1.msra.mxu1 %v14999_v63 }
0x1ebf   :  { %5697 = vmatprep.subr.mxu0 %v15000_v19  ;;  %5768 = vmatprep.subr.mxu1 %v15001_v13 }
0x1ec0   :  { %5698 = vmatpush1.msra.mxu0 %v15002_v59  ;;  %5769 = vmatpush1.msra.mxu1 %v15003_v62 }
0x1ec1   :  { %5699 = vmatprep.subr.mxu0 %v15004_v27  ;;  %5770 = vmatprep.subr.mxu1 %v15005_v17 }
0x1ec2   :  { %5700 = vmatpush1.msra.mxu0 %v15006_v12  ;;  %5771 = vmatpush1.msra.mxu1 %v15007_v52 }
0x1ec3   :  { %5701 = vmatprep.subr.mxu0 %v15008_v7  ;;  %5772 = vmatprep.subr.mxu1 %v15009_v46 }
0x1ec4   :  { %5702 = vmatpush1.msra.mxu0 %v15010_v6  ;;  %5773 = vmatpush1.msra.mxu1 %v15011_v5 }
0x1ec5   :  { %5703 = vmatprep.subr.mxu0 %v15012_v31  ;;  %5774 = vmatprep.subr.mxu1 %v15013_v14 }
0x1ec6   :  { %5704 = vmatpush1.msra.mxu0 %v15014_v51  ;;  %5775 = vmatpush1.msra.mxu1 %v15015_v36  ;;  %v5538_v36 = vld [vmem:[#allocation3] sm:$0xff] }
0x1ec7   :  { %5705 = vmatprep.subr.mxu0 %v15016_v41  ;;  %5776 = vmatprep.subr.mxu1 %v15017_v3 }
0x1ec8   :  { %5706 = vmatpush1.msra.mxu0 %v15018_v15  ;;  %5777 = vmatpush1.msra.mxu1 %v15019_v58 }
0x1ec9   :  { %5707 = vmatprep.subr.mxu0 %v15020_v42  ;;  %5778 = vmatprep.subr.mxu1 %v15021_v49 }
0x1eca   :  { %5708 = vmatpush1.msra.mxu0 %v15022_v0  ;;  %5779 = vmatpush1.msra.mxu1 %v15023_v55 }
0x1ecb   :  { %5709 = vmatprep.subr.mxu0 %v15024_v20  ;;  %5780 = vmatprep.subr.mxu1 %v15025_v43 }
0x1ecc   :  { %5710 = vmatpush1.msra.mxu0 %v15026_v48  ;;  %5781 = vmatpush1.msra.mxu1 %v15027_v28  ;;  %v15048_v48 = vld [vmem:[#allocation163_spill] sm:$0xff] }
0x1ecd   :  { %5711 = vmatprep.subr.mxu0 %v15028_v8  ;;  %5782 = vmatprep.subr.mxu1 %v15029_v24 }
0x1ece   :  { %5712 = vmatpush1.msra.mxu0 %v15030_v21  ;;  %5745 = vmatprep.mubr.f32.mxu0 %v14966_v56 }
0x1ecf   :  { %5783 = vmatpush1.msra.mxu1 %v15031_v23  ;;  %5816 = vmatprep.mubr.f32.mxu1 %v14966_v56 }
0x1ed0   :  { %5746 = vmatmul.mubr.f32.vlgmr.msra.gmra.mxu0 %v5536_v39  ;;  %5817 = vmatmul.mubr.f32.vlgmr.msra.gmra.mxu1 %v5536_v39  ;;  %v15049_v39 = vld [vmem:[#allocation249_spill] sm:$0xff] }
0x1ed1   :  { %7152 = vmatprep.subr.mxu0 %v14966_v56  ;;  %7184 = vmatprep.mubr.msk.f32.mxu0 %vm7868_vm1, %v14966_v56 }
0x1ed2   :  { %7153 = vmatpush3.msra.mxu0 %v15032_v25 }
0x1ed3   :  { %7154 = vmatprep.subr.mxu0 %v14966_v56 }
0x1ed4   :  { %7155 = vmatpush3.msra.mxu0 %v15033_v26 }
0x1ed5   :  { %7156 = vmatprep.subr.mxu0 %v14966_v56 }
0x1ed6   :  { %7157 = vmatpush3.msra.mxu0 %v15034_v16 }
0x1ed7   :  { %7158 = vmatprep.subr.mxu0 %v14966_v56 }
0x1ed8   :  { %7159 = vmatpush3.msra.mxu0 %v15035_v34 }
0x1ed9   :  { %7160 = vmatprep.subr.mxu0 %v14966_v56 }
0x1eda   :  { %7161 = vmatpush3.msra.mxu0 %v15036_v2 }
0x1edb   :  { %7162 = vmatprep.subr.mxu0 %v14966_v56 }
0x1edc   :  { %7163 = vmatpush3.msra.mxu0 %v15037_v9 }
0x1edd   :  { %7164 = vmatprep.subr.mxu0 %v14966_v56 }
0x1ede   :  { %7165 = vmatpush3.msra.mxu0 %v15038_v11 }
0x1edf   :  { %7166 = vmatprep.subr.mxu0 %v14966_v56 }
0x1ee0   :  { %7167 = vmatpush3.msra.mxu0 %v15039_v38 }
0x1ee1   :  { %7168 = vmatprep.subr.mxu0 %v14966_v56 }
0x1ee2   :  { %7169 = vmatpush3.msra.mxu0 %v15040_v35 }
0x1ee3   :  { %7170 = vmatprep.subr.mxu0 %v14966_v56 }
0x1ee4   :  { %7171 = vmatpush3.msra.mxu0 %v15041_v50 }
0x1ee5   :  { %7172 = vmatprep.subr.mxu0 %v14966_v56 }
0x1ee6   :  { %7173 = vmatpush3.msra.mxu0 %v15042_v44 }
0x1ee7   :  { %7174 = vmatprep.subr.mxu0 %v14966_v56 }
0x1ee8   :  { %7175 = vmatpush3.msra.mxu0 %v15043_v1 }
0x1ee9   :  { %7176 = vmatprep.subr.mxu0 %v14966_v56 }
0x1eea   :  { %7177 = vmatpush3.msra.mxu0 %v15044_v32 }
0x1eeb   :  { %7178 = vmatprep.subr.mxu0 %v14966_v56 }
0x1eec   :  { %7179 = vmatpush3.msra.mxu0 %v15045_v33 }
0x1eed   :  { %7180 = vmatprep.subr.mxu0 %v14966_v56 }
0x1eee   :  { %7181 = vmatpush3.msra.mxu0 %v15046_v54 }
0x1eef   :  { %7182 = vmatprep.subr.mxu0 %v14966_v56 }
0x1ef0   :  { %7183 = vmatpush3.msra.mxu0 %v15047_v29 }
0x1f6d   :  { %v5605_v30 = vpop.f32.mrf.mxu0 }
0x1f6f   :  { %v5676_v10 = vpop.f32.mrf.mxu1  ;;  %v5607_v40 = vpop.f32.mrf.mxu0 }
0x1f71   :  { %v5678_v57 = vpop.f32.mrf.mxu1 }
0x1f90   :  { %v5747_v53 = vpop.f32.mrf.mxu0  ;;  %v5818_v22 = vpop.f32.mrf.mxu1 }
0x1f91   :  { %v5748_v60 = vadd.f32 %v5747_v53, %v5605_v30  ;;  %v5819_v12 = vadd.f32 %v5818_v22, %v5676_v10 }
0x1f92   :  { %v5749_v61 = vpop.f32.mrf.mxu0  ;;  %v5820_v62 = vpop.f32.mrf.mxu1 }
0x1f93   :  { %v5823_v37 = vadd.f32 %v5748_v60, %v11622_v4  ;;  %v5750_v63 = vadd.f32 %v5749_v61, %v5607_v40  ;;  %v5821_v27 = vadd.f32 %v5820_v62, %v5678_v57  ;;  %v5825_v46 = vadd.f32 %v5819_v12, %v11640_v45 }
0x1f95   :  { %v6519_v19 = vmul.f32 -1.442695, %v5823_v37  ;;  %v5824_v13 = vadd.f32 %v5750_v63, %v11627_v47  ;;  %v5826_v17 = vadd.f32 %v5821_v27, %v11634_v18 }
0x1f97   :  { %7748 = vpow2.f32 %v6519_v19  ;;  %v6520_v59 = vmul.f32 -1.442695, %v5824_v13  ;;  %v6521_v52 = vmul.f32 -1.442695, %v5826_v17 }
0x1f99   :  { %7750 = vpow2.f32 %v6520_v59 }
0x1f9a   :  { %7752 = vpow2.f32 %v6521_v52 }
0x1fa4   :  { %v7749_v7 = vpop.eup %7748 }
0x1fa5   :  { %v5830_v6 = vadd.f32 1.0, %v7749_v7 }
0x1fa6   :  { %v7751_v5 = vpop.eup %7750 }
0x1fa7   :  { %7754 = vrcp.f32 %v5830_v6  ;;  %v5836_v31 = vadd.f32 1.0, %v7751_v5  ;;  %v7753_v14 = vpop.eup %7752 }
0x1fa8   :  { %7756 = vtanh.f32 %v5825_v46  ;;  %v5843_v15 = vadd.f32 1.0, %v7753_v14 }
0x1fa9   :  { %7758 = vrcp.f32 %v5836_v31 }
0x1faa   :  { %7760 = vrcp.f32 %v5843_v15 }
0x1fb4   :  { %v7755_v51 = vpop.eup %7754 }
0x1fb5   :  { %v7757_v41 = vpop.eup %7756 }
0x1fb6   :  { %v7759_v3 = vpop.eup %7758  ;;  %v5847_v58 = vmul.f32 %v7757_v41, %v7755_v51 }
0x1fb7   :  { %v5846_v42 = vmul.f32 %v7759_v3, %v5538_v36  ;;  %v7761_v0 = vpop.eup %7760 }
0x1fb9   :  { %v5848_v49 = vadd.f32 %v5847_v58, %v5846_v42 }
0x1fbb   :  { %5933 = vst [vmem:[#allocation3] sm:$0xff] %v5848_v49  ;;  %7762 = vtanh.f32 %v5848_v49 }
0x1fc8   :  { %v7763_v55 = vpop.eup %7762 }
0x1fc9   :  { %v5850_v20 = vmul.f32 %v7763_v55, %v7761_v0 }
0x1fcb   :  { %7185 = vmatmul.mubr.f32.vlgmr.msra.gmra.mxu0 %v5850_v20  ;;  %5932 = vst [vmem:[#allocation2] sm:$0xff] %v5850_v20 }
0x208b   :  { %v5917_v43 = vpop.f32.mrf.mxu0 }
0x208c   :  { %v5918_v28 = vadd.f32 %v15048_v48, %v5917_v43 }
0x208d   :  { %v7186_v8 = vpop.f32.mrf.mxu0 }
0x208e   :  { %5922 = vst [vmem:[#allocation13 + $0x30] sm:$0xff] %v5918_v28  ;;  %5923 = vmax.xlane.f32.xlu0 %v5918_v28 }
0x2117   :  { %v5924_v24 = vpop.xlane.xlu0 %5923 }
0x2118   :  { %vm5925_vm2 = vcmp.eq.f32.partialorder %v5918_v28, %v5924_v24 }
0x2119   :  { %v5926_v21 = vsel %vm5925_vm2, %v15049_v39, 128.0 }
0x211a   :  { %5927 = vmin.xlane.f32.xlu0 %v5926_v21 }
0x21a2   :  { %5938 = sbr.rel (%p6523_p13) target bundleno = 8617 (0x21a9), region = 105 }
0x21a3   :  { %v5928_v23 = vpop.xlane.xlu0 %5927 }
0x21a4   :  { %vm5929_vm3 = vcmp.eq.f32.partialorder %v15049_v39, %v5928_v23 }
0x21a5   :  { %v5930_v25 = vsel %vm5929_vm3, 1.0, %v14966_v56 }
0x21a6   :  { %5931 = vst [vmem:[#allocation4] sm:$0xff] %v5930_v25 }
0x21a7   :  { %v6524_v26 = vld [vmem:[%s13002_s2 + $0x30] sm:$0xff] }
0x21a8   :  { %5941 = vst [vmem:[#allocation5] sm:$0xff] %v6524_v26 }
0x21a9 PF:  { %p6525_p0 = scmp.ne.s32.totalorder %s6522_s7, 0 }
0x21ab   :  { %5945 = sbr.rel (%p6525_p0) target bundleno = 8852 (0x2294), region = 109 }
0x21b0   :  { %v5962_v16 = vld [vmem:[%s13009_s9 + $0x78] sm:$0xff]  ;;  %v7879_v34 = vmov 0.0   ;;  %v5961_v56 = vld [vmem:[%s13009_s9 + $0x70] sm:$0xff]  ;;  %vm7880_vm4 = vmmov 0   ;;  %v5960_v2 = vld [vmem:[%s13009_s9 + $0x68] sm:$0xff] }
0x21b1   :  { %7187 = vmatprep.subr.mxu0 %v7879_v34  ;;  %7219 = vmatprep.mubr.msk.f32.mxu0 %vm7880_vm4, %v7879_v34  ;;  %v5959_v9 = vld [vmem:[%s13009_s9 + $0x60] sm:$0xff]  ;;  %v5958_v11 = vld [vmem:[%s13009_s9 + $0x58] sm:$0xff]  ;;  %v5957_v38 = vld [vmem:[%s13009_s9 + $0x50] sm:$0xff] }
0x21b2   :  { %7188 = vmatpush3.msra.mxu0 %v5962_v16  ;;  %v5956_v35 = vld [vmem:[%s13009_s9 + $0x48] sm:$0xff]  ;;  %v5955_v50 = vld [vmem:[%s13009_s9 + $0x40] sm:$0xff]  ;;  %v5954_v44 = vld [vmem:[%s13009_s9 + $0x38] sm:$0xff] }
0x21b3   :  { %7189 = vmatprep.subr.mxu0 %v7879_v34  ;;  %v5953_v1 = vld [vmem:[%s13009_s9 + $0x30] sm:$0xff]  ;;  %v5952_v32 = vld [vmem:[%s13009_s9 + $0x28] sm:$0xff]  ;;  %v5951_v33 = vld [vmem:[%s13009_s9 + $0x20] sm:$0xff] }
0x21b4   :  { %7190 = vmatpush3.msra.mxu0 %v5961_v56  ;;  %v5950_v54 = vld [vmem:[%s13009_s9 + $0x18] sm:$0xff]  ;;  %v5949_v29 = vld [vmem:[%s13009_s9 + $0x10] sm:$0xff]  ;;  %v5948_v30 = vld [vmem:[%s13009_s9 + $0x8] sm:$0xff] }
0x21b5   :  { %7191 = vmatprep.subr.mxu0 %v7879_v34  ;;  %v5947_v10 = vld [vmem:[%s13009_s9] sm:$0xff]  ;;  %v5946_v40 = vld [vmem:[#allocation4] sm:$0xff] }
0x21b6   :  { %7192 = vmatpush3.msra.mxu0 %v5960_v2 }
0x21b7   :  { %7193 = vmatprep.subr.mxu0 %v7879_v34 }
0x21b8   :  { %7194 = vmatpush3.msra.mxu0 %v5959_v9 }
0x21b9   :  { %7195 = vmatprep.subr.mxu0 %v7879_v34 }
0x21ba   :  { %7196 = vmatpush3.msra.mxu0 %v5958_v11 }
0x21bb   :  { %7197 = vmatprep.subr.mxu0 %v7879_v34 }
0x21bc   :  { %7198 = vmatpush3.msra.mxu0 %v5957_v38 }
0x21bd   :  { %7199 = vmatprep.subr.mxu0 %v7879_v34 }
0x21be   :  { %7200 = vmatpush3.msra.mxu0 %v5956_v35 }
0x21bf   :  { %7201 = vmatprep.subr.mxu0 %v7879_v34 }
0x21c0   :  { %7202 = vmatpush3.msra.mxu0 %v5955_v50 }
0x21c1   :  { %7203 = vmatprep.subr.mxu0 %v7879_v34 }
0x21c2   :  { %7204 = vmatpush3.msra.mxu0 %v5954_v44 }
0x21c3   :  { %7205 = vmatprep.subr.mxu0 %v7879_v34 }
0x21c4   :  { %7206 = vmatpush3.msra.mxu0 %v5953_v1 }
0x21c5   :  { %7207 = vmatprep.subr.mxu0 %v7879_v34 }
0x21c6   :  { %7208 = vmatpush3.msra.mxu0 %v5952_v32 }
0x21c7   :  { %7209 = vmatprep.subr.mxu0 %v7879_v34 }
0x21c8   :  { %7210 = vmatpush3.msra.mxu0 %v5951_v33 }
0x21c9   :  { %7211 = vmatprep.subr.mxu0 %v7879_v34 }
0x21ca   :  { %7212 = vmatpush3.msra.mxu0 %v5950_v54 }
0x21cb   :  { %7213 = vmatprep.subr.mxu0 %v7879_v34 }
0x21cc   :  { %7214 = vmatpush3.msra.mxu0 %v5949_v29 }
0x21cd   :  { %7215 = vmatprep.subr.mxu0 %v7879_v34 }
0x21ce   :  { %7216 = vmatpush3.msra.mxu0 %v5948_v30 }
0x21cf   :  { %7217 = vmatprep.subr.mxu0 %v7879_v34 }
0x21d0   :  { %7218 = vmatpush3.msra.mxu0 %v5947_v10 }
0x21d1   :  { %7220 = vmatmul.mubr.f32.vlgmr.msra.gmra.mxu0 %v5946_v40 }
0x2291   :  { %v6029_v53 = vpop.f32.mrf.mxu0 }
0x2292   :  { %6033 = vst [vmem:[#allocation5] sm:$0xff] %v6029_v53 }
0x2293   :  { %v7221_v57 = vpop.f32.mrf.mxu0 }
0x2294 PF:  { %v15050_v60 = vld [vmem:[#allocation143_spill] sm:$0xff]  ;;  %v15051_v61 = vld [vmem:[#allocation145_spill] sm:$0xff]  ;;  %v15052_v37 = vld [vmem:[#allocation142_spill] sm:$0xff]  ;;  %s7881_s9 = smov [#allocation13]  }
0x2295   :  { %6037 = vmatprep.subr.mxu0 %v15050_v60  ;;  %6108 = vmatprep.subr.mxu1 %v15051_v61  ;;  %v15053_v22 = vld [vmem:[#allocation144_spill] sm:$0xff]  ;;  %v15054_v63 = vld [vmem:[#allocation139_spill] sm:$0xff]  ;;  %v15055_v19 = vld [vmem:[#allocation141_spill] sm:$0xff]  ;;  %s6437_s24 = sshll.u32 %s7881_s9, 4  ;;  %s6438_s24 = int_to_ptr.vmem [resolvable:$true] %s6437_s24 }
0x2296   :  { %6038 = vmatpush1.msra.mxu0 %v15052_v37  ;;  %6109 = vmatpush1.msra.mxu1 %v15053_v22  ;;  %v15056_v13 = vld [vmem:[#allocation138_spill] sm:$0xff]  ;;  %v15057_v59 = vld [vmem:[#allocation140_spill] sm:$0xff]  ;;  %v15058_v62 = vld [vmem:[#allocation135_spill] sm:$0xff]  ;;  %s7832_s25 = scalar_lea.vmem %s6438_s24, 1024  ;;  %p7837_p2 = scmp.lt.s32.totalorder %s6438_s24, %s6438_s24 }
0x2297   :  { %6039 = vmatprep.subr.mxu0 %v15054_v63  ;;  %6110 = vmatprep.subr.mxu1 %v15055_v19  ;;  %v15059_v27 = vld [vmem:[#allocation137_spill] sm:$0xff]  ;;  %v15060_v17 = vld [vmem:[#allocation134_spill] sm:$0xff]  ;;  %v15061_v12 = vld [vmem:[#allocation136_spill] sm:$0xff]  ;;  %v15113_v63 = vmov 0.0   ;;  %p7833_p1 = scmp.ne.s32.totalorder %s6438_s24, %s7832_s25  ;;  %p7838_p3 = scmp.lt.s32.totalorder %s7832_s25, %s7832_s25 }
0x2298   :  { %6040 = vmatpush1.msra.mxu0 %v15056_v13  ;;  %6111 = vmatpush1.msra.mxu1 %v15057_v59  ;;  %v15062_v52 = vld [vmem:[#allocation131_spill] sm:$0xff]  ;;  %v15063_v7 = vld [vmem:[#allocation133_spill] sm:$0xff]  ;;  %v15064_v46 = vld [vmem:[#allocation130_spill] sm:$0xff] }
0x2299   :  { %6041 = vmatprep.subr.mxu0 %v15058_v62  ;;  %6112 = vmatprep.subr.mxu1 %v15059_v27  ;;  %v15065_v6 = vld [vmem:[#allocation132_spill] sm:$0xff]  ;;  %v15066_v5 = vld [vmem:[#allocation127_spill] sm:$0xff]  ;;  %v15067_v31 = vld [vmem:[#allocation129_spill] sm:$0xff]  ;;  %p7839_p4 = por %p7838_p3, %p7837_p2 }
0x229a   :  { %6042 = vmatpush1.msra.mxu0 %v15060_v17  ;;  %6113 = vmatpush1.msra.mxu1 %v15061_v12  ;;  %v15068_v14 = vld [vmem:[#allocation126_spill] sm:$0xff]  ;;  %v15069_v51 = vld [vmem:[#allocation128_spill] sm:$0xff]  ;;  %v15070_v36 = vld [vmem:[#allocation123_spill] sm:$0xff] }
0x229b   :  { %6043 = vmatprep.subr.mxu0 %v15062_v52  ;;  %6114 = vmatprep.subr.mxu1 %v15063_v7  ;;  %v15071_v41 = vld [vmem:[#allocation125_spill] sm:$0xff]  ;;  %v15072_v3 = vld [vmem:[#allocation122_spill] sm:$0xff]  ;;  %v15073_v15 = vld [vmem:[#allocation124_spill] sm:$0xff]  ;;  %p7840_p5 = pnand %p7839_p4, %p7833_p1 }
0x229c   :  { %6044 = vmatpush1.msra.mxu0 %v15064_v46  ;;  %6115 = vmatpush1.msra.mxu1 %v15065_v6  ;;  %v15074_v58 = vld [vmem:[#allocation119_spill] sm:$0xff]  ;;  %v15075_v42 = vld [vmem:[#allocation121_spill] sm:$0xff]  ;;  %v15076_v49 = vld [vmem:[#allocation118_spill] sm:$0xff] }
0x229d   :  { %6045 = vmatprep.subr.mxu0 %v15066_v5  ;;  %6116 = vmatprep.subr.mxu1 %v15067_v31  ;;  %v15077_v0 = vld [vmem:[#allocation120_spill] sm:$0xff]  ;;  %v15078_v55 = vld [vmem:[#allocation115_spill] sm:$0xff]  ;;  %v15079_v20 = vld [vmem:[#allocation117_spill] sm:$0xff] }
0x229e   :  { %6046 = vmatpush1.msra.mxu0 %v15068_v14  ;;  %6117 = vmatpush1.msra.mxu1 %v15069_v51  ;;  %v15080_v43 = vld [vmem:[#allocation114_spill] sm:$0xff]  ;;  %v15081_v48 = vld [vmem:[#allocation116_spill] sm:$0xff]  ;;  %v15082_v28 = vld [vmem:[#allocation111_spill] sm:$0xff] }
0x229f   :  { %6047 = vmatprep.subr.mxu0 %v15070_v36  ;;  %6118 = vmatprep.subr.mxu1 %v15071_v41  ;;  %v15083_v8 = vld [vmem:[#allocation113_spill] sm:$0xff]  ;;  %v15084_v24 = vld [vmem:[#allocation110_spill] sm:$0xff]  ;;  %v15085_v39 = vld [vmem:[#allocation112_spill] sm:$0xff] }
0x22a0   :  { %6048 = vmatpush1.msra.mxu0 %v15072_v3  ;;  %6119 = vmatpush1.msra.mxu1 %v15073_v15  ;;  %v15086_v21 = vld [vmem:[#allocation107_spill] sm:$0xff]  ;;  %v15087_v23 = vld [vmem:[#allocation109_spill] sm:$0xff]  ;;  %v15088_v25 = vld [vmem:[#allocation106_spill] sm:$0xff] }
0x22a1   :  { %6049 = vmatprep.subr.mxu0 %v15074_v58  ;;  %6120 = vmatprep.subr.mxu1 %v15075_v42  ;;  %v15089_v26 = vld [vmem:[#allocation108_spill] sm:$0xff]  ;;  %v15090_v16 = vld [vmem:[#allocation103_spill] sm:$0xff]  ;;  %v15091_v34 = vld [vmem:[#allocation105_spill] sm:$0xff] }
0x22a2   :  { %6050 = vmatpush1.msra.mxu0 %v15076_v49  ;;  %6121 = vmatpush1.msra.mxu1 %v15077_v0  ;;  %v15092_v56 = vld [vmem:[#allocation102_spill] sm:$0xff]  ;;  %v15093_v2 = vld [vmem:[#allocation104_spill] sm:$0xff]  ;;  %v15094_v9 = vld [vmem:[#allocation99_spill] sm:$0xff] }
0x22a3   :  { %6051 = vmatprep.subr.mxu0 %v15078_v55  ;;  %6122 = vmatprep.subr.mxu1 %v15079_v20  ;;  %v15095_v11 = vld [vmem:[#allocation101_spill] sm:$0xff]  ;;  %v15096_v38 = vld [vmem:[#allocation98_spill] sm:$0xff]  ;;  %v15097_v35 = vld [vmem:[#allocation100_spill] sm:$0xff] }
0x22a4   :  { %6052 = vmatpush1.msra.mxu0 %v15080_v43  ;;  %6123 = vmatpush1.msra.mxu1 %v15081_v48  ;;  %v15098_v50 = vld [vmem:[#allocation95_spill] sm:$0xff]  ;;  %v15099_v44 = vld [vmem:[#allocation97_spill] sm:$0xff]  ;;  %v15100_v1 = vld [vmem:[#allocation94_spill] sm:$0xff] }
0x22a5   :  { %6053 = vmatprep.subr.mxu0 %v15082_v28  ;;  %6124 = vmatprep.subr.mxu1 %v15083_v8  ;;  %v15101_v32 = vld [vmem:[#allocation96_spill] sm:$0xff]  ;;  %v15102_v33 = vld [vmem:[#allocation91_spill] sm:$0xff]  ;;  %v15103_v54 = vld [vmem:[#allocation93_spill] sm:$0xff] }
0x22a6   :  { %6054 = vmatpush1.msra.mxu0 %v15084_v24  ;;  %6125 = vmatpush1.msra.mxu1 %v15085_v39  ;;  %v15104_v29 = vld [vmem:[#allocation90_spill] sm:$0xff]  ;;  %v15105_v30 = vld [vmem:[#allocation92_spill] sm:$0xff]  ;;  %v15106_v10 = vld [vmem:[#allocation87_spill] sm:$0xff] }
0x22a7   :  { %6055 = vmatprep.subr.mxu0 %v15086_v21  ;;  %6126 = vmatprep.subr.mxu1 %v15087_v23  ;;  %v15107_v40 = vld [vmem:[#allocation89_spill] sm:$0xff]  ;;  %v15108_v53 = vld [vmem:[#allocation86_spill] sm:$0xff]  ;;  %v15109_v57 = vld [vmem:[#allocation88_spill] sm:$0xff] }
0x22a8   :  { %6056 = vmatpush1.msra.mxu0 %v15088_v25  ;;  %6127 = vmatpush1.msra.mxu1 %v15089_v26  ;;  %v6035_v60 = vld [vmem:[#allocation2] sm:$0xff]  ;;  %v15110_v61 = vld [vmem:[#allocation83_spill] sm:$0xff]  ;;  %v15111_v37 = vld [vmem:[#allocation85_spill] sm:$0xff] }
0x22a9   :  { %6057 = vmatprep.subr.mxu0 %v15090_v16  ;;  %6128 = vmatprep.subr.mxu1 %v15091_v34  ;;  %v15112_v22 = vld [vmem:[#allocation82_spill] sm:$0xff]  ;;  %v15114_v19 = vld [vmem:[#allocation84_spill] sm:$0xff]  ;;  %v15115_v13 = vld [vmem:[#allocation79_spill] sm:$0xff] }
0x22aa   :  { %6058 = vmatpush1.msra.mxu0 %v15092_v56  ;;  %6129 = vmatpush1.msra.mxu1 %v15093_v2  ;;  %v15116_v59 = vld [vmem:[#allocation81_spill] sm:$0xff]  ;;  %v15117_v62 = vld [vmem:[#allocation78_spill] sm:$0xff]  ;;  %v15118_v27 = vld [vmem:[#allocation80_spill] sm:$0xff] }
0x22ab   :  { %6059 = vmatprep.subr.mxu0 %v15094_v9  ;;  %6130 = vmatprep.subr.mxu1 %v15095_v11  ;;  %v15119_v17 = vld [vmem:[#allocation75_spill] sm:$0xff]  ;;  %v15120_v12 = vld [vmem:[#allocation77_spill] sm:$0xff]  ;;  %v15121_v52 = vld [vmem:[#allocation74_spill] sm:$0xff] }
0x22ac   :  { %6060 = vmatpush1.msra.mxu0 %v15096_v38  ;;  %6131 = vmatpush1.msra.mxu1 %v15097_v35  ;;  %v15122_v7 = vld [vmem:[#allocation76_spill] sm:$0xff]  ;;  %v15123_v46 = vld [vmem:[#allocation71_spill] sm:$0xff]  ;;  %v15124_v6 = vld [vmem:[#allocation73_spill] sm:$0xff] }
0x22ad   :  { %6061 = vmatprep.subr.mxu0 %v15098_v50  ;;  %6132 = vmatprep.subr.mxu1 %v15099_v44  ;;  %v15125_v5 = vld [vmem:[#allocation70_spill] sm:$0xff]  ;;  %v15126_v31 = vld [vmem:[#allocation72_spill] sm:$0xff]  ;;  %v15127_v14 = vld [vmem:[#allocation67_spill] sm:$0xff] }
0x22ae   :  { %6062 = vmatpush1.msra.mxu0 %v15100_v1  ;;  %6133 = vmatpush1.msra.mxu1 %v15101_v32  ;;  %v15128_v51 = vld [vmem:[#allocation69_spill] sm:$0xff]  ;;  %v15129_v36 = vld [vmem:[#allocation66_spill] sm:$0xff]  ;;  %v15130_v41 = vld [vmem:[#allocation68_spill] sm:$0xff] }
0x22af   :  { %6063 = vmatprep.subr.mxu0 %v15102_v33  ;;  %6134 = vmatprep.subr.mxu1 %v15103_v54  ;;  %v15131_v3 = vld [vmem:[#allocation63_spill] sm:$0xff]  ;;  %v15132_v15 = vld [vmem:[#allocation65_spill] sm:$0xff]  ;;  %v15133_v58 = vld [vmem:[#allocation62_spill] sm:$0xff] }
0x22b0   :  { %6064 = vmatpush1.msra.mxu0 %v15104_v29  ;;  %6135 = vmatpush1.msra.mxu1 %v15105_v30  ;;  %v15134_v42 = vld [vmem:[#allocation64_spill] sm:$0xff]  ;;  %v15135_v49 = vld [vmem:[#allocation59_spill] sm:$0xff]  ;;  %v15136_v0 = vld [vmem:[#allocation61_spill] sm:$0xff] }
0x22b1   :  { %6065 = vmatprep.subr.mxu0 %v15106_v10  ;;  %6136 = vmatprep.subr.mxu1 %v15107_v40  ;;  %v15137_v55 = vld [vmem:[#allocation58_spill] sm:$0xff]  ;;  %v15138_v20 = vld [vmem:[#allocation60_spill] sm:$0xff]  ;;  %v15139_v43 = vld [vmem:[#allocation55_spill] sm:$0xff] }
0x22b2   :  { %6066 = vmatpush1.msra.mxu0 %v15108_v53  ;;  %6137 = vmatpush1.msra.mxu1 %v15109_v57  ;;  %v15140_v48 = vld [vmem:[#allocation57_spill] sm:$0xff]  ;;  %v15141_v28 = vld [vmem:[#allocation54_spill] sm:$0xff]  ;;  %v15142_v8 = vld [vmem:[#allocation56_spill] sm:$0xff] }
0x22b3   :  { %6067 = vmatprep.subr.mxu0 %v15110_v61  ;;  %6138 = vmatprep.subr.mxu1 %v15111_v37  ;;  %v15143_v24 = vld [vmem:[#allocation51_spill] sm:$0xff]  ;;  %v15144_v39 = vld [vmem:[#allocation53_spill] sm:$0xff]  ;;  %v15145_v21 = vld [vmem:[#allocation50_spill] sm:$0xff] }
0x22b4   :  { %6068 = vmatpush1.msra.mxu0 %v15112_v22  ;;  %6101 = vmatprep.mubr.f32.mxu0 %v15113_v63  ;;  %v15146_v23 = vld [vmem:[#allocation52_spill] sm:$0xff]  ;;  %v15147_v25 = vld [vmem:[#allocation47_spill] sm:$0xff]  ;;  %v15148_v26 = vld [vmem:[#allocation49_spill] sm:$0xff] }
0x22b5   :  { %6139 = vmatpush1.msra.mxu1 %v15114_v19  ;;  %6102 = vmatmul.mubr.f32.vlgmr.msra.gmra.mxu0 %v6035_v60  ;;  %v15149_v16 = vld [vmem:[#allocation46_spill] sm:$0xff]  ;;  %v15150_v34 = vld [vmem:[#allocation48_spill] sm:$0xff]  ;;  %v15151_v56 = vld [vmem:[#allocation43_spill] sm:$0xff] }
0x22b6   :  { %6172 = vmatprep.mubr.f32.mxu1 %v15113_v63  ;;  %6179 = vmatprep.subr.mxu0 %v15115_v13  ;;  %v15152_v2 = vld [vmem:[#allocation45_spill] sm:$0xff]  ;;  %v15153_v9 = vld [vmem:[#allocation42_spill] sm:$0xff]  ;;  %v15154_v11 = vld [vmem:[#allocation44_spill] sm:$0xff] }
0x22b7   :  { %6250 = vmatprep.subr.mxu1 %v15116_v59  ;;  %6173 = vmatmul.mubr.f32.vlgmr.msra.gmra.mxu1 %v6035_v60  ;;  %v15155_v38 = vld [vmem:[#allocation39_spill] sm:$0xff]  ;;  %v15156_v35 = vld [vmem:[#allocation41_spill] sm:$0xff]  ;;  %v15157_v50 = vld [vmem:[#allocation38_spill] sm:$0xff] }
0x22b8   :  { %6180 = vmatpush1.msra.mxu0 %v15117_v62  ;;  %6251 = vmatpush1.msra.mxu1 %v15118_v27  ;;  %v15158_v44 = vld [vmem:[#allocation40_spill] sm:$0xff]  ;;  %v15159_v1 = vld [vmem:[#allocation35_spill] sm:$0xff]  ;;  %v15160_v32 = vld [vmem:[#allocation37_spill] sm:$0xff] }
0x22b9   :  { %6181 = vmatprep.subr.mxu0 %v15119_v17  ;;  %6252 = vmatprep.subr.mxu1 %v15120_v12  ;;  %v15161_v33 = vld [vmem:[#allocation34_spill] sm:$0xff]  ;;  %v15162_v54 = vld [vmem:[#allocation36_spill] sm:$0xff]  ;;  %v15163_v29 = vld [vmem:[#allocation31_spill] sm:$0xff] }
0x22ba   :  { %6182 = vmatpush1.msra.mxu0 %v15121_v52  ;;  %6253 = vmatpush1.msra.mxu1 %v15122_v7  ;;  %v15164_v30 = vld [vmem:[#allocation33_spill] sm:$0xff]  ;;  %v15165_v10 = vld [vmem:[#allocation30_spill] sm:$0xff]  ;;  %v15166_v40 = vld [vmem:[#allocation32_spill] sm:$0xff] }
0x22bb   :  { %6183 = vmatprep.subr.mxu0 %v15123_v46  ;;  %6254 = vmatprep.subr.mxu1 %v15124_v6  ;;  %v15167_v53 = vld [vmem:[#allocation27_spill] sm:$0xff]  ;;  %v15168_v57 = vld [vmem:[#allocation29_spill] sm:$0xff]  ;;  %v15169_v60 = vld [vmem:[#allocation26_spill] sm:$0xff] }
0x22bc   :  { %6184 = vmatpush1.msra.mxu0 %v15125_v5  ;;  %6255 = vmatpush1.msra.mxu1 %v15126_v31  ;;  %v15170_v61 = vld [vmem:[#allocation28_spill] sm:$0xff]  ;;  %v15171_v37 = vld [vmem:[#allocation23_spill] sm:$0xff]  ;;  %v15172_v22 = vld [vmem:[#allocation25_spill] sm:$0xff] }
0x22bd   :  { %6185 = vmatprep.subr.mxu0 %v15127_v14  ;;  %6256 = vmatprep.subr.mxu1 %v15128_v51  ;;  %v15173_v19 = vld [vmem:[#allocation22_spill] sm:$0xff]  ;;  %v15174_v13 = vld [vmem:[#allocation24_spill] sm:$0xff]  ;;  %v15175_v59 = vld [vmem:[#allocation19_spill] sm:$0xff] }
0x22be   :  { %6186 = vmatpush1.msra.mxu0 %v15129_v36  ;;  %6257 = vmatpush1.msra.mxu1 %v15130_v41  ;;  %v15176_v62 = vld [vmem:[#allocation21_spill] sm:$0xff]  ;;  %v15177_v17 = vld [vmem:[#allocation18_spill] sm:$0xff]  ;;  %v15178_v12 = vld [vmem:[#allocation20_spill] sm:$0xff] }
0x22bf   :  { %6187 = vmatprep.subr.mxu0 %v15131_v3  ;;  %6258 = vmatprep.subr.mxu1 %v15132_v15  ;;  %v6034_v27 = vld [vmem:[#allocation5] sm:$0xff]  ;;  %v15179_v52 = vld [vmem:[#allocation162_spill] sm:$0xff]  ;;  %v15181_v46 = vld [vmem:[#allocation160_spill] sm:$0xff] }
0x22c0   :  { %6188 = vmatpush1.msra.mxu0 %v15133_v58  ;;  %6259 = vmatpush1.msra.mxu1 %v15134_v42  ;;  %v15180_v7 = vld [vmem:[#allocation161_spill] sm:$0xff]  ;;  %v15182_v6 = vld [vmem:[#allocation159_spill] sm:$0xff]  ;;  %v15183_v5 = vld [vmem:[#allocation158_spill] sm:$0xff] }
0x22c1   :  { %6189 = vmatprep.subr.mxu0 %v15135_v49  ;;  %6260 = vmatprep.subr.mxu1 %v15136_v0  ;;  %v15184_v31 = vld [vmem:[#allocation157_spill] sm:$0xff]  ;;  %v15185_v14 = vld [vmem:[#allocation156_spill] sm:$0xff]  ;;  %v15186_v51 = vld [vmem:[#allocation155_spill] sm:$0xff] }
0x22c2   :  { %6190 = vmatpush1.msra.mxu0 %v15137_v55  ;;  %6261 = vmatpush1.msra.mxu1 %v15138_v20  ;;  %v15187_v36 = vld [vmem:[#allocation154_spill] sm:$0xff]  ;;  %v15188_v41 = vld [vmem:[#allocation153_spill] sm:$0xff]  ;;  %v15189_v3 = vld [vmem:[#allocation152_spill] sm:$0xff] }
0x22c3   :  { %6191 = vmatprep.subr.mxu0 %v15139_v43  ;;  %6262 = vmatprep.subr.mxu1 %v15140_v48  ;;  %v15190_v15 = vld [vmem:[#allocation151_spill] sm:$0xff]  ;;  %v15191_v58 = vld [vmem:[#allocation150_spill] sm:$0xff]  ;;  %v15192_v42 = vld [vmem:[#allocation149_spill] sm:$0xff] }
0x22c4   :  { %6192 = vmatpush1.msra.mxu0 %v15141_v28  ;;  %6263 = vmatpush1.msra.mxu1 %v15142_v8  ;;  %v15193_v49 = vld [vmem:[#allocation148_spill] sm:$0xff]  ;;  %v15194_v0 = vld [vmem:[#allocation147_spill] sm:$0xff] }
0x22c5   :  { %6193 = vmatprep.subr.mxu0 %v15143_v24  ;;  %6264 = vmatprep.subr.mxu1 %v15144_v39 }
0x22c6   :  { %6194 = vmatpush1.msra.mxu0 %v15145_v21  ;;  %6265 = vmatpush1.msra.mxu1 %v15146_v23 }
0x22c7   :  { %6195 = vmatprep.subr.mxu0 %v15147_v25  ;;  %6266 = vmatprep.subr.mxu1 %v15148_v26 }
0x22c8   :  { %6196 = vmatpush1.msra.mxu0 %v15149_v16  ;;  %6267 = vmatpush1.msra.mxu1 %v15150_v34 }
0x22c9   :  { %6197 = vmatprep.subr.mxu0 %v15151_v56  ;;  %6268 = vmatprep.subr.mxu1 %v15152_v2 }
0x22ca   :  { %6198 = vmatpush1.msra.mxu0 %v15153_v9  ;;  %6269 = vmatpush1.msra.mxu1 %v15154_v11 }
0x22cb   :  { %6199 = vmatprep.subr.mxu0 %v15155_v38  ;;  %6270 = vmatprep.subr.mxu1 %v15156_v35 }
0x22cc   :  { %6200 = vmatpush1.msra.mxu0 %v15157_v50  ;;  %6271 = vmatpush1.msra.mxu1 %v15158_v44 }
0x22cd   :  { %6201 = vmatprep.subr.mxu0 %v15159_v1  ;;  %6272 = vmatprep.subr.mxu1 %v15160_v32  ;;  %v6036_v32 = vld [vmem:[#allocation3] sm:$0xff] }
0x22ce   :  { %6202 = vmatpush1.msra.mxu0 %v15161_v33  ;;  %6273 = vmatpush1.msra.mxu1 %v15162_v54 }
0x22cf   :  { %6203 = vmatprep.subr.mxu0 %v15163_v29  ;;  %6274 = vmatprep.subr.mxu1 %v15164_v30 }
0x22d0   :  { %6204 = vmatpush1.msra.mxu0 %v15165_v10  ;;  %6275 = vmatpush1.msra.mxu1 %v15166_v40 }
0x22d1   :  { %6205 = vmatprep.subr.mxu0 %v15167_v53  ;;  %6276 = vmatprep.subr.mxu1 %v15168_v57 }
0x22d2   :  { %6206 = vmatpush1.msra.mxu0 %v15169_v60  ;;  %6277 = vmatpush1.msra.mxu1 %v15170_v61  ;;  %v15195_v60 = vld [vmem:[#allocation163_spill] sm:$0xff] }
0x22d3   :  { %6207 = vmatprep.subr.mxu0 %v15171_v37  ;;  %6278 = vmatprep.subr.mxu1 %v15172_v22 }
0x22d4   :  { %6208 = vmatpush1.msra.mxu0 %v15173_v19  ;;  %6279 = vmatpush1.msra.mxu1 %v15174_v13  ;;  %v15196_v19 = vld [vmem:[#allocation249_spill] sm:$0xff] }
0x22d5   :  { %6209 = vmatprep.subr.mxu0 %v15175_v59  ;;  %6280 = vmatprep.subr.mxu1 %v15176_v62 }
0x22d6   :  { %6210 = vmatpush1.msra.mxu0 %v15177_v17  ;;  %6243 = vmatprep.mubr.f32.mxu0 %v15113_v63 }
0x22d7   :  { %6281 = vmatpush1.msra.mxu1 %v15178_v12  ;;  %6314 = vmatprep.mubr.f32.mxu1 %v15113_v63 }
0x22d8   :  { %6244 = vmatmul.mubr.f32.vlgmr.msra.gmra.mxu0 %v6034_v27  ;;  %6315 = vmatmul.mubr.f32.vlgmr.msra.gmra.mxu1 %v6034_v27 }
0x22d9   :  { %7222 = vmatprep.subr.mxu0 %v15113_v63  ;;  %7254 = vmatprep.mubr.msk.f32.mxu0 %vm7868_vm1, %v15113_v63 }
0x22da   :  { %7223 = vmatpush3.msra.mxu0 %v15179_v52 }
0x22db   :  { %7224 = vmatprep.subr.mxu0 %v15113_v63 }
0x22dc   :  { %7225 = vmatpush3.msra.mxu0 %v15180_v7 }
0x22dd   :  { %7226 = vmatprep.subr.mxu0 %v15113_v63 }
0x22de   :  { %7227 = vmatpush3.msra.mxu0 %v15181_v46 }
0x22df   :  { %7228 = vmatprep.subr.mxu0 %v15113_v63 }
0x22e0   :  { %7229 = vmatpush3.msra.mxu0 %v15182_v6 }
0x22e1   :  { %7230 = vmatprep.subr.mxu0 %v15113_v63 }
0x22e2   :  { %7231 = vmatpush3.msra.mxu0 %v15183_v5 }
0x22e3   :  { %7232 = vmatprep.subr.mxu0 %v15113_v63 }
0x22e4   :  { %7233 = vmatpush3.msra.mxu0 %v15184_v31 }
0x22e5   :  { %7234 = vmatprep.subr.mxu0 %v15113_v63 }
0x22e6   :  { %7235 = vmatpush3.msra.mxu0 %v15185_v14 }
0x22e7   :  { %7236 = vmatprep.subr.mxu0 %v15113_v63 }
0x22e8   :  { %7237 = vmatpush3.msra.mxu0 %v15186_v51 }
0x22e9   :  { %7238 = vmatprep.subr.mxu0 %v15113_v63 }
0x22ea   :  { %7239 = vmatpush3.msra.mxu0 %v15187_v36 }
0x22eb   :  { %7240 = vmatprep.subr.mxu0 %v15113_v63 }
0x22ec   :  { %7241 = vmatpush3.msra.mxu0 %v15188_v41 }
0x22ed   :  { %7242 = vmatprep.subr.mxu0 %v15113_v63 }
0x22ee   :  { %7243 = vmatpush3.msra.mxu0 %v15189_v3 }
0x22ef   :  { %7244 = vmatprep.subr.mxu0 %v15113_v63 }
0x22f0   :  { %7245 = vmatpush3.msra.mxu0 %v15190_v15 }
0x22f1   :  { %7246 = vmatprep.subr.mxu0 %v15113_v63 }
0x22f2   :  { %7247 = vmatpush3.msra.mxu0 %v15191_v58 }
0x22f3   :  { %7248 = vmatprep.subr.mxu0 %v15113_v63 }
0x22f4   :  { %7249 = vmatpush3.msra.mxu0 %v15192_v42 }
0x22f5   :  { %7250 = vmatprep.subr.mxu0 %v15113_v63 }
0x22f6   :  { %7251 = vmatpush3.msra.mxu0 %v15193_v49 }
0x22f7   :  { %7252 = vmatprep.subr.mxu0 %v15113_v63 }
0x22f8   :  { %7253 = vmatpush3.msra.mxu0 %v15194_v0 }
0x2375   :  { %v6103_v55 = vpop.f32.mrf.mxu0 }
0x2377   :  { %v6174_v20 = vpop.f32.mrf.mxu1  ;;  %v6105_v43 = vpop.f32.mrf.mxu0 }
0x2379   :  { %v6176_v28 = vpop.f32.mrf.mxu1 }
0x2398   :  { %v6245_v48 = vpop.f32.mrf.mxu0  ;;  %v6316_v21 = vpop.f32.mrf.mxu1 }
0x2399   :  { %v6246_v8 = vadd.f32 %v6245_v48, %v6103_v55  ;;  %v6317_v9 = vadd.f32 %v6316_v21, %v6174_v20 }
0x239a   :  { %v6247_v24 = vpop.f32.mrf.mxu0  ;;  %v6318_v34 = vpop.f32.mrf.mxu1 }
0x239b   :  { %v6321_v39 = vadd.f32 %v6246_v8, %v11622_v4  ;;  %v6248_v23 = vadd.f32 %v6247_v24, %v6105_v43  ;;  %v6319_v56 = vadd.f32 %v6318_v34, %v6176_v28  ;;  %v6323_v35 = vadd.f32 %v6317_v9, %v11640_v45 }
0x239d   :  { %v6526_v25 = vmul.f32 -1.442695, %v6321_v39  ;;  %v6322_v26 = vadd.f32 %v6248_v23, %v11627_v47  ;;  %v6324_v2 = vadd.f32 %v6319_v56, %v11634_v18 }
0x239f   :  { %7764 = vpow2.f32 %v6526_v25  ;;  %v6527_v16 = vmul.f32 -1.442695, %v6322_v26  ;;  %v6528_v11 = vmul.f32 -1.442695, %v6324_v2 }
0x23a1   :  { %7766 = vpow2.f32 %v6527_v16 }
0x23a2   :  { %7768 = vpow2.f32 %v6528_v11 }
0x23ac   :  { %v7765_v38 = vpop.eup %7764 }
0x23ad   :  { %v6328_v50 = vadd.f32 1.0, %v7765_v38 }
0x23ae   :  { %v7767_v44 = vpop.eup %7766 }
0x23af   :  { %7770 = vrcp.f32 %v6328_v50  ;;  %v6334_v4 = vadd.f32 1.0, %v7767_v44  ;;  %v7769_v47 = vpop.eup %7768 }
0x23b0   :  { %7772 = vtanh.f32 %v6323_v35  ;;  %v6341_v29 = vadd.f32 1.0, %v7769_v47 }
0x23b1   :  { %7774 = vrcp.f32 %v6334_v4 }
0x23b2   :  { %7776 = vrcp.f32 %v6341_v29 }
0x23bc   :  { %v7771_v1 = vpop.eup %7770 }
0x23bd   :  { %v7773_v33 = vpop.eup %7772 }
0x23be   :  { %v7775_v54 = vpop.eup %7774  ;;  %v6345_v30 = vmul.f32 %v7773_v33, %v7771_v1 }
0x23bf   :  { %v6344_v18 = vmul.f32 %v7775_v54, %v6036_v32  ;;  %v7777_v45 = vpop.eup %7776 }
0x23c1   :  { %v6346_v10 = vadd.f32 %v6345_v30, %v6344_v18 }
0x23c3   :  { %6431 = vst [vmem:[#allocation3] sm:$0xff] %v6346_v10  ;;  %7778 = vtanh.f32 %v6346_v10 }
0x23d0   :  { %v7779_v40 = vpop.eup %7778 }
0x23d1   :  { %v6348_v53 = vmul.f32 %v7779_v40, %v7777_v45 }
0x23d3   :  { %7255 = vmatmul.mubr.f32.vlgmr.msra.gmra.mxu0 %v6348_v53  ;;  %6430 = vst [vmem:[#allocation2] sm:$0xff] %v6348_v53 }
0x2493   :  { %v6415_v57 = vpop.f32.mrf.mxu0 }
0x2494   :  { %v6416_v61 = vadd.f32 %v15195_v60, %v6415_v57 }
0x2495   :  { %v7256_v37 = vpop.f32.mrf.mxu0 }
0x2496   :  { %6420 = vst [vmem:[#allocation13 + $0x38] sm:$0xff] %v6416_v61  ;;  %6421 = vmax.xlane.f32.xlu0 %v6416_v61 }
0x251f   :  { %v6422_v22 = vpop.xlane.xlu0 %6421 }
0x2520   :  { %vm6423_vm1 = vcmp.eq.f32.partialorder %v6416_v61, %v6422_v22 }
0x2521   :  { %v6424_v13 = vsel %vm6423_vm1, %v15196_v19, 128.0 }
0x2522   :  { %6425 = vmin.xlane.f32.xlu0 %v6424_v13 }
0x2523   :  { %7843 = shalt.err (!%p7840_p5)
}
0x2524   :  { %s7882_s2 = smov 128   ;;  %s7883_s26 = smov 8  }
0x2525   :  { %6443 = dma.vmem_to_hbm [thread:$0]  %s6438_s24, 1024, %s13012_s12, [#allocation10], %s7882_s2, %s7882_s2, %s7883_s26  }
0x25ab   :  { %v6426_v59 = vpop.xlane.xlu0 %6425 }
0x25ac   :  { %vm6427_vm5 = vcmp.eq.f32.partialorder %v15196_v19, %v6426_v59 }
0x25ad   :  { %v6428_v62 = vsel %vm6427_vm5, 1.0, %v15113_v63 }
0x25ae   :  { %6429 = vst [vmem:[#allocation4] sm:$0xff] %v6428_v62 }
0x25af   :  { %7858 = dma.done.wait [#allocation10], 1024  }
0x25b0   :  { %7859 = vsyncadd [#allocation10], 4294966272 }
0x25b1   :  { %6447 = vsyncpa [#allocation9], 1 }
0x25b2   :  { %6448 = vsyncpa [#allocation12], 1 }
0x25b3   :  { %6449 = vsyncpa [#allocation10], 1 }

</bundles_post_ra>
